<compile_context>
chip_gen: v7x
topology: tpu7x:2x2x1
jax: 0.10.0
libtpu: 0.0.40
codegen_flags: <defaults>
</compile_context>

<pallas_src>
import jax
import jax.numpy as jnp
from jax import lax
from jax.experimental import pallas as pl
from jax.experimental.pallas import tpu as pltpu

# ---- problem constants (fixed by the PyTorch module / its hard-coded resize_) ----
N, H, W = 50, 30, 6            # batch, conv spatial dims
C = 32                         # conv output channels
PH, PW = 14, 2                 # MaxPool2d(kernel=3, stride=2) output spatial dims
FLAT = C * PH * PW             # 896
FC1_OUT, FC2_OUT = 50, 30
FC_PAD = 128                   # fc1 / fc2 widths zero-padded to one full lane tile
WC = W * C                     # 192 conv-output lanes, layout [w (6), c (32)]
WP = W + 2                     # 8  zero-padded input width
HB = H + 2                     # 32 conv rows computed per sample (rows 0..29 valid)
HPAD = H + 4                   # 34 host-padded input rows (1 top, 3 bottom)
K_IM2COL = 3 * WP              # 24 row-im2col taps
NB = 64                        # batch padded for the 2-way batch-parallel grid
NB2 = NB // 2                  # 32 samples per grid step / TensorCore


# -------------------------- fused Pallas kernel ------------------------------

def fused_forward_kernel(x3_ref, m_ref, bt_ref, w1_ref, b1_ref, w2_ref, b2_ref,
                         out_ref, hm_ref):
    """conv(1->32,3x3,p=1) + ReLU + maxpool(3,2) + flatten + fc1 + fc2 for one
    batch half (NB2 samples).

    x3_ref : (NB2*HB, 24)   row-im2col input: x3[n*32+h, dh*8+wp] = x_pad[n, h+dh, wp]
    m_ref  : (24, 192)      conv-as-matmul: m[dh*8+wp, w*32+c] = W[c,dh,wp-w] (0 outside)
    bt_ref : (1, 192)       conv bias tiled over w
    w1_ref : (896, 128)     fc1 weights, rows in [ph, pw, c] order, cols padded 50->128
    b1_ref : (1, 128)
    w2_ref : (128, 128)     fc2 weights, rows/cols zero-padded
    b2_ref : (1, 128)
    out_ref: (NB2, 128)
    hm_ref : (NB2, 32, 64)  VMEM scratch: 3-row height max for every conv row
    """
    # ---- conv + ReLU: one MXU matmul, output lanes = [w (6) x c (32)] ----
    cw = jnp.dot(x3_ref[...], m_ref[...], preferred_element_type=jnp.float32)
    cw = jnp.maximum(cw + bt_ref[...], 0.0)                 # (NB2*32, 192)

    # ---- width pooling: windows w in {0,1,2} and {2,3,4} (col 5 dropped) ----
    pw0 = jnp.maximum(jnp.maximum(cw[:, 0:32],  cw[:, 32:64]),  cw[:, 64:96])
    pw1 = jnp.maximum(jnp.maximum(cw[:, 64:96], cw[:, 96:128]), cw[:, 128:160])
    wpool = jnp.concatenate([pw0, pw1], axis=1)             # (NB2*32, 64) = [pw, c]

    # ---- height pooling, vectorized: rowmax[r] = max(wp[r], wp[r+1], wp[r+2]) ----
    s1 = jnp.concatenate([wpool[1:, :], jnp.zeros((1, 2 * C), jnp.float32)], axis=0)
    s2 = jnp.concatenate([wpool[2:, :], jnp.zeros((2, 2 * C), jnp.float32)], axis=0)
    hmax = jnp.maximum(jnp.maximum(wpool, s1), s2)          # (NB2*32, 64)
    # (NB2*32, 64) -> (NB2, 32, 64): 32 | sublane tile, so this split is layout-preserving.
    hm_ref[...] = hmax.reshape(NB2, HB, 2 * C)

    # ---- fc1: 14 accumulating matmuls over the stride-2 pooled rows (h = 2*ph) ----
    acc = jnp.zeros((NB2, FC_PAD), jnp.float32)
    for ph in range(PH):
        lhs = hm_ref[:, 2 * ph, :]                          # (NB2, 64)
        acc = acc + jnp.dot(lhs, w1_ref[64 * ph:64 * (ph + 1), :],
                            preferred_element_type=jnp.float32)
    h1 = acc + b1_ref[...]                                  # (NB2, 128)

    # ---- fc2 (no nonlinearity between fc1/fc2, matching the PyTorch forward) ----
    out_ref[...] = jnp.dot(h1, w2_ref[...],
                           preferred_element_type=jnp.float32) + b2_ref[...]


def fused_forward(x3, m, bt, w1, b1, w2, b2):
    return pl.pallas_call(
        fused_forward_kernel,
        out_shape=jax.ShapeDtypeStruct((NB, FC_PAD), jnp.float32),
        grid=(2,),
        in_specs=[
            pl.BlockSpec((NB2 * HB, K_IM2COL), lambda i: (i, 0)),
            pl.BlockSpec((K_IM2COL, WC), lambda i: (0, 0)),
            pl.BlockSpec((1, WC), lambda i: (0, 0)),
            pl.BlockSpec((FLAT, FC_PAD), lambda i: (0, 0)),
            pl.BlockSpec((1, FC_PAD), lambda i: (0, 0)),
            pl.BlockSpec((FC_PAD, FC_PAD), lambda i: (0, 0)),
            pl.BlockSpec((1, FC_PAD), lambda i: (0, 0)),
        ],
        out_specs=pl.BlockSpec((NB2, FC_PAD), lambda i: (i, 0)),
        scratch_shapes=[pltpu.VMEM((NB2, HB, 2 * C), jnp.float32)],
        compiler_params=pltpu.CompilerParams(
            dimension_semantics=("parallel",)),
    )(x3, m, bt, w1, b1, w2, b2)


# -------------------------- host-level forward -------------------------------

@jax.jit
def convnet_forward(x, params):
    # x.resize_((50, 1, 30, 6)): same element count, so this is a pure row-major reshape.
    # TODO(synk): the in-place .resize_ aliasing of the caller's tensor is not modeled.
    x = x.reshape(N, 1, H, W).astype(jnp.float32)
    # zero-pad: 1 row top / 3 rows bottom (conv pad + 2 overrun rows for the unused
    # h=30,31 slots), 1 col each side; batch padded 50 -> 64 for the 2-way grid.
    xp = jnp.pad(x[:, 0], ((0, NB - N), (1, 3), (1, 1)))             # (64, 34, 8)
    # tiny row-im2col: x3[n, h, dh*8 + wp] = xp[n, h + dh, wp], h = 0..31  (~200 KB)
    x3 = jnp.concatenate([xp[:, 0:HB], xp[:, 1:HB + 1], xp[:, 2:HB + 2]], axis=-1)
    x3 = x3.reshape(NB * HB, K_IM2COL)                               # (2048, 24)
    out = fused_forward(x3, params["conv_m"], params["conv_bt"],
                        params["fc1_w"], params["fc1_b"],
                        params["fc2_w"], params["fc2_b"])
    return out[:N, :FC2_OUT]


# -------------------------- deterministic params ----------------------------

def init_params(key):
    ks = jax.random.split(key, 6)
    conv_w = jax.random.normal(ks[0], (C, 1, 3, 3), jnp.float32) * 0.1
    conv_b = jax.random.normal(ks[1], (C,), jnp.float32) * 0.1
    fc1_w = jax.random.normal(ks[2], (FC1_OUT, FLAT), jnp.float32) * 0.05
    fc1_b = jax.random.normal(ks[3], (FC1_OUT,), jnp.float32) * 0.05
    fc2_w = jax.random.normal(ks[4], (FC2_OUT, FC1_OUT), jnp.float32) * 0.05
    fc2_b = jax.random.normal(ks[5], (FC2_OUT,), jnp.float32) * 0.05

    # conv-as-matmul operator: m[dh*8 + wp, w*32 + c] = conv_w[c, 0, dh, wp - w]
    # (zero when wp - w is outside the 3-tap window).
    taps = jnp.transpose(conv_w[:, 0], (1, 2, 0))            # (3, 3, C): [dh, dw, c]
    m = jnp.zeros((3, WP, W, C), jnp.float32)
    for dw in range(3):
        for w in range(W):
            m = m.at[:, w + dw, w, :].set(taps[:, dw, :])
    conv_m = m.reshape(K_IM2COL, WC)                         # (24, 192)
    conv_bt = jnp.tile(conv_b, W).reshape(1, WC)             # (1, 192)

    # fc1: permute rows from PyTorch's NCHW flatten order (c, ph, pw) to the kernel's
    # (ph, pw, c) order; zero-pad columns 50 -> 128.
    w1p = (fc1_w.T.reshape(C, PH, PW, FC1_OUT)
                 .transpose(1, 2, 0, 3)
                 .reshape(FLAT, FC1_OUT))
    fc1_w_k = jnp.pad(w1p, ((0, 0), (0, FC_PAD - FC1_OUT)))
    fc1_b_k = jnp.pad(fc1_b.reshape(1, FC1_OUT), ((0, 0), (0, FC_PAD - FC1_OUT)))
    # fc2: rows zero-padded 50 -> 128, cols zero-padded 30 -> 128 (lane-dense output).
    fc2_w_k = jnp.pad(fc2_w.T, ((0, FC_PAD - FC1_OUT), (0, FC_PAD - FC2_OUT)))
    fc2_b_k = jnp.pad(fc2_b.reshape(1, FC2_OUT), ((0, 0), (0, FC_PAD - FC2_OUT)))

    return {
        "conv_m": conv_m, "conv_bt": conv_bt,
        "fc1_w": fc1_w_k, "fc1_b": fc1_b_k,
        "fc2_w": fc2_w_k, "fc2_b": fc2_b_k,
        # raw PyTorch-layout weights kept (unpermuted) for the pure-JAX reference check
        "_conv_w_nchw": conv_w, "_conv_b_raw": conv_b,
        "_fc1_w_raw": fc1_w, "_fc1_b_raw": fc1_b,
        "_fc2_w_raw": fc2_w, "_fc2_b_raw": fc2_b,
    }


def reference_forward(x, params):
    """Pure-JAX reference (same math as the PyTorch module)."""
    x = x.reshape(N, 1, H, W).astype(jnp.float32)
    conv = lax.conv_general_dilated(
        x, params["_conv_w_nchw"], window_strides=(1, 1),
        padding=((1, 1), (1, 1)),
        dimension_numbers=("NCHW", "OIHW", "NCHW"))
    conv = jnp.maximum(conv + params["_conv_b_raw"].reshape(1, C, 1, 1), 0.0)
    pooled = lax.reduce_window(conv, -jnp.inf, lax.max,
                               (1, 1, 3, 3), (1, 1, 2, 2), "VALID")
    flat = pooled.reshape(N, FLAT)
    h = flat @ params["_fc1_w_raw"].T + params["_fc1_b_raw"]
    return h @ params["_fc2_w_raw"].T + params["_fc2_b_raw"]


# -------------------------- main --------------------------------------------

if __name__ == "__main__":
    key = jax.random.PRNGKey(0)
    k_x, k_p = jax.random.split(key)
    x = jax.random.normal(k_x, (N, 1, H, W), jnp.float32)   # 50*1*30*6 elements
    params = init_params(k_p)

    out = jax.block_until_ready(convnet_forward(x, params))
    assert out.shape == (N, FC2_OUT), out.shape

    ref = jax.block_until_ready(reference_forward(x, params))
    err = float(jnp.max(jnp.abs(out - ref)))
    assert jnp.allclose(out, ref, rtol=1e-3, atol=1e-3), err

    print("KERNEL_OK")
</pallas_src>

<mosaic_0001>
module attributes {stable_mosaic.version = 11 : i64} {
  func.func @fused_forward_kernel(%arg0: i32, %arg1: memref<1024x24xf32, #tpu.memory_space<vmem>>, %arg2: memref<24x192xf32, #tpu.memory_space<vmem>>, %arg3: memref<1x192xf32, #tpu.memory_space<vmem>>, %arg4: memref<896x128xf32, #tpu.memory_space<vmem>>, %arg5: memref<1x128xf32, #tpu.memory_space<vmem>>, %arg6: memref<128x128xf32, #tpu.memory_space<vmem>>, %arg7: memref<1x128xf32, #tpu.memory_space<vmem>>, %arg8: memref<32x128xf32, #tpu.memory_space<vmem>>, %arg9: memref<32x32x64xf32, #tpu.memory_space<vmem>>) attributes {dimension_semantics = [#tpu.dimension_semantics<parallel>], iteration_bounds = array<i64: 2>, scalar_prefetch = 0 : i64, scratch_operands = 1 : i64, tpu.core_type = #tpu.core_type<tc>, window_params = [{transform_indices = @transform_0, window_bounds = array<i64: 1024, 24>}, {pipeline_mode = #tpu.pipeline_mode<synchronous>, transform_indices = @transform_1, window_bounds = array<i64: 24, 192>}, {pipeline_mode = #tpu.pipeline_mode<synchronous>, transform_indices = @transform_2, window_bounds = array<i64: 1, 192>}, {pipeline_mode = #tpu.pipeline_mode<synchronous>, transform_indices = @transform_3, window_bounds = array<i64: 896, 128>}, {pipeline_mode = #tpu.pipeline_mode<synchronous>, transform_indices = @transform_4, window_bounds = array<i64: 1, 128>}, {pipeline_mode = #tpu.pipeline_mode<synchronous>, transform_indices = @transform_5, window_bounds = array<i64: 128, 128>}, {pipeline_mode = #tpu.pipeline_mode<synchronous>, transform_indices = @transform_6, window_bounds = array<i64: 1, 128>}, {transform_indices = @transform_7, window_bounds = array<i64: 32, 128>}]} {
    %c0 = arith.constant 0 : index
    %c0_0 = arith.constant 0 : index
    %0 = vector.load %arg1[%c0, %c0_0] : memref<1024x24xf32, #tpu.memory_space<vmem>>, vector<1024x24xf32>
    %c0_1 = arith.constant 0 : index
    %c0_2 = arith.constant 0 : index
    %1 = vector.load %arg2[%c0_1, %c0_2] : memref<24x192xf32, #tpu.memory_space<vmem>>, vector<24x192xf32>
    %cst = arith.constant dense<0.000000e+00> : vector<1024x192xf32>
    %2 = tpu.matmul %0, %1, %cst {dimension_numbers = #tpu.dot_dimension_numbers<[1], [0], [0], [1], [0, 0, 1, 1], [], []>} : vector<1024x24xf32>, vector<24x192xf32>, vector<1024x192xf32> -> vector<1024x192xf32>
    %c0_3 = arith.constant 0 : index
    %c0_4 = arith.constant 0 : index
    %3 = vector.load %arg3[%c0_3, %c0_4] : memref<1x192xf32, #tpu.memory_space<vmem>>, vector<1x192xf32>
    %4 = vector.broadcast %3 : vector<1x192xf32> to vector<1024x192xf32>
    %5 = arith.addf %2, %4 : vector<1024x192xf32>
    %cst_5 = arith.constant 0.000000e+00 : f32
    %6 = vector.broadcast %cst_5 : f32 to vector<1024x192xf32>
    %7 = arith.maximumf %5, %6 : vector<1024x192xf32>
    %8 = vector.extract_strided_slice %7 {offsets = [0, 0], sizes = [1024, 32], strides = [1, 1]} : vector<1024x192xf32> to vector<1024x32xf32>
    %9 = vector.extract_strided_slice %7 {offsets = [0, 32], sizes = [1024, 32], strides = [1, 1]} : vector<1024x192xf32> to vector<1024x32xf32>
    %10 = arith.maximumf %8, %9 : vector<1024x32xf32>
    %11 = vector.extract_strided_slice %7 {offsets = [0, 64], sizes = [1024, 32], strides = [1, 1]} : vector<1024x192xf32> to vector<1024x32xf32>
    %12 = arith.maximumf %10, %11 : vector<1024x32xf32>
    %13 = vector.extract_strided_slice %7 {offsets = [0, 64], sizes = [1024, 32], strides = [1, 1]} : vector<1024x192xf32> to vector<1024x32xf32>
    %14 = vector.extract_strided_slice %7 {offsets = [0, 96], sizes = [1024, 32], strides = [1, 1]} : vector<1024x192xf32> to vector<1024x32xf32>
    %15 = arith.maximumf %13, %14 : vector<1024x32xf32>
    %16 = vector.extract_strided_slice %7 {offsets = [0, 128], sizes = [1024, 32], strides = [1, 1]} : vector<1024x192xf32> to vector<1024x32xf32>
    %17 = arith.maximumf %15, %16 : vector<1024x32xf32>
    %18 = tpu.concatenate %12, %17 in 1 : vector<1024x32xf32>, vector<1024x32xf32> -> vector<1024x64xf32>
    %19 = vector.extract_strided_slice %18 {offsets = [1, 0], sizes = [1023, 64], strides = [1, 1]} : vector<1024x64xf32> to vector<1023x64xf32>
    %cst_6 = arith.constant 0.000000e+00 : f32
    %20 = vector.broadcast %cst_6 : f32 to vector<1x64xf32>
    %21 = tpu.concatenate %19, %20 in 0 : vector<1023x64xf32>, vector<1x64xf32> -> vector<1024x64xf32>
    %22 = vector.extract_strided_slice %18 {offsets = [2, 0], sizes = [1022, 64], strides = [1, 1]} : vector<1024x64xf32> to vector<1022x64xf32>
    %cst_7 = arith.constant 0.000000e+00 : f32
    %23 = vector.broadcast %cst_7 : f32 to vector<2x64xf32>
    %24 = tpu.concatenate %22, %23 in 0 : vector<1022x64xf32>, vector<2x64xf32> -> vector<1024x64xf32>
    %25 = arith.maximumf %18, %21 : vector<1024x64xf32>
    %26 = arith.maximumf %25, %24 : vector<1024x64xf32>
    %27 = vector.shape_cast %26 : vector<1024x64xf32> to vector<32x32x64xf32>
    %c0_8 = arith.constant 0 : index
    %c0_9 = arith.constant 0 : index
    %c0_10 = arith.constant 0 : index
    %28 = vector.load %arg9[%c0_8, %c0_9, %c0_10] : memref<32x32x64xf32, #tpu.memory_space<vmem>>, vector<32x32x64xf32>
    tpu.vector_store %arg9[%c0_8, %c0_9, %c0_10], %27 {strides = array<i32>} : memref<32x32x64xf32, #tpu.memory_space<vmem>>, vector<32x32x64xf32>,
    %cst_11 = arith.constant 0.000000e+00 : f32
    %29 = vector.broadcast %cst_11 : f32 to vector<32x128xf32>
    %c0_12 = arith.constant 0 : index
    %c0_13 = arith.constant 0 : index
    %c0_14 = arith.constant 0 : index
    %30 = vector.load %arg9[%c0_12, %c0_13, %c0_14] : memref<32x32x64xf32, #tpu.memory_space<vmem>>, vector<32x1x64xf32>
    %31 = vector.shape_cast %30 : vector<32x1x64xf32> to vector<32x64xf32>
    %c0_15 = arith.constant 0 : index
    %c0_16 = arith.constant 0 : index
    %32 = vector.load %arg4[%c0_15, %c0_16] : memref<896x128xf32, #tpu.memory_space<vmem>>, vector<64x128xf32>
    %cst_17 = arith.constant dense<0.000000e+00> : vector<32x128xf32>
    %33 = tpu.matmul %31, %32, %cst_17 {dimension_numbers = #tpu.dot_dimension_numbers<[1], [0], [0], [1], [0, 0, 1, 1], [], []>} : vector<32x64xf32>, vector<64x128xf32>, vector<32x128xf32> -> vector<32x128xf32>
    %34 = arith.addf %29, %33 : vector<32x128xf32>
    %c0_18 = arith.constant 0 : index
    %c2 = arith.constant 2 : index
    %c0_19 = arith.constant 0 : index
    %35 = vector.load %arg9[%c0_18, %c2, %c0_19] : memref<32x32x64xf32, #tpu.memory_space<vmem>>, vector<32x1x64xf32>
    %36 = vector.shape_cast %35 : vector<32x1x64xf32> to vector<32x64xf32>
    %c64 = arith.constant 64 : index
    %c0_20 = arith.constant 0 : index
    %37 = vector.load %arg4[%c64, %c0_20] : memref<896x128xf32, #tpu.memory_space<vmem>>, vector<64x128xf32>
    %cst_21 = arith.constant dense<0.000000e+00> : vector<32x128xf32>
    %38 = tpu.matmul %36, %37, %cst_21 {dimension_numbers = #tpu.dot_dimension_numbers<[1], [0], [0], [1], [0, 0, 1, 1], [], []>} : vector<32x64xf32>, vector<64x128xf32>, vector<32x128xf32> -> vector<32x128xf32>
    %39 = arith.addf %34, %38 : vector<32x128xf32>
    %c0_22 = arith.constant 0 : index
    %c4 = arith.constant 4 : index
    %c0_23 = arith.constant 0 : index
    %40 = vector.load %arg9[%c0_22, %c4, %c0_23] : memref<32x32x64xf32, #tpu.memory_space<vmem>>, vector<32x1x64xf32>
    %41 = vector.shape_cast %40 : vector<32x1x64xf32> to vector<32x64xf32>
    %c128 = arith.constant 128 : index
    %c0_24 = arith.constant 0 : index
    %42 = vector.load %arg4[%c128, %c0_24] : memref<896x128xf32, #tpu.memory_space<vmem>>, vector<64x128xf32>
    %cst_25 = arith.constant dense<0.000000e+00> : vector<32x128xf32>
    %43 = tpu.matmul %41, %42, %cst_25 {dimension_numbers = #tpu.dot_dimension_numbers<[1], [0], [0], [1], [0, 0, 1, 1], [], []>} : vector<32x64xf32>, vector<64x128xf32>, vector<32x128xf32> -> vector<32x128xf32>
    %44 = arith.addf %39, %43 : vector<32x128xf32>
    %c0_26 = arith.constant 0 : index
    %c6 = arith.constant 6 : index
    %c0_27 = arith.constant 0 : index
    %45 = vector.load %arg9[%c0_26, %c6, %c0_27] : memref<32x32x64xf32, #tpu.memory_space<vmem>>, vector<32x1x64xf32>
    %46 = vector.shape_cast %45 : vector<32x1x64xf32> to vector<32x64xf32>
    %c192 = arith.constant 192 : index
    %c0_28 = arith.constant 0 : index
    %47 = vector.load %arg4[%c192, %c0_28] : memref<896x128xf32, #tpu.memory_space<vmem>>, vector<64x128xf32>
    %cst_29 = arith.constant dense<0.000000e+00> : vector<32x128xf32>
    %48 = tpu.matmul %46, %47, %cst_29 {dimension_numbers = #tpu.dot_dimension_numbers<[1], [0], [0], [1], [0, 0, 1, 1], [], []>} : vector<32x64xf32>, vector<64x128xf32>, vector<32x128xf32> -> vector<32x128xf32>
    %49 = arith.addf %44, %48 : vector<32x128xf32>
    %c0_30 = arith.constant 0 : index
    %c8 = arith.constant 8 : index
    %c0_31 = arith.constant 0 : index
    %50 = vector.load %arg9[%c0_30, %c8, %c0_31] : memref<32x32x64xf32, #tpu.memory_space<vmem>>, vector<32x1x64xf32>
    %51 = vector.shape_cast %50 : vector<32x1x64xf32> to vector<32x64xf32>
    %c256 = arith.constant 256 : index
    %c0_32 = arith.constant 0 : index
    %52 = vector.load %arg4[%c256, %c0_32] : memref<896x128xf32, #tpu.memory_space<vmem>>, vector<64x128xf32>
    %cst_33 = arith.constant dense<0.000000e+00> : vector<32x128xf32>
    %53 = tpu.matmul %51, %52, %cst_33 {dimension_numbers = #tpu.dot_dimension_numbers<[1], [0], [0], [1], [0, 0, 1, 1], [], []>} : vector<32x64xf32>, vector<64x128xf32>, vector<32x128xf32> -> vector<32x128xf32>
    %54 = arith.addf %49, %53 : vector<32x128xf32>
    %c0_34 = arith.constant 0 : index
    %c10 = arith.constant 10 : index
    %c0_35 = arith.constant 0 : index
    %55 = vector.load %arg9[%c0_34, %c10, %c0_35] : memref<32x32x64xf32, #tpu.memory_space<vmem>>, vector<32x1x64xf32>
    %56 = vector.shape_cast %55 : vector<32x1x64xf32> to vector<32x64xf32>
    %c320 = arith.constant 320 : index
    %c0_36 = arith.constant 0 : index
    %57 = vector.load %arg4[%c320, %c0_36] : memref<896x128xf32, #tpu.memory_space<vmem>>, vector<64x128xf32>
    %cst_37 = arith.constant dense<0.000000e+00> : vector<32x128xf32>
    %58 = tpu.matmul %56, %57, %cst_37 {dimension_numbers = #tpu.dot_dimension_numbers<[1], [0], [0], [1], [0, 0, 1, 1], [], []>} : vector<32x64xf32>, vector<64x128xf32>, vector<32x128xf32> -> vector<32x128xf32>
    %59 = arith.addf %54, %58 : vector<32x128xf32>
    %c0_38 = arith.constant 0 : index
    %c12 = arith.constant 12 : index
    %c0_39 = arith.constant 0 : index
    %60 = vector.load %arg9[%c0_38, %c12, %c0_39] : memref<32x32x64xf32, #tpu.memory_space<vmem>>, vector<32x1x64xf32>
    %61 = vector.shape_cast %60 : vector<32x1x64xf32> to vector<32x64xf32>
    %c384 = arith.constant 384 : index
    %c0_40 = arith.constant 0 : index
    %62 = vector.load %arg4[%c384, %c0_40] : memref<896x128xf32, #tpu.memory_space<vmem>>, vector<64x128xf32>
    %cst_41 = arith.constant dense<0.000000e+00> : vector<32x128xf32>
    %63 = tpu.matmul %61, %62, %cst_41 {dimension_numbers = #tpu.dot_dimension_numbers<[1], [0], [0], [1], [0, 0, 1, 1], [], []>} : vector<32x64xf32>, vector<64x128xf32>, vector<32x128xf32> -> vector<32x128xf32>
    %64 = arith.addf %59, %63 : vector<32x128xf32>
    %c0_42 = arith.constant 0 : index
    %c14 = arith.constant 14 : index
    %c0_43 = arith.constant 0 : index
    %65 = vector.load %arg9[%c0_42, %c14, %c0_43] : memref<32x32x64xf32, #tpu.memory_space<vmem>>, vector<32x1x64xf32>
    %66 = vector.shape_cast %65 : vector<32x1x64xf32> to vector<32x64xf32>
    %c448 = arith.constant 448 : index
    %c0_44 = arith.constant 0 : index
    %67 = vector.load %arg4[%c448, %c0_44] : memref<896x128xf32, #tpu.memory_space<vmem>>, vector<64x128xf32>
    %cst_45 = arith.constant dense<0.000000e+00> : vector<32x128xf32>
    %68 = tpu.matmul %66, %67, %cst_45 {dimension_numbers = #tpu.dot_dimension_numbers<[1], [0], [0], [1], [0, 0, 1, 1], [], []>} : vector<32x64xf32>, vector<64x128xf32>, vector<32x128xf32> -> vector<32x128xf32>
    %69 = arith.addf %64, %68 : vector<32x128xf32>
    %c0_46 = arith.constant 0 : index
    %c16 = arith.constant 16 : index
    %c0_47 = arith.constant 0 : index
    %70 = vector.load %arg9[%c0_46, %c16, %c0_47] : memref<32x32x64xf32, #tpu.memory_space<vmem>>, vector<32x1x64xf32>
    %71 = vector.shape_cast %70 : vector<32x1x64xf32> to vector<32x64xf32>
    %c512 = arith.constant 512 : index
    %c0_48 = arith.constant 0 : index
    %72 = vector.load %arg4[%c512, %c0_48] : memref<896x128xf32, #tpu.memory_space<vmem>>, vector<64x128xf32>
    %cst_49 = arith.constant dense<0.000000e+00> : vector<32x128xf32>
    %73 = tpu.matmul %71, %72, %cst_49 {dimension_numbers = #tpu.dot_dimension_numbers<[1], [0], [0], [1], [0, 0, 1, 1], [], []>} : vector<32x64xf32>, vector<64x128xf32>, vector<32x128xf32> -> vector<32x128xf32>
    %74 = arith.addf %69, %73 : vector<32x128xf32>
    %c0_50 = arith.constant 0 : index
    %c18 = arith.constant 18 : index
    %c0_51 = arith.constant 0 : index
    %75 = vector.load %arg9[%c0_50, %c18, %c0_51] : memref<32x32x64xf32, #tpu.memory_space<vmem>>, vector<32x1x64xf32>
    %76 = vector.shape_cast %75 : vector<32x1x64xf32> to vector<32x64xf32>
    %c576 = arith.constant 576 : index
    %c0_52 = arith.constant 0 : index
    %77 = vector.load %arg4[%c576, %c0_52] : memref<896x128xf32, #tpu.memory_space<vmem>>, vector<64x128xf32>
    %cst_53 = arith.constant dense<0.000000e+00> : vector<32x128xf32>
    %78 = tpu.matmul %76, %77, %cst_53 {dimension_numbers = #tpu.dot_dimension_numbers<[1], [0], [0], [1], [0, 0, 1, 1], [], []>} : vector<32x64xf32>, vector<64x128xf32>, vector<32x128xf32> -> vector<32x128xf32>
    %79 = arith.addf %74, %78 : vector<32x128xf32>
    %c0_54 = arith.constant 0 : index
    %c20 = arith.constant 20 : index
    %c0_55 = arith.constant 0 : index
    %80 = vector.load %arg9[%c0_54, %c20, %c0_55] : memref<32x32x64xf32, #tpu.memory_space<vmem>>, vector<32x1x64xf32>
    %81 = vector.shape_cast %80 : vector<32x1x64xf32> to vector<32x64xf32>
    %c640 = arith.constant 640 : index
    %c0_56 = arith.constant 0 : index
    %82 = vector.load %arg4[%c640, %c0_56] : memref<896x128xf32, #tpu.memory_space<vmem>>, vector<64x128xf32>
    %cst_57 = arith.constant dense<0.000000e+00> : vector<32x128xf32>
    %83 = tpu.matmul %81, %82, %cst_57 {dimension_numbers = #tpu.dot_dimension_numbers<[1], [0], [0], [1], [0, 0, 1, 1], [], []>} : vector<32x64xf32>, vector<64x128xf32>, vector<32x128xf32> -> vector<32x128xf32>
    %84 = arith.addf %79, %83 : vector<32x128xf32>
    %c0_58 = arith.constant 0 : index
    %c22 = arith.constant 22 : index
    %c0_59 = arith.constant 0 : index
    %85 = vector.load %arg9[%c0_58, %c22, %c0_59] : memref<32x32x64xf32, #tpu.memory_space<vmem>>, vector<32x1x64xf32>
    %86 = vector.shape_cast %85 : vector<32x1x64xf32> to vector<32x64xf32>
    %c704 = arith.constant 704 : index
    %c0_60 = arith.constant 0 : index
    %87 = vector.load %arg4[%c704, %c0_60] : memref<896x128xf32, #tpu.memory_space<vmem>>, vector<64x128xf32>
    %cst_61 = arith.constant dense<0.000000e+00> : vector<32x128xf32>
    %88 = tpu.matmul %86, %87, %cst_61 {dimension_numbers = #tpu.dot_dimension_numbers<[1], [0], [0], [1], [0, 0, 1, 1], [], []>} : vector<32x64xf32>, vector<64x128xf32>, vector<32x128xf32> -> vector<32x128xf32>
    %89 = arith.addf %84, %88 : vector<32x128xf32>
    %c0_62 = arith.constant 0 : index
    %c24 = arith.constant 24 : index
    %c0_63 = arith.constant 0 : index
    %90 = vector.load %arg9[%c0_62, %c24, %c0_63] : memref<32x32x64xf32, #tpu.memory_space<vmem>>, vector<32x1x64xf32>
    %91 = vector.shape_cast %90 : vector<32x1x64xf32> to vector<32x64xf32>
    %c768 = arith.constant 768 : index
    %c0_64 = arith.constant 0 : index
    %92 = vector.load %arg4[%c768, %c0_64] : memref<896x128xf32, #tpu.memory_space<vmem>>, vector<64x128xf32>
    %cst_65 = arith.constant dense<0.000000e+00> : vector<32x128xf32>
    %93 = tpu.matmul %91, %92, %cst_65 {dimension_numbers = #tpu.dot_dimension_numbers<[1], [0], [0], [1], [0, 0, 1, 1], [], []>} : vector<32x64xf32>, vector<64x128xf32>, vector<32x128xf32> -> vector<32x128xf32>
    %94 = arith.addf %89, %93 : vector<32x128xf32>
    %c0_66 = arith.constant 0 : index
    %c26 = arith.constant 26 : index
    %c0_67 = arith.constant 0 : index
    %95 = vector.load %arg9[%c0_66, %c26, %c0_67] : memref<32x32x64xf32, #tpu.memory_space<vmem>>, vector<32x1x64xf32>
    %96 = vector.shape_cast %95 : vector<32x1x64xf32> to vector<32x64xf32>
    %c832 = arith.constant 832 : index
    %c0_68 = arith.constant 0 : index
    %97 = vector.load %arg4[%c832, %c0_68] : memref<896x128xf32, #tpu.memory_space<vmem>>, vector<64x128xf32>
    %cst_69 = arith.constant dense<0.000000e+00> : vector<32x128xf32>
    %98 = tpu.matmul %96, %97, %cst_69 {dimension_numbers = #tpu.dot_dimension_numbers<[1], [0], [0], [1], [0, 0, 1, 1], [], []>} : vector<32x64xf32>, vector<64x128xf32>, vector<32x128xf32> -> vector<32x128xf32>
    %99 = arith.addf %94, %98 : vector<32x128xf32>
    %c0_70 = arith.constant 0 : index
    %c0_71 = arith.constant 0 : index
    %100 = vector.load %arg5[%c0_70, %c0_71] : memref<1x128xf32, #tpu.memory_space<vmem>>, vector<1x128xf32>
    %101 = vector.broadcast %100 : vector<1x128xf32> to vector<32x128xf32>
    %102 = arith.addf %99, %101 : vector<32x128xf32>
    %c0_72 = arith.constant 0 : index
    %c0_73 = arith.constant 0 : index
    %103 = vector.load %arg6[%c0_72, %c0_73] : memref<128x128xf32, #tpu.memory_space<vmem>>, vector<128x128xf32>
    %cst_74 = arith.constant dense<0.000000e+00> : vector<32x128xf32>
    %104 = tpu.matmul %102, %103, %cst_74 {dimension_numbers = #tpu.dot_dimension_numbers<[1], [0], [0], [1], [0, 0, 1, 1], [], []>} : vector<32x128xf32>, vector<128x128xf32>, vector<32x128xf32> -> vector<32x128xf32>
    %c0_75 = arith.constant 0 : index
    %c0_76 = arith.constant 0 : index
    %105 = vector.load %arg7[%c0_75, %c0_76] : memref<1x128xf32, #tpu.memory_space<vmem>>, vector<1x128xf32>
    %106 = vector.broadcast %105 : vector<1x128xf32> to vector<32x128xf32>
    %107 = arith.addf %104, %106 : vector<32x128xf32>
    %c0_77 = arith.constant 0 : index
    %c0_78 = arith.constant 0 : index
    %108 = vector.load %arg8[%c0_77, %c0_78] : memref<32x128xf32, #tpu.memory_space<vmem>>, vector<32x128xf32>
    tpu.vector_store %arg8[%c0_77, %c0_78], %107 {strides = array<i32>} : memref<32x128xf32, #tpu.memory_space<vmem>>, vector<32x128xf32>,
    return
  }
  func.func @transform_0(%arg0: i32) -> (i32, i32) {
    %c0_i32 = arith.constant 0 : i32
    %c0_i32_0 = arith.constant 0 : i32
    return %arg0, %c0_i32 : i32, i32
  }
  func.func @transform_1(%arg0: i32) -> (i32, i32) {
    %c0_i32 = arith.constant 0 : i32
    %c0_i32_0 = arith.constant 0 : i32
    %c0_i32_1 = arith.constant 0 : i32
    return %c0_i32, %c0_i32_0 : i32, i32
  }
  func.func @transform_2(%arg0: i32) -> (i32, i32) {
    %c0_i32 = arith.constant 0 : i32
    %c0_i32_0 = arith.constant 0 : i32
    %c0_i32_1 = arith.constant 0 : i32
    return %c0_i32, %c0_i32_0 : i32, i32
  }
  func.func @transform_3(%arg0: i32) -> (i32, i32) {
    %c0_i32 = arith.constant 0 : i32
    %c0_i32_0 = arith.constant 0 : i32
    %c0_i32_1 = arith.constant 0 : i32
    return %c0_i32, %c0_i32_0 : i32, i32
  }
  func.func @transform_4(%arg0: i32) -> (i32, i32) {
    %c0_i32 = arith.constant 0 : i32
    %c0_i32_0 = arith.constant 0 : i32
    %c0_i32_1 = arith.constant 0 : i32
    return %c0_i32, %c0_i32_0 : i32, i32
  }
  func.func @transform_5(%arg0: i32) -> (i32, i32) {
    %c0_i32 = arith.constant 0 : i32
    %c0_i32_0 = arith.constant 0 : i32
    %c0_i32_1 = arith.constant 0 : i32
    return %c0_i32, %c0_i32_0 : i32, i32
  }
  func.func @transform_6(%arg0: i32) -> (i32, i32) {
    %c0_i32 = arith.constant 0 : i32
    %c0_i32_0 = arith.constant 0 : i32
    %c0_i32_1 = arith.constant 0 : i32
    return %c0_i32, %c0_i32_0 : i32, i32
  }
  func.func @transform_7(%arg0: i32) -> (i32, i32) {
    %c0_i32 = arith.constant 0 : i32
    %c0_i32_0 = arith.constant 0 : i32
    return %arg0, %c0_i32 : i32, i32
  }
}

</mosaic_0001>

<bundles_post_ra>
// kernel: convnet_forward.1
= control target key start
LH: loop header
LB: loop body
LE: loop exit
PB: predicated region body
PF: predicated region fallthrough
CT: control target
= control target key end

     0   :  { %s10055_s24 = smov 0   ;;  %s17208_s0 = inlined_call_operand.vmem [shape: f32[2048,24], index: 0, kind: input, shape index: {}]   ;;  %s17209_s1 = inlined_call_operand.vmem [shape: f32[24,192], index: 1, kind: input, shape index: {}]   ;;  %s17210_s2 = inlined_call_operand.vmem [shape: f32[1,192], index: 2, kind: input, shape index: {}]   ;;  %s17211_s3 = inlined_call_operand.vmem [shape: f32[896,128], index: 3, kind: input, shape index: {}]   ;;  %s17212_s4 = inlined_call_operand.vmem [shape: f32[1,128], index: 4, kind: input, shape index: {}]   ;;  %s17213_s5 = inlined_call_operand.vmem [shape: f32[128,128], index: 5, kind: input, shape index: {}]   ;;  %s17214_s6 = inlined_call_operand.vmem [shape: f32[1,128], index: 6, kind: input, shape index: {}]   ;;  %s17215_s7 = inlined_call_operand.vmem [shape: f32[64,128], index: 7, kind: output, shape index: {}]  }
   0x1 LB: > { %s8946_s25 = sadd.s32 4294967295, %s10010_s24   ;;  %p8950_p0 = scmp.ge.s32.totalorder %s10010_s24, 1  ;;  %s10010_s24 = sphi %s10055_s24, %s17_s24  }
   0x2   : > { %p238_p1 = scmp.lt.s32.totalorder %s10010_s24, 3 }
   0x4   : > { %p239_p2 = pnand %p8950_p0, %p238_p1 }
   0x6   : > { %242 = sbr.rel (%p239_p2) target bundleno = 1960 (0x7a8), region = 48 }
   0xd   : > { %v411_v0 = vld [vmem:[%s17209_s1 + $0x8] sm:$0xff]  ;;  %v413_v1 = vld [vmem:[%s17209_s1 + $0x18] sm:$0xff]  ;;  %v410_v2 = vld [vmem:[%s17209_s1] sm:$0xff]  ;;  %s8951_s9 = sshll.u32 %s8946_s25, 7  ;;  %v17222_v5 = vmov 0.0   ;;  %vm428_vm0 = vcmask 195584  }
   0xe   : > { %v9677_v3 = vpack.c.bf16 %v413_v1, %v411_v0  ;;  %v412_v4 = vld [vmem:[%s17209_s1 + $0x10] sm:$0xff]  ;;  %877 = vmatprep.mubr.f32.mxu0 %v17222_v5  ;;  %1447 = vmatprep.mubr.f32.mxu1 %v17222_v5  ;;  %p271_p3 = scmp.lt.s32.totalorder %s8951_s9, 255  ;;  %v415_v7 = vld [vmem:[%s17209_s1 + $0x28] sm:$0xff]  ;;  %v414_v8 = vld [vmem:[%s17209_s1 + $0x20] sm:$0xff]  ;;  %s10013_s22 = smov 96   ;;  %vm4206_vm1 = vcmask 261120  }
   0xf   : > { %v9679_v6 = vpack.c.bf16 %v412_v4, %v410_v2  ;;  %s10014_s23 = smov 64   ;;  %vm4463_vm2 = vcmask 1046528   ;;  %vm4848_vm3 = vcmask 1045504   ;;  %vm5489_vm4 = vcmask 523264   ;;  %s8953_s20 = sshll.u32 %s8946_s25, 2 }
  0x10   : > { %9678 = vmatprep.subr.bf16.mxu0 %v9677_v3  ;;  %9937 = vmatprep.subr.bf16.mxu1 %v9677_v3  ;;  %s19062_s9 = smov (!%p271_p3, %s8951_s9), 255  ;;  %vm5731_vm5 = vcmask 1041409   ;;  %vm5734_vm6 = vcmask 1042434   ;;  %vm5737_vm7 = vcmask 1043459   ;;  %vm5740_vm8 = vcmask 1044484   ;;  %p277_p4 = scmp.lt.s32.totalorder %s8953_s20, 7 }
  0x11   : > { %9680 = vmatpush1.bf16.msra.mxu0 %v9679_v6  ;;  %9939 = vmatpush1.bf16.msra.mxu1 %v9679_v6  ;;  %s8952_s16 = sshll.u32 %s19062_s9, 3  ;;  %vm5743_vm9 = vcmask 1045509   ;;  %vm5746_vm10 = vcmask 1046534   ;;  %vm5749_vm11 = vcmask 1047559  }
  0x12   : > { %817 = vmatprep.subr.mxu0 %v415_v7  ;;  %9938 = vmatprep.subr.mxu1 %v415_v7  ;;  %s10088_s19 = scalar_lea.vmem %s17208_s0, %s8952_s16  ;;  %s19064_s20 = smov (!%p277_p4, %s8953_s20), 7 }
  0x13   : > { %v282_v9 = vld [vmem:[%s10088_s19] sm:$0xff]  ;;  %v377_v10 = vld [vmem:[%s10088_s19 + $0x2f8] sm:$0xff]  ;;  %v283_v11 = vld [vmem:[%s10088_s19 + $0x8] sm:$0xff]  ;;  %s8954_s21 = sshll.u32 %s19064_s20, 3 }
  0x14   : > { %v378_v12 = vld [vmem:[%s10088_s19 + $0x300] sm:$0xff]  ;;  %v379_v13 = vld [vmem:[%s10088_s19 + $0x308] sm:$0xff]  ;;  %v284_v14 = vld [vmem:[%s10088_s19 + $0x10] sm:$0xff]  ;;  %s280_s29 = scalar_lea.vmem %s17215_s7, %s8954_s21 }
  0x15   : > { %818 = vmatpush1.msra.mxu0 %v414_v8  ;;  %9940 = vmatpush1.msra.mxu1 %v414_v8  ;;  %v285_v15 = vld [vmem:[%s10088_s19 + $0x18] sm:$0xff]  ;;  %v380_v16 = vld [vmem:[%s10088_s19 + $0x310] sm:$0xff]  ;;  %v286_v18 = vld [vmem:[%s10088_s19 + $0x20] sm:$0xff] }
  0x16   : > { %8955 = vmatmul.mubr.msk.f32.vlgmr.msra.gmra.mrb[0].mxu0 %vm428_vm0, %v282_v9  ;;  %9050 = vmatmul.mubr.msk.f32.vlgmr.msra.gmra.mrb[0].mxu1 %vm428_vm0, %v377_v10  ;;  %v381_v17 = vld [vmem:[%s10088_s19 + $0x318] sm:$0xff]  ;;  %v382_v19 = vld [vmem:[%s10088_s19 + $0x320] sm:$0xff]  ;;  %v287_v20 = vld [vmem:[%s10088_s19 + $0x28] sm:$0xff] }
  0x17   : > { %883 = vmatprep.mubr.f32.mxu0 %v17222_v5  ;;  %1453 = vmatprep.mubr.f32.mxu1 %v17222_v5  ;;  %v383_v21 = vld [vmem:[%s10088_s19 + $0x328] sm:$0xff]  ;;  %v288_v22 = vld [vmem:[%s10088_s19 + $0x30] sm:$0xff]  ;;  %v289_v23 = vld [vmem:[%s10088_s19 + $0x38] sm:$0xff] }
  0x18   : > { %v384_v24 = vld [vmem:[%s10088_s19 + $0x330] sm:$0xff]  ;;  %v290_v25 = vld [vmem:[%s10088_s19 + $0x40] sm:$0xff]  ;;  %v385_v26 = vld [vmem:[%s10088_s19 + $0x338] sm:$0xff] }
  0x19   : > { %v386_v27 = vld [vmem:[%s10088_s19 + $0x340] sm:$0xff]  ;;  %v291_v28 = vld [vmem:[%s10088_s19 + $0x48] sm:$0xff]  ;;  %v292_v29 = vld [vmem:[%s10088_s19 + $0x50] sm:$0xff] }
  0x1a   : > { %8956 = vmatmul.mubr.msk.f32.gmra.mrb[2].mxu0 %vm428_vm0, %v283_v11  ;;  %9051 = vmatmul.mubr.msk.f32.gmra.mrb[2].mxu1 %vm428_vm0, %v378_v12  ;;  %v387_v30 = vld [vmem:[%s10088_s19 + $0x348] sm:$0xff]  ;;  %v293_v31 = vld [vmem:[%s10088_s19 + $0x58] sm:$0xff]  ;;  %v388_v32 = vld [vmem:[%s10088_s19 + $0x350] sm:$0xff] }
  0x1b   : > { %1459 = vmatprep.mubr.f32.mxu1 %v17222_v5  ;;  %889 = vmatprep.mubr.f32.mxu0 %v17222_v5  ;;  %v389_v33 = vld [vmem:[%s10088_s19 + $0x358] sm:$0xff]  ;;  %v294_v34 = vld [vmem:[%s10088_s19 + $0x60] sm:$0xff]  ;;  %v295_v36 = vld [vmem:[%s10088_s19 + $0x68] sm:$0xff] }
  0x1c   : > { %v390_v35 = vld [vmem:[%s10088_s19 + $0x360] sm:$0xff]  ;;  %v296_v37 = vld [vmem:[%s10088_s19 + $0x70] sm:$0xff]  ;;  %v391_v38 = vld [vmem:[%s10088_s19 + $0x368] sm:$0xff] }
  0x1d   : > { %v297_v39 = vld [vmem:[%s10088_s19 + $0x78] sm:$0xff]  ;;  %v392_v40 = vld [vmem:[%s10088_s19 + $0x370] sm:$0xff]  ;;  %v298_v41 = vld [vmem:[%s10088_s19 + $0x80] sm:$0xff] }
  0x1e   : > { %9052 = vmatmul.mubr.msk.f32.gmra.mrb[4].mxu1 %vm428_vm0, %v379_v13  ;;  %8957 = vmatmul.mubr.msk.f32.gmra.mrb[4].mxu0 %vm428_vm0, %v284_v14  ;;  %v393_v42 = vld [vmem:[%s10088_s19 + $0x378] sm:$0xff]  ;;  %v394_v43 = vld [vmem:[%s10088_s19 + $0x380] sm:$0xff]  ;;  %v299_v44 = vld [vmem:[%s10088_s19 + $0x88] sm:$0xff] }
  0x1f   : > { %895 = vmatprep.mubr.f32.mxu0 %v17222_v5  ;;  %1465 = vmatprep.mubr.f32.mxu1 %v17222_v5  ;;  %v300_v45 = vld [vmem:[%s10088_s19 + $0x90] sm:$0xff]  ;;  %v395_v46 = vld [vmem:[%s10088_s19 + $0x388] sm:$0xff]  ;;  %v301_v47 = vld [vmem:[%s10088_s19 + $0x98] sm:$0xff] }
  0x20   : > { %v396_v48 = vld [vmem:[%s10088_s19 + $0x390] sm:$0xff]  ;;  %v302_v49 = vld [vmem:[%s10088_s19 + $0xa0] sm:$0xff]  ;;  %v397_v50 = vld [vmem:[%s10088_s19 + $0x398] sm:$0xff] }
  0x21   : > { %v398_v51 = vld [vmem:[%s10088_s19 + $0x3a0] sm:$0xff]  ;;  %v303_v52 = vld [vmem:[%s10088_s19 + $0xa8] sm:$0xff]  ;;  %v304_v53 = vld [vmem:[%s10088_s19 + $0xb0] sm:$0xff] }
  0x22   : > { %8958 = vmatmul.mubr.msk.f32.gmra.mrb[6].mxu0 %vm428_vm0, %v285_v15  ;;  %9053 = vmatmul.mubr.msk.f32.gmra.mrb[6].mxu1 %vm428_vm0, %v380_v16  ;;  %v399_v54 = vld [vmem:[%s10088_s19 + $0x3a8] sm:$0xff]  ;;  %v305_v55 = vld [vmem:[%s10088_s19 + $0xb8] sm:$0xff]  ;;  %v400_v56 = vld [vmem:[%s10088_s19 + $0x3b0] sm:$0xff] }
  0x23   : > { %1471 = vmatprep.mubr.f32.mxu1 %v17222_v5  ;;  %901 = vmatprep.mubr.f32.mxu0 %v17222_v5  ;;  %v306_v57 = vld [vmem:[%s10088_s19 + $0xc0] sm:$0xff]  ;;  %v401_v58 = vld [vmem:[%s10088_s19 + $0x3b8] sm:$0xff]  ;;  %v307_v59 = vld [vmem:[%s10088_s19 + $0xc8] sm:$0xff] }
  0x24   : > { %v402_v60 = vld [vmem:[%s10088_s19 + $0x3c0] sm:$0xff]  ;;  %v308_v61 = vld [vmem:[%s10088_s19 + $0xd0] sm:$0xff]  ;;  %v403_v62 = vld [vmem:[%s10088_s19 + $0x3c8] sm:$0xff] }
  0x25   : > { %v309_v63 = vld [vmem:[%s10088_s19 + $0xd8] sm:$0xff]  ;;  %v404_v0 = vld [vmem:[%s10088_s19 + $0x3d0] sm:$0xff]  ;;  %v310_v1 = vld [vmem:[%s10088_s19 + $0xe0] sm:$0xff] }
  0x26   : > { %9054 = vmatmul.mubr.msk.f32.gmra.mrb[8].mxu1 %vm428_vm0, %v381_v17  ;;  %8959 = vmatmul.mubr.msk.f32.gmra.mrb[8].mxu0 %vm428_vm0, %v286_v18  ;;  %v405_v2 = vld [vmem:[%s10088_s19 + $0x3d8] sm:$0xff]  ;;  %v311_v3 = vld [vmem:[%s10088_s19 + $0xe8] sm:$0xff]  ;;  %v406_v4 = vld [vmem:[%s10088_s19 + $0x3e0] sm:$0xff] }
  0x27   : > { %1477 = vmatprep.mubr.f32.mxu1 %v17222_v5  ;;  %907 = vmatprep.mubr.f32.mxu0 %v17222_v5  ;;  %v312_v6 = vld [vmem:[%s10088_s19 + $0xf0] sm:$0xff]  ;;  %v407_v7 = vld [vmem:[%s10088_s19 + $0x3e8] sm:$0xff]  ;;  %v313_v8 = vld [vmem:[%s10088_s19 + $0xf8] sm:$0xff] }
  0x28   : > { %v314_v9 = vld [vmem:[%s10088_s19 + $0x100] sm:$0xff]  ;;  %v315_v10 = vld [vmem:[%s10088_s19 + $0x108] sm:$0xff]  ;;  %v316_v11 = vld [vmem:[%s10088_s19 + $0x110] sm:$0xff] }
  0x29   : > { %v317_v12 = vld [vmem:[%s10088_s19 + $0x118] sm:$0xff]  ;;  %v318_v13 = vld [vmem:[%s10088_s19 + $0x120] sm:$0xff]  ;;  %v319_v14 = vld [vmem:[%s10088_s19 + $0x128] sm:$0xff] }
  0x2a   : > { %9055 = vmatmul.mubr.msk.f32.gmra.mrb[10].mxu1 %vm428_vm0, %v382_v19  ;;  %8960 = vmatmul.mubr.msk.f32.gmra.mrb[10].mxu0 %vm428_vm0, %v287_v20  ;;  %v320_v15 = vld [vmem:[%s10088_s19 + $0x130] sm:$0xff]  ;;  %v321_v16 = vld [vmem:[%s10088_s19 + $0x138] sm:$0xff]  ;;  %v322_v17 = vld [vmem:[%s10088_s19 + $0x140] sm:$0xff]  ;;  %v418_v19 = vlaneseq }
  0x2b   : > { %1483 = vmatprep.mubr.f32.mxu1 %v17222_v5  ;;  %913 = vmatprep.mubr.f32.mxu0 %v17222_v5  ;;  %v323_v18 = vld [vmem:[%s10088_s19 + $0x148] sm:$0xff]  ;;  %v324_v20 = vld [vmem:[%s10088_s19 + $0x150] sm:$0xff] }
  0x2e   : > { %9056 = vmatmul.mubr.msk.f32.gmra.mrb[12].mxu1 %vm428_vm0, %v383_v21  ;;  %8961 = vmatmul.mubr.msk.f32.gmra.mrb[12].mxu0 %vm428_vm0, %v288_v22  ;;  %v419_v21 = vshrl.u32 %v418_v19, 7  ;;  %v325_v22 = vld [vmem:[%s10088_s19 + $0x158] sm:$0xff] }
  0x2f   : > { %919 = vmatprep.mubr.f32.mxu0 %v17222_v5  ;;  %1489 = vmatprep.mubr.f32.mxu1 %v17222_v5 }
  0x32   : > { %8962 = vmatmul.mubr.msk.f32.gmra.mrb[14].mxu0 %vm428_vm0, %v289_v23  ;;  %9057 = vmatmul.mubr.msk.f32.gmra.mrb[14].mxu1 %vm428_vm0, %v384_v24  ;;  %v420_v23 = vsub.s32 0, %v419_v21  ;;  %v416_v24 = vld [vmem:[%s17210_s2] sm:$0x3] }
  0x33   : > { %925 = vmatprep.mubr.f32.mxu0 %v17222_v5  ;;  %1495 = vmatprep.mubr.f32.mxu1 %v17222_v5 }
  0x36   : > { %8963 = vmatmul.mubr.msk.f32.gmra.mrb[16].mxu0 %vm428_vm0, %v290_v25  ;;  %9058 = vmatmul.mubr.msk.f32.gmra.mrb[16].mxu1 %vm428_vm0, %v385_v26  ;;  %v326_v25 = vld [vmem:[%s10088_s19 + $0x160] sm:$0xff]  ;;  %v10319_v26 = vrot.slane %v416_v24, %v420_v23 }
  0x37   : > { %1501 = vmatprep.mubr.f32.mxu1 %v17222_v5  ;;  %931 = vmatprep.mubr.f32.mxu0 %v17222_v5 }
  0x38   : > { %17793 = vst [vmem:[#allocation3_spill] sm:$0xff] %v10319_v26 }
  0x3a   : > { %9059 = vmatmul.mubr.msk.f32.gmra.mrb[18].mxu1 %vm428_vm0, %v386_v27  ;;  %8964 = vmatmul.mubr.msk.f32.gmra.mrb[18].mxu0 %vm428_vm0, %v291_v28  ;;  %v424_v27 = vsub.s32 1, %v419_v21 }
  0x3b   : > { %937 = vmatprep.mubr.f32.mxu0 %v17222_v5  ;;  %1507 = vmatprep.mubr.f32.mxu1 %v17222_v5 }
  0x3e   : > { %8965 = vmatmul.mubr.msk.f32.gmra.mrb[20].mxu0 %vm428_vm0, %v292_v29  ;;  %9060 = vmatmul.mubr.msk.f32.gmra.mrb[20].mxu1 %vm428_vm0, %v387_v30 }
  0x3f   : > { %943 = vmatprep.mubr.f32.mxu0 %v17222_v5  ;;  %1513 = vmatprep.mubr.f32.mxu1 %v17222_v5 }
  0x42   : > { %8966 = vmatmul.mubr.msk.f32.gmra.mrb[22].mxu0 %vm428_vm0, %v293_v31  ;;  %9061 = vmatmul.mubr.msk.f32.gmra.mrb[22].mxu1 %vm428_vm0, %v388_v32 }
  0x43   : > { %1519 = vmatprep.mubr.f32.mxu1 %v17222_v5  ;;  %949 = vmatprep.mubr.f32.mxu0 %v17222_v5 }
  0x46   : > { %9062 = vmatmul.mubr.msk.f32.gmra.mrb[24].mxu1 %vm428_vm0, %v389_v33  ;;  %8967 = vmatmul.mubr.msk.f32.gmra.mrb[24].mxu0 %vm428_vm0, %v294_v34 }
  0x47   : > { %1525 = vmatprep.mubr.f32.mxu1 %v17222_v5  ;;  %955 = vmatprep.mubr.f32.mxu0 %v17222_v5 }
  0x4a   : > { %9063 = vmatmul.mubr.msk.f32.gmra.mrb[26].mxu1 %vm428_vm0, %v390_v35  ;;  %8968 = vmatmul.mubr.msk.f32.gmra.mrb[26].mxu0 %vm428_vm0, %v295_v36  ;;  %v10331_v36 = vrot.slane %v416_v24, %v424_v27 }
  0x4b   : > { %961 = vmatprep.mubr.f32.mxu0 %v17222_v5  ;;  %1531 = vmatprep.mubr.f32.mxu1 %v17222_v5 }
  0x4c   : > { %17797 = vst [vmem:[#allocation7_spill] sm:$0xff] %v10331_v36 }
  0x4e   : > { %8969 = vmatmul.mubr.msk.f32.gmra.mrb[28].mxu0 %vm428_vm0, %v296_v37  ;;  %9064 = vmatmul.mubr.msk.f32.gmra.mrb[28].mxu1 %vm428_vm0, %v391_v38 }
  0x4f   : > { %967 = vmatprep.mubr.f32.mxu0 %v17222_v5  ;;  %1537 = vmatprep.mubr.f32.mxu1 %v17222_v5 }
  0x52   : > { %8970 = vmatmul.mubr.msk.f32.gmra.mrb[30].mxu0 %vm428_vm0, %v297_v39  ;;  %9065 = vmatmul.mubr.msk.f32.gmra.mrb[30].mxu1 %vm428_vm0, %v392_v40  ;;  %v327_v39 = vld [vmem:[%s10088_s19 + $0x168] sm:$0xff] }
  0x53   : > { %973 = vmatprep.mubr.f32.mxu0 %v17222_v5  ;;  %1543 = vmatprep.mubr.f32.mxu1 %v17222_v5 }
  0x56   : > { %8971 = vmatmul.mubr.msk.f32.gmra.mrb[32].mxu0 %vm428_vm0, %v298_v41  ;;  %9066 = vmatmul.mubr.msk.f32.gmra.mrb[32].mxu1 %vm428_vm0, %v393_v42 }
  0x57   : > { %1549 = vmatprep.mubr.f32.mxu1 %v17222_v5  ;;  %979 = vmatprep.mubr.f32.mxu0 %v17222_v5 }
  0x5a   : > { %9067 = vmatmul.mubr.msk.f32.gmra.mrb[34].mxu1 %vm428_vm0, %v394_v43  ;;  %8972 = vmatmul.mubr.msk.f32.gmra.mrb[34].mxu0 %vm428_vm0, %v299_v44 }
  0x5b   : > { %985 = vmatprep.mubr.f32.mxu0 %v17222_v5  ;;  %1555 = vmatprep.mubr.f32.mxu1 %v17222_v5 }
  0x5e   : > { %8973 = vmatmul.mubr.msk.f32.gmra.mrb[36].mxu0 %vm428_vm0, %v300_v45  ;;  %9068 = vmatmul.mubr.msk.f32.gmra.mrb[36].mxu1 %vm428_vm0, %v395_v46 }
  0x5f   : > { %991 = vmatprep.mubr.f32.mxu0 %v17222_v5  ;;  %1561 = vmatprep.mubr.f32.mxu1 %v17222_v5 }
  0x62   : > { %8974 = vmatmul.mubr.msk.f32.gmra.mrb[38].mxu0 %vm428_vm0, %v301_v47  ;;  %9069 = vmatmul.mubr.msk.f32.gmra.mrb[38].mxu1 %vm428_vm0, %v396_v48 }
  0x63   : > { %997 = vmatprep.mubr.f32.mxu0 %v17222_v5  ;;  %1567 = vmatprep.mubr.f32.mxu1 %v17222_v5 }
  0x66   : > { %8975 = vmatmul.mubr.msk.f32.gmra.mrb[40].mxu0 %vm428_vm0, %v302_v49  ;;  %9070 = vmatmul.mubr.msk.f32.gmra.mrb[40].mxu1 %vm428_vm0, %v397_v50 }
  0x67   : > { %1573 = vmatprep.mubr.f32.mxu1 %v17222_v5  ;;  %1003 = vmatprep.mubr.f32.mxu0 %v17222_v5 }
  0x6a   : > { %9071 = vmatmul.mubr.msk.f32.gmra.mrb[42].mxu1 %vm428_vm0, %v398_v51  ;;  %8976 = vmatmul.mubr.msk.f32.gmra.mrb[42].mxu0 %vm428_vm0, %v303_v52  ;;  %v328_v52 = vld [vmem:[%s10088_s19 + $0x170] sm:$0xff] }
  0x6b   : > { %1009 = vmatprep.mubr.f32.mxu0 %v17222_v5  ;;  %1579 = vmatprep.mubr.f32.mxu1 %v17222_v5 }
  0x6e   : > { %8977 = vmatmul.mubr.msk.f32.gmra.mrb[44].mxu0 %vm428_vm0, %v304_v53  ;;  %9072 = vmatmul.mubr.msk.f32.gmra.mrb[44].mxu1 %vm428_vm0, %v399_v54 }
  0x6f   : > { %1015 = vmatprep.mubr.f32.mxu0 %v17222_v5  ;;  %1585 = vmatprep.mubr.f32.mxu1 %v17222_v5 }
  0x72   : > { %8978 = vmatmul.mubr.msk.f32.gmra.mrb[46].mxu0 %vm428_vm0, %v305_v55  ;;  %9073 = vmatmul.mubr.msk.f32.gmra.mrb[46].mxu1 %vm428_vm0, %v400_v56 }
  0x73   : > { %1021 = vmatprep.mubr.f32.mxu0 %v17222_v5  ;;  %1591 = vmatprep.mubr.f32.mxu1 %v17222_v5 }
  0x76   : > { %8979 = vmatmul.mubr.msk.f32.gmra.mrb[48].mxu0 %vm428_vm0, %v306_v57  ;;  %9074 = vmatmul.mubr.msk.f32.gmra.mrb[48].mxu1 %vm428_vm0, %v401_v58 }
  0x77   : > { %1027 = vmatprep.mubr.f32.mxu0 %v17222_v5  ;;  %1597 = vmatprep.mubr.f32.mxu1 %v17222_v5 }
  0x7a   : > { %8980 = vmatmul.mubr.msk.f32.gmra.mrb[50].mxu0 %vm428_vm0, %v307_v59  ;;  %9075 = vmatmul.mubr.msk.f32.gmra.mrb[50].mxu1 %vm428_vm0, %v402_v60 }
  0x7b   : > { %1033 = vmatprep.mubr.f32.mxu0 %v17222_v5  ;;  %1603 = vmatprep.mubr.f32.mxu1 %v17222_v5 }
  0x7e   : > { %8981 = vmatmul.mubr.msk.f32.gmra.mrb[52].mxu0 %vm428_vm0, %v308_v61  ;;  %9076 = vmatmul.mubr.msk.f32.gmra.mrb[52].mxu1 %vm428_vm0, %v403_v62  ;;  %v329_v61 = vld [vmem:[%s10088_s19 + $0x178] sm:$0xff] }
  0x7f   : > { %1039 = vmatprep.mubr.f32.mxu0 %v17222_v5  ;;  %1609 = vmatprep.mubr.f32.mxu1 %v17222_v5 }
  0x82   : > { %8982 = vmatmul.mubr.msk.f32.gmra.mrb[54].mxu0 %vm428_vm0, %v309_v63  ;;  %9077 = vmatmul.mubr.msk.f32.gmra.mrb[54].mxu1 %vm428_vm0, %v404_v0 }
  0x83   : > { %1045 = vmatprep.mubr.f32.mxu0 %v17222_v5  ;;  %1615 = vmatprep.mubr.f32.mxu1 %v17222_v5 }
  0x86   : > { %8983 = vmatmul.mubr.msk.f32.gmra.mrb[56].mxu0 %vm428_vm0, %v310_v1  ;;  %9078 = vmatmul.mubr.msk.f32.gmra.mrb[56].mxu1 %vm428_vm0, %v405_v2 }
  0x87   : > { %1051 = vmatprep.mubr.f32.mxu0 %v17222_v5  ;;  %1621 = vmatprep.mubr.f32.mxu1 %v17222_v5 }
  0x8a   : > { %8984 = vmatmul.mubr.msk.f32.gmra.mrb[58].mxu0 %vm428_vm0, %v311_v3  ;;  %9079 = vmatmul.mubr.msk.f32.gmra.mrb[58].mxu1 %vm428_vm0, %v406_v4 }
  0x8b   : > { %1057 = vmatprep.mubr.f32.mxu0 %v17222_v5  ;;  %1627 = vmatprep.mubr.f32.mxu1 %v17222_v5 }
  0x8e   : > { %8985 = vmatmul.mubr.msk.f32.gmra.mrb[60].mxu0 %vm428_vm0, %v312_v6  ;;  %9080 = vmatmul.mubr.msk.f32.gmra.mrb[60].mxu1 %vm428_vm0, %v407_v7  ;;  %v330_v7 = vld [vmem:[%s10088_s19 + $0x180] sm:$0xff] }
  0x8f   : > { %1063 = vmatprep.mubr.f32.mxu0 %v17222_v5  ;;  %1633 = vmatprep.mubr.f32.mxu1 %v17222_v5 }
  0x92   : > { %8986 = vmatmul.mubr.msk.f32.gmra.mrb[62].mxu0 %vm428_vm0, %v313_v8 }
  0x93   : > { %1069 = vmatprep.mubr.f32.mxu0 %v17222_v5 }
  0x96   : > { %8987 = vmatmul.mubr.msk.f32.gmra.mrb[64].mxu0 %vm428_vm0, %v314_v9 }
  0x97   : > { %1075 = vmatprep.mubr.f32.mxu0 %v17222_v5 }
  0x9a   : > { %8988 = vmatmul.mubr.msk.f32.gmra.mrb[66].mxu0 %vm428_vm0, %v315_v10 }
  0x9b   : > { %1081 = vmatprep.mubr.f32.mxu0 %v17222_v5 }
  0x9e   : > { %8989 = vmatmul.mubr.msk.f32.gmra.mrb[68].mxu0 %vm428_vm0, %v316_v11 }
  0x9f   : > { %1087 = vmatprep.mubr.f32.mxu0 %v17222_v5 }
  0xa2   : > { %8990 = vmatmul.mubr.msk.f32.gmra.mrb[70].mxu0 %vm428_vm0, %v317_v12 }
  0xa3   : > { %1093 = vmatprep.mubr.f32.mxu0 %v17222_v5 }
  0xa6   : > { %8991 = vmatmul.mubr.msk.f32.gmra.mrb[72].mxu0 %vm428_vm0, %v318_v13 }
  0xa7   : > { %1099 = vmatprep.mubr.f32.mxu0 %v17222_v5 }
  0xaa   : > { %8992 = vmatmul.mubr.msk.f32.gmra.mrb[74].mxu0 %vm428_vm0, %v319_v14 }
  0xab   : > { %1105 = vmatprep.mubr.f32.mxu0 %v17222_v5 }
  0xae   : > { %8993 = vmatmul.mubr.msk.f32.gmra.mrb[76].mxu0 %vm428_vm0, %v320_v15 }
  0xaf   : > { %1111 = vmatprep.mubr.f32.mxu0 %v17222_v5 }
  0xb2   : > { %8994 = vmatmul.mubr.msk.f32.gmra.mrb[78].mxu0 %vm428_vm0, %v321_v16 }
  0xb3   : > { %1117 = vmatprep.mubr.f32.mxu0 %v17222_v5 }
  0xb6   : > { %8995 = vmatmul.mubr.msk.f32.gmra.mrb[80].mxu0 %vm428_vm0, %v322_v17 }
  0xb7   : > { %1123 = vmatprep.mubr.f32.mxu0 %v17222_v5 }
  0xba   : > { %8996 = vmatmul.mubr.msk.f32.gmra.mrb[82].mxu0 %vm428_vm0, %v323_v18 }
  0xbb   : > { %1129 = vmatprep.mubr.f32.mxu0 %v17222_v5 }
  0xbe   : > { %8997 = vmatmul.mubr.msk.f32.gmra.mrb[84].mxu0 %vm428_vm0, %v324_v20  ;;  %v331_v20 = vld [vmem:[%s10088_s19 + $0x188] sm:$0xff] }
  0xbf   : > { %1135 = vmatprep.mubr.f32.mxu0 %v17222_v5 }
  0xc2   : > { %8998 = vmatmul.mubr.msk.f32.gmra.mrb[86].mxu0 %vm428_vm0, %v325_v22 }
  0xc3   : > { %1141 = vmatprep.mubr.f32.mxu0 %v17222_v5 }
  0xc6   : > { %8999 = vmatmul.mubr.msk.f32.gmra.mrb[88].mxu0 %vm428_vm0, %v326_v25 }
  0xc7   : > { %1147 = vmatprep.mubr.f32.mxu0 %v17222_v5 }
  0xca   : > { %9000 = vmatmul.mubr.msk.f32.gmra.mrb[90].mxu0 %vm428_vm0, %v327_v39 }
  0xcb   : > { %1153 = vmatprep.mubr.f32.mxu0 %v17222_v5 }
  0xce   : > { %9001 = vmatmul.mubr.msk.f32.gmra.mrb[92].mxu0 %vm428_vm0, %v328_v52 }
  0xcf   : > { %1159 = vmatprep.mubr.f32.mxu0 %v17222_v5 }
  0xd2   : > { %9002 = vmatmul.mubr.msk.f32.gmra.mrb[94].mxu0 %vm428_vm0, %v329_v61  ;;  %v334_v61 = vld [vmem:[%s10088_s19 + $0x1a0] sm:$0xff] }
  0xd3   : > { %1165 = vmatprep.mubr.f32.mxu0 %v17222_v5 }
  0xd6   : > { %9003 = vmatmul.mubr.msk.f32.gmra.mrb[96].mxu0 %vm428_vm0, %v330_v7 }
  0xd7   : > { %1171 = vmatprep.mubr.f32.mxu0 %v17222_v5 }
  0xda   : > { %9004 = vmatmul.mubr.msk.f32.gmra.mrb[98].mxu0 %vm428_vm0, %v331_v20 }
  0xdb   : > { %1177 = vmatprep.mubr.f32.mxu0 %v17222_v5 }
  0xe9   : > { %v879_v28 = vpop.f32.mrb[0].mxu0  ;;  %v1449_v29 = vpop.f32.mrb[0].mxu1 }
  0xea   : > { %v880_v30 = vadd.f32 %v879_v28, %v10319_v26  ;;  %v1450_v31 = vadd.f32 %v1449_v29, %v10319_v26  ;;  %v881_v32 = vpop.f32.mrb[1].mxu0  ;;  %v10325_v33 = vpop.f32.mrb[1].mxu1 }
  0xeb   : > { %17794 = vst [vmem:[#allocation4_spill] sm:$0xff] %v10325_v33  ;;  %v882_v44 = vadd.f32 %v881_v32, %v10331_v36 }
  0xec   : > { %v10327_v34 = vmax.f32 %v880_v30, 0.0  ;;  %v10329_v35 = vmax.f32 %v1450_v31, 0.0  ;;  %v332_v30 = vld [vmem:[%s10088_s19 + $0x190] sm:$0xff] }
  0xed   : > { %v885_v37 = vpop.f32.mrb[2].mxu0  ;;  %v1455_v38 = vpop.f32.mrb[2].mxu1  ;;  %v1647_v51 = vmax.f32 %v882_v44, 0.0  ;;  %9005 = vmatmul.mubr.msk.f32.gmra.mrb[100].mxu0 %vm428_vm0, %v332_v30 }
  0xee   : > { %17795 = vst [vmem:[#allocation5_spill] sm:$0xff] %v10327_v34  ;;  %17796 = vst [vmem:[#allocation6_spill] sm:$0xff] %v10329_v35  ;;  %v886_v40 = vadd.f32 %v885_v37, %v10319_v26  ;;  %2220 = vrot.lane.b32.xlu1 %v10329_v35, %s10013_s22  ;;  %v887_v41 = vpop.f32.mrb[3].mxu0  ;;  %2030 = vrot.lane.b32.xlu0 %v10327_v34, %s10013_s22  ;;  %v1456_v42 = vadd.f32 %v1455_v38, %v10319_v26  ;;  %v1457_v43 = vpop.f32.mrb[3].mxu1 }
  0xef   : > { %v888_v57 = vadd.f32 %v887_v41, %v10331_v36  ;;  %v1458_v58 = vadd.f32 %v1457_v43, %v10331_v36  ;;  %1183 = vmatprep.mubr.f32.mxu0 %v17222_v5 }
  0xf0   : > { %v10342_v45 = vmax.f32 %v886_v40, 0.0  ;;  %v10345_v48 = vmax.f32 %v1456_v42, 0.0 }
  0xf1   : > { %v1461_v46 = vpop.f32.mrb[4].mxu1  ;;  %v891_v47 = vpop.f32.mrb[4].mxu0  ;;  %v1649_v2 = vmax.f32 %v888_v57, 0.0  ;;  %v1839_v3 = vmax.f32 %v1458_v58, 0.0 }
  0xf2   : > { %17798 = vst [vmem:[#allocation8_spill] sm:$0xff] %v10342_v45  ;;  %17799 = vst [vmem:[#allocation9_spill] sm:$0xff] %v10345_v48  ;;  %2542 = vrot.lane.b32.xlu1 %v10327_v34, %s10014_s23  ;;  %2032 = vrot.lane.b32.xlu0 %v10342_v45, %s10013_s22  ;;  %v1463_v49 = vpop.f32.mrb[5].mxu1  ;;  %v893_v50 = vpop.f32.mrb[5].mxu0  ;;  %v1462_v62 = vadd.f32 %v1461_v46, %v10319_v26  ;;  %v892_v63 = vadd.f32 %v891_v47, %v10319_v26 }
  0xf3   : > { %v1464_v12 = vadd.f32 %v1463_v49, %v10331_v36  ;;  %v894_v19 = vadd.f32 %v893_v50, %v10331_v36 }
  0xf4   : > { %v10375_v8 = vmax.f32 %v1462_v62, 0.0  ;;  %v10377_v9 = vmax.f32 %v892_v63, 0.0 }
  0xf5   : > { %v897_v53 = vpop.f32.mrb[6].mxu0  ;;  %v1467_v54 = vpop.f32.mrb[6].mxu1  ;;  %v1841_v18 = vmax.f32 %v1464_v12, 0.0  ;;  %v1651_v28 = vmax.f32 %v894_v19, 0.0 }
  0xf6   : > { %3182 = vrot.lane.b32.xlu1 %v1647_v51, %s10014_s23  ;;  %2222 = vrot.lane.b32.xlu0 %v10345_v48, %s10013_s22  ;;  %v10356_v55 = vpop.f32.mrb[7].mxu0  ;;  %v10358_v56 = vpop.f32.mrb[7].mxu1  ;;  %17803 = vst [vmem:[#allocation13_spill] sm:$0xff] %v10375_v8  ;;  %17804 = vst [vmem:[#allocation14_spill] sm:$0xff] %v10377_v9  ;;  %v898_v15 = vadd.f32 %v897_v53, %v10319_v26  ;;  %v1468_v29 = vadd.f32 %v1467_v54, %v10319_v26  ;;  %v333_v51 = vld [vmem:[%s10088_s19 + $0x198] sm:$0xff] }
  0xf7   : > { %17800 = vst [vmem:[#allocation10_spill] sm:$0xff] %v10356_v55  ;;  %17801 = vst [vmem:[#allocation11_spill] sm:$0xff] %v10358_v56  ;;  %9006 = vmatmul.mubr.msk.f32.gmra.mrb[102].mxu0 %vm428_vm0, %v333_v51 }
  0xf8   : > { %v10408_v23 = vmax.f32 %v898_v15, 0.0  ;;  %v10437_v41 = vmax.f32 %v1468_v29, 0.0  ;;  %1189 = vmatprep.mubr.f32.mxu0 %v17222_v5 }
  0xf9   : > { %v1473_v59 = vpop.f32.mrb[8].mxu1  ;;  %v903_v60 = vpop.f32.mrb[8].mxu0 }
  0xfa   : > { %2734 = vrot.lane.b32.xlu1 %v10345_v48, %s10014_s23  ;;  %2544 = vrot.lane.b32.xlu0 %v10342_v45, %s10014_s23  ;;  %v10370_v0 = vpop.f32.mrb[9].mxu1  ;;  %v905_v1 = vpop.f32.mrb[9].mxu0  ;;  %17805 = vst [vmem:[#allocation15_spill] sm:$0xff] %v10408_v23  ;;  %v1474_v24 = vadd.f32 %v1473_v59, %v10319_v26  ;;  %v904_v38 = vadd.f32 %v903_v60, %v10319_v26  ;;  %17810 = vst [vmem:[#allocation20_spill] sm:$0xff] %v10437_v41  ;;  %v348_v45 = vld [vmem:[%s10088_s19 + $0x210] sm:$0xff] }
  0xfb   : > { %17802 = vst [vmem:[#allocation12_spill] sm:$0xff] %v10370_v0  ;;  %v906_v50 = vadd.f32 %v905_v1, %v10331_v36  ;;  %9007 = vmatmul.mubr.msk.f32.gmra.mrb[104].mxu0 %vm428_vm0, %v334_v61 }
  0xfc   : > { %v10426_v37 = vmax.f32 %v1474_v24, 0.0  ;;  %v10443_v44 = vmax.f32 %v904_v38, 0.0  ;;  %1195 = vmatprep.mubr.f32.mxu0 %v17222_v5 }
  0xfd   : > { %v1479_v4 = vpop.f32.mrb[10].mxu1  ;;  %v909_v6 = vpop.f32.mrb[10].mxu0  ;;  %v1655_v60 = vmax.f32 %v906_v50, 0.0 }
  0xfe   : > { %3374 = vrot.lane.b32.xlu1 %v1839_v3, %s10014_s23  ;;  %3184 = vrot.lane.b32.xlu0 %v1649_v2, %s10014_s23  ;;  %v10381_v10 = vpop.f32.mrb[11].mxu1  ;;  %v10383_v11 = vpop.f32.mrb[11].mxu0  ;;  %17808 = vst [vmem:[#allocation18_spill] sm:$0xff] %v10426_v37  ;;  %17811 = vst [vmem:[#allocation21_spill] sm:$0xff] %v10443_v44  ;;  %v1480_v46 = vadd.f32 %v1479_v4, %v10319_v26  ;;  %v910_v57 = vadd.f32 %v909_v6, %v10319_v26  ;;  %v335_v6 = vld [vmem:[%s10088_s19 + $0x1a8] sm:$0xff] }
  0xff   : > { %v1482_v4 = vadd.f32 %v10381_v10, %v10331_v36  ;;  %9008 = vmatmul.mubr.msk.f32.gmra.mrb[106].mxu0 %vm428_vm0, %v335_v6  ;;  %v912_v20 = vadd.f32 %v10383_v11, %v10331_v36  ;;  %v337_v6 = vld [vmem:[%s10088_s19 + $0x1b8] sm:$0xff] }
 0x100   : > { %v10461_v54 = vmax.f32 %v1480_v46, 0.0  ;;  %v10479_v1 = vmax.f32 %v910_v57, 0.0  ;;  %1201 = vmatprep.mubr.f32.mxu0 %v17222_v5  ;;  %v336_v46 = vld [vmem:[%s10088_s19 + $0x1b0] sm:$0xff] }
 0x101   : > { %v10388_v13 = vpop.f32.mrb[12].mxu1  ;;  %v10390_v14 = vpop.f32.mrb[12].mxu0  ;;  %v1847_v19 = vmax.f32 %v1482_v4, 0.0  ;;  %v1657_v11 = vmax.f32 %v912_v20, 0.0 }
 0x102   : > { %2034 = vrot.lane.b32.xlu1 %v10377_v9, %s10013_s22  ;;  %2736 = vrot.lane.b32.xlu0 %v10375_v8, %s10014_s23  ;;  %v10397_v16 = vpop.f32.mrb[13].mxu1  ;;  %v10399_v17 = vpop.f32.mrb[13].mxu0  ;;  %17812 = vst [vmem:[#allocation22_spill] sm:$0xff] %v10461_v54  ;;  %17813 = vst [vmem:[#allocation23_spill] sm:$0xff] %v10479_v1  ;;  %v1486_v15 = vadd.f32 %v10388_v13, %v10319_v26  ;;  %v916_v13 = vadd.f32 %v10390_v14, %v10319_v26 }
 0x103   : > { %9009 = vmatmul.mubr.msk.f32.gmra.mrb[108].mxu0 %vm428_vm0, %v336_v46  ;;  %v1488_v61 = vadd.f32 %v10397_v16, %v10331_v36  ;;  %v918_v4 = vadd.f32 %v10399_v17, %v10331_v36 }
 0x104   : > { %v10514_v29 = vmax.f32 %v1486_v15, 0.0  ;;  %v10531_v57 = vmax.f32 %v916_v13, 0.0  ;;  %1207 = vmatprep.mubr.f32.mxu0 %v17222_v5 }
 0x105   : > { %v10403_v21 = vpop.f32.mrb[14].mxu0  ;;  %v10405_v22 = vpop.f32.mrb[14].mxu1  ;;  %v1659_v46 = vmax.f32 %v918_v4, 0.0 }
 0x106   : > { %2224 = vrot.lane.b32.xlu1 %v10375_v8, %s10013_s22  ;;  %3376 = vrot.lane.b32.xlu0 %v1841_v18, %s10014_s23  ;;  %v10414_v25 = vpop.f32.mrb[15].mxu0  ;;  %v10416_v27 = vpop.f32.mrb[15].mxu1  ;;  %17817 = vst [vmem:[#allocation27_spill] sm:$0xff] %v10514_v29  ;;  %17818 = vst [vmem:[#allocation28_spill] sm:$0xff] %v10531_v57  ;;  %v922_v20 = vadd.f32 %v10403_v21, %v10319_v26  ;;  %v1492_v16 = vadd.f32 %v10405_v22, %v10319_v26 }
 0x107   : > { %17806 = vst [vmem:[#allocation16_spill] sm:$0xff] %v10414_v25  ;;  %17807 = vst [vmem:[#allocation17_spill] sm:$0xff] %v10416_v27  ;;  %9010 = vmatmul.mubr.msk.f32.gmra.mrb[110].mxu0 %vm428_vm0, %v337_v6  ;;  %v338_v6 = vld [vmem:[%s10088_s19 + $0x1c0] sm:$0xff] }
 0x108   : > { %1213 = vmatprep.mubr.f32.mxu0 %v17222_v5  ;;  %v10570_v21 = vmax.f32 %v922_v20, 0.0  ;;  %v339_v20 = vld [vmem:[%s10088_s19 + $0x1c8] sm:$0xff]  ;;  %v342_v25 = vld [vmem:[%s10088_s19 + $0x1e0] sm:$0xff] }
 0x109   : > { %v10421_v31 = vpop.f32.mrb[16].mxu0  ;;  %v10423_v32 = vpop.f32.mrb[16].mxu1 }
 0x10a   : > { %2036 = vrot.lane.b32.xlu1 %v10408_v23, %s10013_s22  ;;  %3186 = vrot.lane.b32.xlu0 %v1651_v28, %s10014_s23  ;;  %v10432_v39 = vpop.f32.mrb[17].mxu0  ;;  %v10434_v40 = vpop.f32.mrb[17].mxu1  ;;  %17821 = vst [vmem:[#allocation31_spill] sm:$0xff] %v10570_v21  ;;  %v10572_v23 = vmax.f32 %v1492_v16, 0.0  ;;  %v928_v22 = vadd.f32 %v10421_v31, %v10319_v26 }
 0x10b   : > { %17809 = vst [vmem:[#allocation19_spill] sm:$0xff] %v10434_v40  ;;  %9011 = vmatmul.mubr.msk.f32.gmra.mrb[112].mxu0 %vm428_vm0, %v338_v6  ;;  %v340_v40 = vld [vmem:[%s10088_s19 + $0x1d0] sm:$0xff] }
 0x10c   : > { %17822 = vst [vmem:[#allocation32_spill] sm:$0xff] %v10572_v23 }
 0x10d   : > { %v10439_v42 = vpop.f32.mrb[18].mxu1  ;;  %v10441_v43 = vpop.f32.mrb[18].mxu0 }
 0x10e   : > { %2228 = vrot.lane.b32.xlu1 %v10426_v37, %s10013_s22  ;;  %2226 = vrot.lane.b32.xlu0 %v10437_v41, %s10013_s22  ;;  %v10450_v47 = vpop.f32.mrb[19].mxu1  ;;  %v10452_v49 = vpop.f32.mrb[19].mxu0  ;;  %v17824_v41 = vmov 0.0   ;;  %v1504_v31 = vadd.f32 %v10439_v42, %v10319_v26  ;;  %v934_v42 = vadd.f32 %v10441_v43, %v10319_v26 }
 0x10f   : > { %1219 = vmatprep.mubr.f32.mxu0 %v17824_v41 }
 0x110   : > { %9012 = vmatmul.mubr.msk.f32.gmra.mrb[114].mxu0 %vm428_vm0, %v339_v20  ;;  %v10610_v20 = vmax.f32 %v1504_v31, 0.0 }
 0x111   : > { %v10456_v52 = vpop.f32.mrb[20].mxu0  ;;  %v10458_v53 = vpop.f32.mrb[20].mxu1  ;;  %1225 = vmatprep.mubr.f32.mxu0 %v17824_v41 }
 0x112   : > { %2550 = vrot.lane.b32.xlu1 %v10443_v44, %s10014_s23  ;;  %2038 = vrot.lane.b32.xlu0 %v10443_v44, %s10013_s22  ;;  %v10468_v58 = vpop.f32.mrb[21].mxu0  ;;  %v10470_v59 = vpop.f32.mrb[21].mxu1  ;;  %17827 = vst [vmem:[#allocation36_spill] sm:$0xff] %v10610_v20 }
 0x113   : > { %v1512_v56 = vadd.f32 %v10470_v59, %v10331_v36  ;;  %v942_v59 = vadd.f32 %v10468_v58, %v10331_v36 }
 0x114   : > { %9013 = vmatmul.mubr.msk.f32.gmra.mrb[116].mxu0 %vm428_vm0, %v340_v40  ;;  %v341_v40 = vld [vmem:[%s10088_s19 + $0x1d8] sm:$0xff] }
 0x115   : > { %v10474_v62 = vpop.f32.mrb[22].mxu0  ;;  %v10476_v63 = vpop.f32.mrb[22].mxu1  ;;  %1231 = vmatprep.mubr.f32.mxu0 %v17824_v41 }
 0x116   : > { %3190 = vrot.lane.b32.xlu1 %v1655_v60, %s10014_s23  ;;  %2230 = vrot.lane.b32.xlu0 %v10461_v54, %s10013_s22  ;;  %v10484_v2 = vpop.f32.mrb[23].mxu0  ;;  %v10486_v3 = vpop.f32.mrb[23].mxu1 }
 0x117   : > { %17814 = vst [vmem:[#allocation24_spill] sm:$0xff] %v10484_v2  ;;  %17815 = vst [vmem:[#allocation25_spill] sm:$0xff] %v10486_v3 }
 0x118   : > { %9014 = vmatmul.mubr.msk.f32.gmra.mrb[118].mxu0 %vm428_vm0, %v341_v40 }
 0x119   : > { %v10492_v7 = vpop.f32.mrb[24].mxu1  ;;  %v10494_v12 = vpop.f32.mrb[24].mxu0  ;;  %1237 = vmatprep.mubr.f32.mxu0 %v17824_v41 }
 0x11a   : > { %2040 = vrot.lane.b32.xlu1 %v10479_v1, %s10013_s22  ;;  %2552 = vrot.lane.b32.xlu0 %v10479_v1, %s10014_s23  ;;  %v10503_v18 = vpop.f32.mrb[25].mxu1  ;;  %v10505_v10 = vpop.f32.mrb[25].mxu0 }
 0x11b   : > { %17816 = vst [vmem:[#allocation26_spill] sm:$0xff] %v10503_v18  ;;  %v930_v18 = vadd.f32 %v10432_v39, %v10331_v36 }
 0x11c   : > { %9015 = vmatmul.mubr.msk.f32.gmra.mrb[120].mxu0 %vm428_vm0, %v342_v25  ;;  %v1506_v25 = vadd.f32 %v10450_v47, %v10331_v36 }
 0x11d   : > { %v10510_v24 = vpop.f32.mrb[26].mxu1  ;;  %v10512_v28 = vpop.f32.mrb[26].mxu0  ;;  %v1663_v39 = vmax.f32 %v930_v18, 0.0  ;;  %1243 = vmatprep.mubr.f32.mxu0 %v17824_v41 }
 0x11e   : > { %3382 = vrot.lane.b32.xlu1 %v1847_v19, %s10014_s23  ;;  %2742 = vrot.lane.b32.xlu0 %v10461_v54, %s10014_s23  ;;  %v10521_v30 = vpop.f32.mrb[27].mxu1  ;;  %v10523_v38 = vpop.f32.mrb[27].mxu0  ;;  %v1855_v47 = vmax.f32 %v1506_v25, 0.0  ;;  %v1857_v25 = vmax.f32 %v1512_v56, 0.0  ;;  %v347_v54 = vld [vmem:[%s10088_s19 + $0x208] sm:$0xff] }
 0x121   : > { %v10526_v50 = vpop.f32.mrb[28].mxu0  ;;  %v10528_v51 = vpop.f32.mrb[28].mxu1 }
 0x122   : > { %2232 = vrot.lane.b32.xlu1 %v10514_v29, %s10013_s22  ;;  %3192 = vrot.lane.b32.xlu0 %v1657_v11, %s10014_s23  ;;  %v10536_v14 = vpop.f32.mrb[29].mxu0  ;;  %v10538_v60 = vpop.f32.mrb[29].mxu1  ;;  %v1849_v11 = vmax.f32 %v1488_v61, 0.0  ;;  %v1498_v61 = vadd.f32 %v10423_v32, %v10319_v26 }
 0x125   : > { %v10546_v15 = vpop.f32.mrb[30].mxu0  ;;  %v10548_v19 = vpop.f32.mrb[30].mxu1 }
 0x126   : > { %2744 = vrot.lane.b32.xlu1 %v10514_v29, %s10014_s23  ;;  %2042 = vrot.lane.b32.xlu0 %v10531_v57, %s10013_s22  ;;  %v10559_v17 = vpop.f32.mrb[31].mxu0  ;;  %v10561_v13 = vpop.f32.mrb[31].mxu1 }
 0x127   : > { %17819 = vst [vmem:[#allocation29_spill] sm:$0xff] %v10559_v17  ;;  %17820 = vst [vmem:[#allocation30_spill] sm:$0xff] %v10561_v13  ;;  %v936_v17 = vadd.f32 %v10452_v49, %v10331_v36  ;;  %v343_v13 = vld [vmem:[%s10088_s19 + $0x1e8] sm:$0xff] }
 0x128   : > { %9016 = vmatmul.mubr.msk.f32.gmra.mrb[122].mxu0 %vm428_vm0, %v343_v13 }
 0x129   : > { %v10565_v37 = vpop.f32.mrb[32].mxu0  ;;  %v10567_v35 = vpop.f32.mrb[32].mxu1  ;;  %v1665_v49 = vmax.f32 %v936_v17, 0.0  ;;  %1249 = vmatprep.mubr.f32.mxu0 %v17824_v41 }
 0x12a   : > { %3194 = vrot.lane.b32.xlu1 %v1659_v46, %s10014_s23  ;;  %3384 = vrot.lane.b32.xlu0 %v1849_v11, %s10014_s23  ;;  %v10580_v4 = vpop.f32.mrb[33].mxu0  ;;  %v10582_v5 = vpop.f32.mrb[33].mxu1  ;;  %v10591_v11 = vmax.f32 %v928_v22, 0.0  ;;  %v10593_v46 = vmax.f32 %v1498_v61, 0.0 }
 0x12b   : > { %17823 = vst [vmem:[#allocation33_spill] sm:$0xff] %v10582_v5 }
 0x12c   : > { %17825 = vst [vmem:[#allocation34_spill] sm:$0xff] %v10591_v11  ;;  %17826 = vst [vmem:[#allocation35_spill] sm:$0xff] %v10593_v46 }
 0x12d   : > { %v10586_v6 = vpop.f32.mrb[34].mxu1  ;;  %v10588_v16 = vpop.f32.mrb[34].mxu0 }
 0x12e   : > { %2044 = vrot.lane.b32.xlu1 %v10570_v21, %s10013_s22  ;;  %2234 = vrot.lane.b32.xlu0 %v10572_v23, %s10013_s22  ;;  %v10601_v32 = vpop.f32.mrb[35].mxu1  ;;  %v10603_v5 = vpop.f32.mrb[35].mxu0 }
 0x131   : > { %v10606_v22 = vpop.f32.mrb[36].mxu0  ;;  %v10608_v61 = vpop.f32.mrb[36].mxu1 }
 0x132   : > { %2236 = vrot.lane.b32.xlu1 %v10593_v46, %s10013_s22  ;;  %2046 = vrot.lane.b32.xlu0 %v10591_v11, %s10013_s22  ;;  %v10618_v21 = vpop.f32.mrb[37].mxu0  ;;  %v10620_v23 = vpop.f32.mrb[37].mxu1  ;;  %v10630_v46 = vmax.f32 %v934_v42, 0.0 }
 0x134   : > { %17828 = vst [vmem:[#allocation37_spill] sm:$0xff] %v10630_v46 }
 0x135   : > { %v10625_v31 = vpop.f32.mrb[38].mxu0  ;;  %v10627_v33 = vpop.f32.mrb[38].mxu1 }
 0x136   : > { %2558 = vrot.lane.b32.xlu1 %v10591_v11, %s10014_s23  ;;  %2238 = vrot.lane.b32.xlu0 %v10610_v20, %s10013_s22  ;;  %v10636_v43 = vpop.f32.mrb[39].mxu0  ;;  %v10638_v0 = vpop.f32.mrb[39].mxu1 }
 0x137   : > { %17829 = vst [vmem:[#allocation38_spill] sm:$0xff] %v10636_v43  ;;  %17830 = vst [vmem:[#allocation39_spill] sm:$0xff] %v10638_v0  ;;  %v940_v43 = vadd.f32 %v10456_v52, %v10319_v26  ;;  %v1510_v52 = vadd.f32 %v10458_v53, %v10319_v26 }
 0x139   : > { %v10644_v42 = vpop.f32.mrb[40].mxu0  ;;  %v10646_v55 = vpop.f32.mrb[40].mxu1  ;;  %v10683_v0 = vmax.f32 %v1510_v52, 0.0 }
 0x13a   : > { %3198 = vrot.lane.b32.xlu1 %v1663_v39, %s10014_s23  ;;  %2560 = vrot.lane.b32.xlu0 %v10630_v46, %s10014_s23  ;;  %v10654_v2 = vpop.f32.mrb[41].mxu0  ;;  %v10656_v18 = vpop.f32.mrb[41].mxu1  ;;  %v10665_v39 = vmax.f32 %v940_v43, 0.0 }
 0x13b   : > { %17831 = vst [vmem:[#allocation40_spill] sm:$0xff] %v10656_v18  ;;  %17833 = vst [vmem:[#allocation42_spill] sm:$0xff] %v10683_v0 }
 0x13c   : > { %17832 = vst [vmem:[#allocation41_spill] sm:$0xff] %v10665_v39 }
 0x13d   : > { %v10660_v9 = vpop.f32.mrb[42].mxu1  ;;  %v10662_v57 = vpop.f32.mrb[42].mxu0 }
 0x13e   : > { %2048 = vrot.lane.b32.xlu1 %v10630_v46, %s10013_s22  ;;  %3200 = vrot.lane.b32.xlu0 %v1665_v49, %s10014_s23  ;;  %v10672_v40 = vpop.f32.mrb[43].mxu1  ;;  %v10674_v17 = vpop.f32.mrb[43].mxu0  ;;  %v344_v46 = vld [vmem:[%s10088_s19 + $0x1f0] sm:$0xff] }
 0x13f   : > { %9017 = vmatmul.mubr.msk.f32.gmra.mrb[124].mxu0 %vm428_vm0, %v344_v46  ;;  %v1516_v46 = vadd.f32 %v10476_v63, %v10319_v26 }
 0x140   : > { %1255 = vmatprep.mubr.f32.mxu0 %v17824_v41 }
 0x141   : > { %v10679_v18 = vpop.f32.mrb[44].mxu0  ;;  %v10681_v43 = vpop.f32.mrb[44].mxu1  ;;  %v10748_v63 = vmax.f32 %v1516_v46, 0.0 }
 0x142   : > { %2750 = vrot.lane.b32.xlu1 %v10610_v20, %s10014_s23  ;;  %2050 = vrot.lane.b32.xlu0 %v10665_v39, %s10013_s22  ;;  %v10689_v53 = vpop.f32.mrb[45].mxu0  ;;  %v10691_v49 = vpop.f32.mrb[45].mxu1  ;;  %v946_v39 = vadd.f32 %v10474_v62, %v10319_v26  ;;  %v1522_v62 = vadd.f32 %v10492_v7, %v10319_v26  ;;  %v952_v7 = vadd.f32 %v10494_v12, %v10319_v26 }
 0x143   : > { %17840 = vst [vmem:[#allocation49_spill] sm:$0xff] %v10748_v63  ;;  %v1528_v12 = vadd.f32 %v10510_v24, %v10319_v26  ;;  %v958_v24 = vadd.f32 %v10512_v28, %v10319_v26 }
 0x145   : > { %v10698_v52 = vpop.f32.mrb[46].mxu0  ;;  %v10700_v3 = vpop.f32.mrb[46].mxu1  ;;  %v10796_v44 = vmax.f32 %v958_v24, 0.0 }
 0x146   : > { %3390 = vrot.lane.b32.xlu1 %v1855_v47, %s10014_s23  ;;  %2752 = vrot.lane.b32.xlu0 %v10683_v0, %s10014_s23  ;;  %v10707_v27 = vpop.f32.mrb[47].mxu0  ;;  %v10709_v13 = vpop.f32.mrb[47].mxu1  ;;  %v10719_v47 = vmax.f32 %v946_v39, 0.0 }
 0x147   : > { %17834 = vst [vmem:[#allocation43_spill] sm:$0xff] %v10707_v27  ;;  %17835 = vst [vmem:[#allocation44_spill] sm:$0xff] %v10709_v13  ;;  %v10737_v13 = vmax.f32 %v1522_v62, 0.0 }
 0x148   : > { %17837 = vst [vmem:[#allocation46_spill] sm:$0xff] %v10719_v47  ;;  %17847 = vst [vmem:[#allocation56_spill] sm:$0xff] %v10796_v44 }
 0x149   : > { %v10714_v20 = vpop.f32.mrb[48].mxu0  ;;  %v10716_v11 = vpop.f32.mrb[48].mxu1  ;;  %17839 = vst [vmem:[#allocation48_spill] sm:$0xff] %v10737_v13 }
 0x14a   : > { %17836 = vst [vmem:[#allocation45_spill] sm:$0xff] %v10716_v11  ;;  %2240 = vrot.lane.b32.xlu1 %v10683_v0, %s10013_s22  ;;  %3392 = vrot.lane.b32.xlu0 %v1857_v25, %s10014_s23  ;;  %v10726_v58 = vpop.f32.mrb[49].mxu0  ;;  %v10728_v56 = vpop.f32.mrb[49].mxu1  ;;  %v1667_v11 = vmax.f32 %v942_v59, 0.0 }
 0x14b   : > { %17838 = vst [vmem:[#allocation47_spill] sm:$0xff] %v10728_v56  ;;  %v345_v56 = vld [vmem:[%s10088_s19 + $0x1f8] sm:$0xff] }
 0x14c   : > { %9018 = vmatmul.mubr.msk.f32.gmra.mrb[126].mxu0 %vm428_vm0, %v345_v56  ;;  %v954_v56 = vadd.f32 %v10505_v10, %v10331_v36 }
 0x14d   : > { %v10733_v39 = vpop.f32.mrb[50].mxu0  ;;  %v10735_v27 = vpop.f32.mrb[50].mxu1  ;;  %1261 = vmatprep.mubr.f32.mxu0 %v17824_v41 }
 0x14e   : > { %2052 = vrot.lane.b32.xlu1 %v10719_v47, %s10013_s22  ;;  %3202 = vrot.lane.b32.xlu0 %v1667_v11, %s10014_s23  ;;  %v10744_v25 = vpop.f32.mrb[51].mxu0  ;;  %v10746_v59 = vpop.f32.mrb[51].mxu1  ;;  %v10756_v47 = vmax.f32 %v952_v7, 0.0  ;;  %v346_v7 = vld [vmem:[%s10088_s19 + $0x200] sm:$0xff] }
 0x150   : > { %17841 = vst [vmem:[#allocation50_spill] sm:$0xff] %v10756_v47  ;;  %9019 = vmatmul.mubr.msk.f32.gmra.mrb[128].mxu0 %vm428_vm0, %v346_v7 }
 0x151   : > { %v10751_v0 = vpop.f32.mrb[52].mxu0  ;;  %v10753_v62 = vpop.f32.mrb[52].mxu1  ;;  %1267 = vmatprep.mubr.f32.mxu0 %v17824_v41 }
 0x152   : > { %2244 = vrot.lane.b32.xlu1 %v10737_v13, %s10013_s22  ;;  %2242 = vrot.lane.b32.xlu0 %v10748_v63, %s10013_s22  ;;  %v10764_v11 = vpop.f32.mrb[53].mxu0  ;;  %v10766_v46 = vpop.f32.mrb[53].mxu1  ;;  %v10777_v63 = vmax.f32 %v1528_v12, 0.0 }
 0x154   : > { %17843 = vst [vmem:[#allocation52_spill] sm:$0xff] %v10777_v63  ;;  %9020 = vmatmul.mubr.msk.f32.gmra.mrb[130].mxu0 %vm428_vm0, %v347_v54 }
 0x155   : > { %v10772_v29 = vpop.f32.mrb[54].mxu0  ;;  %v10774_v13 = vpop.f32.mrb[54].mxu1  ;;  %1273 = vmatprep.mubr.f32.mxu0 %v17824_v41 }
 0x156   : > { %17842 = vst [vmem:[#allocation51_spill] sm:$0xff] %v10774_v13  ;;  %2566 = vrot.lane.b32.xlu1 %v10756_v47, %s10014_s23  ;;  %2054 = vrot.lane.b32.xlu0 %v10756_v47, %s10013_s22  ;;  %v10785_v1 = vpop.f32.mrb[55].mxu0  ;;  %v10787_v10 = vpop.f32.mrb[55].mxu1  ;;  %v1671_v13 = vmax.f32 %v954_v56, 0.0  ;;  %v960_v56 = vadd.f32 %v10523_v38, %v10331_v36  ;;  %v1530_v38 = vadd.f32 %v10521_v30, %v10331_v36 }
 0x157   : > { %17844 = vst [vmem:[#allocation53_spill] sm:$0xff] %v10785_v1  ;;  %17845 = vst [vmem:[#allocation54_spill] sm:$0xff] %v10787_v10  ;;  %v1534_v30 = vadd.f32 %v10528_v51, %v10319_v26  ;;  %v966_v51 = vadd.f32 %v10536_v14, %v10331_v36  ;;  %v1540_v14 = vadd.f32 %v10548_v19, %v10319_v26 }
 0x158   : > { %v1673_v10 = vmax.f32 %v960_v56, 0.0  ;;  %9021 = vmatmul.mubr.msk.f32.gmra.mrb[132].mxu0 %vm428_vm0, %v348_v45  ;;  %v1863_v34 = vmax.f32 %v1530_v38, 0.0  ;;  %v1546_v19 = vadd.f32 %v10567_v35, %v10319_v26  ;;  %v1552_v35 = vadd.f32 %v10586_v6, %v10319_v26 }
 0x159   : > { %v10791_v7 = vpop.f32.mrb[56].mxu0  ;;  %v10793_v12 = vpop.f32.mrb[56].mxu1  ;;  %1279 = vmatprep.mubr.f32.mxu0 %v17824_v41  ;;  %v982_v6 = vadd.f32 %v10588_v16, %v10319_v26 }
 0x15a   : > { %17846 = vst [vmem:[#allocation55_spill] sm:$0xff] %v10793_v12  ;;  %3206 = vrot.lane.b32.xlu1 %v1671_v13, %s10014_s23  ;;  %2246 = vrot.lane.b32.xlu0 %v10777_v63, %s10013_s22  ;;  %v10801_v28 = vpop.f32.mrb[57].mxu0  ;;  %v10803_v1 = vpop.f32.mrb[57].mxu1  ;;  %v964_v13 = vadd.f32 %v10526_v50, %v10319_v26 }
 0x15b   : > { %17848 = vst [vmem:[#allocation57_spill] sm:$0xff] %v10803_v1 }
 0x15c   : > { %v10834_v50 = vmax.f32 %v964_v13, 0.0  ;;  %v349_v13 = vld [vmem:[%s10088_s19 + $0x218] sm:$0xff] }
 0x15d   : > { %v10808_v12 = vpop.f32.mrb[58].mxu0  ;;  %v10810_v54 = vpop.f32.mrb[58].mxu1  ;;  %9022 = vmatmul.mubr.msk.f32.gmra.mrb[134].mxu0 %vm428_vm0, %v349_v13  ;;  %v350_v13 = vld [vmem:[%s10088_s19 + $0x220] sm:$0xff] }
 0x15e   : > { %2056 = vrot.lane.b32.xlu1 %v10796_v44, %s10013_s22  ;;  %2568 = vrot.lane.b32.xlu0 %v10796_v44, %s10014_s23  ;;  %v10818_v24 = vpop.f32.mrb[59].mxu0  ;;  %v10820_v1 = vpop.f32.mrb[59].mxu1  ;;  %17851 = vst [vmem:[#allocation60_spill] sm:$0xff] %v10834_v50 }
 0x15f   : > { %1285 = vmatprep.mubr.f32.mxu0 %v17824_v41 }
 0x160   : > { %v10824_v47 = vpop.permute.xlu1 %2220  ;;  %v10826_v8 = vpop.permute.xlu0 %2030 }
 0x161   : > { %17849 = vst [vmem:[#allocation58_spill] sm:$0xff] %v10824_v47  ;;  %17850 = vst [vmem:[#allocation59_spill] sm:$0xff] %v10826_v8  ;;  %v10829_v48 = vpop.f32.mrb[60].mxu0  ;;  %v10831_v44 = vpop.f32.mrb[60].mxu1  ;;  %9023 = vmatmul.mubr.msk.f32.gmra.mrb[136].mxu0 %vm428_vm0, %v350_v13 }
 0x162   : > { %2758 = vrot.lane.b32.xlu1 %v10777_v63, %s10014_s23  ;;  %3208 = vrot.lane.b32.xlu0 %v1673_v10, %s10014_s23  ;;  %v10841_v56 = vpop.f32.mrb[61].mxu0  ;;  %v10843_v47 = vpop.f32.mrb[61].mxu1  ;;  %v10852_v63 = vmax.f32 %v1534_v30, 0.0  ;;  %v1536_v10 = vadd.f32 %v10538_v60, %v10331_v36 }
 0x163   : > { %17852 = vst [vmem:[#allocation61_spill] sm:$0xff] %v10841_v56  ;;  %1291 = vmatprep.mubr.f32.mxu0 %v17824_v41 }
 0x164   : > { %v10846_v8 = vpop.permute.xlu1 %2542  ;;  %v10848_v45 = vpop.permute.xlu0 %2032  ;;  %17855 = vst [vmem:[#allocation64_spill] sm:$0xff] %v10852_v63 }
 0x165   : > { %17853 = vst [vmem:[#allocation62_spill] sm:$0xff] %v10846_v8  ;;  %17854 = vst [vmem:[#allocation63_spill] sm:$0xff] %v10848_v45  ;;  %v10867_v30 = vpop.f32.mrb[62].mxu0  ;;  %v1865_v45 = vmax.f32 %v1536_v10, 0.0  ;;  %v351_v10 = vld [vmem:[%s10088_s19 + $0x228] sm:$0xff] }
 0x166   : > { %3398 = vrot.lane.b32.xlu1 %v1863_v34, %s10014_s23  ;;  %2058 = vrot.lane.b32.xlu0 %v10834_v50, %s10013_s22  ;;  %17857 = vst [vmem:[#allocation66_spill] sm:$0xff] %v10867_v30  ;;  %v970_v34 = vadd.f32 %v10546_v15, %v10319_v26  ;;  %v10878_v60 = vpop.f32.mrb[63].mxu0  ;;  %v1675_v50 = vmax.f32 %v966_v51, 0.0  ;;  %v976_v15 = vadd.f32 %v10565_v37, %v10319_v26 }
 0x167   : > { %17858 = vst [vmem:[#allocation67_spill] sm:$0xff] %v10878_v60  ;;  %9024 = vmatmul.mubr.msk.f32.gmra.mrb[138].mxu0 %vm428_vm0, %v351_v10  ;;  %v352_v60 = vld [vmem:[%s10088_s19 + $0x230] sm:$0xff] }
 0x168   : > { %v10862_v38 = vpop.permute.xlu1 %3182  ;;  %v10864_v8 = vpop.permute.xlu0 %2222  ;;  %1297 = vmatprep.mubr.f32.mxu0 %v17824_v41 }
 0x169   : > { %17856 = vst [vmem:[#allocation65_spill] sm:$0xff] %v10864_v8  ;;  %v10885_v30 = vpop.f32.mrb[64].mxu0  ;;  %v10889_v8 = vmax.f32 %v1540_v14, 0.0 }
 0x16a   : > { %2248 = vrot.lane.b32.xlu1 %v10852_v63, %s10013_s22  ;;  %2760 = vrot.lane.b32.xlu0 %v10852_v63, %s10014_s23  ;;  %v10887_v63 = vmax.f32 %v970_v34, 0.0  ;;  %v10897_v51 = vpop.f32.mrb[65].mxu0 }
 0x16b   : > { %17862 = vst [vmem:[#allocation71_spill] sm:$0xff] %v10889_v8  ;;  %9025 = vmatmul.mubr.msk.f32.gmra.mrb[140].mxu0 %vm428_vm0, %v352_v60 }
 0x16c   : > { %v10881_v13 = vpop.permute.xlu1 %2734  ;;  %v10883_v56 = vpop.permute.xlu0 %2544  ;;  %17861 = vst [vmem:[#allocation70_spill] sm:$0xff] %v10887_v63  ;;  %1303 = vmatprep.mubr.f32.mxu0 %v17824_v41 }
 0x16d   : > { %17859 = vst [vmem:[#allocation68_spill] sm:$0xff] %v10881_v13  ;;  %17860 = vst [vmem:[#allocation69_spill] sm:$0xff] %v10883_v56  ;;  %v10921_v13 = vpop.f32.mrb[66].mxu0  ;;  %v354_v56 = vld [vmem:[%s10088_s19 + $0x240] sm:$0xff] }
 0x16e   : > { %3210 = vrot.lane.b32.xlu1 %v1675_v50, %s10014_s23  ;;  %3400 = vrot.lane.b32.xlu0 %v1865_v45, %s10014_s23  ;;  %v10906_v50 = vmax.f32 %v976_v15, 0.0  ;;  %v10908_v45 = vmax.f32 %v1546_v19, 0.0  ;;  %v10924_v15 = vmax.f32 %v1552_v35, 0.0  ;;  %v10932_v19 = vpop.f32.mrb[67].mxu0 }
 0x170   : > { %v10901_v34 = vpop.permute.xlu1 %3374  ;;  %v10903_v14 = vpop.permute.xlu0 %3184  ;;  %17863 = vst [vmem:[#allocation72_spill] sm:$0xff] %v10906_v50  ;;  %17864 = vst [vmem:[#allocation73_spill] sm:$0xff] %v10908_v45 }
 0x171   : > { %17867 = vst [vmem:[#allocation76_spill] sm:$0xff] %v10924_v15 }
 0x172   : > { %2060 = vrot.lane.b32.xlu1 %v10887_v63, %s10013_s22  ;;  %2250 = vrot.lane.b32.xlu0 %v10889_v8, %s10013_s22  ;;  %v978_v63 = vadd.f32 %v10580_v4, %v10331_v36  ;;  %v353_v8 = vld [vmem:[%s10088_s19 + $0x238] sm:$0xff]  ;;  %v984_v4 = vadd.f32 %v10603_v5, %v10331_v36 }
 0x173   : > { %9026 = vmatmul.mubr.msk.f32.gmra.mrb[142].mxu0 %vm428_vm0, %v353_v8  ;;  %v10957_v8 = vpop.f32.mrb[68].mxu0 }
 0x174   : > { %v10916_v37 = vpop.permute.xlu1 %2034  ;;  %v10918_v10 = vpop.permute.xlu0 %2736  ;;  %1309 = vmatprep.mubr.f32.mxu0 %v17824_v41  ;;  %v1679_v16 = vmax.f32 %v978_v63, 0.0  ;;  %v988_v63 = vadd.f32 %v10606_v22, %v10319_v26  ;;  %v1681_v5 = vmax.f32 %v984_v4, 0.0  ;;  %v1558_v22 = vadd.f32 %v10608_v61, %v10319_v26  ;;  %v355_v4 = vld [vmem:[%s10088_s19 + $0x248] sm:$0xff] }
 0x175   : > { %17865 = vst [vmem:[#allocation74_spill] sm:$0xff] %v10916_v37  ;;  %17866 = vst [vmem:[#allocation75_spill] sm:$0xff] %v10918_v10 }
 0x176   : > { %2252 = vrot.lane.b32.xlu1 %v10908_v45, %s10013_s22  ;;  %2062 = vrot.lane.b32.xlu0 %v10906_v50, %s10013_s22  ;;  %v10943_v45 = vmax.f32 %v982_v6, 0.0  ;;  %v10965_v6 = vpop.f32.mrb[69].mxu0 }
 0x177   : > { %9027 = vmatmul.mubr.msk.f32.gmra.mrb[144].mxu0 %vm428_vm0, %v354_v56  ;;  %17871 = vst [vmem:[#allocation80_spill] sm:$0xff] %v10965_v6  ;;  %v10974_v56 = vmax.f32 %v988_v63, 0.0 }
 0x178   : > { %v10937_v60 = vpop.permute.xlu1 %2224  ;;  %v10939_v35 = vpop.permute.xlu0 %3376  ;;  %17868 = vst [vmem:[#allocation77_spill] sm:$0xff] %v10943_v45  ;;  %1315 = vmatprep.mubr.f32.mxu0 %v17824_v41 }
 0x179   : > { %17874 = vst [vmem:[#allocation83_spill] sm:$0xff] %v10974_v56 }
 0x17a   : > { %2574 = vrot.lane.b32.xlu1 %v10906_v50, %s10014_s23  ;;  %2254 = vrot.lane.b32.xlu0 %v10924_v15, %s10013_s22  ;;  %v10972_v50 = vpop.f32.mrb[70].mxu0 }
 0x17b   : > { %9028 = vmatmul.mubr.msk.f32.gmra.mrb[146].mxu0 %vm428_vm0, %v355_v4 }
 0x17c   : > { %v10952_v37 = vpop.permute.xlu1 %2036  ;;  %v10954_v10 = vpop.permute.xlu0 %3186  ;;  %1321 = vmatprep.mubr.f32.mxu0 %v17824_v41 }
 0x17d   : > { %17869 = vst [vmem:[#allocation78_spill] sm:$0xff] %v10952_v37  ;;  %17870 = vst [vmem:[#allocation79_spill] sm:$0xff] %v10954_v10 }
 0x17e   : > { %3214 = vrot.lane.b32.xlu1 %v1679_v16, %s10014_s23  ;;  %2576 = vrot.lane.b32.xlu0 %v10943_v45, %s10014_s23  ;;  %v10981_v16 = vpop.f32.mrb[71].mxu0 }
 0x17f   : > { %17875 = vst [vmem:[#allocation84_spill] sm:$0xff] %v10981_v16  ;;  %v10991_v63 = vpop.f32.mrb[72].mxu0  ;;  %v1560_v16 = vadd.f32 %v10620_v23, %v10331_v36  ;;  %v990_v23 = vadd.f32 %v10618_v21, %v10331_v36 }
 0x180   : > { %v10968_v37 = vpop.permute.xlu1 %2228  ;;  %v10970_v10 = vpop.permute.xlu0 %2226 }
 0x181   : > { %17872 = vst [vmem:[#allocation81_spill] sm:$0xff] %v10968_v37  ;;  %17873 = vst [vmem:[#allocation82_spill] sm:$0xff] %v10970_v10  ;;  %v1554_v37 = vadd.f32 %v10601_v32, %v10331_v36  ;;  %v11000_v32 = vpop.f32.mrb[73].mxu0 }
 0x182   : > { %2064 = vrot.lane.b32.xlu1 %v10943_v45, %s10013_s22  ;;  %3216 = vrot.lane.b32.xlu0 %v1681_v5, %s10014_s23  ;;  %v10994_v5 = vmax.f32 %v1558_v22, 0.0  ;;  %17878 = vst [vmem:[#allocation87_spill] sm:$0xff] %v11000_v32  ;;  %v356_v45 = vld [vmem:[%s10088_s19 + $0x250] sm:$0xff]  ;;  %v1564_v22 = vadd.f32 %v10627_v33, %v10319_v26  ;;  %v11023_v32 = vpop.f32.mrb[74].mxu0  ;;  %v1000_v33 = vadd.f32 %v10644_v42, %v10319_v26 }
 0x183   : > { %v1871_v61 = vmax.f32 %v1554_v37, 0.0  ;;  %9029 = vmatmul.mubr.msk.f32.gmra.mrb[148].mxu0 %vm428_vm0, %v356_v45  ;;  %v1873_v37 = vmax.f32 %v1560_v16, 0.0  ;;  %v357_v45 = vld [vmem:[%s10088_s19 + $0x258] sm:$0xff]  ;;  %17880 = vst [vmem:[#allocation89_spill] sm:$0xff] %v11023_v32  ;;  %v11033_v21 = vpop.f32.mrb[75].mxu0  ;;  %v1683_v16 = vmax.f32 %v990_v23, 0.0  ;;  %v1576_v42 = vadd.f32 %v10660_v9, %v10319_v26 }
 0x184   : > { %v10986_v10 = vpop.permute.xlu1 %2550  ;;  %v10988_v6 = vpop.permute.xlu0 %2038  ;;  %17877 = vst [vmem:[#allocation86_spill] sm:$0xff] %v10994_v5  ;;  %1327 = vmatprep.mubr.f32.mxu0 %v17824_v41  ;;  %17882 = vst [vmem:[#allocation91_spill] sm:$0xff] %v11033_v21  ;;  %v358_v32 = vld [vmem:[%s10088_s19 + $0x260] sm:$0xff] }
 0x185   : > { %17876 = vst [vmem:[#allocation85_spill] sm:$0xff] %v10986_v10  ;;  %v11051_v23 = vpop.f32.mrb[76].mxu0  ;;  %v11066_v9 = vmax.f32 %v1576_v42, 0.0  ;;  %v1002_v42 = vadd.f32 %v10654_v2, %v10331_v36  ;;  %v1012_v2 = vadd.f32 %v10679_v18, %v10319_v26  ;;  %v1582_v18 = vadd.f32 %v10681_v43, %v10319_v26 }
 0x186   : > { %2766 = vrot.lane.b32.xlu1 %v10924_v15, %s10014_s23  ;;  %2066 = vrot.lane.b32.xlu0 %v10974_v56, %s10013_s22  ;;  %17885 = vst [vmem:[#allocation94_spill] sm:$0xff] %v11051_v23  ;;  %v1578_v43 = vadd.f32 %v10672_v40, %v10331_v36 }
 0x187   : > { %9030 = vmatmul.mubr.msk.f32.gmra.mrb[150].mxu0 %vm428_vm0, %v357_v45  ;;  %17887 = vst [vmem:[#allocation96_spill] sm:$0xff] %v11066_v9 }
 0x188   : > { %v11004_v4 = vpop.permute.xlu1 %3190  ;;  %v11006_v10 = vpop.permute.xlu0 %2230  ;;  %1333 = vmatprep.mubr.f32.mxu0 %v17824_v41 }
 0x18a   : > { %3406 = vrot.lane.b32.xlu1 %v1871_v61, %s10014_s23  ;;  %2768 = vrot.lane.b32.xlu0 %v10994_v5, %s10014_s23  ;;  %v11026_v61 = vmax.f32 %v1564_v22, 0.0 }
 0x18b   : > { %9031 = vmatmul.mubr.msk.f32.gmra.mrb[152].mxu0 %vm428_vm0, %v358_v32 }
 0x18c   : > { %v11018_v56 = vpop.permute.xlu1 %2040  ;;  %v11020_v15 = vpop.permute.xlu0 %2552  ;;  %17881 = vst [vmem:[#allocation90_spill] sm:$0xff] %v11026_v61  ;;  %1339 = vmatprep.mubr.f32.mxu0 %v17824_v41 }
 0x18d   : > { %17879 = vst [vmem:[#allocation88_spill] sm:$0xff] %v11020_v15  ;;  %v994_v15 = vadd.f32 %v10625_v31, %v10319_v26 }
 0x18e   : > { %2256 = vrot.lane.b32.xlu1 %v10994_v5, %s10013_s22  ;;  %3408 = vrot.lane.b32.xlu0 %v1873_v37, %s10014_s23  ;;  %v11044_v37 = vmax.f32 %v1000_v33, 0.0  ;;  %v1570_v5 = vadd.f32 %v10646_v55, %v10319_v26  ;;  %v1006_v55 = vadd.f32 %v10662_v57, %v10319_v26  ;;  %v1008_v57 = vadd.f32 %v10674_v17, %v10331_v36 }
 0x18f   : > { %v11054_v31 = vmax.f32 %v994_v15, 0.0  ;;  %v1687_v17 = vmax.f32 %v1002_v42, 0.0 }
 0x190   : > { %v11038_v45 = vpop.permute.xlu1 %3382  ;;  %v11040_v22 = vpop.permute.xlu0 %2742  ;;  %17884 = vst [vmem:[#allocation93_spill] sm:$0xff] %v11044_v37  ;;  %v11075_v15 = vmax.f32 %v1570_v5, 0.0 }
 0x191   : > { %17883 = vst [vmem:[#allocation92_spill] sm:$0xff] %v11040_v22  ;;  %17886 = vst [vmem:[#allocation95_spill] sm:$0xff] %v11054_v31  ;;  %v11063_v22 = vpop.f32.mrb[77].mxu0 }
 0x192   : > { %3218 = vrot.lane.b32.xlu1 %v1683_v16, %s10014_s23  ;;  %2258 = vrot.lane.b32.xlu0 %v11026_v61, %s10013_s22  ;;  %v359_v16 = vld [vmem:[%s10088_s19 + $0x268] sm:$0xff]  ;;  %17888 = vst [vmem:[#allocation97_spill] sm:$0xff] %v11075_v15 }
 0x193   : > { %9032 = vmatmul.mubr.msk.f32.gmra.mrb[154].mxu0 %vm428_vm0, %v359_v16  ;;  %v11081_v16 = vmax.f32 %v1006_v55, 0.0  ;;  %v11096_v55 = vpop.f32.mrb[78].mxu0 }
 0x194   : > { %v11058_v32 = vpop.permute.xlu1 %2232  ;;  %v11060_v33 = vpop.permute.xlu0 %3192  ;;  %1345 = vmatprep.mubr.f32.mxu0 %v17824_v41  ;;  %17893 = vst [vmem:[#allocation102_spill] sm:$0xff] %v11096_v55 }
 0x195   : > { %17891 = vst [vmem:[#allocation100_spill] sm:$0xff] %v11081_v16 }
 0x196   : > { %2068 = vrot.lane.b32.xlu1 %v11054_v31, %s10013_s22  ;;  %2070 = vrot.lane.b32.xlu0 %v11044_v37, %s10013_s22 }
 0x198   : > { %v11077_v61 = vpop.permute.xlu1 %2744  ;;  %v11079_v23 = vpop.permute.xlu0 %2042 }
 0x199   : > { %17889 = vst [vmem:[#allocation98_spill] sm:$0xff] %v11077_v61  ;;  %17890 = vst [vmem:[#allocation99_spill] sm:$0xff] %v11079_v23  ;;  %v360_v23 = vld [vmem:[%s10088_s19 + $0x270] sm:$0xff] }
 0x19a   : > { %2260 = vrot.lane.b32.xlu1 %v11075_v15, %s10013_s22  ;;  %2262 = vrot.lane.b32.xlu0 %v11066_v9, %s10013_s22  ;;  %v11105_v15 = vpop.f32.mrb[79].mxu0 }
 0x19b   : > { %9033 = vmatmul.mubr.msk.f32.gmra.mrb[156].mxu0 %vm428_vm0, %v360_v23  ;;  %17894 = vst [vmem:[#allocation103_spill] sm:$0xff] %v11105_v15  ;;  %v361_v23 = vld [vmem:[%s10088_s19 + $0x278] sm:$0xff]  ;;  %v11113_v21 = vpop.f32.mrb[80].mxu0 }
 0x19c   : > { %v11091_v5 = vpop.permute.xlu1 %3194  ;;  %v11093_v31 = vpop.permute.xlu0 %3384  ;;  %1351 = vmatprep.mubr.f32.mxu0 %v17824_v41 }
 0x19d   : > { %17892 = vst [vmem:[#allocation101_spill] sm:$0xff] %v11091_v5  ;;  %v1689_v5 = vmax.f32 %v1008_v57, 0.0  ;;  %v11122_v42 = vpop.f32.mrb[81].mxu0 }
 0x19e   : > { %2582 = vrot.lane.b32.xlu1 %v11044_v37, %s10014_s23  ;;  %2584 = vrot.lane.b32.xlu0 %v11081_v16, %s10014_s23  ;;  %v11116_v37 = vmax.f32 %v1012_v2, 0.0  ;;  %v11131_v2 = vmax.f32 %v1582_v18, 0.0  ;;  %v11147_v18 = vpop.f32.mrb[82].mxu0 }
 0x19f   : > { %9034 = vmatmul.mubr.msk.f32.gmra.mrb[158].mxu0 %vm428_vm0, %v361_v23  ;;  %v11154_v40 = vpop.f32.mrb[83].mxu0 }
 0x1a0   : > { %v11108_v61 = vpop.permute.xlu1 %2044  ;;  %v11110_v55 = vpop.permute.xlu0 %2234  ;;  %17897 = vst [vmem:[#allocation106_spill] sm:$0xff] %v11116_v37  ;;  %1357 = vmatprep.mubr.f32.mxu0 %v17824_v41  ;;  %17899 = vst [vmem:[#allocation108_spill] sm:$0xff] %v11131_v2 }
 0x1a1   : > { %17895 = vst [vmem:[#allocation104_spill] sm:$0xff] %v11108_v61  ;;  %17896 = vst [vmem:[#allocation105_spill] sm:$0xff] %v11110_v55  ;;  %v362_v55 = vld [vmem:[%s10088_s19 + $0x280] sm:$0xff] }
 0x1a2   : > { %3222 = vrot.lane.b32.xlu1 %v1687_v17, %s10014_s23  ;;  %3224 = vrot.lane.b32.xlu0 %v1689_v5, %s10014_s23  ;;  %v1584_v5 = vadd.f32 %v10691_v49, %v10331_v36  ;;  %17901 = vst [vmem:[#allocation110_spill] sm:$0xff] %v11154_v40  ;;  %v1879_v49 = vmax.f32 %v1578_v43, 0.0  ;;  %v11174_v40 = vpop.f32.mrb[84].mxu0 }
 0x1a3   : > { %9035 = vmatmul.mubr.msk.f32.gmra.mrb[160].mxu0 %vm428_vm0, %v362_v55  ;;  %v363_v55 = vld [vmem:[%s10088_s19 + $0x288] sm:$0xff] }
 0x1a4   : > { %v11125_v57 = vpop.permute.xlu1 %2236  ;;  %v11127_v61 = vpop.permute.xlu0 %2046  ;;  %1363 = vmatprep.mubr.f32.mxu0 %v17824_v41  ;;  %v1881_v15 = vmax.f32 %v1584_v5, 0.0  ;;  %v364_v5 = vld [vmem:[%s10088_s19 + $0x290] sm:$0xff] }
 0x1a5   : > { %17898 = vst [vmem:[#allocation107_spill] sm:$0xff] %v11125_v57  ;;  %v1014_v57 = vadd.f32 %v10689_v53, %v10331_v36 }
 0x1a6   : > { %2072 = vrot.lane.b32.xlu1 %v11081_v16, %s10013_s22  ;;  %2074 = vrot.lane.b32.xlu0 %v11116_v37, %s10013_s22 }
 0x1a7   : > { %9036 = vmatmul.mubr.msk.f32.gmra.mrb[162].mxu0 %vm428_vm0, %v363_v55  ;;  %v1018_v55 = vadd.f32 %v10698_v52, %v10319_v26  ;;  %v1691_v43 = vmax.f32 %v1014_v57, 0.0  ;;  %v11186_v52 = vpop.f32.mrb[85].mxu0 }
 0x1a8   : > { %v11142_v17 = vpop.permute.xlu1 %2558  ;;  %v11144_v23 = vpop.permute.xlu0 %2238  ;;  %1369 = vmatprep.mubr.f32.mxu0 %v17824_v41 }
 0x1a9   : > { %17900 = vst [vmem:[#allocation109_spill] sm:$0xff] %v11142_v17 }
 0x1aa   : > { %2774 = vrot.lane.b32.xlu1 %v11066_v9, %s10014_s23  ;;  %2776 = vrot.lane.b32.xlu0 %v11131_v2, %s10014_s23  ;;  %v1588_v9 = vadd.f32 %v10700_v3, %v10319_v26  ;;  %v1024_v3 = vadd.f32 %v10714_v20, %v10319_v26  ;;  %v1030_v20 = vadd.f32 %v10733_v39, %v10319_v26 }
 0x1ab   : > { %9037 = vmatmul.mubr.msk.f32.gmra.mrb[164].mxu0 %vm428_vm0, %v364_v5 }
 0x1ac   : > { %v11159_v37 = vpop.permute.xlu1 %3198  ;;  %v11161_v17 = vpop.permute.xlu0 %2560  ;;  %1375 = vmatprep.mubr.f32.mxu0 %v17824_v41 }
 0x1ad   : > { %17902 = vst [vmem:[#allocation111_spill] sm:$0xff] %v11161_v17 }
 0x1ae   : > { %3414 = vrot.lane.b32.xlu1 %v1879_v49, %s10014_s23  ;;  %3416 = vrot.lane.b32.xlu0 %v1881_v15, %s10014_s23  ;;  %v11177_v49 = vmax.f32 %v1018_v55, 0.0  ;;  %v11179_v15 = vmax.f32 %v1588_v9, 0.0  ;;  %v365_v55 = vld [vmem:[%s10088_s19 + $0x298] sm:$0xff]  ;;  %v11194_v9 = vpop.f32.mrb[86].mxu0 }
 0x1af   : > { %9038 = vmatmul.mubr.msk.f32.gmra.mrb[166].mxu0 %vm428_vm0, %v365_v55 }
 0x1b0   : > { %v11169_v16 = vpop.permute.xlu1 %2048  ;;  %v11171_v53 = vpop.permute.xlu0 %3200  ;;  %17903 = vst [vmem:[#allocation112_spill] sm:$0xff] %v11177_v49  ;;  %17904 = vst [vmem:[#allocation113_spill] sm:$0xff] %v11179_v15  ;;  %1381 = vmatprep.mubr.f32.mxu0 %v17824_v41 }
 0x1b2   : > { %2264 = vrot.lane.b32.xlu1 %v11131_v2, %s10013_s22  ;;  %3226 = vrot.lane.b32.xlu0 %v1691_v43, %s10014_s23  ;;  %v11197_v2 = vmax.f32 %v1024_v3, 0.0  ;;  %v11205_v43 = vpop.f32.mrb[87].mxu0 }
 0x1b3   : > { %17908 = vst [vmem:[#allocation117_spill] sm:$0xff] %v11205_v43  ;;  %v1032_v43 = vadd.f32 %v10744_v25, %v10331_v36 }
 0x1b4   : > { %v11189_v57 = vpop.permute.xlu1 %2750  ;;  %v11191_v5 = vpop.permute.xlu0 %2050  ;;  %17907 = vst [vmem:[#allocation116_spill] sm:$0xff] %v11197_v2 }
 0x1b5   : > { %17905 = vst [vmem:[#allocation114_spill] sm:$0xff] %v11189_v57  ;;  %17906 = vst [vmem:[#allocation115_spill] sm:$0xff] %v11191_v5  ;;  %v1026_v5 = vadd.f32 %v10726_v58, %v10331_v36  ;;  %v366_v57 = vld [vmem:[%s10088_s19 + $0x2a0] sm:$0xff]  ;;  %v1697_v25 = vmax.f32 %v1032_v43, 0.0 }
 0x1b6   : > { %2076 = vrot.lane.b32.xlu1 %v11177_v49, %s10013_s22  ;;  %2266 = vrot.lane.b32.xlu0 %v11179_v15, %s10013_s22  ;;  %v11215_v49 = vpop.f32.mrb[88].mxu0  ;;  %v11218_v15 = vmax.f32 %v1030_v20, 0.0  ;;  %v1036_v20 = vadd.f32 %v10751_v0, %v10319_v26  ;;  %v1606_v0 = vadd.f32 %v10753_v62, %v10319_v26  ;;  %v1042_v62 = vadd.f32 %v10772_v29, %v10319_v26 }
 0x1b7   : > { %9039 = vmatmul.mubr.msk.f32.gmra.mrb[168].mxu0 %vm428_vm0, %v366_v57  ;;  %v11224_v39 = vpop.f32.mrb[89].mxu0  ;;  %v1695_v58 = vmax.f32 %v1026_v5, 0.0  ;;  %v367_v57 = vld [vmem:[%s10088_s19 + $0x2a8] sm:$0xff]  ;;  %v1600_v5 = vadd.f32 %v10735_v27, %v10319_v26  ;;  %v1048_v29 = vadd.f32 %v10791_v7, %v10319_v26 }
 0x1b8   : > { %v11210_v55 = vpop.permute.xlu1 %3390  ;;  %v11212_v3 = vpop.permute.xlu0 %2752  ;;  %17910 = vst [vmem:[#allocation119_spill] sm:$0xff] %v11218_v15  ;;  %17911 = vst [vmem:[#allocation120_spill] sm:$0xff] %v11224_v39  ;;  %1387 = vmatprep.mubr.f32.mxu0 %v17824_v41 }
 0x1b9   : > { %17909 = vst [vmem:[#allocation118_spill] sm:$0xff] %v11212_v3  ;;  %v11256_v27 = vpop.f32.mrb[90].mxu0 }
 0x1ba   : > { %2590 = vrot.lane.b32.xlu1 %v11197_v2, %s10014_s23  ;;  %2078 = vrot.lane.b32.xlu0 %v11197_v2, %s10013_s22  ;;  %v11258_v43 = vpop.f32.mrb[91].mxu0 }
 0x1bb   : > { %9040 = vmatmul.mubr.msk.f32.gmra.mrb[170].mxu0 %vm428_vm0, %v367_v57  ;;  %v11247_v57 = vmax.f32 %v1036_v20, 0.0 }
 0x1bc   : > { %v11229_v3 = vpop.permute.xlu1 %2240  ;;  %v11231_v17 = vpop.permute.xlu0 %3392  ;;  %1393 = vmatprep.mubr.f32.mxu0 %v17824_v41 }
 0x1bd   : > { %17914 = vst [vmem:[#allocation123_spill] sm:$0xff] %v11247_v57 }
 0x1be   : > { %3230 = vrot.lane.b32.xlu1 %v1695_v58, %s10014_s23  ;;  %2592 = vrot.lane.b32.xlu0 %v11218_v15, %s10014_s23  ;;  %v11249_v58 = vmax.f32 %v1600_v5, 0.0 }
 0x1c0   : > { %v11243_v2 = vpop.permute.xlu1 %2052  ;;  %v11245_v39 = vpop.permute.xlu0 %3202  ;;  %17915 = vst [vmem:[#allocation124_spill] sm:$0xff] %v11249_v58 }
 0x1c1   : > { %17912 = vst [vmem:[#allocation121_spill] sm:$0xff] %v11243_v2  ;;  %17913 = vst [vmem:[#allocation122_spill] sm:$0xff] %v11245_v39  ;;  %v1602_v2 = vadd.f32 %v10746_v59, %v10331_v36  ;;  %v368_v39 = vld [vmem:[%s10088_s19 + $0x2b0] sm:$0xff] }
 0x1c2   : > { %2080 = vrot.lane.b32.xlu1 %v11218_v15, %s10013_s22  ;;  %3232 = vrot.lane.b32.xlu0 %v1697_v25, %s10014_s23  ;;  %v11268_v15 = vmax.f32 %v1606_v0, 0.0  ;;  %v1608_v25 = vadd.f32 %v10766_v46, %v10331_v36  ;;  %v369_v0 = vld [vmem:[%s10088_s19 + $0x2b8] sm:$0xff] }
 0x1c3   : > { %9041 = vmatmul.mubr.msk.f32.gmra.mrb[172].mxu0 %vm428_vm0, %v368_v39  ;;  %v1887_v59 = vmax.f32 %v1602_v2, 0.0  ;;  %v1038_v2 = vadd.f32 %v10764_v11, %v10331_v36 }
 0x1c4   : > { %v11262_v20 = vpop.permute.xlu1 %2244  ;;  %v11264_v5 = vpop.permute.xlu0 %2242  ;;  %17918 = vst [vmem:[#allocation127_spill] sm:$0xff] %v11268_v15  ;;  %1399 = vmatprep.mubr.f32.mxu0 %v17824_v41 }
 0x1c5   : > { %17916 = vst [vmem:[#allocation125_spill] sm:$0xff] %v11262_v20  ;;  %17917 = vst [vmem:[#allocation126_spill] sm:$0xff] %v11264_v5  ;;  %v11284_v5 = vpop.f32.mrb[92].mxu0  ;;  %v1699_v11 = vmax.f32 %v1038_v2, 0.0 }
 0x1c6   : > { %2270 = vrot.lane.b32.xlu1 %v11249_v58, %s10013_s22  ;;  %2082 = vrot.lane.b32.xlu0 %v11247_v57, %s10013_s22  ;;  %17920 = vst [vmem:[#allocation129_spill] sm:$0xff] %v11284_v5  ;;  %v11287_v57 = vmax.f32 %v1042_v62, 0.0  ;;  %v11294_v46 = vpop.f32.mrb[93].mxu0  ;;  %v1889_v58 = vmax.f32 %v1608_v25, 0.0  ;;  %v1050_v25 = vadd.f32 %v10801_v28, %v10331_v36 }
 0x1c7   : > { %9042 = vmatmul.mubr.msk.f32.gmra.mrb[174].mxu0 %vm428_vm0, %v369_v0  ;;  %v11310_v7 = vpop.f32.mrb[94].mxu0 }
 0x1c8   : > { %v11279_v20 = vpop.permute.xlu1 %2566  ;;  %v11281_v39 = vpop.permute.xlu0 %2054  ;;  %17921 = vst [vmem:[#allocation130_spill] sm:$0xff] %v11287_v57  ;;  %1405 = vmatprep.mubr.f32.mxu0 %v17824_v41  ;;  %v1703_v28 = vmax.f32 %v1050_v25, 0.0 }
 0x1c9   : > { %17919 = vst [vmem:[#allocation128_spill] sm:$0xff] %v11279_v20  ;;  %v11312_v20 = vpop.f32.mrb[95].mxu0 }
 0x1ca   : > { %3422 = vrot.lane.b32.xlu1 %v1887_v59, %s10014_s23  ;;  %2272 = vrot.lane.b32.xlu0 %v11268_v15, %s10013_s22  ;;  %v370_v59 = vld [vmem:[%s10088_s19 + $0x2c0] sm:$0xff]  ;;  %v11305_v15 = vmax.f32 %v1048_v29, 0.0  ;;  %17923 = vst [vmem:[#allocation132_spill] sm:$0xff] %v11312_v20  ;;  %v371_v29 = vld [vmem:[%s10088_s19 + $0x2c8] sm:$0xff] }
 0x1cb   : > { %9043 = vmatmul.mubr.msk.f32.gmra.mrb[176].mxu0 %vm428_vm0, %v370_v59 }
 0x1cc   : > { %v11299_v0 = vpop.permute.xlu1 %3206  ;;  %v11301_v62 = vpop.permute.xlu0 %2246  ;;  %17922 = vst [vmem:[#allocation131_spill] sm:$0xff] %v11305_v15  ;;  %1411 = vmatprep.mubr.f32.mxu0 %v17824_v41 }
 0x1ce   : > { %2084 = vrot.lane.b32.xlu1 %v11287_v57, %s10013_s22  ;;  %3424 = vrot.lane.b32.xlu0 %v1889_v58, %s10014_s23  ;;  %v1054_v58 = vadd.f32 %v10808_v12, %v10319_v26  ;;  %v11328_v57 = vpop.f32.mrb[96].mxu0  ;;  %v1624_v12 = vadd.f32 %v10810_v54, %v10319_v26  ;;  %v1060_v54 = vadd.f32 %v10829_v48, %v10319_v26 }
 0x1cf   : > { %9044 = vmatmul.mubr.msk.f32.gmra.mrb[178].mxu0 %vm428_vm0, %v371_v29  ;;  %17925 = vst [vmem:[#allocation134_spill] sm:$0xff] %v11328_v57  ;;  %v11330_v2 = vpop.f32.mrb[97].mxu0  ;;  %v1630_v48 = vadd.f32 %v10831_v44, %v10319_v26  ;;  %v374_v44 = vld [vmem:[%s10088_s19 + $0x2e0] sm:$0xff] }
 0x1d0   : > { %v11317_v5 = vpop.permute.xlu1 %2056  ;;  %v11319_v59 = vpop.permute.xlu0 %2568  ;;  %17926 = vst [vmem:[#allocation135_spill] sm:$0xff] %v11330_v2  ;;  %1417 = vmatprep.mubr.f32.mxu0 %v17824_v41  ;;  %v11337_v29 = vmax.f32 %v1054_v58, 0.0  ;;  %v11352_v57 = vmax.f32 %v1624_v12, 0.0  ;;  %v1626_v12 = vadd.f32 %v10820_v1, %v10331_v36 }
 0x1d1   : > { %17924 = vst [vmem:[#allocation133_spill] sm:$0xff] %v11319_v59 }
 0x1d2   : > { %2598 = vrot.lane.b32.xlu1 %v11305_v15, %s10014_s23  ;;  %3234 = vrot.lane.b32.xlu0 %v1699_v11, %s10014_s23  ;;  %17928 = vst [vmem:[#allocation137_spill] sm:$0xff] %v11337_v29  ;;  %v1056_v11 = vadd.f32 %v10818_v24, %v10331_v36  ;;  %17931 = vst [vmem:[#allocation140_spill] sm:$0xff] %v11352_v57  ;;  %v372_v24 = vld [vmem:[%s10088_s19 + $0x2d0] sm:$0xff] }
 0x1d3   : > { %9045 = vmatmul.mubr.msk.f32.gmra.mrb[180].mxu0 %vm428_vm0, %v372_v24  ;;  %v1895_v24 = vmax.f32 %v1626_v12, 0.0 }
 0x1d4   : > { %v11333_v20 = vpop.permute.xlu1 %2758  ;;  %v11335_v59 = vpop.permute.xlu0 %3208  ;;  %1423 = vmatprep.mubr.f32.mxu0 %v17824_v41 }
 0x1d5   : > { %17927 = vst [vmem:[#allocation136_spill] sm:$0xff] %v11333_v20  ;;  %v11350_v20 = vpop.f32.mrb[98].mxu0 }
 0x1d6   : > { %3238 = vrot.lane.b32.xlu1 %v1703_v28, %s10014_s23  ;;  %2086 = vrot.lane.b32.xlu0 %v11305_v15, %s10013_s22  ;;  %17930 = vst [vmem:[#allocation139_spill] sm:$0xff] %v11350_v20  ;;  %v11360_v58 = vpop.f32.mrb[99].mxu0  ;;  %v1705_v28 = vmax.f32 %v1056_v11, 0.0  ;;  %v11373_v20 = vmax.f32 %v1060_v54, 0.0  ;;  %v373_v11 = vld [vmem:[%s10088_s19 + $0x2d8] sm:$0xff]  ;;  %v17938_v54 = vld [vmem:[#allocation59_spill] sm:$0xff] }
 0x1d7   : > { %9046 = vmatmul.mubr.msk.f32.gmra.mrb[182].mxu0 %vm428_vm0, %v373_v11  ;;  %v1632_v11 = vadd.f32 %v10843_v47, %v10331_v36 }
 0x1d8   : > { %v11346_v2 = vpop.permute.xlu1 %3398  ;;  %v11348_v25 = vpop.permute.xlu0 %2058  ;;  %17935 = vst [vmem:[#allocation144_spill] sm:$0xff] %v11373_v20  ;;  %1429 = vmatprep.mubr.f32.mxu0 %v17824_v41 }
 0x1d9   : > { %17929 = vst [vmem:[#allocation138_spill] sm:$0xff] %v11348_v25 }
 0x1da   : > { %2088 = vrot.lane.b32.xlu1 %v11337_v29, %s10013_s22  ;;  %2600 = vrot.lane.b32.xlu0 %v11337_v29, %s10014_s23  ;;  %v11371_v29 = vpop.f32.mrb[100].mxu0 }
 0x1db   : > { %17934 = vst [vmem:[#allocation143_spill] sm:$0xff] %v11371_v29  ;;  %v11380_v1 = vpop.f32.mrb[101].mxu0  ;;  %v17939_v29 = vld [vmem:[#allocation5_spill] sm:$0xff]  ;;  %9047 = vmatmul.mubr.msk.f32.gmra.mrb[184].mxu0 %vm428_vm0, %v374_v44 }
 0x1dc   : > { %v11366_v25 = vpop.permute.xlu1 %2248  ;;  %v11368_v15 = vpop.permute.xlu0 %2760  ;;  %1435 = vmatprep.mubr.f32.mxu0 %v17824_v41 }
 0x1dd   : > { %17932 = vst [vmem:[#allocation141_spill] sm:$0xff] %v11366_v25  ;;  %17933 = vst [vmem:[#allocation142_spill] sm:$0xff] %v11368_v15 }
 0x1de   : > { %2278 = vrot.lane.b32.xlu1 %v11352_v57, %s10013_s22  ;;  %3240 = vrot.lane.b32.xlu0 %v1705_v28, %s10014_s23  ;;  %v11391_v57 = vmax.f32 %v17939_v29, %v17938_v54  ;;  %v11393_v28 = vmax.f32 %v1630_v48, 0.0  ;;  %v11409_v48 = vpop.f32.mrb[102].mxu0  ;;  %v17945_v54 = vld [vmem:[#allocation9_spill] sm:$0xff] }
 0x1df   : > { %17943 = vst [vmem:[#allocation148_spill] sm:$0xff] %v11409_v48  ;;  %v11420_v44 = vpop.f32.mrb[103].mxu0 }
 0x1e0   : > { %v11384_v15 = vpop.permute.xlu1 %3210  ;;  %v11386_v25 = vpop.permute.xlu0 %3400  ;;  %17940 = vst [vmem:[#allocation59_spill] sm:$0xff] %v11393_v28  ;;  %v3566_v12 = vmax.f32 %v11391_v57, %v10862_v38  ;;  %v17947_v38 = vld [vmem:[#allocation66_spill] sm:$0xff]  ;;  %17948 = vst [vmem:[#allocation9_spill] sm:$0xff] %v11420_v44 }
 0x1e1   : > { %17936 = vst [vmem:[#allocation145_spill] sm:$0xff] %v11384_v15  ;;  %17937 = vst [vmem:[#allocation146_spill] sm:$0xff] %v11386_v25  ;;  %v1066_v47 = vadd.f32 %v17947_v38, %v10319_v26  ;;  %v17949_v25 = vld [vmem:[#allocation61_spill] sm:$0xff] }
 0x1e2   : > { %3430 = vrot.lane.b32.xlu1 %v1895_v24, %s10014_s23  ;;  %2090 = vrot.lane.b32.xlu0 %v11373_v20, %s10013_s22  ;;  %v17944_v24 = vld [vmem:[#allocation65_spill] sm:$0xff]  ;;  %v1062_v48 = vadd.f32 %v17949_v25, %v10331_v36 }
 0x1e3   : > { %v11413_v20 = vmax.f32 %v17945_v54, %v17944_v24  ;;  %v1897_v24 = vmax.f32 %v1632_v11, 0.0  ;;  %v11435_v38 = vmax.f32 %v1066_v47, 0.0  ;;  %v17955_v47 = vld [vmem:[#allocation63_spill] sm:$0xff] }
 0x1e4   : > { %v11404_v15 = vpop.permute.xlu1 %2060  ;;  %v11406_v29 = vpop.permute.xlu0 %2250  ;;  %v1707_v11 = vmax.f32 %v1062_v48, 0.0 }
 0x1e5   : > { %17941 = vst [vmem:[#allocation5_spill] sm:$0xff] %v11404_v15  ;;  %17942 = vst [vmem:[#allocation147_spill] sm:$0xff] %v11406_v29  ;;  %v375_v15 = vld [vmem:[%s10088_s19 + $0x2e8] sm:$0xff]  ;;  %v3662_v29 = vmax.f32 %v11413_v20, %v10901_v34  ;;  %v1072_v34 = vadd.f32 %v10885_v30, %v10319_v26 }
 0x1e6   : > { %17946 = vst [vmem:[#allocation65_spill] sm:$0xff] %v11413_v20  ;;  %3822 = vrot.lane.b32.xlu1 %v3566_v12, %s10013_s22  ;;  %2280 = vrot.lane.b32.xlu0 %v11393_v28, %s10013_s22  ;;  %v11432_v28 = vpop.f32.mrb[104].mxu0  ;;  %17952 = vst [vmem:[#allocation149_spill] sm:$0xff] %v11435_v38  ;;  %v17956_v20 = vld [vmem:[#allocation8_spill] sm:$0xff] }
 0x1e7   : > { %9048 = vmatmul.mubr.msk.f32.gmra.mrb[186].mxu0 %vm428_vm0, %v375_v15  ;;  %17951 = vst [vmem:[#allocation61_spill] sm:$0xff] %v11432_v28  ;;  %v11441_v25 = vpop.f32.mrb[105].mxu0  ;;  %v376_v15 = vld [vmem:[%s10088_s19 + $0x2f0] sm:$0xff] }
 0x1e8   : > { %v11427_v54 = vpop.permute.xlu1 %2252  ;;  %v11429_v12 = vpop.permute.xlu0 %2062  ;;  %1441 = vmatprep.mubr.f32.mxu0 %v17824_v41 }
 0x1e9   : > { %17950 = vst [vmem:[#allocation66_spill] sm:$0xff] %v11427_v54  ;;  %v11448_v28 = vpop.f32.mrb[106].mxu0 }
 0x1ea   : > { %4014 = vrot.lane.b32.xlu1 %v3662_v29, %s10013_s22  ;;  %3432 = vrot.lane.b32.xlu0 %v1897_v24, %s10014_s23  ;;  %v11453_v29 = vmax.f32 %v17956_v20, %v17955_v47  ;;  %v11455_v24 = vmax.f32 %v1072_v34, 0.0  ;;  %v11460_v30 = vpop.f32.mrb[107].mxu0  ;;  %v1074_v20 = vadd.f32 %v10897_v51, %v10331_v36 }
 0x1eb   : > { %9049 = vmatmul.mubr.msk.f32.gmra.mrb[188].mxu0 %vm428_vm0, %v376_v15  ;;  %17958 = vst [vmem:[#allocation8_spill] sm:$0xff] %v11460_v30  ;;  %v11485_v51 = vpop.f32.mrb[108].mxu0 }
 0x1ec   : > { %v11443_v54 = vpop.permute.xlu1 %2574  ;;  %v11445_v44 = vpop.permute.xlu0 %2254  ;;  %17957 = vst [vmem:[#allocation63_spill] sm:$0xff] %v11455_v24  ;;  %v3567_v48 = vmax.f32 %v11453_v29, %v10903_v14 }
 0x1ed   : > { %17953 = vst [vmem:[#allocation150_spill] sm:$0xff] %v11443_v54  ;;  %17954 = vst [vmem:[#allocation151_spill] sm:$0xff] %v11445_v44  ;;  %v17959_v44 = vld [vmem:[#allocation13_spill] sm:$0xff] }
 0x1ee   : > { %2092 = vrot.lane.b32.xlu1 %v11435_v38, %s10013_s22  ;;  %3242 = vrot.lane.b32.xlu0 %v1707_v11, %s10014_s23  ;;  %v11466_v54 = vmax.f32 %v17959_v44, %v10937_v60  ;;  %v1078_v11 = vadd.f32 %v10921_v13, %v10319_v26  ;;  %v1711_v60 = vmax.f32 %v1074_v20, 0.0  ;;  %v17965_v20 = vld [vmem:[#allocation21_spill] sm:$0xff] }
 0x1ef   : > { %v11501_v30 = vmax.f32 %v17965_v20, %v10988_v6  ;;  %v17969_v20 = vld [vmem:[#allocation22_spill] sm:$0xff] }
 0x1f0   : > { %v11470_v15 = vpop.permute.xlu1 %3214  ;;  %v11472_v34 = vpop.permute.xlu0 %2576  ;;  %v3663_v14 = vmax.f32 %v11466_v54, %v10939_v35  ;;  %v11487_v38 = vmax.f32 %v1078_v11, 0.0 }
 0x1f1   : > { %17960 = vst [vmem:[#allocation13_spill] sm:$0xff] %v11472_v34 }
 0x1f2   : > { %2606 = vrot.lane.b32.xlu1 %v11455_v24, %s10014_s23  ;;  %3824 = vrot.lane.b32.xlu0 %v3567_v48, %s10013_s22  ;;  %17961 = vst [vmem:[#allocation152_spill] sm:$0xff] %v11487_v38  ;;  %v11491_v48 = vpop.f32.mrb[109].mxu0 }
 0x1f3   : > { %v11497_v35 = vpop.f32.mrb[110].mxu0 }
 0x1f4   : > { %v11481_v44 = vpop.permute.xlu1 %2064  ;;  %v11483_v47 = vpop.permute.xlu0 %3216  ;;  %17964 = vst [vmem:[#allocation155_spill] sm:$0xff] %v11497_v35  ;;  %v11521_v35 = vmax.f32 %v17969_v20, %v11006_v10 }
 0x1f5   : > { %v11507_v11 = vpop.f32.mrb[111].mxu0 }
 0x1f6   : > { %3246 = vrot.lane.b32.xlu1 %v1711_v60, %s10014_s23  ;;  %4016 = vrot.lane.b32.xlu0 %v3663_v14, %s10013_s22  ;;  %17966 = vst [vmem:[#allocation21_spill] sm:$0xff] %v11507_v11  ;;  %v3570_v14 = vmax.f32 %v11501_v30, %v11004_v4  ;;  %v1080_v60 = vadd.f32 %v10932_v19, %v10331_v36  ;;  %v11517_v6 = vpop.f32.mrb[112].mxu0 }
 0x1f7   : > { %v1090_v4 = vadd.f32 %v10972_v50, %v10319_v26  ;;  %v11528_v11 = vpop.f32.mrb[113].mxu0  ;;  %v3666_v19 = vmax.f32 %v11521_v35, %v11038_v45  ;;  %v1096_v50 = vadd.f32 %v10991_v63, %v10319_v26 }
 0x1f8   : > { %v11493_v34 = vpop.permute.xlu1 %2766  ;;  %v11495_v13 = vpop.permute.xlu0 %2066  ;;  %17970 = vst [vmem:[#allocation22_spill] sm:$0xff] %v11528_v11 }
 0x1f9   : > { %17962 = vst [vmem:[#allocation153_spill] sm:$0xff] %v11493_v34  ;;  %17963 = vst [vmem:[#allocation154_spill] sm:$0xff] %v11495_v13  ;;  %v11540_v20 = vmax.f32 %v1090_v4, 0.0  ;;  %v11556_v4 = vmax.f32 %v1096_v50, 0.0 }
 0x1fa   : > { %2096 = vrot.lane.b32.xlu1 %v11487_v38, %s10013_s22  ;;  %2094 = vrot.lane.b32.xlu0 %v11455_v24, %s10013_s22 }
 0x1fb   : > { %17973 = vst [vmem:[#allocation160_spill] sm:$0xff] %v11540_v20  ;;  %17979 = vst [vmem:[#allocation164_spill] sm:$0xff] %v11556_v4 }
 0x1fc   : > { %v11513_v13 = vpop.permute.xlu1 %3406  ;;  %v11515_v34 = vpop.permute.xlu0 %2768 }
 0x1fd   : > { %17967 = vst [vmem:[#allocation156_spill] sm:$0xff] %v11513_v13  ;;  %17968 = vst [vmem:[#allocation157_spill] sm:$0xff] %v11515_v34  ;;  %v1713_v34 = vmax.f32 %v1080_v60, 0.0  ;;  %v1084_v13 = vadd.f32 %v10957_v8, %v10319_v26  ;;  %v17976_v8 = vld [vmem:[#allocation80_spill] sm:$0xff] }
 0x1fe   : > { %3830 = vrot.lane.b32.xlu1 %v3570_v14, %s10013_s22  ;;  %2608 = vrot.lane.b32.xlu0 %v11487_v38, %s10014_s23  ;;  %v11538_v14 = vpop.f32.mrb[114].mxu0 }
 0x1ff   : > { %v11546_v45 = vpop.f32.mrb[115].mxu0  ;;  %v11548_v60 = vmax.f32 %v1084_v13, 0.0 }
 0x200   : > { %v11534_v24 = vpop.permute.xlu1 %2256  ;;  %v11536_v10 = vpop.permute.xlu0 %3408  ;;  %17974 = vst [vmem:[#allocation161_spill] sm:$0xff] %v11546_v45 }
 0x201   : > { %17971 = vst [vmem:[#allocation158_spill] sm:$0xff] %v11534_v24  ;;  %17972 = vst [vmem:[#allocation159_spill] sm:$0xff] %v11536_v10  ;;  %v1086_v24 = vadd.f32 %v17976_v8, %v10331_v36  ;;  %v11568_v8 = vpop.f32.mrb[116].mxu0 }
 0x202   : > { %4022 = vrot.lane.b32.xlu1 %v3666_v19, %s10013_s22  ;;  %3248 = vrot.lane.b32.xlu0 %v1713_v34, %s10014_s23  ;;  %17975 = vst [vmem:[#allocation162_spill] sm:$0xff] %v11548_v60  ;;  %v17980_v34 = vld [vmem:[#allocation87_spill] sm:$0xff]  ;;  %17982 = vst [vmem:[#allocation165_spill] sm:$0xff] %v11568_v8 }
 0x203   : > { %v1715_v63 = vmax.f32 %v1086_v24, 0.0  ;;  %v1098_v13 = vadd.f32 %v17980_v34, %v10331_v36  ;;  %v17984_v24 = vld [vmem:[#allocation89_spill] sm:$0xff] }
 0x204   : > { %v11552_v38 = vpop.permute.xlu1 %3218  ;;  %v11554_v10 = vpop.permute.xlu0 %2258 }
 0x205   : > { %17977 = vst [vmem:[#allocation80_spill] sm:$0xff] %v11552_v38  ;;  %17978 = vst [vmem:[#allocation163_spill] sm:$0xff] %v11554_v10  ;;  %v17983_v10 = vld [vmem:[#allocation23_spill] sm:$0xff]  ;;  %v11579_v38 = vpop.f32.mrb[117].mxu0 }
 0x206   : > { %2100 = vrot.lane.b32.xlu1 %v11540_v20, %s10013_s22  ;;  %2098 = vrot.lane.b32.xlu0 %v11548_v60, %s10013_s22  ;;  %v11572_v50 = vmax.f32 %v17983_v10, %v11018_v56  ;;  %v1102_v20 = vadd.f32 %v17984_v24, %v10319_v26  ;;  %v11587_v56 = vpop.f32.mrb[118].mxu0  ;;  %v17988_v10 = vld [vmem:[#allocation27_spill] sm:$0xff] }
 0x207   : > { %17987 = vst [vmem:[#allocation166_spill] sm:$0xff] %v11587_v56  ;;  %v11591_v11 = vmax.f32 %v17988_v10, %v11058_v32  ;;  %v11597_v24 = vpop.f32.mrb[119].mxu0  ;;  %v17993_v32 = vld [vmem:[#allocation34_spill] sm:$0xff] }
 0x208   : > { %v11564_v19 = vpop.permute.xlu1 %2068  ;;  %v11566_v45 = vpop.permute.xlu0 %2070  ;;  %v3571_v34 = vmax.f32 %v11572_v50, %v11060_v33  ;;  %17990 = vst [vmem:[#allocation167_spill] sm:$0xff] %v11597_v24  ;;  %v11609_v10 = vmax.f32 %v17993_v32, %v11127_v61 }
 0x209   : > { %17981 = vst [vmem:[#allocation87_spill] sm:$0xff] %v11564_v19  ;;  %v1719_v19 = vmax.f32 %v1098_v13, 0.0  ;;  %v3667_v33 = vmax.f32 %v11591_v11, %v11093_v31 }
 0x20a   : > { %2614 = vrot.lane.b32.xlu1 %v11556_v4, %s10014_s23  ;;  %3250 = vrot.lane.b32.xlu0 %v1715_v63, %s10014_s23  ;;  %v11593_v63 = vmax.f32 %v1102_v20, 0.0  ;;  %17994 = vst [vmem:[#allocation34_spill] sm:$0xff] %v11609_v10  ;;  %v1110_v20 = vadd.f32 %v11063_v22, %v10331_v36  ;;  %v3574_v31 = vmax.f32 %v11609_v10, %v11159_v37 }
 0x20c   : > { %v11583_v60 = vpop.permute.xlu1 %2260  ;;  %v11585_v8 = vpop.permute.xlu0 %2262  ;;  %17989 = vst [vmem:[#allocation27_spill] sm:$0xff] %v11593_v63 }
 0x20d   : > { %17985 = vst [vmem:[#allocation23_spill] sm:$0xff] %v11583_v60  ;;  %17986 = vst [vmem:[#allocation89_spill] sm:$0xff] %v11585_v8  ;;  %v11605_v8 = vpop.f32.mrb[120].mxu0 }
 0x20e   : > { %3254 = vrot.lane.b32.xlu1 %v1719_v19, %s10014_s23  ;;  %3832 = vrot.lane.b32.xlu0 %v3571_v34, %s10013_s22  ;;  %v11616_v19 = vpop.f32.mrb[121].mxu0 }
 0x20f   : > { %17995 = vst [vmem:[#allocation170_spill] sm:$0xff] %v11616_v19  ;;  %v11627_v61 = vpop.f32.mrb[122].mxu0  ;;  %v18000_v19 = vld [vmem:[#allocation36_spill] sm:$0xff] }
 0x210   : > { %v11601_v13 = vpop.permute.xlu1 %2582  ;;  %v11603_v60 = vpop.permute.xlu0 %2584  ;;  %17996 = vst [vmem:[#allocation171_spill] sm:$0xff] %v11627_v61  ;;  %v11639_v10 = vmax.f32 %v18000_v19, %v11144_v23  ;;  %v1120_v19 = vadd.f32 %v11113_v21, %v10319_v26 }
 0x211   : > { %17991 = vst [vmem:[#allocation168_spill] sm:$0xff] %v11601_v13  ;;  %17992 = vst [vmem:[#allocation169_spill] sm:$0xff] %v11603_v60  ;;  %v1723_v60 = vmax.f32 %v1110_v20, 0.0  ;;  %v11635_v37 = vpop.f32.mrb[123].mxu0  ;;  %v18001_v20 = vld [vmem:[#allocation102_spill] sm:$0xff] }
 0x212   : > { %2104 = vrot.lane.b32.xlu1 %v11593_v63, %s10013_s22  ;;  %4024 = vrot.lane.b32.xlu0 %v3667_v33, %s10013_s22  ;;  %v17997_v33 = vld [vmem:[#allocation91_spill] sm:$0xff]  ;;  %17999 = vst [vmem:[#allocation172_spill] sm:$0xff] %v11635_v37  ;;  %v11654_v23 = vpop.f32.mrb[124].mxu0 }
 0x213   : > { %v1104_v22 = vadd.f32 %v17997_v33, %v10331_v36  ;;  %v3670_v33 = vmax.f32 %v11639_v10, %v11210_v55  ;;  %v11662_v55 = vpop.f32.mrb[125].mxu0 }
 0x214   : > { %v11620_v34 = vpop.permute.xlu1 %3222  ;;  %v11622_v24 = vpop.permute.xlu0 %3224 }
 0x216   : > { %3838 = vrot.lane.b32.xlu1 %v3574_v31, %s10013_s22  ;;  %2102 = vrot.lane.b32.xlu0 %v11556_v4, %s10013_s22  ;;  %v1114_v31 = vadd.f32 %v18001_v20, %v10319_v26  ;;  %v1721_v4 = vmax.f32 %v1104_v22, 0.0  ;;  %v18006_v22 = vld [vmem:[#allocation37_spill] sm:$0xff] }
 0x218   : > { %v11631_v32 = vpop.permute.xlu1 %2072  ;;  %v11633_v13 = vpop.permute.xlu0 %2074 }
 0x219   : > { %17998 = vst [vmem:[#allocation91_spill] sm:$0xff] %v11633_v13  ;;  %v18002_v13 = vld [vmem:[#allocation94_spill] sm:$0xff] }
 0x21a   : > { %3258 = vrot.lane.b32.xlu1 %v1723_v60, %s10014_s23  ;;  %2616 = vrot.lane.b32.xlu0 %v11593_v63, %s10014_s23  ;;  %v1108_v61 = vadd.f32 %v18002_v13, %v10319_v26  ;;  %v11656_v60 = vmax.f32 %v1114_v31, 0.0  ;;  %v11666_v13 = vmax.f32 %v18006_v22, %v11169_v16  ;;  %v11674_v31 = vmax.f32 %v1120_v19, 0.0  ;;  %v18011_v16 = vld [vmem:[#allocation42_spill] sm:$0xff] }
 0x21c   : > { %v11650_v37 = vpop.permute.xlu1 %2774  ;;  %v11652_v56 = vpop.permute.xlu0 %2776  ;;  %18005 = vst [vmem:[#allocation94_spill] sm:$0xff] %v11656_v60  ;;  %v11668_v20 = vmax.f32 %v1108_v61, 0.0  ;;  %18010 = vst [vmem:[#allocation175_spill] sm:$0xff] %v11674_v31  ;;  %v3575_v21 = vmax.f32 %v11666_v13, %v11171_v53  ;;  %v1122_v61 = vadd.f32 %v11122_v42, %v10331_v36  ;;  %v1126_v53 = vadd.f32 %v11147_v18, %v10319_v26 }
 0x21d   : > { %18003 = vst [vmem:[#allocation36_spill] sm:$0xff] %v11650_v37  ;;  %18004 = vst [vmem:[#allocation102_spill] sm:$0xff] %v11652_v56 }
 0x21e   : > { %4030 = vrot.lane.b32.xlu1 %v3670_v33, %s10013_s22  ;;  %3256 = vrot.lane.b32.xlu0 %v1721_v4, %s10014_s23  ;;  %18007 = vst [vmem:[#allocation37_spill] sm:$0xff] %v11668_v20  ;;  %v11684_v4 = vmax.f32 %v18011_v16, %v11229_v3  ;;  %v1727_v42 = vmax.f32 %v1122_v61, 0.0  ;;  %v18019_v61 = vld [vmem:[#allocation50_spill] sm:$0xff] }
 0x21f   : > { %v11692_v22 = vpop.f32.mrb[126].mxu0 }
 0x220   : > { %v11670_v56 = vpop.permute.xlu1 %3414  ;;  %v11672_v37 = vpop.permute.xlu0 %3416  ;;  %v3671_v3 = vmax.f32 %v11684_v4, %v11231_v17 }
 0x221   : > { %18008 = vst [vmem:[#allocation173_spill] sm:$0xff] %v11670_v56  ;;  %18009 = vst [vmem:[#allocation174_spill] sm:$0xff] %v11672_v37  ;;  %v11709_v37 = vmax.f32 %v1126_v53, 0.0 }
 0x222   : > { %2108 = vrot.lane.b32.xlu1 %v11656_v60, %s10013_s22  ;;  %2106 = vrot.lane.b32.xlu0 %v11668_v20, %s10013_s22  ;;  %v11699_v60 = vpop.f32.mrb[127].mxu0 }
 0x223   : > { %18014 = vst [vmem:[#allocation177_spill] sm:$0xff] %v11699_v60  ;;  %18017 = vst [vmem:[#allocation180_spill] sm:$0xff] %v11709_v37 }
 0x224   : > { %v11688_v33 = vpop.permute.xlu1 %2264  ;;  %v11690_v19 = vpop.permute.xlu0 %3226 }
 0x225   : > { %18012 = vst [vmem:[#allocation42_spill] sm:$0xff] %v11688_v33  ;;  %18013 = vst [vmem:[#allocation176_spill] sm:$0xff] %v11690_v19  ;;  %v11707_v19 = vpop.f32.mrb[128].mxu0 }
 0x226   : > { %2622 = vrot.lane.b32.xlu1 %v11674_v31, %s10014_s23  ;;  %3840 = vrot.lane.b32.xlu0 %v3575_v21, %s10013_s22  ;;  %v11713_v21 = vpop.f32.mrb[129].mxu0 }
 0x227   : > { %v11719_v17 = vpop.f32.mrb[130].mxu0 }
 0x228   : > { %v11703_v16 = vpop.permute.xlu1 %2076  ;;  %v11705_v20 = vpop.permute.xlu0 %2266 }
 0x229   : > { %18015 = vst [vmem:[#allocation178_spill] sm:$0xff] %v11703_v16  ;;  %18016 = vst [vmem:[#allocation179_spill] sm:$0xff] %v11705_v20  ;;  %v11723_v16 = vmax.f32 %v18019_v61, %v11281_v39  ;;  %v11729_v53 = vpop.f32.mrb[131].mxu0  ;;  %v18022_v39 = vld [vmem:[#allocation52_spill] sm:$0xff] }
 0x22a   : > { %3262 = vrot.lane.b32.xlu1 %v1727_v42, %s10014_s23  ;;  %4032 = vrot.lane.b32.xlu0 %v3671_v3, %s10013_s22  ;;  %v18020_v42 = vld [vmem:[#allocation110_spill] sm:$0xff]  ;;  %v11741_v61 = vmax.f32 %v18022_v39, %v11301_v62 }
 0x22b   : > { %v3578_v3 = vmax.f32 %v11723_v16, %v11299_v0  ;;  %v1128_v20 = vadd.f32 %v18020_v42, %v10331_v36  ;;  %v11756_v62 = vpop.f32.mrb[132].mxu0 }
 0x22c   : > { %v11715_v18 = vpop.permute.xlu1 %2590  ;;  %v11717_v60 = vpop.permute.xlu0 %2078  ;;  %18023 = vst [vmem:[#allocation110_spill] sm:$0xff] %v11741_v61  ;;  %v3674_v0 = vmax.f32 %v11741_v61, %v11346_v2 }
 0x22d   : > { %18018 = vst [vmem:[#allocation181_spill] sm:$0xff] %v11715_v18  ;;  %v1138_v18 = vadd.f32 %v11194_v9, %v10319_v26  ;;  %v1729_v42 = vmax.f32 %v1128_v20, 0.0  ;;  %v1144_v9 = vadd.f32 %v11215_v49, %v10319_v26  ;;  %v11765_v2 = vpop.f32.mrb[133].mxu0  ;;  %v1134_v20 = vadd.f32 %v11186_v52, %v10331_v36  ;;  %v18031_v52 = vld [vmem:[#allocation120_spill] sm:$0xff] }
 0x22e   : > { %2112 = vrot.lane.b32.xlu1 %v11709_v37, %s10013_s22  ;;  %2110 = vrot.lane.b32.xlu0 %v11674_v31, %s10013_s22  ;;  %v1132_v31 = vadd.f32 %v11174_v40, %v10319_v26  ;;  %18025 = vst [vmem:[#allocation182_spill] sm:$0xff] %v11765_v2 }
 0x22f   : > { %v11759_v39 = vmax.f32 %v1138_v18, 0.0 }
 0x230   : > { %v11735_v33 = vpop.permute.xlu1 %3230  ;;  %v11737_v56 = vpop.permute.xlu0 %2592  ;;  %v11768_v40 = vmax.f32 %v1132_v31, 0.0  ;;  %v1731_v31 = vmax.f32 %v1134_v20, 0.0  ;;  %v1150_v20 = vadd.f32 %v11256_v27, %v10319_v26 }
 0x231   : > { %18021 = vst [vmem:[#allocation50_spill] sm:$0xff] %v11737_v56  ;;  %18024 = vst [vmem:[#allocation52_spill] sm:$0xff] %v11759_v39 }
 0x232   : > { %3846 = vrot.lane.b32.xlu1 %v3578_v3, %s10013_s22  ;;  %2624 = vrot.lane.b32.xlu0 %v11709_v37, %s10014_s23  ;;  %v408_v3 = vld [vmem:[%s10088_s19 + $0x3f0] sm:$0xff]  ;;  %18026 = vst [vmem:[#allocation183_spill] sm:$0xff] %v11768_v40 }
 0x233   : > { %9081 = vmatmul.mubr.msk.f32.gmra.mrb[62].mxu1 %vm428_vm0, %v408_v3  ;;  %v1146_v3 = vadd.f32 %v18031_v52, %v10331_v36 }
 0x234   : > { %v11752_v56 = vpop.permute.xlu1 %2080  ;;  %v11754_v63 = vpop.permute.xlu0 %3232  ;;  %1639 = vmatprep.mubr.f32.mxu1 %v17824_v41 }
 0x236   : > { %4038 = vrot.lane.b32.xlu1 %v3674_v0, %s10013_s22  ;;  %3264 = vrot.lane.b32.xlu0 %v1729_v42, %s10014_s23  ;;  %v11777_v0 = vpop.f32.mrb[134].mxu0  ;;  %v11779_v42 = vmax.f32 %v1144_v9, 0.0  ;;  %v18034_v9 = vld [vmem:[#allocation56_spill] sm:$0xff] }
 0x237   : > { %v11785_v49 = vpop.f32.mrb[135].mxu0  ;;  %v11797_v2 = vmax.f32 %v18034_v9, %v11317_v5  ;;  %v11812_v5 = vmax.f32 %v1150_v20, 0.0 }
 0x238   : > { %v11772_v61 = vpop.permute.xlu1 %2270  ;;  %v11774_v18 = vpop.permute.xlu0 %2082  ;;  %18029 = vst [vmem:[#allocation186_spill] sm:$0xff] %v11779_v42  ;;  %18030 = vst [vmem:[#allocation187_spill] sm:$0xff] %v11785_v49  ;;  %v1735_v49 = vmax.f32 %v1146_v3, 0.0 }
 0x239   : > { %18027 = vst [vmem:[#allocation184_spill] sm:$0xff] %v11772_v61  ;;  %18028 = vst [vmem:[#allocation185_spill] sm:$0xff] %v11774_v18  ;;  %v11793_v41 = vpop.f32.mrb[136].mxu0  ;;  %v3579_v52 = vmax.f32 %v11797_v2, %v11335_v59  ;;  %v18040_v59 = vld [vmem:[#allocation72_spill] sm:$0xff] }
 0x23a   : > { %2116 = vrot.lane.b32.xlu1 %v11759_v39, %s10013_s22  ;;  %2114 = vrot.lane.b32.xlu0 %v11768_v40, %s10013_s22  ;;  %v11804_v39 = vpop.f32.mrb[137].mxu0  ;;  %18037 = vst [vmem:[#allocation190_spill] sm:$0xff] %v11812_v5  ;;  %v11826_v3 = vmax.f32 %v18040_v59, %v11429_v12 }
 0x23c   : > { %v11789_v61 = vpop.permute.xlu1 %3422  ;;  %v11791_v18 = vpop.permute.xlu0 %2272  ;;  %v3582_v20 = vmax.f32 %v11826_v3, %v11470_v15 }
 0x23d   : > { %18032 = vst [vmem:[#allocation120_spill] sm:$0xff] %v11789_v61  ;;  %18033 = vst [vmem:[#allocation188_spill] sm:$0xff] %v11791_v18 }
 0x23e   : > { %2630 = vrot.lane.b32.xlu1 %v11779_v42, %s10014_s23  ;;  %3266 = vrot.lane.b32.xlu0 %v1731_v31, %s10014_s23  ;;  %v11816_v31 = vpop.f32.mrb[138].mxu0 }
 0x23f   : > { %v11818_v9 = vpop.f32.mrb[139].mxu0 }
 0x240   : > { %v11808_v40 = vpop.permute.xlu1 %2084  ;;  %v11810_v18 = vpop.permute.xlu0 %3424 }
 0x241   : > { %18035 = vst [vmem:[#allocation56_spill] sm:$0xff] %v11808_v40  ;;  %18036 = vst [vmem:[#allocation189_spill] sm:$0xff] %v11810_v18  ;;  %v11842_v12 = vpop.f32.mrb[140].mxu0 }
 0x242   : > { %3270 = vrot.lane.b32.xlu1 %v1735_v49, %s10014_s23  ;;  %3848 = vrot.lane.b32.xlu0 %v3579_v52, %s10013_s22  ;;  %v1158_v49 = vadd.f32 %v11294_v46, %v10331_v36  ;;  %v1152_v52 = vadd.f32 %v11258_v43, %v10331_v36  ;;  %18041 = vst [vmem:[#allocation72_spill] sm:$0xff] %v11842_v12  ;;  %v11849_v18 = vpop.f32.mrb[141].mxu0  ;;  %v18043_v43 = vld [vmem:[#allocation129_spill] sm:$0xff] }
 0x243   : > { %v1162_v46 = vadd.f32 %v11310_v7, %v10319_v26  ;;  %18042 = vst [vmem:[#allocation193_spill] sm:$0xff] %v11849_v18  ;;  %v18047_v7 = vld [vmem:[#allocation134_spill] sm:$0xff] }
 0x244   : > { %v11820_v27 = vpop.permute.xlu1 %2598  ;;  %v11822_v61 = vpop.permute.xlu0 %3234  ;;  %v1739_v59 = vmax.f32 %v1158_v49, 0.0  ;;  %v1737_v15 = vmax.f32 %v1152_v52, 0.0  ;;  %v18049_v52 = vld [vmem:[#allocation77_spill] sm:$0xff] }
 0x245   : > { %18038 = vst [vmem:[#allocation191_spill] sm:$0xff] %v11820_v27  ;;  %18039 = vst [vmem:[#allocation192_spill] sm:$0xff] %v11822_v61  ;;  %v1156_v27 = vadd.f32 %v18043_v43, %v10319_v26  ;;  %v11859_v49 = vmax.f32 %v1162_v46, 0.0  ;;  %v11869_v43 = vmax.f32 %v18049_v52, %v11481_v44 }
 0x246   : > { %2120 = vrot.lane.b32.xlu1 %v11812_v5, %s10013_s22  ;;  %2118 = vrot.lane.b32.xlu0 %v11779_v42, %s10013_s22  ;;  %v11857_v12 = vpop.f32.mrb[142].mxu0 }
 0x247   : > { %18045 = vst [vmem:[#allocation194_spill] sm:$0xff] %v11857_v12  ;;  %18046 = vst [vmem:[#allocation195_spill] sm:$0xff] %v11859_v49  ;;  %v11865_v18 = vpop.f32.mrb[143].mxu0  ;;  %v3583_v44 = vmax.f32 %v11869_v43, %v11483_v47 }
 0x248   : > { %v11838_v40 = vpop.permute.xlu1 %3238  ;;  %v11840_v61 = vpop.permute.xlu0 %2086  ;;  %18048 = vst [vmem:[#allocation134_spill] sm:$0xff] %v11865_v18 }
 0x24a   : > { %3854 = vrot.lane.b32.xlu1 %v3582_v20, %s10013_s22  ;;  %2632 = vrot.lane.b32.xlu0 %v11812_v5, %s10014_s23  ;;  %v1168_v20 = vadd.f32 %v18047_v7, %v10319_v26  ;;  %v11871_v5 = vmax.f32 %v1156_v27, 0.0  ;;  %v11877_v46 = vpop.f32.mrb[144].mxu0  ;;  %v18055_v27 = vld [vmem:[#allocation135_spill] sm:$0xff] }
 0x24b   : > { %18052 = vst [vmem:[#allocation197_spill] sm:$0xff] %v11877_v46  ;;  %v1170_v7 = vadd.f32 %v18055_v27, %v10331_v36 }
 0x24c   : > { %v11853_v42 = vpop.permute.xlu1 %2088  ;;  %v11855_v37 = vpop.permute.xlu0 %2600  ;;  %18050 = vst [vmem:[#allocation77_spill] sm:$0xff] %v11871_v5 }
 0x24d   : > { %18044 = vst [vmem:[#allocation129_spill] sm:$0xff] %v11855_v37 }
 0x24e   : > { %3274 = vrot.lane.b32.xlu1 %v1739_v59, %s10014_s23  ;;  %3272 = vrot.lane.b32.xlu0 %v1737_v15, %s10014_s23  ;;  %v11879_v59 = vmax.f32 %v1168_v20, 0.0  ;;  %v11885_v15 = vpop.f32.mrb[145].mxu0  ;;  %v18058_v20 = vld [vmem:[#allocation139_spill] sm:$0xff] }
 0x24f   : > { %18054 = vst [vmem:[#allocation199_spill] sm:$0xff] %v11885_v15 }
 0x250   : > { %v11873_v37 = vpop.permute.xlu1 %2278  ;;  %v11875_v12 = vpop.permute.xlu0 %3240  ;;  %18053 = vst [vmem:[#allocation198_spill] sm:$0xff] %v11879_v59 }
 0x251   : > { %18051 = vst [vmem:[#allocation196_spill] sm:$0xff] %v11873_v37  ;;  %v1743_v37 = vmax.f32 %v1170_v7, 0.0 }
 0x252   : > { %2124 = vrot.lane.b32.xlu1 %v11859_v49, %s10013_s22  ;;  %2122 = vrot.lane.b32.xlu0 %v11871_v5, %s10013_s22  ;;  %v1174_v49 = vadd.f32 %v18058_v20, %v10319_v26  ;;  %v11900_v5 = vpop.f32.mrb[146].mxu0  ;;  %v1176_v20 = vadd.f32 %v11360_v58, %v10331_v36 }
 0x253   : > { %18059 = vst [vmem:[#allocation139_spill] sm:$0xff] %v11900_v5  ;;  %v11904_v46 = vpop.f32.mrb[147].mxu0  ;;  %v18071_v5 = vld [vmem:[#allocation93_spill] sm:$0xff] }
 0x254   : > { %v11891_v52 = vpop.permute.xlu1 %3430  ;;  %v11893_v18 = vpop.permute.xlu0 %2090  ;;  %18061 = vst [vmem:[#allocation202_spill] sm:$0xff] %v11904_v46  ;;  %v11906_v27 = vmax.f32 %v1174_v49, 0.0  ;;  %v18066_v49 = vld [vmem:[#allocation100_spill] sm:$0xff]  ;;  %v1745_v58 = vmax.f32 %v1176_v20, 0.0 }
 0x255   : > { %18056 = vst [vmem:[#allocation135_spill] sm:$0xff] %v11891_v52  ;;  %18057 = vst [vmem:[#allocation200_spill] sm:$0xff] %v11893_v18 }
 0x256   : > { %2638 = vrot.lane.b32.xlu1 %v11879_v59, %s10014_s23  ;;  %3856 = vrot.lane.b32.xlu0 %v3583_v44, %s10013_s22  ;;  %18062 = vst [vmem:[#allocation203_spill] sm:$0xff] %v11906_v27  ;;  %v1182_v44 = vadd.f32 %v11380_v1, %v10331_v36  ;;  %v11917_v52 = vpop.f32.mrb[148].mxu0  ;;  %v11927_v1 = vmax.f32 %v18066_v49, %v11631_v32  ;;  %v18072_v32 = vld [vmem:[#allocation148_spill] sm:$0xff] }
 0x257   : > { %18064 = vst [vmem:[#allocation205_spill] sm:$0xff] %v11917_v52  ;;  %v18069_v52 = vld [vmem:[#allocation62_spill] sm:$0xff]  ;;  %v1186_v20 = vadd.f32 %v18072_v32, %v10319_v26  ;;  %v18077_v32 = vld [vmem:[#allocation68_spill] sm:$0xff] }
 0x258   : > { %v3823_v15 = vpop.permute.xlu1 %3822  ;;  %v11902_v47 = vpop.permute.xlu0 %2280 }
 0x259   : > { %18060 = vst [vmem:[#allocation201_spill] sm:$0xff] %v11902_v47  ;;  %v1747_v47 = vmax.f32 %v1182_v44, 0.0  ;;  %v2926_v44 = vmax.f32 %v11391_v57, %v18069_v52 }
 0x25a   : > { %3278 = vrot.lane.b32.xlu1 %v1743_v37, %s10014_s23  ;;  %2126 = vrot.lane.b32.xlu0 %v11879_v59, %s10013_s22  ;;  %v11923_v37 = vpop.f32.mrb[149].mxu0 }
 0x25b   : > { %18065 = vst [vmem:[#allocation206_spill] sm:$0xff] %v11923_v37  ;;  %v11935_v46 = vpop.f32.mrb[150].mxu0  ;;  %v4207_v57 = vsel %vm4206_vm1, %v2926_v44, %v3823_v15 }
 0x25c   : > { %v4015_v18 = vpop.permute.xlu1 %4014  ;;  %v11915_v7 = vpop.permute.xlu0 %3432  ;;  %18070 = vst [vmem:[#allocation62_spill] sm:$0xff] %v11935_v46  ;;  %v18078_v46 = vld [vmem:[#allocation65_spill] sm:$0xff]  ;;  %v4464_v44 = vrot.slane %v4207_v57, 1 }
 0x25d   : > { %18063 = vst [vmem:[#allocation204_spill] sm:$0xff] %v11915_v7  ;;  %v11945_v49 = vpop.f32.mrb[151].mxu0 }
 0x25e   : > { %2128 = vrot.lane.b32.xlu1 %v11906_v27, %s10013_s22  ;;  %2640 = vrot.lane.b32.xlu0 %v11906_v27, %s10014_s23  ;;  %v11939_v27 = vmax.f32 %v18071_v5, %v11566_v45  ;;  %18073 = vst [vmem:[#allocation93_spill] sm:$0xff] %v11945_v49  ;;  %v3587_v45 = vmax.f32 %v11927_v1, %v11622_v24  ;;  %v18075_v5 = vld [vmem:[#allocation143_spill] sm:$0xff]  ;;  %v11967_v24 = vmax.f32 %v1186_v20, 0.0 }
 0x25f   : > { %v3022_v49 = vmax.f32 %v18078_v46, %v18077_v32 }
 0x260   : > { %v11929_v59 = vpop.permute.xlu1 %2092  ;;  %v11931_v7 = vpop.permute.xlu0 %3242  ;;  %v3586_v52 = vmax.f32 %v11939_v27, %v11620_v34  ;;  %18082 = vst [vmem:[#allocation68_spill] sm:$0xff] %v11967_v24 }
 0x261   : > { %18067 = vst [vmem:[#allocation100_spill] sm:$0xff] %v11929_v59  ;;  %18068 = vst [vmem:[#allocation207_spill] sm:$0xff] %v11931_v7  ;;  %v18074_v59 = vld [vmem:[#allocation69_spill] sm:$0xff]  ;;  %v11965_v34 = vpop.f32.mrb[152].mxu0  ;;  %v11978_v32 = vsel %vm4206_vm1, %v3022_v49, %v4015_v18  ;;  %v1198_v18 = vadd.f32 %v11448_v28, %v10319_v26 }
 0x262   : > { %3282 = vrot.lane.b32.xlu1 %v1747_v47, %s10014_s23  ;;  %3280 = vrot.lane.b32.xlu0 %v1745_v58, %s10014_s23  ;;  %v2927_v7 = vmax.f32 %v11453_v29, %v18074_v59  ;;  %v1180_v47 = vadd.f32 %v18075_v5, %v10319_v26  ;;  %v18080_v59 = vld [vmem:[#allocation61_spill] sm:$0xff]  ;;  %18081 = vst [vmem:[#allocation143_spill] sm:$0xff] %v11965_v34  ;;  %v11973_v46 = vpop.f32.mrb[153].mxu0 }
 0x263   : > { %v1192_v15 = vadd.f32 %v18080_v59, %v10319_v26  ;;  %18083 = vst [vmem:[#allocation65_spill] sm:$0xff] %v11973_v46  ;;  %18085 = vst [vmem:[#allocation61_spill] sm:$0xff] %v11978_v32  ;;  %v4849_v59 = vrot.slane %v4207_v57, 2 }
 0x264   : > { %v11956_v58 = vpop.permute.xlu1 %2606  ;;  %v3825_v37 = vpop.permute.xlu0 %3824  ;;  %v11980_v20 = vmax.f32 %v1180_v47, 0.0  ;;  %v17342_v47 = vrot.slane %v11978_v32, 1 }
 0x265   : > { %18076 = vst [vmem:[#allocation148_spill] sm:$0xff] %v11956_v58  ;;  %v11961_v29 = vsel %vm4206_vm1, %v2927_v7, %v3825_v37  ;;  %v18084_v7 = vld [vmem:[#allocation75_spill] sm:$0xff]  ;;  %v11987_v46 = vmax.f32 %v1192_v15, 0.0  ;;  %v17348_v15 = vrot.slane %v11978_v32, 2 }
 0x266   : > { %18079 = vst [vmem:[#allocation69_spill] sm:$0xff] %v11961_v29  ;;  %v17339_v5 = vrot.slane %v11961_v29, 1  ;;  %3864 = vrot.lane.b32.xlu1 %v3587_v45, %s10013_s22  ;;  %3862 = vrot.lane.b32.xlu0 %v3586_v52, %s10013_s22  ;;  %v3023_v37 = vmax.f32 %v11466_v54, %v18084_v7  ;;  %18086 = vst [vmem:[#allocation75_spill] sm:$0xff] %v11980_v20  ;;  %v11994_v49 = vpop.f32.mrb[154].mxu0  ;;  %v18089_v7 = vrot.slane %v11961_v29, 2 }
 0x267   : > { %18087 = vst [vmem:[#allocation208_spill] sm:$0xff] %v11987_v46 }
 0x268   : > { %v4466_v58 = vsel %vm4463_vm2, %v4464_v44, %v17339_v5  ;;  %v11985_v45 = vpop.permute.xlu1 %3246  ;;  %v4017_v52 = vpop.permute.xlu0 %4016  ;;  %v4851_v44 = vsel %vm4848_vm3, %v4849_v59, %v18089_v7  ;;  %v1194_v59 = vadd.f32 %v11441_v25, %v10331_v36 }
 0x269   : > { %v5233_v34 = vmax.f32 %v4207_v57, %v4466_v58  ;;  %v11990_v54 = vsel %vm4206_vm1, %v3023_v37, %v4017_v52  ;;  %v12006_v58 = vpop.f32.mrb[155].mxu0 }
 0x26a   : > { %18088 = vst [vmem:[#allocation209_spill] sm:$0xff] %v11990_v54  ;;  %v17343_v5 = vrot.slane %v11990_v54, 1  ;;  %2132 = vrot.lane.b32.xlu1 %v11967_v24, %s10013_s22  ;;  %2130 = vrot.lane.b32.xlu0 %v11980_v20, %s10013_s22  ;;  %v12027_v24 = vmax.f32 %v1198_v18, 0.0  ;;  %v1206_v18 = vadd.f32 %v11491_v48, %v10331_v36 }
 0x26b   : > { %v5361_v28 = vmax.f32 %v5233_v34, %v4851_v44  ;;  %v18090_v34 = vrot.slane %v11990_v54, 2 }
 0x26c   : > { %v4658_v37 = vsel %vm4463_vm2, %v17342_v47, %v17343_v5  ;;  %v12016_v52 = vpop.permute.xlu1 %2096  ;;  %v12018_v7 = vpop.permute.xlu0 %2094  ;;  %18091 = vst [vmem:[#allocation210_spill] sm:$0xff] %v12027_v24  ;;  %v1751_v47 = vmax.f32 %v1194_v59, 0.0  ;;  %v1755_v54 = vmax.f32 %v1206_v18, 0.0 }
 0x26d   : > { %5490 = vst.msk [vmem:[#allocation2] sm:$0xff] %vm5489_vm4, %v5361_v28  ;;  %v5329_v57 = vmax.f32 %v11978_v32, %v4658_v37  ;;  %v5043_v44 = vsel %vm4848_vm3, %v17348_v15, %v18090_v34  ;;  %v18092_v28 = vld [vmem:[#allocation8_spill] sm:$0xff] }
 0x26e   : > { %2646 = vrot.lane.b32.xlu1 %v11987_v46, %s10014_s23  ;;  %2134 = vrot.lane.b32.xlu0 %v11987_v46, %s10013_s22  ;;  %v1200_v5 = vadd.f32 %v18092_v28, %v10331_v36  ;;  %v12038_v32 = vpop.f32.mrb[156].mxu0 }
 0x26f   : > { %v5457_v25 = vmax.f32 %v5329_v57, %v5043_v44  ;;  %v12045_v57 = vpop.f32.mrb[157].mxu0 }
 0x270   : > { %v3831_v37 = vpop.permute.xlu1 %3830  ;;  %v12035_v29 = vpop.permute.xlu0 %2608  ;;  %18094 = vst [vmem:[#allocation211_spill] sm:$0xff] %v12045_v57  ;;  %v1753_v59 = vmax.f32 %v1200_v5, 0.0  ;;  %v18097_v5 = vld [vmem:[#allocation119_spill] sm:$0xff]  ;;  %v1204_v57 = vadd.f32 %v11485_v51, %v10319_v26 }
 0x271   : > { %18093 = vst [vmem:[#allocation8_spill] sm:$0xff] %v12035_v29  ;;  %5586 = vst.msk [vmem:[#allocation2 + $0x300] sm:$0xff] %vm5489_vm4, %v5457_v25  ;;  %v18095_v25 = vld [vmem:[#allocation116_spill] sm:$0xff]  ;;  %v12064_v20 = vmax.f32 %v18097_v5, %v11752_v56  ;;  %v18102_v51 = vld [vmem:[#allocation155_spill] sm:$0xff] }
 0x272   : > { %3286 = vrot.lane.b32.xlu1 %v1751_v47, %s10014_s23  ;;  %2648 = vrot.lane.b32.xlu0 %v12027_v24, %s10014_s23  ;;  %v12049_v28 = vpop.f32.mrb[158].mxu0  ;;  %v12053_v15 = vmax.f32 %v18095_v25, %v11717_v60  ;;  %v12082_v5 = vmax.f32 %v1204_v57, 0.0 }
 0x273   : > { %v12058_v47 = vpop.f32.mrb[159].mxu0  ;;  %v3591_v56 = vmax.f32 %v12064_v20, %v11754_v63  ;;  %v1222_v63 = vadd.f32 %v11538_v14, %v10319_v26 }
 0x274   : > { %v4023_v34 = vpop.permute.xlu1 %4022  ;;  %v12047_v44 = vpop.permute.xlu0 %3248  ;;  %18096 = vst [vmem:[#allocation116_spill] sm:$0xff] %v12058_v47  ;;  %v3590_v48 = vmax.f32 %v12053_v15, %v11735_v33  ;;  %v1216_v33 = vadd.f32 %v11517_v6, %v10319_v26  ;;  %18101 = vst [vmem:[#allocation214_spill] sm:$0xff] %v12082_v5 }
 0x275   : > { %v12118_v46 = vmax.f32 %v1222_v63, 0.0 }
 0x276   : > { %2136 = vrot.lane.b32.xlu1 %v12027_v24, %s10013_s22  ;;  %3288 = vrot.lane.b32.xlu0 %v1753_v59, %s10014_s23  ;;  %v12072_v25 = vpop.f32.mrb[160].mxu0  ;;  %v12094_v6 = vmax.f32 %v1216_v33, 0.0  ;;  %v18111_v24 = vld [vmem:[#allocation92_spill] sm:$0xff] }
 0x277   : > { %v12078_v59 = vpop.f32.mrb[161].mxu0  ;;  %18113 = vst [vmem:[#allocation218_spill] sm:$0xff] %v12118_v46 }
 0x278   : > { %v12068_v60 = vpop.permute.xlu1 %2100  ;;  %v12070_v18 = vpop.permute.xlu0 %2098  ;;  %18100 = vst [vmem:[#allocation213_spill] sm:$0xff] %v12078_v59 }
 0x279   : > { %18098 = vst [vmem:[#allocation119_spill] sm:$0xff] %v12068_v60  ;;  %18099 = vst [vmem:[#allocation212_spill] sm:$0xff] %v12070_v18  ;;  %v1210_v60 = vadd.f32 %v18102_v51, %v10319_v26  ;;  %v18108_v51 = vld [vmem:[#allocation88_spill] sm:$0xff] }
 0x27a   : > { %3290 = vrot.lane.b32.xlu1 %v1755_v54, %s10014_s23  ;;  %3870 = vrot.lane.b32.xlu0 %v3590_v48, %s10013_s22  ;;  %v18105_v54 = vld [vmem:[#allocation85_spill] sm:$0xff]  ;;  %v12092_v29 = vpop.f32.mrb[162].mxu0 }
 0x27b   : > { %v2930_v48 = vmax.f32 %v11501_v30, %v18105_v54  ;;  %18106 = vst [vmem:[#allocation85_spill] sm:$0xff] %v12094_v6  ;;  %v12101_v57 = vpop.f32.mrb[163].mxu0  ;;  %v12108_v30 = vmax.f32 %v1210_v60, 0.0  ;;  %v18114_v60 = vld [vmem:[#allocation98_spill] sm:$0xff] }
 0x27c   : > { %v12086_v47 = vpop.permute.xlu1 %2614  ;;  %v12088_v18 = vpop.permute.xlu0 %3250  ;;  %18107 = vst [vmem:[#allocation216_spill] sm:$0xff] %v12101_v57 }
 0x27d   : > { %18103 = vst [vmem:[#allocation155_spill] sm:$0xff] %v12086_v47  ;;  %18104 = vst [vmem:[#allocation215_spill] sm:$0xff] %v12088_v18  ;;  %v2931_v18 = vmax.f32 %v11572_v50, %v18108_v51  ;;  %v12106_v47 = vsel %vm4206_vm1, %v2930_v48, %v3831_v37  ;;  %v18116_v48 = vld [vmem:[#allocation22_spill] sm:$0xff] }
 0x27e   : > { %2138 = vrot.lane.b32.xlu0 %v12082_v5, %s10013_s22  ;;  %3872 = vrot.lane.b32.xlu1 %v3591_v56, %s10013_s22  ;;  %18109 = vst [vmem:[#allocation88_spill] sm:$0xff] %v12106_v47  ;;  %18110 = vst [vmem:[#allocation217_spill] sm:$0xff] %v12108_v30  ;;  %v3026_v5 = vmax.f32 %v11521_v35, %v18111_v24  ;;  %v17359_v14 = vrot.slane %v12106_v47, 1  ;;  %v3027_v35 = vmax.f32 %v11591_v11, %v18114_v60  ;;  %v18119_v60 = vld [vmem:[#allocation165_spill] sm:$0xff] }
 0x27f   : > { %v1218_v63 = vadd.f32 %v18116_v48, %v10331_v36  ;;  %v1228_v48 = vadd.f32 %v18119_v60, %v10319_v26 }
 0x280   : > { %v12110_v33 = vpop.permute.xlu1 %3254  ;;  %v3833_v54 = vpop.permute.xlu0 %3832  ;;  %v12129_v24 = vsel %vm4206_vm1, %v3026_v5, %v4023_v34 }
 0x281   : > { %v12115_v56 = vsel %vm4206_vm1, %v2931_v18, %v3833_v54  ;;  %18115 = vst [vmem:[#allocation98_spill] sm:$0xff] %v12129_v24  ;;  %v18117_v54 = vld [vmem:[#allocation161_spill] sm:$0xff]  ;;  %v12149_v18 = vpop.f32.mrb[164].mxu0  ;;  %v17369_v60 = vrot.slane %v12129_v24, 2  ;;  %v1759_v57 = vmax.f32 %v1218_v63, 0.0  ;;  %v12182_v63 = vmax.f32 %v1228_v48, 0.0 }
 0x282   : > { %18112 = vst [vmem:[#allocation92_spill] sm:$0xff] %v12115_v56  ;;  %v17360_v50 = vrot.slane %v12115_v56, 1  ;;  %2142 = vrot.lane.b32.xlu0 %v12094_v6, %s10013_s22  ;;  %2140 = vrot.lane.b32.xlu1 %v12108_v30, %s10013_s22  ;;  %v1224_v37 = vadd.f32 %v18117_v54, %v10331_v36  ;;  %18120 = vst [vmem:[#allocation161_spill] sm:$0xff] %v12149_v18  ;;  %v18131_v48 = vld [vmem:[#allocation137_spill] sm:$0xff] }
 0x283   : > { %18126 = vst [vmem:[#allocation219_spill] sm:$0xff] %v12182_v63 }
 0x284   : > { %v4474_v51 = vsel %vm4463_vm2, %v17359_v14, %v17360_v50  ;;  %v12141_v30 = vpop.permute.xlu1 %2104  ;;  %v4025_v11 = vpop.permute.xlu0 %4024  ;;  %v18121_v14 = vrot.slane %v12115_v56, 2  ;;  %v18122_v50 = vrot.slane %v12106_v47, 2  ;;  %v1761_v56 = vmax.f32 %v1224_v37, 0.0 }
 0x285   : > { %v5237_v34 = vmax.f32 %v12106_v47, %v4474_v51  ;;  %v12145_v5 = vsel %vm4206_vm1, %v3027_v35, %v4025_v11  ;;  %v12163_v35 = vpop.f32.mrb[165].mxu0 }
 0x286   : > { %18118 = vst [vmem:[#allocation22_spill] sm:$0xff] %v12145_v5  ;;  %v4859_v54 = vsel %vm4848_vm3, %v18122_v50, %v18121_v14  ;;  %v17366_v59 = vrot.slane %v12145_v5, 1  ;;  %2654 = vrot.lane.b32.xlu1 %v12094_v6, %s10014_s23  ;;  %2656 = vrot.lane.b32.xlu0 %v12118_v46, %s10014_s23  ;;  %18123 = vst [vmem:[#allocation165_spill] sm:$0xff] %v12163_v35  ;;  %v18124_v14 = vrot.slane %v12129_v24, 1  ;;  %v12175_v18 = vpop.f32.mrb[166].mxu0 }
 0x287   : > { %v5365_v11 = vmax.f32 %v5237_v34, %v4859_v54  ;;  %v18125_v34 = vrot.slane %v12145_v5, 2  ;;  %v12186_v54 = vpop.f32.mrb[167].mxu0 }
 0x288   : > { %v4666_v50 = vsel %vm4463_vm2, %v18124_v14, %v17366_v59  ;;  %v3839_v51 = vpop.permute.xlu1 %3838  ;;  %v12171_v47 = vpop.permute.xlu0 %2102  ;;  %18127 = vst [vmem:[#allocation220_spill] sm:$0xff] %v12186_v54 }
 0x289   : > { %5494 = vst.msk [vmem:[#allocation2 + $0x20] sm:$0xff] %vm5489_vm4, %v5365_v11  ;;  %v5333_v6 = vmax.f32 %v12129_v24, %v4666_v50  ;;  %v5051_v37 = vsel %vm4848_vm3, %v17369_v60, %v18125_v34  ;;  %v18128_v11 = vld [vmem:[#allocation131_spill] sm:$0xff] }
 0x28a   : > { %3294 = vrot.lane.b32.xlu1 %v1759_v57, %s10014_s23  ;;  %3296 = vrot.lane.b32.xlu0 %v1761_v56, %s10014_s23  ;;  %v12190_v50 = vmax.f32 %v18128_v11, %v11840_v61  ;;  %v12197_v34 = vpop.f32.mrb[168].mxu0  ;;  %v12201_v57 = vmax.f32 %v18131_v48, %v11853_v42  ;;  %v1240_v61 = vadd.f32 %v11605_v8, %v10319_v26 }
 0x28b   : > { %v5461_v14 = vmax.f32 %v5333_v6, %v5051_v37  ;;  %v12209_v6 = vpop.f32.mrb[169].mxu0  ;;  %v1230_v42 = vadd.f32 %v11579_v38, %v10331_v36 }
 0x28c   : > { %v12192_v59 = vpop.permute.xlu1 %3258  ;;  %v12194_v5 = vpop.permute.xlu0 %2616  ;;  %v3594_v56 = vmax.f32 %v12190_v50, %v11838_v40  ;;  %v3595_v37 = vmax.f32 %v12201_v57, %v11875_v12  ;;  %v12221_v60 = vmax.f32 %v1240_v61, 0.0  ;;  %v18134_v12 = vld [vmem:[#allocation166_spill] sm:$0xff]  ;;  %v18139_v61 = vld [vmem:[#allocation172_spill] sm:$0xff] }
 0x28d   : > { %18129 = vst [vmem:[#allocation131_spill] sm:$0xff] %v12192_v59  ;;  %18130 = vst [vmem:[#allocation221_spill] sm:$0xff] %v12194_v5  ;;  %v1763_v40 = vmax.f32 %v1230_v42, 0.0  ;;  %v1234_v24 = vadd.f32 %v18134_v12, %v10319_v26  ;;  %v18138_v59 = vld [vmem:[#allocation34_spill] sm:$0xff]  ;;  %v18140_v42 = vld [vmem:[#allocation111_spill] sm:$0xff] }
 0x28e   : > { %5590 = vst.msk [vmem:[#allocation2 + $0x320] sm:$0xff] %vm5489_vm4, %v5461_v14  ;;  %2144 = vrot.lane.b32.xlu1 %v12118_v46, %s10013_s22  ;;  %2146 = vrot.lane.b32.xlu0 %v12182_v63, %s10013_s22  ;;  %v12219_v48 = vpop.f32.mrb[170].mxu0  ;;  %18132 = vst [vmem:[#allocation137_spill] sm:$0xff] %v12221_v60  ;;  %v18137_v63 = vld [vmem:[#allocation109_spill] sm:$0xff]  ;;  %v2935_v5 = vmax.f32 %v11666_v13, %v18140_v42  ;;  %v18145_v46 = vld [vmem:[#allocation114_spill] sm:$0xff]  ;;  %v1252_v13 = vadd.f32 %v11654_v23, %v10319_v26 }
 0x28f   : > { %v12225_v8 = vpop.f32.mrb[171].mxu0  ;;  %v2934_v35 = vmax.f32 %v18138_v59, %v18137_v63  ;;  %v18143_v59 = vld [vmem:[#allocation170_spill] sm:$0xff] }
 0x290   : > { %v4031_v14 = vpop.permute.xlu1 %4030  ;;  %v12217_v11 = vpop.permute.xlu0 %3256  ;;  %18133 = vst [vmem:[#allocation222_spill] sm:$0xff] %v12225_v8  ;;  %v1242_v63 = vadd.f32 %v18143_v59, %v10331_v36  ;;  %v18150_v59 = vld [vmem:[#allocation171_spill] sm:$0xff] }
 0x291   : > { %v12244_v12 = vsel %vm4206_vm1, %v2934_v35, %v3839_v51  ;;  %v1246_v42 = vadd.f32 %v18150_v59, %v10319_v26 }
 0x292   : > { %3878 = vrot.lane.b32.xlu1 %v3594_v56, %s10013_s22  ;;  %3880 = vrot.lane.b32.xlu0 %v3595_v37, %s10013_s22  ;;  %v1248_v56 = vadd.f32 %v18139_v61, %v10331_v36  ;;  %v409_v37 = vld [vmem:[%s10088_s19 + $0x3f8] sm:$0xff]  ;;  %18141 = vst [vmem:[#allocation109_spill] sm:$0xff] %v12244_v12  ;;  %v3030_v61 = vmax.f32 %v11639_v10, %v18145_v46 }
 0x293   : > { %9082 = vmatmul.mubr.msk.f32.gmra.mrb[64].mxu1 %vm428_vm0, %v409_v37  ;;  %v18148_v46 = vld [vmem:[#allocation118_spill] sm:$0xff] }
 0x294   : > { %v12229_v54 = vpop.permute.xlu1 %2108  ;;  %v12231_v38 = vpop.permute.xlu0 %2106  ;;  %v1769_v35 = vmax.f32 %v1248_v56, 0.0  ;;  %v3031_v23 = vmax.f32 %v11684_v4, %v18148_v46  ;;  %v1767_v56 = vmax.f32 %v1242_v63, 0.0  ;;  %v12287_v46 = vmax.f32 %v1252_v13, 0.0 }
 0x295   : > { %18135 = vst [vmem:[#allocation166_spill] sm:$0xff] %v12229_v54  ;;  %18136 = vst [vmem:[#allocation223_spill] sm:$0xff] %v12231_v38  ;;  %v12247_v54 = vmax.f32 %v1234_v24, 0.0  ;;  %v17377_v24 = vrot.slane %v12244_v12, 1 }
 0x296   : > { %3298 = vrot.lane.b32.xlu1 %v1763_v40, %s10014_s23  ;;  %2150 = vrot.lane.b32.xlu0 %v12221_v60, %s10013_s22  ;;  %v12260_v51 = vpop.f32.mrb[172].mxu0  ;;  %18151 = vst [vmem:[#allocation118_spill] sm:$0xff] %v12287_v46 }
 0x297   : > { %18142 = vst [vmem:[#allocation34_spill] sm:$0xff] %v12247_v54  ;;  %v12269_v10 = vpop.f32.mrb[173].mxu0 }
 0x298   : > { %v12251_v40 = vpop.permute.xlu1 %2622  ;;  %v3841_v38 = vpop.permute.xlu0 %3840  ;;  %18147 = vst [vmem:[#allocation170_spill] sm:$0xff] %v12269_v10 }
 0x299   : > { %18144 = vst [vmem:[#allocation172_spill] sm:$0xff] %v12251_v40  ;;  %v12256_v8 = vsel %vm4206_vm1, %v2935_v5, %v3841_v38  ;;  %v12274_v5 = vsel %vm4206_vm1, %v3030_v61, %v4031_v14  ;;  %v17380_v38 = vrot.slane %v12244_v12, 2 }
 0x29a   : > { %18146 = vst [vmem:[#allocation111_spill] sm:$0xff] %v12256_v8  ;;  %v17378_v37 = vrot.slane %v12256_v8, 1  ;;  %2148 = vrot.lane.b32.xlu1 %v12247_v54, %s10013_s22  ;;  %2662 = vrot.lane.b32.xlu0 %v12221_v60, %s10014_s23  ;;  %18149 = vst [vmem:[#allocation114_spill] sm:$0xff] %v12274_v5  ;;  %v12292_v63 = vpop.f32.mrb[174].mxu0  ;;  %v17381_v61 = vrot.slane %v12274_v5, 1  ;;  %v18153_v59 = vrot.slane %v12256_v8, 2 }
 0x29c   : > { %v4482_v54 = vsel %vm4463_vm2, %v17377_v24, %v17378_v37  ;;  %v12284_v40 = vpop.permute.xlu1 %3262  ;;  %v4033_v10 = vpop.permute.xlu0 %4032  ;;  %v4867_v24 = vsel %vm4848_vm3, %v17380_v38, %v18153_v59  ;;  %v1254_v38 = vadd.f32 %v11662_v55, %v10331_v36 }
 0x29d   : > { %v5241_v4 = vmax.f32 %v12244_v12, %v4482_v54  ;;  %v12290_v14 = vsel %vm4206_vm1, %v3031_v23, %v4033_v10  ;;  %v12304_v54 = vpop.f32.mrb[175].mxu0  ;;  %v17387_v10 = vrot.slane %v12274_v5, 2  ;;  %v12307_v23 = vmax.f32 %v1246_v42, 0.0 }
 0x29e   : > { %18152 = vst [vmem:[#allocation171_spill] sm:$0xff] %v12290_v14  ;;  %v17382_v37 = vrot.slane %v12290_v14, 1  ;;  %3302 = vrot.lane.b32.xlu1 %v1767_v56, %s10014_s23  ;;  %3304 = vrot.lane.b32.xlu0 %v1769_v35, %s10014_s23  ;;  %18154 = vst [vmem:[#allocation224_spill] sm:$0xff] %v12304_v54  ;;  %v12322_v35 = vpop.f32.mrb[176].mxu0  ;;  %v18155_v42 = vrot.slane %v12290_v14, 2 }
 0x29f   : > { %v5369_v13 = vmax.f32 %v5241_v4, %v4867_v24  ;;  %v12333_v55 = vpop.f32.mrb[177].mxu0 }
 0x2a0   : > { %v4674_v59 = vsel %vm4463_vm2, %v17381_v61, %v17382_v37  ;;  %v12316_v60 = vpop.permute.xlu1 %2112  ;;  %v12318_v56 = vpop.permute.xlu0 %2110  ;;  %v5059_v4 = vsel %vm4848_vm3, %v17387_v10, %v18155_v42  ;;  %v1771_v37 = vmax.f32 %v1254_v38, 0.0  ;;  %v18157_v10 = vld [vmem:[#allocation152_spill] sm:$0xff] }
 0x2a1   : > { %5498 = vst.msk [vmem:[#allocation2 + $0x40] sm:$0xff] %vm5489_vm4, %v5369_v13  ;;  %v5337_v24 = vmax.f32 %v12274_v5, %v4674_v59  ;;  %v18156_v13 = vld [vmem:[#allocation63_spill] sm:$0xff]  ;;  %v12346_v5 = vmax.f32 %v18157_v10, %v12016_v52  ;;  %v1258_v52 = vadd.f32 %v11692_v22, %v10319_v26 }
 0x2a2   : > { %2152 = vrot.lane.b32.xlu1 %v12307_v23, %s10013_s22  ;;  %2154 = vrot.lane.b32.xlu0 %v12287_v46, %s10013_s22  ;;  %v12337_v59 = vmax.f32 %v18156_v13, %v12018_v7  ;;  %v12342_v42 = vpop.f32.mrb[178].mxu0  ;;  %v1264_v7 = vadd.f32 %v11707_v19, %v10319_v26  ;;  %v1270_v19 = vadd.f32 %v11719_v17, %v10319_v26 }
 0x2a3   : > { %v5465_v61 = vmax.f32 %v5337_v24, %v5059_v4  ;;  %v12353_v38 = vpop.f32.mrb[179].mxu0  ;;  %v1272_v17 = vadd.f32 %v11729_v53, %v10331_v36 }
 0x2a4   : > { %v3847_v12 = vpop.permute.xlu1 %3846  ;;  %v12339_v14 = vpop.permute.xlu0 %2624  ;;  %v3598_v24 = vmax.f32 %v12337_v59, %v11985_v45  ;;  %v12365_v13 = vmax.f32 %v1264_v7, 0.0  ;;  %v12371_v45 = vmax.f32 %v1258_v52, 0.0  ;;  %v12377_v22 = vmax.f32 %v1270_v19, 0.0  ;;  %v18165_v19 = vld [vmem:[#allocation128_spill] sm:$0xff] }
 0x2a5   : > { %5594 = vst.msk [vmem:[#allocation2 + $0x340] sm:$0xff] %vm5489_vm4, %v5465_v61  ;;  %v3599_v61 = vmax.f32 %v12346_v5, %v12047_v44 }
 0x2a6   : > { %2664 = vrot.lane.b32.xlu1 %v12307_v23, %s10014_s23  ;;  %3306 = vrot.lane.b32.xlu0 %v1771_v37, %s10014_s23  ;;  %18159 = vst [vmem:[#allocation152_spill] sm:$0xff] %v12371_v45  ;;  %18162 = vst [vmem:[#allocation227_spill] sm:$0xff] %v12377_v22  ;;  %v12383_v7 = vpop.f32.mrb[180].mxu0 }
 0x2a7   : > { %v12395_v8 = vpop.f32.mrb[181].mxu0 }
 0x2a8   : > { %v12361_v10 = vpop.permute.xlu1 %4038  ;;  %v12363_v4 = vpop.permute.xlu0 %3264  ;;  %18166 = vst [vmem:[#allocation128_spill] sm:$0xff] %v12395_v8 }
 0x2a9   : > { %18158 = vst [vmem:[#allocation63_spill] sm:$0xff] %v12361_v10 }
 0x2aa   : > { %3886 = vrot.lane.b32.xlu1 %v3598_v24, %s10013_s22  ;;  %3888 = vrot.lane.b32.xlu0 %v3599_v61, %s10013_s22  ;;  %v1266_v24 = vadd.f32 %v11713_v21, %v10331_v36  ;;  %v1276_v21 = vadd.f32 %v11756_v62, %v10319_v26  ;;  %v12408_v46 = vpop.f32.mrb[182].mxu0 }
 0x2ab   : > { %v12415_v8 = vpop.f32.mrb[183].mxu0 }
 0x2ac   : > { %v12373_v37 = vpop.permute.xlu1 %2116  ;;  %v12375_v44 = vpop.permute.xlu0 %2114  ;;  %18170 = vst [vmem:[#allocation231_spill] sm:$0xff] %v12415_v8 }
 0x2ad   : > { %18160 = vst [vmem:[#allocation225_spill] sm:$0xff] %v12373_v37  ;;  %18161 = vst [vmem:[#allocation226_spill] sm:$0xff] %v12375_v44  ;;  %v2938_v37 = vmax.f32 %v11723_v16, %v18165_v19  ;;  %v1775_v16 = vmax.f32 %v1266_v24, 0.0  ;;  %v1777_v19 = vmax.f32 %v1272_v17, 0.0 }
 0x2ae   : > { %2156 = vrot.lane.b32.xlu1 %v12371_v45, %s10013_s22  ;;  %2158 = vrot.lane.b32.xlu0 %v12365_v13, %s10013_s22  ;;  %v18167_v45 = vld [vmem:[#allocation133_spill] sm:$0xff] }
 0x2af   : > { %v2939_v53 = vmax.f32 %v11797_v2, %v18167_v45  ;;  %v12406_v54 = vsel %vm4206_vm1, %v2938_v37, %v3847_v12  ;;  %v12424_v45 = vpop.f32.mrb[184].mxu0  ;;  %v18172_v37 = vld [vmem:[#allocation164_spill] sm:$0xff]  ;;  %v18173_v12 = vld [vmem:[#allocation27_spill] sm:$0xff] }
 0x2b0   : > { %v12389_v61 = vpop.permute.xlu1 %2630  ;;  %v12391_v52 = vpop.permute.xlu0 %3266  ;;  %18168 = vst [vmem:[#allocation133_spill] sm:$0xff] %v12406_v54  ;;  %v17396_v62 = vrot.slane %v12406_v54, 1  ;;  %v17398_v24 = vrot.slane %v12406_v54, 2 }
 0x2b1   : > { %18163 = vst [vmem:[#allocation228_spill] sm:$0xff] %v12389_v61  ;;  %18164 = vst [vmem:[#allocation229_spill] sm:$0xff] %v12391_v52  ;;  %v12418_v61 = vmax.f32 %v1276_v21, 0.0 }
 0x2b2   : > { %2670 = vrot.lane.b32.xlu1 %v12365_v13, %s10014_s23  ;;  %2672 = vrot.lane.b32.xlu0 %v12377_v22, %s10014_s23 }
 0x2b3   : > { %18171 = vst [vmem:[#allocation232_spill] sm:$0xff] %v12418_v61 }
 0x2b4   : > { %v12410_v52 = vpop.permute.xlu1 %3270  ;;  %v3849_v44 = vpop.permute.xlu0 %3848 }
 0x2b5   : > { %v12413_v10 = vsel %vm4206_vm1, %v2939_v53, %v3849_v44  ;;  %v12428_v44 = vmax.f32 %v18172_v37, %v12171_v47  ;;  %v12445_v47 = vmax.f32 %v18173_v12, %v12141_v30 }
 0x2b6   : > { %18169 = vst [vmem:[#allocation230_spill] sm:$0xff] %v12413_v10  ;;  %v17397_v2 = vrot.slane %v12413_v10, 1  ;;  %3310 = vrot.lane.b32.xlu1 %v1775_v16, %s10014_s23  ;;  %3312 = vrot.lane.b32.xlu0 %v1777_v19, %s10014_s23  ;;  %v12441_v19 = vpop.f32.mrb[185].mxu0  ;;  %v18174_v37 = vrot.slane %v12413_v10, 2 }
 0x2b7   : > { %v3602_v30 = vmax.f32 %v12428_v44, %v12110_v33  ;;  %v3603_v12 = vmax.f32 %v12445_v47, %v12217_v11  ;;  %v1290_v11 = vadd.f32 %v11804_v39, %v10331_v36 }
 0x2b8   : > { %v4490_v17 = vsel %vm4463_vm2, %v17396_v62, %v17397_v2  ;;  %v12436_v21 = vpop.permute.xlu1 %2120  ;;  %v12438_v53 = vpop.permute.xlu0 %2118  ;;  %v4875_v8 = vsel %vm4848_vm3, %v17398_v24, %v18174_v37  ;;  %v1282_v37 = vadd.f32 %v11777_v0, %v10319_v26 }
 0x2b9   : > { %v5245_v16 = vmax.f32 %v12406_v54, %v4490_v17  ;;  %v1288_v17 = vadd.f32 %v11793_v41, %v10319_v26  ;;  %v1783_v39 = vmax.f32 %v1290_v11, 0.0 }
 0x2ba   : > { %2160 = vrot.lane.b32.xlu1 %v12377_v22, %s10013_s22  ;;  %2162 = vrot.lane.b32.xlu0 %v12418_v61, %s10013_s22  ;;  %v12458_v2 = vpop.f32.mrb[186].mxu0  ;;  %v12475_v33 = vmax.f32 %v1282_v37, 0.0  ;;  %v18182_v61 = vld [vmem:[#allocation150_spill] sm:$0xff]  ;;  %v18206_v22 = vld [vmem:[#allocation205_spill] sm:$0xff] }
 0x2bb   : > { %v5373_v62 = vmax.f32 %v5245_v16, %v4875_v8  ;;  %v12469_v10 = vpop.f32.mrb[187].mxu0  ;;  %v12471_v41 = vmax.f32 %v1288_v17, 0.0  ;;  %v1296_v17 = vadd.f32 %v11818_v9, %v10331_v36 }
 0x2bc   : > { %v3855_v24 = vpop.permute.xlu1 %3854  ;;  %v12466_v54 = vpop.permute.xlu0 %2632  ;;  %18177 = vst [vmem:[#allocation233_spill] sm:$0xff] %v12475_v33 }
 0x2bd   : > { %18175 = vst [vmem:[#allocation164_spill] sm:$0xff] %v12466_v54  ;;  %5502 = vst.msk [vmem:[#allocation2 + $0x60] sm:$0xff] %vm5489_vm4, %v5373_v62  ;;  %v1294_v62 = vadd.f32 %v11816_v31, %v10319_v26  ;;  %v1785_v54 = vmax.f32 %v1296_v17, 0.0  ;;  %v18184_v31 = vld [vmem:[#allocation72_spill] sm:$0xff] }
 0x2be   : > { %18176 = vst [vmem:[#allocation27_spill] sm:$0xff] %v12471_v41  ;;  %3894 = vrot.lane.b32.xlu1 %v3602_v30, %s10013_s22  ;;  %3896 = vrot.lane.b32.xlu0 %v3603_v12, %s10013_s22  ;;  %v12483_v16 = vpop.f32.mrb[188].mxu0  ;;  %v1300_v9 = vadd.f32 %v18184_v31, %v10319_v26 }
 0x2bf   : > { %v12493_v30 = vpop.f32.mrb[189].mxu0 }
 0x2c0   : > { %v12479_v8 = vpop.permute.xlu1 %3274  ;;  %v12481_v0 = vpop.permute.xlu0 %3272  ;;  %18179 = vst [vmem:[#allocation235_spill] sm:$0xff] %v12493_v30  ;;  %v18185_v30 = vld [vmem:[#allocation13_spill] sm:$0xff]  ;;  %v12519_v17 = vmax.f32 %v1300_v9, 0.0 }
 0x2c1   : > { %18178 = vst [vmem:[#allocation234_spill] sm:$0xff] %v12479_v8  ;;  %v2942_v8 = vmax.f32 %v11826_v3, %v18182_v61  ;;  %v2943_v11 = vmax.f32 %v11869_v43, %v18185_v30  ;;  %v18190_v43 = vld [vmem:[#allocation175_spill] sm:$0xff] }
 0x2c2   : > { %2164 = vrot.lane.b32.xlu1 %v12475_v33, %s10013_s22  ;;  %2166 = vrot.lane.b32.xlu0 %v12471_v41, %s10013_s22  ;;  %v12501_v33 = vmax.f32 %v1294_v62, 0.0  ;;  %18189 = vst [vmem:[#allocation239_spill] sm:$0xff] %v12519_v17 }
 0x2c4   : > { %v12495_v12 = vpop.permute.xlu1 %2124  ;;  %v12497_v37 = vpop.permute.xlu0 %2122  ;;  %18183 = vst [vmem:[#allocation150_spill] sm:$0xff] %v12501_v33 }
 0x2c5   : > { %18180 = vst [vmem:[#allocation236_spill] sm:$0xff] %v12495_v12  ;;  %18181 = vst [vmem:[#allocation237_spill] sm:$0xff] %v12497_v37  ;;  %v12511_v12 = vsel %vm4206_vm1, %v2942_v8, %v3855_v24  ;;  %v12528_v24 = vmax.f32 %v18190_v43, %v12318_v56 }
 0x2c6   : > { %3318 = vrot.lane.b32.xlu1 %v1783_v39, %s10014_s23  ;;  %2678 = vrot.lane.b32.xlu0 %v12471_v41, %s10014_s23  ;;  %18186 = vst [vmem:[#allocation72_spill] sm:$0xff] %v12511_v12  ;;  %v17407_v62 = vrot.slane %v12511_v12, 1  ;;  %v17413_v8 = vrot.slane %v12511_v12, 2 }
 0x2c8   : > { %v12513_v37 = vpop.permute.xlu1 %2638  ;;  %v3857_v3 = vpop.permute.xlu0 %3856 }
 0x2c9   : > { %18187 = vst [vmem:[#allocation13_spill] sm:$0xff] %v12513_v37  ;;  %v12516_v61 = vsel %vm4206_vm1, %v2943_v11, %v3857_v3 }
 0x2ca   : > { %18188 = vst [vmem:[#allocation238_spill] sm:$0xff] %v12516_v61  ;;  %v17408_v39 = vrot.slane %v12516_v61, 1  ;;  %2168 = vrot.lane.b32.xlu1 %v12501_v33, %s10013_s22  ;;  %3320 = vrot.lane.b32.xlu0 %v1785_v54, %s10014_s23  ;;  %v18191_v54 = vld [vmem:[#allocation180_spill] sm:$0xff]  ;;  %v18193_v56 = vrot.slane %v12516_v61, 2 }
 0x2cb   : > { %v12543_v31 = vmax.f32 %v18191_v54, %v12316_v60  ;;  %v3606_v60 = vmax.f32 %v12528_v24, %v12284_v40  ;;  %v18198_v40 = vld [vmem:[#allocation199_spill] sm:$0xff] }
 0x2cc   : > { %v4498_v30 = vsel %vm4463_vm2, %v17407_v62, %v17408_v39  ;;  %v12536_v9 = vpop.permute.xlu1 %3278  ;;  %v12538_v11 = vpop.permute.xlu0 %2126  ;;  %v4883_v43 = vsel %vm4848_vm3, %v17413_v8, %v18193_v56  ;;  %v18194_v62 = vld [vmem:[#allocation197_spill] sm:$0xff] }
 0x2cd   : > { %v5249_v3 = vmax.f32 %v12511_v12, %v4498_v30  ;;  %18192 = vst [vmem:[#allocation175_spill] sm:$0xff] %v12543_v31  ;;  %v1312_v39 = vadd.f32 %v18194_v62, %v10319_v26  ;;  %v3607_v54 = vmax.f32 %v12543_v31, %v12363_v4  ;;  %v18195_v12 = vld [vmem:[#allocation194_spill] sm:$0xff]  ;;  %v1314_v4 = vadd.f32 %v18198_v40, %v10331_v36 }
 0x2ce   : > { %2680 = vrot.lane.b32.xlu1 %v12501_v33, %s10014_s23  ;;  %2170 = vrot.lane.b32.xlu0 %v12519_v17, %s10013_s22  ;;  %v1306_v61 = vadd.f32 %v18195_v12, %v10319_v26  ;;  %v1324_v31 = vadd.f32 %v18206_v22, %v10319_v26 }
 0x2cf   : > { %v5377_v30 = vmax.f32 %v5249_v3, %v4883_v43  ;;  %v12567_v17 = vmax.f32 %v1312_v39, 0.0  ;;  %v18200_v43 = vld [vmem:[#allocation139_spill] sm:$0xff] }
 0x2d0   : > { %v12562_v56 = vpop.permute.xlu1 %2128  ;;  %v12564_v8 = vpop.permute.xlu0 %2640  ;;  %v12571_v62 = vmax.f32 %v1306_v61, 0.0  ;;  %v18202_v61 = vld [vmem:[#allocation168_spill] sm:$0xff] }
 0x2d1   : > { %18196 = vst [vmem:[#allocation180_spill] sm:$0xff] %v12564_v8  ;;  %5506 = vst.msk [vmem:[#allocation2 + $0x80] sm:$0xff] %vm5489_vm4, %v5377_v30  ;;  %v1318_v8 = vadd.f32 %v18200_v43, %v10319_v26  ;;  %v18201_v30 = vld [vmem:[#allocation202_spill] sm:$0xff] }
 0x2d2   : > { %3902 = vrot.lane.b32.xlu1 %v3606_v60, %s10013_s22  ;;  %3904 = vrot.lane.b32.xlu0 %v3607_v54, %s10013_s22  ;;  %18197 = vst [vmem:[#allocation197_spill] sm:$0xff] %v12571_v62  ;;  %v1320_v39 = vadd.f32 %v18201_v30, %v10331_v36  ;;  %v2946_v60 = vmax.f32 %v11939_v27, %v18202_v61  ;;  %v18203_v54 = vld [vmem:[#allocation169_spill] sm:$0xff] }
 0x2d3   : > { %v2947_v40 = vmax.f32 %v11927_v1, %v18203_v54  ;;  %v12591_v37 = vmax.f32 %v1318_v8, 0.0 }
 0x2d4   : > { %v12575_v3 = vpop.permute.xlu1 %3282  ;;  %v12577_v12 = vpop.permute.xlu0 %3280  ;;  %v1793_v41 = vmax.f32 %v1320_v39, 0.0 }
 0x2d5   : > { %18199 = vst [vmem:[#allocation194_spill] sm:$0xff] %v12575_v3  ;;  %v1791_v3 = vmax.f32 %v1314_v4, 0.0 }
 0x2d6   : > { %2172 = vrot.lane.b32.xlu1 %v12571_v62, %s10013_s22  ;;  %2174 = vrot.lane.b32.xlu0 %v12567_v17, %s10013_s22 }
 0x2d8   : > { %v3865_v33 = vpop.permute.xlu1 %3864  ;;  %v3863_v43 = vpop.permute.xlu0 %3862 }
 0x2d9   : > { %v12594_v30 = vsel %vm4206_vm1, %v2947_v40, %v3865_v33  ;;  %v12597_v62 = vsel %vm4206_vm1, %v2946_v60, %v3863_v43  ;;  %v12623_v60 = vmax.f32 %v1324_v31, 0.0  ;;  %v18210_v40 = vld [vmem:[#allocation186_spill] sm:$0xff] }
 0x2da   : > { %18204 = vst [vmem:[#allocation199_spill] sm:$0xff] %v12594_v30  ;;  %18205 = vst [vmem:[#allocation139_spill] sm:$0xff] %v12597_v62  ;;  %v17425_v27 = vrot.slane %v12594_v30, 1  ;;  %v17424_v61 = vrot.slane %v12594_v30, 2  ;;  %v17422_v1 = vrot.slane %v12597_v62, 1  ;;  %v17423_v8 = vrot.slane %v12597_v62, 2  ;;  %3326 = vrot.lane.b32.xlu1 %v1791_v3, %s10014_s23  ;;  %2686 = vrot.lane.b32.xlu0 %v12567_v17, %s10014_s23 }
 0x2db   : > { %18209 = vst [vmem:[#allocation169_spill] sm:$0xff] %v12623_v60  ;;  %v12630_v43 = vmax.f32 %v18210_v40, %v12438_v53 }
 0x2dc   : > { %v4506_v33 = vsel %vm4463_vm2, %v17422_v1, %v17425_v27  ;;  %v12613_v22 = vpop.permute.xlu1 %2132  ;;  %v12615_v4 = vpop.permute.xlu0 %2130  ;;  %v4891_v3 = vsel %vm4848_vm3, %v17423_v8, %v17424_v61  ;;  %v18212_v8 = vld [vmem:[#allocation190_spill] sm:$0xff] }
 0x2dd   : > { %18207 = vst [vmem:[#allocation202_spill] sm:$0xff] %v12613_v22  ;;  %18208 = vst [vmem:[#allocation168_spill] sm:$0xff] %v12615_v4  ;;  %v5253_v39 = vmax.f32 %v12597_v62, %v4506_v33  ;;  %v12639_v31 = vmax.f32 %v18212_v8, %v12436_v21  ;;  %v18219_v62 = vld [vmem:[#allocation181_spill] sm:$0xff] }
 0x2de   : > { %2176 = vrot.lane.b32.xlu1 %v12591_v37, %s10013_s22  ;;  %3328 = vrot.lane.b32.xlu0 %v1793_v41, %s10014_s23  ;;  %v18213_v41 = vld [vmem:[#allocation143_spill] sm:$0xff]  ;;  %v2950_v22 = vmax.f32 %v12053_v15, %v18219_v62 }
 0x2df   : > { %v5381_v54 = vmax.f32 %v5253_v39, %v4891_v3  ;;  %v1336_v53 = vadd.f32 %v18213_v41, %v10319_v26  ;;  %v3610_v39 = vmax.f32 %v12630_v43, %v12410_v52  ;;  %v3611_v3 = vmax.f32 %v12639_v31, %v12481_v0 }
 0x2e0   : > { %v12632_v1 = vpop.permute.xlu1 %2646  ;;  %v12634_v33 = vpop.permute.xlu0 %2134  ;;  %v1342_v41 = vadd.f32 %v11994_v49, %v10319_v26  ;;  %v1344_v49 = vadd.f32 %v12006_v58, %v10331_v36  ;;  %v18222_v58 = vld [vmem:[#allocation198_spill] sm:$0xff] }
 0x2e1   : > { %18211 = vst [vmem:[#allocation205_spill] sm:$0xff] %v12632_v1  ;;  %5510 = vst.msk [vmem:[#allocation2 + $0xa0] sm:$0xff] %vm5489_vm4, %v5381_v54  ;;  %v18214_v54 = vld [vmem:[#allocation62_spill] sm:$0xff]  ;;  %v12657_v61 = vmax.f32 %v1336_v53, 0.0  ;;  %v18217_v53 = vld [vmem:[#allocation65_spill] sm:$0xff]  ;;  %v12694_v30 = vmax.f32 %v18222_v58, %v12538_v11 }
 0x2e2   : > { %2688 = vrot.lane.b32.xlu1 %v12591_v37, %s10014_s23  ;;  %2178 = vrot.lane.b32.xlu0 %v12623_v60, %s10013_s22  ;;  %v1330_v40 = vadd.f32 %v18214_v54, %v10319_v26  ;;  %v12669_v54 = vmax.f32 %v1342_v41, 0.0  ;;  %v18220_v41 = vld [vmem:[#allocation50_spill] sm:$0xff] }
 0x2e3   : > { %v3614_v11 = vmax.f32 %v12694_v30, %v12536_v9 }
 0x2e4   : > { %v12653_v21 = vpop.permute.xlu1 %3286  ;;  %v12655_v8 = vpop.permute.xlu0 %2648  ;;  %v12663_v52 = vmax.f32 %v1330_v40, 0.0 }
 0x2e5   : > { %18215 = vst [vmem:[#allocation186_spill] sm:$0xff] %v12655_v8 }
 0x2e6   : > { %3910 = vrot.lane.b32.xlu1 %v3610_v39, %s10013_s22  ;;  %3912 = vrot.lane.b32.xlu0 %v3611_v3, %s10013_s22  ;;  %18216 = vst [vmem:[#allocation190_spill] sm:$0xff] %v12663_v52  ;;  %v1338_v39 = vadd.f32 %v18217_v53, %v10331_v36 }
 0x2e8   : > { %v12665_v27 = vpop.permute.xlu1 %2136  ;;  %v12667_v0 = vpop.permute.xlu0 %3288  ;;  %v1799_v60 = vmax.f32 %v1338_v39, 0.0  ;;  %v1348_v39 = vadd.f32 %v12038_v32, %v10319_v26 }
 0x2ea   : > { %2180 = vrot.lane.b32.xlu1 %v12663_v52, %s10013_s22  ;;  %2182 = vrot.lane.b32.xlu0 %v12657_v61, %s10013_s22  ;;  %v2951_v52 = vmax.f32 %v12064_v20, %v18220_v41 }
 0x2ec   : > { %v12679_v3 = vpop.permute.xlu1 %3290  ;;  %v3871_v40 = vpop.permute.xlu0 %3870 }
 0x2ed   : > { %18218 = vst [vmem:[#allocation143_spill] sm:$0xff] %v12679_v3  ;;  %v12690_v53 = vsel %vm4206_vm1, %v2950_v22, %v3871_v40  ;;  %v1801_v3 = vmax.f32 %v1344_v49, 0.0  ;;  %v1360_v40 = vadd.f32 %v12072_v25, %v10319_v26  ;;  %v1366_v25 = vadd.f32 %v12092_v29, %v10319_v26 }
 0x2ee   : > { %2694 = vrot.lane.b32.xlu1 %v12657_v61, %s10014_s23  ;;  %2696 = vrot.lane.b32.xlu0 %v12669_v54, %s10014_s23  ;;  %18221 = vst [vmem:[#allocation62_spill] sm:$0xff] %v12690_v53  ;;  %v17435_v8 = vrot.slane %v12690_v53, 1  ;;  %v17434_v22 = vrot.slane %v12690_v53, 2 }
 0x2f0   : > { %v3873_v4 = vpop.permute.xlu1 %3872  ;;  %v12696_v15 = vpop.permute.xlu0 %2138 }
 0x2f1   : > { %18223 = vst [vmem:[#allocation65_spill] sm:$0xff] %v12696_v15  ;;  %v12699_v62 = vsel %vm4206_vm1, %v2951_v52, %v3873_v4 }
 0x2f2   : > { %18224 = vst [vmem:[#allocation181_spill] sm:$0xff] %v12699_v62  ;;  %v17437_v1 = vrot.slane %v12699_v62, 1  ;;  %v17436_v20 = vrot.slane %v12699_v62, 2  ;;  %3334 = vrot.lane.b32.xlu1 %v1799_v60, %s10014_s23  ;;  %3336 = vrot.lane.b32.xlu0 %v1801_v3, %s10014_s23  ;;  %v18226_v3 = vld [vmem:[#allocation203_spill] sm:$0xff] }
 0x2f3   : > { %v12723_v9 = vmax.f32 %v18226_v3, %v12562_v56  ;;  %v12737_v56 = vmax.f32 %v1348_v39, 0.0  ;;  %v12759_v39 = vmax.f32 %v1366_v25, 0.0 }
 0x2f4   : > { %v4514_v4 = vsel %vm4463_vm2, %v17435_v8, %v17437_v1  ;;  %v12716_v52 = vpop.permute.xlu1 %2140  ;;  %v12718_v49 = vpop.permute.xlu0 %2142  ;;  %v4899_v32 = vsel %vm4848_vm3, %v17434_v22, %v17436_v20  ;;  %v12746_v8 = vmax.f32 %v1360_v40, 0.0  ;;  %v18230_v40 = vld [vmem:[#allocation216_spill] sm:$0xff]  ;;  %v18233_v20 = vld [vmem:[#allocation129_spill] sm:$0xff] }
 0x2f5   : > { %18225 = vst [vmem:[#allocation50_spill] sm:$0xff] %v12716_v52  ;;  %v5257_v60 = vmax.f32 %v12690_v53, %v4514_v4  ;;  %v3615_v58 = vmax.f32 %v12723_v9, %v12577_v12  ;;  %18227 = vst [vmem:[#allocation198_spill] sm:$0xff] %v12737_v56  ;;  %v1354_v4 = vadd.f32 %v12049_v28, %v10319_v26  ;;  %v18234_v52 = vld [vmem:[#allocation208_spill] sm:$0xff] }
 0x2f6   : > { %2184 = vrot.lane.b32.xlu1 %v12669_v54, %s10013_s22  ;;  %3918 = vrot.lane.b32.xlu0 %v3614_v11, %s10013_s22  ;;  %v1368_v29 = vadd.f32 %v18230_v40, %v10331_v36  ;;  %v2955_v1 = vmax.f32 %v12201_v57, %v18233_v20  ;;  %v12783_v62 = vmax.f32 %v18234_v52, %v12634_v33  ;;  %v18237_v52 = vld [vmem:[#allocation210_spill] sm:$0xff] }
 0x2f7   : > { %v5385_v41 = vmax.f32 %v5257_v60, %v4899_v32  ;;  %v12753_v12 = vmax.f32 %v1354_v4, 0.0  ;;  %v18229_v60 = vld [vmem:[#allocation213_spill] sm:$0xff]  ;;  %v18232_v4 = vld [vmem:[#allocation191_spill] sm:$0xff] }
 0x2f8   : > { %v12741_v3 = vpop.permute.xlu1 %2654  ;;  %v12743_v22 = vpop.permute.xlu0 %2656  ;;  %v1362_v32 = vadd.f32 %v18229_v60, %v10331_v36  ;;  %v2954_v25 = vmax.f32 %v12190_v50, %v18232_v4  ;;  %v1809_v53 = vmax.f32 %v1368_v29, 0.0  ;;  %v3618_v33 = vmax.f32 %v12783_v62, %v12653_v21 }
 0x2f9   : > { %5514 = vst.msk [vmem:[#allocation2 + $0xc0] sm:$0xff] %vm5489_vm4, %v5385_v41  ;;  %18228 = vst [vmem:[#allocation203_spill] sm:$0xff] %v12753_v12  ;;  %v1384_v21 = vadd.f32 %v12197_v34, %v10319_v26  ;;  %v5661_v34 = vld [vmem:[#allocation2 + $0x62] sm:$0x1] }
 0x2fa   : > { %2186 = vrot.lane.b32.xlu0 %v12737_v56, %s10013_s22  ;;  %3920 = vrot.lane.b32.xlu1 %v3615_v58, %s10013_s22  ;;  %v1807_v60 = vmax.f32 %v1362_v32, 0.0 }
 0x2fc   : > { %v12755_v11 = vpop.permute.xlu1 %3294  ;;  %v12757_v28 = vpop.permute.xlu0 %3296 }
 0x2fe   : > { %2190 = vrot.lane.b32.xlu0 %v12746_v8, %s10013_s22  ;;  %2188 = vrot.lane.b32.xlu1 %v12753_v12, %s10013_s22 }
 0x300   : > { %v12769_v41 = vpop.permute.xlu1 %2144  ;;  %v12771_v58 = vpop.permute.xlu0 %2146 }
 0x301   : > { %18231 = vst [vmem:[#allocation213_spill] sm:$0xff] %v12771_v58 }
 0x302   : > { %2704 = vrot.lane.b32.xlu0 %v12759_v39, %s10014_s23  ;;  %2702 = vrot.lane.b32.xlu1 %v12746_v8, %s10014_s23 }
 0x304   : > { %v3879_v12 = vpop.permute.xlu1 %3878  ;;  %v3881_v40 = vpop.permute.xlu0 %3880 }
 0x305   : > { %v12786_v56 = vsel %vm4206_vm1, %v2954_v25, %v3879_v12  ;;  %v12789_v58 = vsel %vm4206_vm1, %v2955_v1, %v3881_v40  ;;  %v12801_v12 = vmax.f32 %v18237_v52, %v12665_v27  ;;  %v18238_v1 = vld [vmem:[#allocation161_spill] sm:$0xff] }
 0x306   : > { %18235 = vst [vmem:[#allocation216_spill] sm:$0xff] %v12786_v56  ;;  %18236 = vst [vmem:[#allocation191_spill] sm:$0xff] %v12789_v58  ;;  %v17446_v15 = vrot.slane %v12786_v56, 1  ;;  %v17448_v50 = vrot.slane %v12786_v56, 2  ;;  %v17447_v57 = vrot.slane %v12789_v58, 1  ;;  %v17449_v20 = vrot.slane %v12789_v58, 2  ;;  %3344 = vrot.lane.b32.xlu0 %v1809_v53, %s10014_s23  ;;  %3342 = vrot.lane.b32.xlu1 %v1807_v60, %s10014_s23 }
 0x307   : > { %v1372_v32 = vadd.f32 %v18238_v1, %v10319_v26  ;;  %v5659_v60 = vld [vmem:[#allocation2 + $0x22] sm:$0x1]  ;;  %v12825_v40 = vpop.f32.mrb[62].mxu1  ;;  %v5736_v58 = vrot.slane %v5661_v34, 5 }
 0x308   : > { %v4522_v29 = vsel %vm4463_vm2, %v17446_v15, %v17447_v57  ;;  %v12810_v4 = vpop.permute.xlu1 %3298  ;;  %v12812_v53 = vpop.permute.xlu0 %2150  ;;  %v4907_v27 = vsel %vm4848_vm3, %v17448_v50, %v17449_v20  ;;  %v5660_v1 = vld [vmem:[#allocation2 + $0x42] sm:$0x1]  ;;  %v3619_v15 = vmax.f32 %v12801_v12, %v12667_v0  ;;  %v1378_v50 = vadd.f32 %v12175_v18, %v10319_v26 }
 0x309   : > { %18239 = vst [vmem:[#allocation129_spill] sm:$0xff] %v12810_v4  ;;  %v5261_v25 = vmax.f32 %v12786_v56, %v4522_v29  ;;  %v12827_v29 = vpop.f32.mrb[63].mxu1  ;;  %v12831_v57 = vmax.f32 %v1372_v32, 0.0  ;;  %v5662_v56 = vld [vmem:[#allocation2 + $0x82] sm:$0x1]  ;;  %v1390_v0 = vadd.f32 %v12219_v48, %v10319_v26  ;;  %v5733_v32 = vrot.slane %v5660_v1, 6 }
 0x30a   : > { %2192 = vrot.lane.b32.xlu1 %v12759_v39, %s10013_s22  ;;  %3926 = vrot.lane.b32.xlu0 %v3618_v33, %s10013_s22  ;;  %18240 = vst [vmem:[#allocation208_spill] sm:$0xff] %v12827_v29  ;;  %v5663_v18 = vld [vmem:[#allocation2 + $0xa2] sm:$0x1]  ;;  %v12847_v4 = vmax.f32 %v1378_v50, 0.0 }
 0x30b   : > { %v5389_v52 = vmax.f32 %v5261_v25, %v4907_v27  ;;  %18241 = vst [vmem:[#allocation210_spill] sm:$0xff] %v12831_v57  ;;  %v5730_v25 = vrot.slane %v5659_v60, 7  ;;  %v12840_v27 = vmax.f32 %v1384_v21, 0.0  ;;  %v5658_v60 = vld [vmem:[#allocation2 + $0x2] sm:$0x1]  ;;  %v12854_v48 = vmax.f32 %v1390_v0, 0.0 }
 0x30c   : > { %v12835_v20 = vpop.permute.xlu1 %2148  ;;  %v12837_v33 = vpop.permute.xlu0 %2662  ;;  %18244 = vst [vmem:[#allocation241_spill] sm:$0xff] %v12847_v4 }
 0x30d   : > { %18242 = vst [vmem:[#allocation161_spill] sm:$0xff] %v12835_v20  ;;  %18243 = vst [vmem:[#allocation240_spill] sm:$0xff] %v12837_v33  ;;  %v5664_v20 = vld [vmem:[#allocation2 + $0xc2] sm:$0x1]  ;;  %v5742_v33 = vrot.slane %v5663_v18, 3 }
 0x30e   : > { %5518 = vst.msk [vmem:[#allocation2 + $0xe0] sm:$0xff] %vm5489_vm4, %v5389_v52  ;;  %2194 = vrot.lane.b32.xlu0 %v12831_v57, %s10013_s22  ;;  %3928 = vrot.lane.b32.xlu1 %v3619_v15, %s10013_s22  ;;  %v5739_v57 = vrot.slane %v5662_v56, 4  ;;  %v5732_v15 = vsel %vm5731_vm5, %v5730_v25, %v5658_v60  ;;  %v5745_v1 = vrot.slane %v5664_v20, 2  ;;  %v1386_v56 = vadd.f32 %v12209_v6, %v10331_v36  ;;  %v18245_v25 = vld [vmem:[#allocation222_spill] sm:$0xff] }
 0x30f   : > { %v5735_v50 = vsel %vm5734_vm6, %v5733_v32, %v5732_v15  ;;  %v1392_v0 = vadd.f32 %v18245_v25, %v10331_v36  ;;  %v1396_v6 = vadd.f32 %v12260_v51, %v10319_v26 }
 0x310   : > { %v12849_v52 = vpop.permute.xlu1 %3302  ;;  %v12851_v21 = vpop.permute.xlu0 %3304  ;;  %v5738_v34 = vsel %vm5737_vm7, %v5736_v58, %v5735_v50  ;;  %v1815_v50 = vmax.f32 %v1386_v56, 0.0  ;;  %v18251_v56 = vld [vmem:[#allocation218_spill] sm:$0xff] }
 0x311   : > { %v1817_v25 = vmax.f32 %v1392_v0, 0.0  ;;  %v12895_v0 = vmax.f32 %v18251_v56, %v12769_v41 }
 0x312   : > { %2198 = vrot.lane.b32.xlu0 %v12840_v27, %s10013_s22  ;;  %2196 = vrot.lane.b32.xlu1 %v12847_v4, %s10013_s22  ;;  %v5741_v4 = vsel %vm5740_vm8, %v5739_v57, %v5738_v34 }
 0x313   : > { %v5744_v32 = vsel %vm5743_vm9, %v5742_v33, %v5741_v4  ;;  %v18249_v33 = vld [vmem:[#allocation148_spill] sm:$0xff] }
 0x314   : > { %v12866_v18 = vpop.permute.xlu1 %2152  ;;  %v12868_v60 = vpop.permute.xlu0 %2154  ;;  %v5747_v58 = vsel %vm5746_vm10, %v5745_v1, %v5744_v32  ;;  %v2958_v51 = vmax.f32 %v12337_v59, %v18249_v33  ;;  %v18250_v1 = vld [vmem:[#allocation8_spill] sm:$0xff]  ;;  %v1408_v59 = vadd.f32 %v12322_v35, %v10319_v26  ;;  %v3623_v35 = vmax.f32 %v12895_v0, %v12757_v28 }
 0x315   : > { %18246 = vst [vmem:[#allocation222_spill] sm:$0xff] %v12868_v60  ;;  %v5665_v29 = vld [vmem:[#allocation2 + $0xe2] sm:$0x1]  ;;  %v2959_v34 = vmax.f32 %v12346_v5, %v18250_v1 }
 0x316   : > { %v5748_v20 = vrot.slane %v5665_v29, 1  ;;  %2712 = vrot.lane.b32.xlu0 %v12854_v48, %s10014_s23  ;;  %2710 = vrot.lane.b32.xlu1 %v12840_v27, %s10014_s23  ;;  %v12885_v29 = vmax.f32 %v1396_v6, 0.0  ;;  %v12938_v28 = vmax.f32 %v1408_v59, 0.0  ;;  %v1416_v59 = vadd.f32 %v12353_v38, %v10331_v36 }
 0x318   : > { %v5750_v15 = vsel %vm5749_vm11, %v5748_v20, %v5747_v58  ;;  %v12880_v57 = vpop.permute.xlu1 %2664  ;;  %v12883_v4 = vpop.permute.xlu0 %3306  ;;  %18248 = vst [vmem:[#allocation243_spill] sm:$0xff] %v12885_v29  ;;  %v18252_v58 = vld [vmem:[#allocation85_spill] sm:$0xff] }
 0x319   : > { %9347 = vmatprep.mubr.msk.f32.mxu1 %vm5489_vm4, %v5750_v15  ;;  %18247 = vst [vmem:[#allocation242_spill] sm:$0xff] %v12883_v4  ;;  %v12899_v6 = vmax.f32 %v18252_v58, %v12718_v49 }
 0x31a   : > { %3352 = vrot.lane.b32.xlu0 %v1817_v25, %s10014_s23  ;;  %3350 = vrot.lane.b32.xlu1 %v1815_v50, %s10014_s23 }
 0x31b   : > { %v3622_v49 = vmax.f32 %v12899_v6, %v12755_v11 }
 0x31c   : > { %v3887_v32 = vpop.permute.xlu1 %3886  ;;  %v3889_v20 = vpop.permute.xlu0 %3888 }
 0x31d   : > { %v12902_v15 = vsel %vm4206_vm1, %v2958_v51, %v3887_v32  ;;  %v12905_v50 = vsel %vm4206_vm1, %v2959_v34, %v3889_v20  ;;  %v1402_v51 = vadd.f32 %v12292_v63, %v10319_v26  ;;  %v1414_v63 = vadd.f32 %v12342_v42, %v10319_v26 }
 0x31e   : > { %18253 = vst [vmem:[#allocation148_spill] sm:$0xff] %v12902_v15  ;;  %18254 = vst [vmem:[#allocation8_spill] sm:$0xff] %v12905_v50  ;;  %v17458_v5 = vrot.slane %v12902_v15, 1  ;;  %v17460_v41 = vrot.slane %v12902_v15, 2  ;;  %v17459_v25 = vrot.slane %v12905_v50, 1  ;;  %v17461_v33 = vrot.slane %v12905_v50, 2  ;;  %2202 = vrot.lane.b32.xlu0 %v12885_v29, %s10013_s22  ;;  %2200 = vrot.lane.b32.xlu1 %v12854_v48, %s10013_s22 }
 0x31f   : > { %v12944_v58 = vmax.f32 %v1402_v51, 0.0  ;;  %v1410_v42 = vadd.f32 %v12333_v55, %v10331_v36  ;;  %v5690_v51 = vld [vmem:[%s17211_s3 + $0x40] sm:$0xff]  ;;  %v13001_v50 = vmax.f32 %v12307_v23, %v12866_v18 }
 0x320   : > { %v4530_v1 = vsel %vm4463_vm2, %v17458_v5, %v17459_v25  ;;  %v12928_v34 = vpop.permute.xlu1 %2156  ;;  %v12930_v56 = vpop.permute.xlu0 %2158  ;;  %v4915_v11 = vsel %vm4848_vm3, %v17460_v41, %v17461_v33  ;;  %v12951_v25 = vmax.f32 %v1414_v63, 0.0  ;;  %v1420_v41 = vadd.f32 %v12383_v7, %v10319_v26  ;;  %v5692_v33 = vld [vmem:[%s17211_s3 + $0x50] sm:$0xff]  ;;  %v5694_v23 = vld [vmem:[%s17211_s3 + $0x60] sm:$0xff] }
 0x321   : > { %18255 = vst [vmem:[#allocation218_spill] sm:$0xff] %v12928_v34  ;;  %v5265_v32 = vmax.f32 %v12902_v15, %v4530_v1  ;;  %18256 = vst [vmem:[#allocation85_spill] sm:$0xff] %v12944_v58  ;;  %v1823_v38 = vmax.f32 %v1410_v42, 0.0  ;;  %v5693_v15 = vld [vmem:[%s17211_s3 + $0x58] sm:$0xff]  ;;  %v18258_v42 = vld [vmem:[#allocation137_spill] sm:$0xff] }
 0x322   : > { %3934 = vrot.lane.b32.xlu1 %v3622_v49, %s10013_s22  ;;  %3936 = vrot.lane.b32.xlu0 %v3623_v35, %s10013_s22 }
 0x323   : > { %v5393_v20 = vmax.f32 %v5265_v32, %v4915_v11  ;;  %v5691_v32 = vld [vmem:[%s17211_s3 + $0x48] sm:$0xff]  ;;  %v1825_v11 = vmax.f32 %v1416_v59, 0.0  ;;  %v12989_v59 = vmax.f32 %v18258_v42, %v12812_v53 }
 0x324   : > { %v12946_v5 = vpop.permute.xlu1 %2670  ;;  %v12948_v1 = vpop.permute.xlu0 %2672  ;;  %v9681_v55 = vpack.c.bf16 %v5691_v32, %v5690_v51  ;;  %v9685_v51 = vpack.c.bf16 %v5693_v15, %v5692_v33  ;;  %v18259_v32 = vld [vmem:[#allocation155_spill] sm:$0xff] }
 0x325   : > { %5522 = vst.msk [vmem:[#allocation2 + $0x100] sm:$0xff] %vm5489_vm4, %v5393_v20  ;;  %v2962_v7 = vmax.f32 %v12428_v44, %v18259_v32  ;;  %v3626_v34 = vmax.f32 %v12989_v59, %v12849_v52  ;;  %v5695_v52 = vld [vmem:[%s17211_s3 + $0x68] sm:$0xff] }
 0x326   : > { %2204 = vrot.lane.b32.xlu1 %v12944_v58, %s10013_s22  ;;  %2206 = vrot.lane.b32.xlu0 %v12938_v28, %s10013_s22 }
 0x327   : > { %9682 = vmatprep.subr.bf16.mxu1 %v9681_v55 }
 0x328   : > { %v12961_v49 = vpop.permute.xlu1 %3310  ;;  %v12963_v35 = vpop.permute.xlu0 %3312  ;;  %9684 = vmatpush3.bf16.msra.mxu1 %v9681_v55  ;;  %v18260_v55 = vld [vmem:[#allocation221_spill] sm:$0xff] }
 0x329   : > { %v2963_v58 = vmax.f32 %v12445_v47, %v18260_v55  ;;  %9686 = vmatprep.subr.bf16.mxu1 %v9685_v51  ;;  %v1426_v47 = vadd.f32 %v12408_v46, %v10319_v26  ;;  %v9689_v46 = vpack.c.bf16 %v5695_v52, %v5694_v23  ;;  %v18265_v55 = vld [vmem:[#allocation141_spill] sm:$0xff]  ;;  %v1432_v23 = vadd.f32 %v12424_v45, %v10319_v26  ;;  %v5697_v52 = vld [vmem:[%s17211_s3 + $0x78] sm:$0xff] }
 0x32a   : > { %2718 = vrot.lane.b32.xlu1 %v12938_v28, %s10014_s23  ;;  %2720 = vrot.lane.b32.xlu0 %v12951_v25, %s10014_s23  ;;  %v1434_v45 = vadd.f32 %v12441_v19, %v10331_v36  ;;  %v1438_v19 = vadd.f32 %v12458_v2, %v10319_v26 }
 0x32c   : > { %v12975_v63 = vpop.permute.xlu1 %2160  ;;  %v12977_v20 = vpop.permute.xlu0 %2162  ;;  %9688 = vmatpush3.bf16.msra.mxu1 %v9685_v51 }
 0x32d   : > { %18257 = vst [vmem:[#allocation244_spill] sm:$0xff] %v12977_v20  ;;  %9690 = vmatprep.subr.bf16.mxu1 %v9689_v46 }
 0x32e   : > { %3358 = vrot.lane.b32.xlu1 %v1823_v38, %s10014_s23  ;;  %3360 = vrot.lane.b32.xlu0 %v1825_v11, %s10014_s23  ;;  %v13003_v38 = vmax.f32 %v1420_v41, 0.0  ;;  %v3627_v11 = vmax.f32 %v13001_v50, %v12851_v21  ;;  %v5696_v21 = vld [vmem:[%s17211_s3 + $0x70] sm:$0xff] }
 0x330   : > { %v3895_v53 = vpop.permute.xlu1 %3894  ;;  %v3897_v42 = vpop.permute.xlu0 %3896  ;;  %18261 = vst [vmem:[#allocation137_spill] sm:$0xff] %v13003_v38  ;;  %9692 = vmatpush3.bf16.msra.mxu1 %v9689_v46 }
 0x331   : > { %v13006_v15 = vsel %vm4206_vm1, %v2962_v7, %v3895_v53  ;;  %v13009_v44 = vsel %vm4206_vm1, %v2963_v58, %v3897_v42  ;;  %v18266_v53 = vld [vmem:[#allocation64_spill] sm:$0xff] }
 0x332   : > { %18262 = vst [vmem:[#allocation155_spill] sm:$0xff] %v13006_v15  ;;  %18263 = vst [vmem:[#allocation221_spill] sm:$0xff] %v13009_v44  ;;  %v17468_v18 = vrot.slane %v13006_v15, 1  ;;  %v17474_v41 = vrot.slane %v13006_v15, 2  ;;  %v17469_v33 = vrot.slane %v13009_v44, 1  ;;  %v17479_v58 = vrot.slane %v13009_v44, 2  ;;  %2208 = vrot.lane.b32.xlu1 %v12951_v25, %s10013_s22  ;;  %3942 = vrot.lane.b32.xlu0 %v3626_v34, %s10013_s22 }
 0x333   : > { %v13039_v42 = vmax.f32 %v18266_v53, %v18265_v55  ;;  %v13055_v53 = vmax.f32 %v1426_v47, 0.0  ;;  %v13069_v47 = vmax.f32 %v1432_v23, 0.0 }
 0x334   : > { %v4538_v51 = vsel %vm4463_vm2, %v17468_v18, %v17469_v33  ;;  %v13033_v32 = vpop.permute.xlu1 %2164  ;;  %v13035_v7 = vpop.permute.xlu0 %2166  ;;  %v4923_v55 = vsel %vm4848_vm3, %v17474_v41, %v17479_v58  ;;  %v18268_v33 = vld [vmem:[#allocation146_spill] sm:$0xff]  ;;  %v1831_v41 = vmax.f32 %v1434_v45, 0.0  ;;  %v18279_v58 = vld [vmem:[#allocation151_spill] sm:$0xff] }
 0x335   : > { %18264 = vst [vmem:[#allocation245_spill] sm:$0xff] %v13033_v32  ;;  %v5269_v34 = vmax.f32 %v13006_v15, %v4538_v51  ;;  %18267 = vst [vmem:[#allocation141_spill] sm:$0xff] %v13055_v53  ;;  %v9693_v51 = vpack.c.bf16 %v5697_v52, %v5696_v21  ;;  %v3675_v32 = vmax.f32 %v13039_v42, %v18268_v33  ;;  %v18271_v52 = vld [vmem:[#allocation172_spill] sm:$0xff] }
 0x336   : > { %2210 = vrot.lane.b32.xlu0 %v13003_v38, %s10013_s22  ;;  %3944 = vrot.lane.b32.xlu1 %v3627_v11, %s10013_s22  ;;  %v1440_v33 = vadd.f32 %v12469_v10, %v10331_v36  ;;  %v13093_v10 = vmax.f32 %v12365_v13, %v12930_v56  ;;  %v18289_v38 = vld [vmem:[#allocation164_spill] sm:$0xff] }
 0x337   : > { %v5397_v18 = vmax.f32 %v5269_v34, %v4923_v55  ;;  %9694 = vmatprep.subr.bf16.mxu1 %v9693_v51  ;;  %v13080_v34 = vmax.f32 %v1438_v19, 0.0 }
 0x338   : > { %v13064_v44 = vpop.permute.xlu1 %3318  ;;  %v13066_v15 = vpop.permute.xlu0 %2678  ;;  %9696 = vmatpush3.bf16.msra.mxu1 %v9693_v51  ;;  %v3630_v45 = vmax.f32 %v13093_v10, %v12961_v49  ;;  %v18273_v51 = vld [vmem:[#allocation227_spill] sm:$0xff] }
 0x339   : > { %5526 = vst.msk [vmem:[#allocation2 + $0x120] sm:$0xff] %vm5489_vm4, %v5397_v18  ;;  %v1833_v18 = vmax.f32 %v1440_v33, 0.0  ;;  %v13108_v13 = vmax.f32 %v18273_v51, %v12975_v63  ;;  %v18277_v51 = vld [vmem:[#allocation193_spill] sm:$0xff] }
 0x33a   : > { %4040 = vrot.lane.b32.xlu0 %v3675_v32, %s10013_s22  ;;  %2212 = vrot.lane.b32.xlu1 %v13055_v53, %s10013_s22  ;;  %v1444_v32 = vadd.f32 %v12483_v16, %v10319_v26  ;;  %v18272_v16 = vld [vmem:[#allocation175_spill] sm:$0xff] }
 0x33b   : > { %v2967_v55 = vmax.f32 %v18272_v16, %v12339_v14  ;;  %v3631_v63 = vmax.f32 %v13108_v13, %v12963_v35 }
 0x33c   : > { %v2169_v46 = vpop.permute.xlu1 %2168  ;;  %v13078_v11 = vpop.permute.xlu0 %3320  ;;  %v13095_v21 = vmax.f32 %v1444_v32, 0.0 }
 0x33e   : > { %2214 = vrot.lane.b32.xlu0 %v13069_v47, %s10013_s22  ;;  %3366 = vrot.lane.b32.xlu1 %v1831_v41, %s10014_s23  ;;  %18270 = vst [vmem:[#allocation146_spill] sm:$0xff] %v13095_v21  ;;  %v2966_v41 = vmax.f32 %v12528_v24, %v18271_v52 }
 0x340   : > { %v13087_v23 = vpop.permute.xlu1 %2680  ;;  %v13089_v2 = vpop.permute.xlu0 %2170 }
 0x341   : > { %18269 = vst [vmem:[#allocation64_spill] sm:$0xff] %v13089_v2 }
 0x342   : > { %3368 = vrot.lane.b32.xlu0 %v1833_v18, %s10014_s23  ;;  %2216 = vrot.lane.b32.xlu1 %v13080_v34, %s10013_s22 }
 0x344   : > { %v3903_v56 = vpop.permute.xlu1 %3902  ;;  %v3905_v19 = vpop.permute.xlu0 %3904 }
 0x345   : > { %v13111_v33 = vsel %vm4206_vm1, %v2966_v41, %v3903_v56  ;;  %v13114_v18 = vsel %vm4206_vm1, %v2967_v55, %v3905_v19  ;;  %v1302_v56 = vadd.f32 %v18277_v51, %v10331_v36 }
 0x346   : > { %18274 = vst [vmem:[#allocation172_spill] sm:$0xff] %v13111_v33  ;;  %18275 = vst [vmem:[#allocation175_spill] sm:$0xff] %v13114_v18  ;;  %v17475_v24 = vrot.slane %v13111_v33, 1  ;;  %v17476_v32 = vrot.slane %v13111_v33, 2  ;;  %v17478_v14 = vrot.slane %v13114_v18, 1  ;;  %v17477_v49 = vrot.slane %v13114_v18, 2  ;;  %2218 = vrot.lane.b32.xlu0 %v13095_v21, %s10013_s22  ;;  %3950 = vrot.lane.b32.xlu1 %v3630_v45, %s10013_s22 }
 0x348   : > { %v4546_v52 = vsel %vm4463_vm2, %v17475_v24, %v17478_v14  ;;  %v13130_v41 = vpop.permute.xlu1 %2172  ;;  %v2175_v16 = vpop.permute.xlu0 %2174  ;;  %v4931_v45 = vsel %vm4848_vm3, %v17476_v32, %v17477_v49  ;;  %v1787_v32 = vmax.f32 %v1302_v56, 0.0  ;;  %v18285_v56 = vld [vmem:[#allocation86_spill] sm:$0xff] }
 0x349   : > { %18276 = vst [vmem:[#allocation227_spill] sm:$0xff] %v13130_v41  ;;  %v5273_v55 = vmax.f32 %v13111_v33, %v4546_v52  ;;  %v18278_v52 = vld [vmem:[#allocation124_spill] sm:$0xff]  ;;  %v18284_v41 = vld [vmem:[#allocation158_spill] sm:$0xff] }
 0x34a   : > { %2726 = vrot.lane.b32.xlu1 %v13069_v47, %s10014_s23  ;;  %3952 = vrot.lane.b32.xlu0 %v3631_v63, %s10013_s22  ;;  %v18280_v63 = vld [vmem:[#allocation76_spill] sm:$0xff]  ;;  %v13165_v18 = vmax.f32 %v18285_v56, %v18284_v41  ;;  %v2971_v41 = vmax.f32 %v12639_v31, %v18289_v38  ;;  %v18290_v56 = vld [vmem:[#allocation159_spill] sm:$0xff] }
 0x34b   : > { %v5401_v35 = vmax.f32 %v5273_v55, %v4931_v45  ;;  %v13152_v55 = vmax.f32 %v18280_v63, %v18279_v58  ;;  %v18281_v45 = vld [vmem:[#allocation27_spill] sm:$0xff]  ;;  %v18283_v33 = vld [vmem:[#allocation156_spill] sm:$0xff]  ;;  %v18286_v63 = vld [vmem:[#allocation150_spill] sm:$0xff] }
 0x34c   : > { %v3327_v19 = vpop.permute.xlu1 %3326  ;;  %v13143_v24 = vpop.permute.xlu0 %2686  ;;  %v13156_v51 = vmax.f32 %v18281_v45, %v13035_v7  ;;  %v13170_v21 = vmax.f32 %v18286_v63, %v2169_v46 }
 0x34d   : > { %5530 = vst.msk [vmem:[#allocation2 + $0x140] sm:$0xff] %vm5489_vm4, %v5401_v35  ;;  %v18282_v35 = vld [vmem:[#allocation127_spill] sm:$0xff]  ;;  %v3678_v53 = vmax.f32 %v13152_v55, %v18283_v33 }
 0x34e   : > { %2782 = vrot.lane.b32.xlu1 %v18278_v52, %s10014_s23  ;;  %2728 = vrot.lane.b32.xlu0 %v13080_v34, %s10014_s23  ;;  %v3634_v58 = vmax.f32 %v13156_v51, %v13064_v44  ;;  %v3679_v44 = vmax.f32 %v13165_v18, %v18290_v56  ;;  %v3635_v46 = vmax.f32 %v13170_v21, %v13078_v11  ;;  %v18293_v11 = vld [vmem:[#allocation17_spill] sm:$0xff] }
 0x350   : > { %v2177_v49 = vpop.permute.xlu1 %2176  ;;  %v3329_v14 = vpop.permute.xlu0 %3328 }
 0x351   : > { %v13241_v4 = vmax.f32 %v12591_v37, %v2177_v49  ;;  %v18310_v49 = vld [vmem:[#allocation13_spill] sm:$0xff] }
 0x352   : > { %3322 = vrot.lane.b32.xlu1 %v1787_v32, %s10014_s23  ;;  %2784 = vrot.lane.b32.xlu0 %v18282_v35, %s10014_s23  ;;  %v18288_v32 = vld [vmem:[#allocation228_spill] sm:$0xff]  ;;  %v2974_v60 = vmax.f32 %v12694_v30, %v18310_v49 }
 0x353   : > { %v2970_v33 = vmax.f32 %v12630_v43, %v18288_v32  ;;  %v1494_v32 = vadd.f32 %v18293_v11, %v10331_v36  ;;  %v18297_v11 = vld [vmem:[#allocation59_spill] sm:$0xff]  ;;  %18306 = vst [vmem:[#allocation156_spill] sm:$0xff] %v13241_v4 }
 0x354   : > { %v13172_v7 = vpop.permute.xlu1 %2688  ;;  %v13174_v45 = vpop.permute.xlu0 %2178 }
 0x355   : > { %18287 = vst [vmem:[#allocation193_spill] sm:$0xff] %v13174_v45  ;;  %v1851_v2 = vmax.f32 %v1494_v32, 0.0 }
 0x356   : > { %4046 = vrot.lane.b32.xlu0 %v3678_v53, %s10013_s22  ;;  %3958 = vrot.lane.b32.xlu1 %v3634_v58, %s10013_s22 }
 0x358   : > { %v3911_v63 = vpop.permute.xlu1 %3910  ;;  %v3913_v29 = vpop.permute.xlu0 %3912 }
 0x359   : > { %v13187_v20 = vsel %vm4206_vm1, %v2970_v33, %v3911_v63  ;;  %v13190_v53 = vsel %vm4206_vm1, %v2971_v41, %v3913_v29  ;;  %v18294_v33 = vld [vmem:[#allocation206_spill] sm:$0xff] }
 0x35a   : > { %18291 = vst [vmem:[#allocation124_spill] sm:$0xff] %v13187_v20  ;;  %18292 = vst [vmem:[#allocation151_spill] sm:$0xff] %v13190_v53  ;;  %v17492_v58 = vrot.slane %v13187_v20, 1  ;;  %v17493_v31 = vrot.slane %v13190_v53, 1  ;;  %v17498_v38 = vrot.slane %v13190_v53, 2  ;;  %4048 = vrot.lane.b32.xlu1 %v3679_v44, %s10013_s22  ;;  %3960 = vrot.lane.b32.xlu0 %v3635_v46, %s10013_s22  ;;  %v1326_v56 = vadd.f32 %v18294_v33, %v10331_v36  ;;  %v18298_v33 = vld [vmem:[#allocation140_spill] sm:$0xff] }
 0x35b   : > { %v18296_v44 = vrot.slane %v13187_v20, 2  ;;  %v18302_v53 = vld [vmem:[#allocation96_spill] sm:$0xff] }
 0x35c   : > { %v4554_v29 = vsel %vm4463_vm2, %v17492_v58, %v17493_v31  ;;  %v13207_v41 = vpop.permute.xlu1 %2180  ;;  %v2183_v63 = vpop.permute.xlu0 %2182  ;;  %v1795_v58 = vmax.f32 %v1326_v56, 0.0  ;;  %v18304_v56 = vld [vmem:[#allocation42_spill] sm:$0xff] }
 0x35d   : > { %18295 = vst [vmem:[#allocation76_spill] sm:$0xff] %v13207_v41  ;;  %v5277_v43 = vmax.f32 %v13187_v20, %v4554_v29  ;;  %v4939_v46 = vsel %vm4848_vm3, %v18296_v44, %v17498_v38  ;;  %v18301_v29 = vld [vmem:[#allocation89_spill] sm:$0xff]  ;;  %v13229_v44 = vmax.f32 %v12567_v17, %v2175_v16  ;;  %v18307_v17 = vld [vmem:[#allocation174_spill] sm:$0xff] }
 0x35e   : > { %2792 = vrot.lane.b32.xlu1 %v18297_v11, %s10014_s23  ;;  %2790 = vrot.lane.b32.xlu0 %v18298_v33, %s10014_s23  ;;  %v13226_v20 = vmax.f32 %v18302_v53, %v18301_v29  ;;  %v18308_v16 = vld [vmem:[#allocation182_spill] sm:$0xff] }
 0x35f   : > { %v5405_v45 = vmax.f32 %v5277_v43, %v4939_v46  ;;  %v18303_v43 = vld [vmem:[#allocation173_spill] sm:$0xff]  ;;  %v18305_v46 = vld [vmem:[#allocation108_spill] sm:$0xff] }
 0x360   : > { %v13219_v31 = vpop.permute.xlu1 %2694  ;;  %v13221_v41 = vpop.permute.xlu0 %2696  ;;  %v3682_v32 = vmax.f32 %v13226_v20, %v18303_v43  ;;  %v13237_v38 = vmax.f32 %v18305_v46, %v18304_v56  ;;  %v18309_v43 = vld [vmem:[#allocation211_spill] sm:$0xff] }
 0x361   : > { %18299 = vst [vmem:[#allocation27_spill] sm:$0xff] %v13219_v31  ;;  %18300 = vst [vmem:[#allocation127_spill] sm:$0xff] %v13221_v41  ;;  %v1350_v56 = vadd.f32 %v18309_v43, %v10331_v36 }
 0x362   : > { %5534 = vst.msk [vmem:[#allocation2 + $0x160] sm:$0xff] %vm5489_vm4, %v5405_v45  ;;  %3386 = vrot.lane.b32.xlu1 %v1851_v2, %s10014_s23  ;;  %3330 = vrot.lane.b32.xlu0 %v1795_v58, %s10014_s23  ;;  %v3638_v45 = vmax.f32 %v13229_v44, %v3327_v19  ;;  %v3683_v2 = vmax.f32 %v13237_v38, %v18307_v17 }
 0x363   : > { %v1278_v58 = vadd.f32 %v18308_v16, %v10331_v36  ;;  %v3639_v19 = vmax.f32 %v13241_v4, %v3329_v14  ;;  %v18313_v16 = vld [vmem:[#allocation25_spill] sm:$0xff]  ;;  %v1803_v14 = vmax.f32 %v1350_v56, 0.0  ;;  %v18317_v56 = vld [vmem:[#allocation120_spill] sm:$0xff] }
 0x364   : > { %v3335_v53 = vpop.permute.xlu1 %3334  ;;  %v3337_v29 = vpop.permute.xlu0 %3336  ;;  %v1518_v43 = vadd.f32 %v18313_v16, %v10331_v36 }
 0x365   : > { %v1779_v41 = vmax.f32 %v1278_v58, 0.0 }
 0x366   : > { %4054 = vrot.lane.b32.xlu0 %v3682_v32, %s10013_s22  ;;  %3966 = vrot.lane.b32.xlu1 %v3638_v45, %s10013_s22  ;;  %v18311_v32 = vld [vmem:[#allocation180_spill] sm:$0xff]  ;;  %v1859_v58 = vmax.f32 %v1518_v43, 0.0  ;;  %v13293_v43 = vmax.f32 %v12657_v61, %v2183_v63 }
 0x367   : > { %v2975_v45 = vmax.f32 %v12723_v9, %v18311_v32 }
 0x368   : > { %v2185_v46 = vpop.permute.xlu1 %2184  ;;  %v3919_v37 = vpop.permute.xlu0 %3918  ;;  %v3642_v61 = vmax.f32 %v13293_v43, %v3335_v53 }
 0x369   : > { %v13259_v17 = vsel %vm4206_vm1, %v2974_v60, %v3919_v37  ;;  %v13308_v63 = vmax.f32 %v12669_v54, %v2185_v46 }
 0x36a   : > { %4056 = vrot.lane.b32.xlu1 %v3683_v2, %s10013_s22  ;;  %3968 = vrot.lane.b32.xlu0 %v3639_v19, %s10013_s22  ;;  %18312 = vst [vmem:[#allocation158_spill] sm:$0xff] %v13259_v17  ;;  %v18316_v2 = vld [vmem:[#allocation184_spill] sm:$0xff]  ;;  %v17500_v9 = vrot.slane %v13259_v17, 1 }
 0x36b   : > { %v13270_v19 = vmax.f32 %v18278_v52, %v18316_v2  ;;  %v3643_v54 = vmax.f32 %v13308_v63, %v3337_v29 }
 0x36c   : > { %v3921_v31 = vpop.permute.xlu1 %3920  ;;  %v13263_v4 = vpop.permute.xlu0 %2186 }
 0x36d   : > { %18314 = vst [vmem:[#allocation86_spill] sm:$0xff] %v13263_v4  ;;  %v13266_v30 = vsel %vm4206_vm1, %v2975_v45, %v3921_v31  ;;  %v3686_v49 = vmax.f32 %v13270_v19, %v18317_v56  ;;  %v17504_v31 = vrot.slane %v13259_v17, 2 }
 0x36e   : > { %18315 = vst [vmem:[#allocation150_spill] sm:$0xff] %v13266_v30  ;;  %v17501_v60 = vrot.slane %v13266_v30, 1  ;;  %v17505_v37 = vrot.slane %v13266_v30, 2  ;;  %3338 = vrot.lane.b32.xlu1 %v1803_v14, %s10014_s23  ;;  %3314 = vrot.lane.b32.xlu0 %v1779_v41, %s10014_s23  ;;  %v18319_v14 = vld [vmem:[#allocation188_spill] sm:$0xff] }
 0x36f   : > { %v13290_v41 = vmax.f32 %v18282_v35, %v18319_v14  ;;  %v18321_v35 = vld [vmem:[#allocation165_spill] sm:$0xff] }
 0x370   : > { %v4562_v52 = vsel %vm4463_vm2, %v17500_v9, %v17501_v60  ;;  %v13285_v32 = vpop.permute.xlu1 %2188  ;;  %v2191_v45 = vpop.permute.xlu0 %2190  ;;  %v4947_v2 = vsel %vm4848_vm3, %v17504_v31, %v17505_v37  ;;  %v18320_v9 = vld [vmem:[#allocation189_spill] sm:$0xff]  ;;  %v1374_v14 = vadd.f32 %v18321_v35, %v10331_v36 }
 0x371   : > { %18318 = vst [vmem:[#allocation228_spill] sm:$0xff] %v13285_v32  ;;  %v5281_v16 = vmax.f32 %v13259_v17, %v4562_v52  ;;  %v3687_v52 = vmax.f32 %v13290_v41, %v18320_v9  ;;  %v18322_v9 = vld [vmem:[#allocation11_spill] sm:$0xff] }
 0x372   : > { %4062 = vrot.lane.b32.xlu1 %v3686_v49, %s10013_s22  ;;  %3394 = vrot.lane.b32.xlu0 %v1859_v58, %s10014_s23  ;;  %v1470_v58 = vadd.f32 %v18322_v9, %v10331_v36  ;;  %v18323_v49 = vld [vmem:[#allocation30_spill] sm:$0xff]  ;;  %v1811_v53 = vmax.f32 %v1374_v14, 0.0  ;;  %v18325_v9 = vld [vmem:[#allocation196_spill] sm:$0xff]  ;;  %v18326_v14 = vld [vmem:[#allocation201_spill] sm:$0xff] }
 0x373   : > { %v5409_v56 = vmax.f32 %v5281_v16, %v4947_v2  ;;  %v1542_v16 = vadd.f32 %v18323_v49, %v10331_v36  ;;  %v13328_v32 = vmax.f32 %v18298_v33, %v18325_v9  ;;  %v13332_v29 = vmax.f32 %v18297_v11, %v18326_v14 }
 0x374   : > { %v13310_v60 = vpop.permute.xlu1 %2702  ;;  %v13312_v17 = vpop.permute.xlu0 %2704 }
 0x375   : > { %5538 = vst.msk [vmem:[#allocation2 + $0x180] sm:$0xff] %vm5489_vm4, %v5409_v56  ;;  %v1843_v56 = vmax.f32 %v1470_v58, 0.0  ;;  %v1867_v35 = vmax.f32 %v1542_v16, 0.0  ;;  %v18327_v58 = vld [vmem:[#allocation51_spill] sm:$0xff]  ;;  %v18328_v16 = vld [vmem:[#allocation186_spill] sm:$0xff] }
 0x376   : > { %4064 = vrot.lane.b32.xlu0 %v3687_v52, %s10013_s22  ;;  %3974 = vrot.lane.b32.xlu1 %v3642_v61, %s10013_s22  ;;  %v18324_v61 = vld [vmem:[#allocation205_spill] sm:$0xff]  ;;  %v1612_v49 = vadd.f32 %v18327_v58, %v10319_v26 }
 0x377   : > { %v2978_v37 = vmax.f32 %v12783_v62, %v18324_v61  ;;  %v18331_v61 = vld [vmem:[#allocation204_spill] sm:$0xff] }
 0x378   : > { %v3343_v46 = vpop.permute.xlu1 %3342  ;;  %v3345_v2 = vpop.permute.xlu0 %3344  ;;  %v3691_v11 = vmax.f32 %v13332_v29, %v18331_v61  ;;  %v13360_v58 = vmax.f32 %v1612_v49, 0.0 }
 0x37a   : > { %3346 = vrot.lane.b32.xlu1 %v1811_v53, %s10014_s23  ;;  %3976 = vrot.lane.b32.xlu0 %v3643_v54, %s10013_s22  ;;  %v2979_v53 = vmax.f32 %v12801_v12, %v18328_v16  ;;  %v18330_v54 = vld [vmem:[#allocation135_spill] sm:$0xff]  ;;  %18334 = vst [vmem:[#allocation206_spill] sm:$0xff] %v13360_v58  ;;  %v18335_v16 = vld [vmem:[#allocation170_spill] sm:$0xff] }
 0x37b   : > { %v3690_v33 = vmax.f32 %v13328_v32, %v18330_v54  ;;  %v1398_v54 = vadd.f32 %v18335_v16, %v10331_v36 }
 0x37c   : > { %v2193_v52 = vpop.permute.xlu1 %2192  ;;  %v3927_v31 = vpop.permute.xlu0 %3926 }
 0x37d   : > { %v13341_v62 = vsel %vm4206_vm1, %v2978_v37, %v3927_v31 }
 0x37e   : > { %3402 = vrot.lane.b32.xlu1 %v1867_v35, %s10014_s23  ;;  %3378 = vrot.lane.b32.xlu0 %v1843_v56, %s10014_s23  ;;  %18329 = vst [vmem:[#allocation164_spill] sm:$0xff] %v13341_v62  ;;  %v13353_v35 = vmax.f32 %v12746_v8, %v2191_v45  ;;  %v17506_v12 = vrot.slane %v13341_v62, 1  ;;  %v13366_v8 = vmax.f32 %v12759_v39, %v2193_v52  ;;  %v17510_v45 = vrot.slane %v13341_v62, 2 }
 0x380   : > { %v3929_v9 = vpop.permute.xlu1 %3928  ;;  %v13347_v14 = vpop.permute.xlu0 %2194 }
 0x381   : > { %18332 = vst [vmem:[#allocation159_spill] sm:$0xff] %v13347_v14  ;;  %v13350_v56 = vsel %vm4206_vm1, %v2979_v53, %v3929_v9  ;;  %v3646_v53 = vmax.f32 %v13353_v35, %v3343_v46  ;;  %v1636_v46 = vadd.f32 %v12825_v40, %v10319_v26  ;;  %v18337_v9 = vld [vmem:[#allocation39_spill] sm:$0xff] }
 0x382   : > { %18333 = vst [vmem:[#allocation17_spill] sm:$0xff] %v13350_v56  ;;  %v17507_v37 = vrot.slane %v13350_v56, 1  ;;  %v17511_v31 = vrot.slane %v13350_v56, 2  ;;  %4072 = vrot.lane.b32.xlu1 %v3691_v11, %s10013_s22  ;;  %4070 = vrot.lane.b32.xlu0 %v3690_v33, %s10013_s22  ;;  %v1566_v16 = vadd.f32 %v18337_v9, %v10331_v36 }
 0x384   : > { %v4570_v61 = vsel %vm4463_vm2, %v17506_v12, %v17507_v37  ;;  %v13374_v11 = vpop.permute.xlu1 %2196  ;;  %v2199_v49 = vpop.permute.xlu0 %2198  ;;  %v4955_v39 = vsel %vm4848_vm3, %v17510_v45, %v17511_v31  ;;  %v1819_v12 = vmax.f32 %v1398_v54, 0.0  ;;  %v13395_v45 = vmax.f32 %v1636_v46, 0.0  ;;  %v18340_v54 = vld [vmem:[#allocation128_spill] sm:$0xff] }
 0x385   : > { %18336 = vst [vmem:[#allocation59_spill] sm:$0xff] %v13374_v11  ;;  %v5285_v33 = vmax.f32 %v13341_v62, %v4570_v61  ;;  %v3647_v61 = vmax.f32 %v13366_v8, %v3345_v2  ;;  %v1875_v40 = vmax.f32 %v1566_v16, 0.0 }
 0x386   : > { %2274 = vrot.lane.b32.xlu0 %v13360_v58, %s10013_s22  ;;  %3982 = vrot.lane.b32.xlu1 %v3646_v53, %s10013_s22  ;;  %18338 = vst [vmem:[#allocation140_spill] sm:$0xff] %v13395_v45  ;;  %v18339_v53 = vld [vmem:[#allocation44_spill] sm:$0xff] }
 0x387   : > { %v5413_v52 = vmax.f32 %v5285_v33, %v4955_v39  ;;  %v1590_v33 = vadd.f32 %v18339_v53, %v10331_v36  ;;  %v1422_v39 = vadd.f32 %v18340_v54, %v10331_v36  ;;  %v13411_v53 = vmax.f32 %v12840_v27, %v2199_v49 }
 0x388   : > { %v13390_v37 = vpop.permute.xlu1 %2710  ;;  %v13392_v62 = vpop.permute.xlu0 %2712  ;;  %v2982_v54 = vmax.f32 %v12899_v6, %v12741_v3 }
 0x389   : > { %5542 = vst.msk [vmem:[#allocation2 + $0x1a0] sm:$0xff] %vm5489_vm4, %v5413_v52  ;;  %v1883_v46 = vmax.f32 %v1590_v33, 0.0  ;;  %v18341_v52 = vld [vmem:[#allocation54_spill] sm:$0xff]  ;;  %v1827_v31 = vmax.f32 %v1422_v39, 0.0 }
 0x38a   : > { %3354 = vrot.lane.b32.xlu1 %v1819_v12, %s10014_s23  ;;  %3984 = vrot.lane.b32.xlu0 %v3647_v61, %s10013_s22  ;;  %v1614_v12 = vadd.f32 %v18341_v52, %v10331_v36  ;;  %v18343_v52 = vld [vmem:[#allocation235_spill] sm:$0xff] }
 0x38b   : > { %v1446_v39 = vadd.f32 %v18343_v52, %v10331_v36 }
 0x38c   : > { %v3351_v2 = vpop.permute.xlu1 %3350  ;;  %v3353_v9 = vpop.permute.xlu0 %3352  ;;  %v1891_v33 = vmax.f32 %v1614_v12, 0.0 }
 0x38d   : > { %v3650_v11 = vmax.f32 %v13411_v53, %v3351_v2  ;;  %v18346_v2 = vld [vmem:[#allocation208_spill] sm:$0xff] }
 0x38e   : > { %2282 = vrot.lane.b32.xlu1 %v13395_v45, %s10013_s22  ;;  %3410 = vrot.lane.b32.xlu0 %v1875_v40, %s10014_s23  ;;  %v2983_v40 = vmax.f32 %v12895_v0, %v12743_v22  ;;  %v1638_v12 = vadd.f32 %v18346_v2, %v10331_v36  ;;  %v18349_v2 = vld [vmem:[#allocation28_spill] sm:$0xff] }
 0x390   : > { %v2201_v61 = vpop.permute.xlu1 %2200  ;;  %v13408_v16 = vpop.permute.xlu0 %2202 }
 0x391   : > { %18342 = vst [vmem:[#allocation89_spill] sm:$0xff] %v13408_v16  ;;  %v13423_v56 = vmax.f32 %v12854_v48, %v2201_v61  ;;  %v1835_v48 = vmax.f32 %v1446_v39, 0.0 }
 0x392   : > { %3418 = vrot.lane.b32.xlu1 %v1883_v46, %s10014_s23  ;;  %3362 = vrot.lane.b32.xlu0 %v1827_v31, %s10014_s23 }
 0x393   : > { %v3651_v61 = vmax.f32 %v13423_v56, %v3353_v9 }
 0x394   : > { %v3935_v27 = vpop.permute.xlu1 %3934  ;;  %v3937_v49 = vpop.permute.xlu0 %3936 }
 0x395   : > { %v13426_v46 = vsel %vm4206_vm1, %v2982_v54, %v3935_v27  ;;  %v13429_v31 = vsel %vm4206_vm1, %v2983_v40, %v3937_v49 }
 0x396   : > { %18344 = vst [vmem:[#allocation96_spill] sm:$0xff] %v13426_v46  ;;  %18345 = vst [vmem:[#allocation173_spill] sm:$0xff] %v13429_v31  ;;  %v17514_v3 = vrot.slane %v13426_v46, 1  ;;  %v17515_v22 = vrot.slane %v13426_v46, 2  ;;  %v17517_v0 = vrot.slane %v13429_v31, 1  ;;  %v17516_v6 = vrot.slane %v13429_v31, 2  ;;  %3426 = vrot.lane.b32.xlu1 %v1891_v33, %s10014_s23  ;;  %3990 = vrot.lane.b32.xlu0 %v3650_v11, %s10013_s22 }
 0x397   : > { %v1899_v33 = vmax.f32 %v1638_v12, 0.0  ;;  %v18352_v12 = vld [vmem:[#allocation37_spill] sm:$0xff]  ;;  %v18361_v31 = vld [vmem:[#allocation99_spill] sm:$0xff] }
 0x398   : > { %v4578_v54 = vsel %vm4463_vm2, %v17514_v3, %v17517_v0  ;;  %v13445_v40 = vpop.permute.xlu1 %2204  ;;  %v2207_v52 = vpop.permute.xlu0 %2206  ;;  %v4963_v11 = vsel %vm4848_vm3, %v17515_v22, %v17516_v6  ;;  %v18355_v0 = vld [vmem:[#allocation60_spill] sm:$0xff] }
 0x399   : > { %18347 = vst [vmem:[#allocation42_spill] sm:$0xff] %v13445_v40  ;;  %v5289_v27 = vmax.f32 %v13426_v46, %v4578_v54  ;;  %v13464_v22 = vmax.f32 %v12938_v28, %v2207_v52  ;;  %v2987_v28 = vmax.f32 %v13001_v50, %v12880_v57 }
 0x39a   : > { %3370 = vrot.lane.b32.xlu0 %v1835_v48, %s10014_s23  ;;  %3992 = vrot.lane.b32.xlu1 %v3651_v61, %s10013_s22  ;;  %v18351_v48 = vld [vmem:[#allocation41_spill] sm:$0xff] }
 0x39b   : > { %v5417_v9 = vmax.f32 %v5289_v27, %v4963_v11  ;;  %18350 = vst [vmem:[#allocation174_spill] sm:$0xff] %v13464_v22 }
 0x39c   : > { %v13455_v39 = vpop.permute.xlu1 %2718  ;;  %v13457_v49 = vpop.permute.xlu0 %2720 }
 0x39d   : > { %18348 = vst [vmem:[#allocation108_spill] sm:$0xff] %v13457_v49  ;;  %5546 = vst.msk [vmem:[#allocation2 + $0x1c0] sm:$0xff] %vm5489_vm4, %v5417_v9  ;;  %v18353_v9 = vld [vmem:[#allocation240_spill] sm:$0xff]  ;;  %v5666_v49 = vld [vmem:[#allocation2 + $0x102] sm:$0x1] }
 0x39e   : > { %3434 = vrot.lane.b32.xlu0 %v1899_v33, %s10014_s23  ;;  %2554 = vrot.lane.b32.xlu1 %v18349_v2, %s10014_s23  ;;  %v2986_v33 = vmax.f32 %v12989_v59, %v18353_v9  ;;  %v18358_v59 = vld [vmem:[#allocation136_spill] sm:$0xff]  ;;  %v18359_v9 = vld [vmem:[#allocation110_spill] sm:$0xff] }
 0x3a0   : > { %v3359_v54 = vpop.permute.xlu1 %3358  ;;  %v3361_v3 = vpop.permute.xlu0 %3360 }
 0x3a1   : > { %v3654_v61 = vmax.f32 %v13464_v22, %v3359_v54 }
 0x3a2   : > { %2562 = vrot.lane.b32.xlu0 %v18351_v48, %s10014_s23  ;;  %2618 = vrot.lane.b32.xlu1 %v18352_v12, %s10014_s23 }
 0x3a4   : > { %v2209_v27 = vpop.permute.xlu1 %2208  ;;  %v3943_v11 = vpop.permute.xlu0 %3942 }
 0x3a5   : > { %v13474_v6 = vmax.f32 %v12951_v25, %v2209_v27  ;;  %v13483_v54 = vsel %vm4206_vm1, %v2986_v33, %v3943_v11  ;;  %v3034_v25 = vmax.f32 %v18359_v9, %v18358_v59  ;;  %v18363_v11 = vld [vmem:[#allocation14_spill] sm:$0xff] }
 0x3a6   : > { %2570 = vrot.lane.b32.xlu1 %v18355_v0, %s10014_s23  ;;  %3998 = vrot.lane.b32.xlu0 %v3654_v61, %s10013_s22  ;;  %18356 = vst [vmem:[#allocation211_spill] sm:$0xff] %v13483_v54  ;;  %v13494_v61 = vmax.f32 %v18349_v2, %v18361_v31  ;;  %v17526_v57 = vrot.slane %v13483_v54, 1  ;;  %v18364_v33 = vld [vmem:[#allocation142_spill] sm:$0xff]  ;;  %v18367_v31 = vld [vmem:[#allocation101_spill] sm:$0xff]  ;;  %v17530_v9 = vrot.slane %v13483_v54, 2 }
 0x3a7   : > { %18354 = vst [vmem:[#allocation182_spill] sm:$0xff] %v13474_v6  ;;  %v3655_v52 = vmax.f32 %v13474_v6, %v3361_v3  ;;  %v3035_v59 = vmax.f32 %v13039_v42, %v18364_v33 }
 0x3a8   : > { %v3945_v46 = vpop.permute.xlu1 %3944  ;;  %v13485_v40 = vpop.permute.xlu0 %2210  ;;  %18362 = vst [vmem:[#allocation25_spill] sm:$0xff] %v13494_v61  ;;  %v3572_v2 = vmax.f32 %v13494_v61, %v18367_v31  ;;  %v5672_v61 = vld [vmem:[#allocation2 + $0x1c2] sm:$0x1] }
 0x3a9   : > { %18357 = vst [vmem:[#allocation13_spill] sm:$0xff] %v13485_v40  ;;  %v13490_v27 = vsel %vm4206_vm1, %v2987_v28, %v3945_v46  ;;  %v18365_v46 = vld [vmem:[#allocation63_spill] sm:$0xff] }
 0x3aa   : > { %18360 = vst [vmem:[#allocation180_spill] sm:$0xff] %v13490_v27  ;;  %v17527_v50 = vrot.slane %v13490_v27, 1  ;;  %2546 = vrot.lane.b32.xlu0 %v18363_v11, %s10014_s23  ;;  %4000 = vrot.lane.b32.xlu1 %v3655_v52, %s10013_s22  ;;  %v13506_v28 = vsel %vm4206_vm1, %v3034_v25, %v18365_v46  ;;  %v18370_v46 = vrot.slane %v13490_v27, 2  ;;  %v5669_v27 = vld [vmem:[#allocation2 + $0x162] sm:$0x1] }
 0x3ab   : > { %18366 = vst [vmem:[#allocation184_spill] sm:$0xff] %v13506_v28  ;;  %v5650_v25 = vld [vmem:[%s17211_s3] sm:$0xff]  ;;  %v18374_v58 = vrot.slane %v13506_v28, 2  ;;  %v5755_v4 = vrot.slane %v5669_v27, 5 }
 0x3ac   : > { %v4586_v3 = vsel %vm4463_vm2, %v17526_v57, %v17527_v50  ;;  %v13516_v30 = vpop.permute.xlu1 %2212  ;;  %v4041_v52 = vpop.permute.xlu0 %4040  ;;  %v4971_v31 = vsel %vm4848_vm3, %v17530_v9, %v18370_v46  ;;  %v18371_v50 = vld [vmem:[#allocation183_spill] sm:$0xff] }
 0x3ad   : > { %18368 = vst [vmem:[#allocation120_spill] sm:$0xff] %v13516_v30  ;;  %v5293_v42 = vmax.f32 %v13483_v54, %v4586_v3  ;;  %v13520_v33 = vsel %vm4206_vm1, %v3035_v59, %v4041_v52  ;;  %v5667_v3 = vld [vmem:[#allocation2 + $0x122] sm:$0x1]  ;;  %v18372_v54 = vrot.slane %v13506_v28, 1 }
 0x3ae   : > { %18369 = vst [vmem:[#allocation188_spill] sm:$0xff] %v13520_v33  ;;  %v17533_v45 = vrot.slane %v13520_v33, 1  ;;  %2626 = vrot.lane.b32.xlu0 %v18371_v50, %s10014_s23  ;;  %3834 = vrot.lane.b32.xlu1 %v3572_v2, %s10013_s22  ;;  %v5668_v52 = vld [vmem:[#allocation2 + $0x142] sm:$0x1] }
 0x3af   : > { %v5421_v59 = vmax.f32 %v5293_v42, %v4971_v31  ;;  %v5670_v42 = vld [vmem:[#allocation2 + $0x182] sm:$0x1]  ;;  %v5751_v31 = vrot.slane %v5667_v3, 7  ;;  %v5753_v3 = vrot.slane %v5668_v52, 6 }
 0x3b0   : > { %v4682_v46 = vsel %vm4463_vm2, %v18372_v54, %v17533_v45  ;;  %v3367_v9 = vpop.permute.xlu1 %3366  ;;  %v2215_v30 = vpop.permute.xlu0 %2214  ;;  %v5651_v54 = vld [vmem:[%s17211_s3 + $0x8] sm:$0xff]  ;;  %v18373_v45 = vrot.slane %v13520_v33, 2  ;;  %v18377_v52 = vld [vmem:[#allocation115_spill] sm:$0xff] }
 0x3b1   : > { %5550 = vst.msk [vmem:[#allocation2 + $0x1e0] sm:$0xff] %vm5489_vm4, %v5421_v59  ;;  %v5341_v57 = vmax.f32 %v13506_v28, %v4682_v46  ;;  %v13542_v2 = vmax.f32 %v13069_v47, %v2215_v30  ;;  %v18375_v46 = vld [vmem:[#allocation83_spill] sm:$0xff]  ;;  %v18376_v47 = vld [vmem:[#allocation162_spill] sm:$0xff]  ;;  %v9697_v40 = vpack.c.bf16 %v5651_v54, %v5650_v25  ;;  %v5757_v28 = vrot.slane %v5670_v42, 4 }
 0x3b2   : > { %v5067_v59 = vsel %vm4848_vm3, %v18374_v58, %v18373_v45  ;;  %2578 = vrot.lane.b32.xlu0 %v18375_v46, %s10014_s23  ;;  %2610 = vrot.lane.b32.xlu1 %v18376_v47, %s10014_s23  ;;  %v5671_v30 = vld [vmem:[#allocation2 + $0x1a2] sm:$0x1]  ;;  %v5752_v45 = vsel %vm5731_vm5, %v5751_v31, %v5666_v49  ;;  %v5761_v25 = vrot.slane %v5672_v61, 2  ;;  %v5652_v61 = vld [vmem:[%s17211_s3 + $0x10] sm:$0xff] }
 0x3b3   : > { %v5469_v16 = vmax.f32 %v5341_v57, %v5067_v59  ;;  %v3658_v14 = vmax.f32 %v13542_v2, %v3367_v9  ;;  %9698 = vmatprep.subr.bf16.mxu1 %v9697_v40  ;;  %v5759_v22 = vrot.slane %v5671_v30, 3  ;;  %v13567_v57 = vmax.f32 %v18351_v48, %v18377_v52  ;;  %v18378_v9 = vld [vmem:[#allocation77_spill] sm:$0xff]  ;;  %v18380_v42 = vld [vmem:[#allocation223_spill] sm:$0xff] }
 0x3b4   : > { %v2217_v6 = vpop.permute.xlu1 %2216  ;;  %v3369_v33 = vpop.permute.xlu0 %3368  ;;  %v5754_v27 = vsel %vm5734_vm6, %v5753_v3, %v5752_v45  ;;  %v13579_v31 = vmax.f32 %v18352_v12, %v18380_v42  ;;  %v2991_v3 = vmax.f32 %v13108_v13, %v12948_v1  ;;  %v5655_v1 = vld [vmem:[%s17211_s3 + $0x28] sm:$0xff] }
 0x3b5   : > { %5598 = vst.msk [vmem:[#allocation2 + $0x360] sm:$0xff] %vm5489_vm4, %v5469_v16  ;;  %v13562_v58 = vmax.f32 %v13080_v34, %v2217_v6  ;;  %v5756_v34 = vsel %vm5737_vm7, %v5755_v4, %v5754_v27  ;;  %v18379_v6 = vld [vmem:[#allocation122_spill] sm:$0xff] }
 0x3b6   : > { %2634 = vrot.lane.b32.xlu0 %v18378_v9, %s10014_s23  ;;  %4006 = vrot.lane.b32.xlu1 %v3658_v14, %s10013_s22  ;;  %v3576_v49 = vmax.f32 %v13567_v57, %v18379_v6  ;;  %18381 = vst [vmem:[#allocation189_spill] sm:$0xff] %v13579_v31  ;;  %v5758_v14 = vsel %vm5740_vm8, %v5757_v28, %v5756_v34  ;;  %v5653_v4 = vld [vmem:[%s17211_s3 + $0x18] sm:$0xff]  ;;  %v18384_v34 = vld [vmem:[#allocation131_spill] sm:$0xff] }
 0x3b7   : > { %v3659_v16 = vmax.f32 %v13562_v58, %v3369_v33  ;;  %v2990_v33 = vmax.f32 %v13093_v10, %v12946_v5  ;;  %v5760_v12 = vsel %vm5743_vm9, %v5759_v22, %v5758_v14  ;;  %v9701_v27 = vpack.c.bf16 %v5653_v4, %v5652_v61  ;;  %v18389_v61 = vld [vmem:[#allocation79_spill] sm:$0xff] }
 0x3b8   : > { %v3951_v48 = vpop.permute.xlu1 %3950  ;;  %v13581_v54 = vpop.permute.xlu0 %2218  ;;  %v5673_v59 = vld [vmem:[#allocation2 + $0x1e2] sm:$0x1]  ;;  %v5762_v28 = vsel %vm5746_vm10, %v5761_v25, %v5760_v12  ;;  %v3604_v5 = vmax.f32 %v13579_v31, %v18384_v34 }
 0x3b9   : > { %18382 = vst [vmem:[#allocation165_spill] sm:$0xff] %v13581_v54  ;;  %v5763_v30 = vrot.slane %v5673_v59, 1  ;;  %v13599_v45 = vsel %vm4206_vm1, %v2990_v33, %v3951_v48  ;;  %v5654_v25 = vld [vmem:[%s17211_s3 + $0x20] sm:$0xff]  ;;  %v18388_v59 = vld [vmem:[#allocation106_spill] sm:$0xff] }
 0x3ba   : > { %3842 = vrot.lane.b32.xlu1 %v3576_v49, %s10013_s22  ;;  %4008 = vrot.lane.b32.xlu0 %v3659_v16, %s10013_s22  ;;  %18383 = vst [vmem:[#allocation11_spill] sm:$0xff] %v13599_v45  ;;  %v18386_v16 = vld [vmem:[#allocation74_spill] sm:$0xff]  ;;  %v17544_v49 = vrot.slane %v13599_v45, 1  ;;  %v9705_v14 = vpack.c.bf16 %v5655_v1, %v5654_v25  ;;  %v17543_v4 = vrot.slane %v13599_v45, 2  ;;  %v18394_v1 = vld [vmem:[#allocation75_spill] sm:$0xff] }
 0x3bb   : > { %v5764_v52 = vsel %vm5749_vm11, %v5763_v30, %v5762_v28  ;;  %v13618_v6 = vmax.f32 %v18363_v11, %v18386_v16  ;;  %v5656_v30 = vld [vmem:[%s17211_s3 + $0x30] sm:$0xff]  ;;  %v5657_v28 = vld [vmem:[%s17211_s3 + $0x38] sm:$0xff]  ;;  %v5618_v54 = vld [vmem:[#allocation2] sm:$0x1] }
 0x3bc   : > { %v13604_v10 = vpop.permute.xlu1 %2726  ;;  %9348 = vmatmul.mubr.msk.f32.vlgmr.msra.gmra.mrb[66].mxu1 %vm5489_vm4, %v5764_v52  ;;  %v3953_v22 = vpop.permute.xlu0 %3952  ;;  %v18390_v52 = vld [vmem:[#allocation138_spill] sm:$0xff]  ;;  %v9709_v16 = vpack.c.bf16 %v5657_v28, %v5656_v30  ;;  %v18398_v28 = vld [vmem:[#allocation153_spill] sm:$0xff] }
 0x3bd   : > { %v13614_v13 = vsel %vm4206_vm1, %v2991_v3, %v3953_v22  ;;  %9700 = vmatpush3.bf16.msra.mxu1 %v9697_v40  ;;  %18387 = vst [vmem:[#allocation205_spill] sm:$0xff] %v13618_v6  ;;  %v3568_v40 = vmax.f32 %v13618_v6, %v18389_v61  ;;  %v13647_v34 = vmax.f32 %v18355_v0, %v18390_v52  ;;  %v18395_v0 = vld [vmem:[#allocation145_spill] sm:$0xff] }
 0x3be   : > { %18385 = vst [vmem:[#allocation30_spill] sm:$0xff] %v13614_v13  ;;  %v17546_v42 = vrot.slane %v13614_v13, 1  ;;  %v17545_v48 = vrot.slane %v13614_v13, 2  ;;  %2586 = vrot.lane.b32.xlu1 %v18388_v59, %s10014_s23  ;;  %3898 = vrot.lane.b32.xlu0 %v3604_v5, %s10013_s22  ;;  %v18392_v5 = vld [vmem:[#allocation226_spill] sm:$0xff]  ;;  %v18418_v13 = vld [vmem:[#allocation168_spill] sm:$0xff] }
 0x3bf   : > { %9702 = vmatprep.subr.bf16.mxu1 %v9701_v27  ;;  %18391 = vst [vmem:[#allocation196_spill] sm:$0xff] %v13647_v34  ;;  %v13651_v22 = vmax.f32 %v18371_v50, %v18392_v5  ;;  %v3580_v61 = vmax.f32 %v13647_v34, %v18395_v0  ;;  %v2994_v0 = vmax.f32 %v13156_v51, %v13066_v15  ;;  %v18406_v15 = vld [vmem:[#allocation123_spill] sm:$0xff]  ;;  %v18407_v51 = vld [vmem:[#allocation157_spill] sm:$0xff] }
 0x3c0   : > { %v4594_v11 = vsel %vm4463_vm2, %v17544_v49, %v17546_v42  ;;  %v13634_v33 = vpop.permute.xlu1 %2782  ;;  %v13636_v12 = vpop.permute.xlu0 %2728  ;;  %v4979_v25 = vsel %vm4848_vm3, %v17543_v4, %v17545_v48  ;;  %v18399_v49 = vld [vmem:[#allocation154_spill] sm:$0xff] }
 0x3c1   : > { %v5297_v3 = vmax.f32 %v13599_v45, %v4594_v11  ;;  %9704 = vmatpush3.bf16.msra.mxu1 %v9701_v27  ;;  %18393 = vst [vmem:[#allocation201_spill] sm:$0xff] %v13651_v22  ;;  %v18396_v11 = vld [vmem:[#allocation229_spill] sm:$0xff]  ;;  %v13686_v48 = vmax.f32 %v18375_v46, %v18399_v49  ;;  %v3039_v46 = vmax.f32 %v13165_v18, %v18407_v51 }
 0x3c2   : > { %3826 = vrot.lane.b32.xlu1 %v3568_v40, %s10013_s22  ;;  %2642 = vrot.lane.b32.xlu0 %v18394_v1, %s10014_s23  ;;  %v3608_v50 = vmax.f32 %v13651_v22, %v18396_v11  ;;  %v6099_v40 = vld [vmem:[%s17211_s3 + $0x80] sm:$0xff]  ;;  %v18408_v49 = vld [vmem:[#allocation237_spill] sm:$0xff] }
 0x3c3   : > { %v5425_v27 = vmax.f32 %v5297_v3, %v4979_v25  ;;  %9706 = vmatprep.subr.bf16.mxu1 %v9705_v14  ;;  %v6100_v3 = vld [vmem:[%s17211_s3 + $0x88] sm:$0xff]  ;;  %v3038_v25 = vmax.f32 %v13152_v55, %v18398_v28  ;;  %18400 = vst [vmem:[#allocation186_spill] sm:$0xff] %v13686_v48  ;;  %v18405_v55 = vld [vmem:[#allocation214_spill] sm:$0xff]  ;;  %v18536_v22 = vld [vmem:[#allocation169_spill] sm:$0xff] }
 0x3c4   : > { %v13665_v52 = vpop.permute.xlu1 %3322  ;;  %v13667_v5 = vpop.permute.xlu0 %2784  ;;  %v13678_v30 = vpack.c.bf16 %v6100_v3, %v6099_v40  ;;  %v18411_v3 = vld [vmem:[#allocation215_spill] sm:$0xff] }
 0x3c5   : > { %5554 = vst.msk [vmem:[#allocation2 + $0x200] sm:$0xff] %vm5489_vm4, %v5425_v27  ;;  %9708 = vmatpush3.bf16.msra.mxu1 %v9705_v14  ;;  %v18401_v14 = vld [vmem:[#allocation212_spill] sm:$0xff] }
 0x3c6   : > { %3906 = vrot.lane.b32.xlu1 %v3608_v50, %s10013_s22  ;;  %3850 = vrot.lane.b32.xlu0 %v3580_v61, %s10013_s22  ;;  %18397 = vst [vmem:[#allocation51_spill] sm:$0xff] %v13678_v30  ;;  %v13690_v27 = vmax.f32 %v18376_v47, %v18401_v14  ;;  %v2995_v47 = vmax.f32 %v13170_v21, %v13087_v23 }
 0x3c7   : > { %9710 = vmatprep.subr.bf16.mxu1 %v9709_v16 }
 0x3c8   : > { %v3959_v11 = vpop.permute.xlu1 %3958  ;;  %v4047_v4 = vpop.permute.xlu0 %4046  ;;  %18402 = vst [vmem:[#allocation135_spill] sm:$0xff] %v13690_v27  ;;  %v3600_v28 = vmax.f32 %v13690_v27, %v18411_v3 }
 0x3c9   : > { %9712 = vmatpush3.bf16.msra.mxu1 %v9709_v16  ;;  %v13693_v61 = vsel %vm4206_vm1, %v2994_v0, %v3959_v11  ;;  %v13696_v50 = vsel %vm4206_vm1, %v3038_v25, %v4047_v4  ;;  %v13706_v16 = vmax.f32 %v18378_v9, %v18408_v49  ;;  %v18410_v4 = vld [vmem:[#allocation80_spill] sm:$0xff] }
 0x3ca   : > { %18403 = vst [vmem:[#allocation204_spill] sm:$0xff] %v13693_v61  ;;  %18404 = vst [vmem:[#allocation170_spill] sm:$0xff] %v13696_v50  ;;  %2650 = vrot.lane.b32.xlu1 %v18405_v55, %s10014_s23  ;;  %2594 = vrot.lane.b32.xlu0 %v18406_v15, %s10014_s23  ;;  %v3584_v40 = vmax.f32 %v13686_v48, %v18410_v4  ;;  %v17549_v11 = vrot.slane %v13693_v61, 1  ;;  %v17547_v18 = vrot.slane %v13696_v50, 1  ;;  %v18414_v4 = vld [vmem:[#allocation16_spill] sm:$0xff] }
 0x3cb   : > { %18409 = vst [vmem:[#allocation39_spill] sm:$0xff] %v13706_v16  ;;  %9714 = vmatprep.subr.bf16.mxu1 %v13678_v30  ;;  %v924_v3 = vadd.f32 %v18414_v4, %v10331_v36  ;;  %v6067_v30 = vld [vmem:[#allocation2 + $0x4] sm:$0x1] }
 0x3cc   : > { %v4049_v25 = vpop.permute.xlu1 %4048  ;;  %v3961_v0 = vpop.permute.xlu0 %3960 }
 0x3cd   : > { %v13718_v9 = vsel %vm4206_vm1, %v3039_v46, %v4049_v25  ;;  %v13721_v14 = vsel %vm4206_vm1, %v2995_v47, %v3961_v0  ;;  %v18415_v46 = vld [vmem:[#allocation234_spill] sm:$0xff]  ;;  %v17559_v0 = vrot.slane %v13696_v50, 2 }
 0x3ce   : > { %18412 = vst [vmem:[#allocation44_spill] sm:$0xff] %v13718_v9  ;;  %18413 = vst [vmem:[#allocation128_spill] sm:$0xff] %v13721_v14  ;;  %v17548_v23 = vrot.slane %v13718_v9, 1  ;;  %v17560_v21 = vrot.slane %v13718_v9, 2  ;;  %v17550_v51 = vrot.slane %v13721_v14, 1  ;;  %v17561_v49 = vrot.slane %v13721_v14, 2  ;;  %3890 = vrot.lane.b32.xlu1 %v3600_v28, %s10013_s22  ;;  %3858 = vrot.lane.b32.xlu0 %v3584_v40, %s10013_s22 }
 0x3cf   : > { %v3612_v25 = vmax.f32 %v13706_v16, %v18415_v46  ;;  %v13766_v9 = vmax.f32 %v18394_v1, %v18418_v13  ;;  %v18423_v13 = vld [vmem:[#allocation24_spill] sm:$0xff] }
 0x3d0   : > { %v4690_v42 = vsel %vm4463_vm2, %v17547_v18, %v17548_v23  ;;  %v4602_v40 = vsel %vm4463_vm2, %v17549_v11, %v17550_v51  ;;  %v13745_v28 = vpop.permute.xlu1 %2792  ;;  %v13747_v4 = vpop.permute.xlu0 %2790  ;;  %v5075_v18 = vsel %vm4848_vm3, %v17559_v0, %v17560_v21  ;;  %v18416_v23 = vrot.slane %v13693_v61, 2  ;;  %v18417_v51 = vld [vmem:[#allocation144_spill] sm:$0xff] }
 0x3d1   : > { %v5345_v46 = vmax.f32 %v13696_v50, %v4690_v42  ;;  %v5301_v47 = vmax.f32 %v13693_v61, %v4602_v40  ;;  %v1661_v40 = vmax.f32 %v924_v3, 0.0  ;;  %18419 = vst [vmem:[#allocation54_spill] sm:$0xff] %v13766_v9  ;;  %v948_v1 = vadd.f32 %v18423_v13, %v10331_v36  ;;  %v18432_v61 = vld [vmem:[#allocation185_spill] sm:$0xff] }
 0x3d2   : > { %v4987_v11 = vsel %vm4848_vm3, %v18416_v23, %v17561_v49  ;;  %2602 = vrot.lane.b32.xlu1 %v18417_v51, %s10014_s23  ;;  %3914 = vrot.lane.b32.xlu0 %v3612_v25, %s10013_s22  ;;  %v18420_v23 = vld [vmem:[#allocation91_spill] sm:$0xff]  ;;  %v18425_v25 = vld [vmem:[#allocation176_spill] sm:$0xff] }
 0x3d3   : > { %v5473_v42 = vmax.f32 %v5345_v46, %v5075_v18  ;;  %v5429_v45 = vmax.f32 %v5301_v47, %v4987_v11  ;;  %v13776_v21 = vmax.f32 %v18388_v59, %v18420_v23  ;;  %v18422_v11 = vld [vmem:[#allocation219_spill] sm:$0xff]  ;;  %v18424_v18 = vld [vmem:[#allocation36_spill] sm:$0xff]  ;;  %v18426_v46 = vld [vmem:[#allocation194_spill] sm:$0xff]  ;;  %v2998_v59 = vmax.f32 %v13229_v44, %v13143_v24 }
 0x3d4   : > { %v13768_v50 = vpop.permute.xlu1 %3386  ;;  %v13770_v0 = vpop.permute.xlu0 %3330  ;;  %v3042_v3 = vmax.f32 %v13226_v20, %v18424_v18  ;;  %v18429_v20 = vld [vmem:[#allocation103_spill] sm:$0xff]  ;;  %v18430_v18 = vld [vmem:[#allocation102_spill] sm:$0xff]  ;;  %v18431_v24 = vld [vmem:[#allocation156_spill] sm:$0xff] }
 0x3d5   : > { %5602 = vst.msk [vmem:[#allocation2 + $0x380] sm:$0xff] %vm5489_vm4, %v5473_v42  ;;  %5558 = vst.msk [vmem:[#allocation2 + $0x220] sm:$0xff] %vm5489_vm4, %v5429_v45  ;;  %v3588_v47 = vmax.f32 %v13776_v21, %v18425_v25  ;;  %v3616_v45 = vmax.f32 %v13766_v9, %v18426_v46  ;;  %v1116_v13 = vadd.f32 %v18429_v20, %v10331_v36  ;;  %v1669_v46 = vmax.f32 %v948_v1, 0.0 }
 0x3d6   : > { %18421 = vst [vmem:[#allocation235_spill] sm:$0xff] %v13776_v21  ;;  %3196 = vrot.lane.b32.xlu1 %v1661_v40, %s10014_s23  ;;  %2658 = vrot.lane.b32.xlu0 %v18422_v11, %s10014_s23  ;;  %v3043_v25 = vmax.f32 %v13237_v38, %v18430_v18  ;;  %v2999_v44 = vmax.f32 %v18431_v24, %v13172_v7  ;;  %v18437_v18 = vld [vmem:[#allocation10_spill] sm:$0xff] }
 0x3d7   : > { %v1725_v24 = vmax.f32 %v1116_v13, 0.0 }
 0x3d8   : > { %v3967_v42 = vpop.permute.xlu1 %3966  ;;  %v4055_v40 = vpop.permute.xlu0 %4054 }
 0x3d9   : > { %v13792_v23 = vsel %vm4206_vm1, %v2998_v59, %v3967_v42  ;;  %v13795_v49 = vsel %vm4206_vm1, %v3042_v3, %v4055_v40  ;;  %v13807_v59 = vmax.f32 %v18406_v15, %v18432_v61  ;;  %v18436_v15 = vld [vmem:[#allocation118_spill] sm:$0xff]  ;;  %v13850_v61 = vpop.f32.mrb[64].mxu1 }
 0x3da   : > { %18427 = vst [vmem:[#allocation208_spill] sm:$0xff] %v13792_v23  ;;  %18428 = vst [vmem:[#allocation28_spill] sm:$0xff] %v13795_v49  ;;  %3922 = vrot.lane.b32.xlu1 %v3616_v45, %s10013_s22  ;;  %3866 = vrot.lane.b32.xlu0 %v3588_v47, %s10013_s22  ;;  %v17566_v47 = vrot.slane %v13795_v49, 1  ;;  %v18441_v13 = vrot.slane %v13792_v23, 1 }
 0x3db   : > { %18433 = vst [vmem:[#allocation41_spill] sm:$0xff] %v13807_v59  ;;  %18442 = vst [vmem:[#allocation136_spill] sm:$0xff] %v13850_v61 }
 0x3dc   : > { %v4057_v3 = vpop.permute.xlu1 %4056  ;;  %v3969_v42 = vpop.permute.xlu0 %3968 }
 0x3dd   : > { %v13812_v40 = vsel %vm4206_vm1, %v3043_v25, %v4057_v3  ;;  %v13815_v20 = vsel %vm4206_vm1, %v2999_v44, %v3969_v42  ;;  %v900_v25 = vadd.f32 %v18437_v18, %v10331_v36  ;;  %v18438_v3 = vld [vmem:[#allocation192_spill] sm:$0xff]  ;;  %v18439_v42 = vld [vmem:[#allocation65_spill] sm:$0xff] }
 0x3de   : > { %18434 = vst [vmem:[#allocation37_spill] sm:$0xff] %v13812_v40  ;;  %18435 = vst [vmem:[#allocation240_spill] sm:$0xff] %v13815_v20  ;;  %v17567_v38 = vrot.slane %v13812_v40, 1  ;;  %v17569_v1 = vrot.slane %v13815_v20, 1  ;;  %3204 = vrot.lane.b32.xlu1 %v1669_v46, %s10014_s23  ;;  %2666 = vrot.lane.b32.xlu0 %v18436_v15, %s10014_s23  ;;  %v3592_v44 = vmax.f32 %v13807_v59, %v18438_v3  ;;  %v18443_v14 = vrot.slane %v13812_v40, 2  ;;  %v18448_v40 = vld [vmem:[#allocation29_spill] sm:$0xff] }
 0x3df   : > { %v13830_v45 = vmax.f32 %v18405_v55, %v18439_v42  ;;  %v18445_v59 = vrot.slane %v13815_v20, 2  ;;  %v1653_v9 = vmax.f32 %v900_v25, 0.0  ;;  %v18450_v20 = vld [vmem:[#allocation143_spill] sm:$0xff] }
 0x3e0   : > { %v4698_v46 = vsel %vm4463_vm2, %v17566_v47, %v17567_v38  ;;  %v4610_v18 = vsel %vm4463_vm2, %v18441_v13, %v17569_v1  ;;  %v13844_v3 = vpop.permute.xlu1 %3338  ;;  %v13846_v55 = vpop.permute.xlu0 %3314  ;;  %v18444_v47 = vrot.slane %v13795_v49, 2  ;;  %v18446_v13 = vrot.slane %v13792_v23, 2 }
 0x3e1   : > { %18440 = vst [vmem:[#allocation60_spill] sm:$0xff] %v13830_v45  ;;  %v5349_v42 = vmax.f32 %v13795_v49, %v4698_v46  ;;  %v5305_v7 = vmax.f32 %v13792_v23, %v4610_v18  ;;  %v13864_v46 = vpop.f32.mrb[65].mxu1  ;;  %v972_v49 = vadd.f32 %v18448_v40, %v10331_v36  ;;  %v3620_v23 = vmax.f32 %v13830_v45, %v18450_v20 }
 0x3e2   : > { %v5083_v38 = vsel %vm4848_vm3, %v18444_v47, %v18443_v14  ;;  %v4995_v1 = vsel %vm4848_vm3, %v18446_v13, %v18445_v59  ;;  %3874 = vrot.lane.b32.xlu1 %v3592_v44, %s10013_s22  ;;  %3260 = vrot.lane.b32.xlu0 %v1725_v24, %s10014_s23  ;;  %18447 = vst [vmem:[#allocation110_spill] sm:$0xff] %v13864_v46  ;;  %v18449_v14 = vld [vmem:[#allocation117_spill] sm:$0xff]  ;;  %v18452_v44 = vld [vmem:[#allocation200_spill] sm:$0xff] }
 0x3e3   : > { %v5477_v18 = vmax.f32 %v5349_v42, %v5083_v38  ;;  %v5433_v61 = vmax.f32 %v5305_v7, %v4995_v1  ;;  %v1140_v47 = vadd.f32 %v18449_v14, %v10331_v36  ;;  %v3046_v24 = vmax.f32 %v13270_v19, %v13634_v33  ;;  %v18454_v33 = vld [vmem:[#allocation27_spill] sm:$0xff]  ;;  %v18459_v42 = vld [vmem:[#allocation84_spill] sm:$0xff] }
 0x3e4   : > { %v4063_v21 = vpop.permute.xlu1 %4062  ;;  %v13872_v59 = vpop.permute.xlu0 %3394  ;;  %v3047_v40 = vmax.f32 %v13290_v41, %v13667_v5  ;;  %v1677_v20 = vmax.f32 %v972_v49, 0.0  ;;  %v13887_v19 = vmax.f32 %v18417_v51, %v18452_v44  ;;  %v18458_v51 = vld [vmem:[#allocation38_spill] sm:$0xff]  ;;  %v1092_v13 = vadd.f32 %v18459_v42, %v10331_v36 }
 0x3e5   : > { %5606 = vst.msk [vmem:[#allocation2 + $0x3a0] sm:$0xff] %vm5489_vm4, %v5477_v18  ;;  %5562 = vst.msk [vmem:[#allocation2 + $0x240] sm:$0xff] %vm5489_vm4, %v5433_v61  ;;  %v13883_v38 = vsel %vm4206_vm1, %v3046_v24, %v4063_v21  ;;  %v1733_v7 = vmax.f32 %v1140_v47, 0.0  ;;  %v3002_v61 = vmax.f32 %v13293_v43, %v18454_v33  ;;  %v996_v43 = vadd.f32 %v18458_v51, %v10331_v36  ;;  %v18460_v18 = vld [vmem:[#allocation127_spill] sm:$0xff] }
 0x3e6   : > { %3188 = vrot.lane.b32.xlu1 %v1653_v9, %s10014_s23  ;;  %3930 = vrot.lane.b32.xlu0 %v3620_v23, %s10013_s22  ;;  %18451 = vst [vmem:[#allocation99_spill] sm:$0xff] %v13883_v38  ;;  %18453 = vst [vmem:[#allocation14_spill] sm:$0xff] %v13887_v19  ;;  %v18456_v23 = vld [vmem:[#allocation213_spill] sm:$0xff]  ;;  %v17580_v5 = vrot.slane %v13883_v38, 1  ;;  %v18462_v47 = vld [vmem:[#allocation207_spill] sm:$0xff] }
 0x3e7   : > { %v13896_v41 = vmax.f32 %v18422_v11, %v18456_v23  ;;  %v3003_v11 = vmax.f32 %v13308_v63, %v18460_v18  ;;  %v3596_v24 = vmax.f32 %v13887_v19, %v18462_v47  ;;  %v18465_v18 = vld [vmem:[#allocation12_spill] sm:$0xff]  ;;  %v1685_v47 = vmax.f32 %v996_v43, 0.0  ;;  %v6293_v19 = vld [vmem:[#allocation2 + $0x26] sm:$0x1] }
 0x3e8   : > { %v3975_v1 = vpop.permute.xlu1 %3974  ;;  %v4065_v25 = vpop.permute.xlu0 %4064  ;;  %v6364_v16 = vrot.slane %v6293_v19, 7  ;;  %v18533_v19 = vld [vmem:[#allocation179_spill] sm:$0xff] }
 0x3e9   : > { %v13892_v9 = vsel %vm4206_vm1, %v3047_v40, %v4065_v25  ;;  %18457 = vst [vmem:[#allocation63_spill] sm:$0xff] %v13896_v41  ;;  %v13910_v14 = vsel %vm4206_vm1, %v3002_v61, %v3975_v1  ;;  %v18463_v40 = vld [vmem:[#allocation129_spill] sm:$0xff] }
 0x3ea   : > { %18455 = vst [vmem:[#allocation142_spill] sm:$0xff] %v13892_v9  ;;  %v17583_v21 = vrot.slane %v13892_v9, 1  ;;  %v17582_v49 = vrot.slane %v13892_v9, 2  ;;  %3268 = vrot.lane.b32.xlu1 %v1733_v7, %s10014_s23  ;;  %3212 = vrot.lane.b32.xlu0 %v1677_v20, %s10014_s23  ;;  %18461 = vst [vmem:[#allocation101_spill] sm:$0xff] %v13910_v14  ;;  %v3624_v7 = vmax.f32 %v13896_v41, %v18463_v40  ;;  %v17581_v20 = vrot.slane %v13883_v38, 2 }
 0x3eb   : > { %v17584_v61 = vrot.slane %v13910_v14, 1  ;;  %v5643_v41 = vld [vmem:[#allocation2 + $0x320] sm:$0x1] }
 0x3ec   : > { %v4706_v25 = vsel %vm4463_vm2, %v17580_v5, %v17583_v21  ;;  %v13922_v44 = vpop.permute.xlu1 %3346  ;;  %v3977_v63 = vpop.permute.xlu0 %3976  ;;  %v5091_v23 = vsel %vm4848_vm3, %v17581_v20, %v17582_v49  ;;  %v17588_v20 = vrot.slane %v13910_v14, 2 }
 0x3ed   : > { %v5353_v1 = vmax.f32 %v13883_v38, %v4706_v25  ;;  %v13926_v33 = vsel %vm4206_vm1, %v3003_v11, %v3977_v63  ;;  %v13940_v11 = vadd.f32 %v18465_v18, %v10331_v36  ;;  %v1717_v25 = vmax.f32 %v1092_v13, 0.0  ;;  %v18467_v63 = vld [vmem:[#allocation132_spill] sm:$0xff]  ;;  %v18476_v38 = vld [vmem:[#allocation9_spill] sm:$0xff] }
 0x3ee   : > { %18464 = vst [vmem:[#allocation183_spill] sm:$0xff] %v13926_v33  ;;  %v17585_v51 = vrot.slane %v13926_v33, 1  ;;  %v17589_v42 = vrot.slane %v13926_v33, 2  ;;  %3938 = vrot.lane.b32.xlu1 %v3624_v7, %s10013_s22  ;;  %3882 = vrot.lane.b32.xlu0 %v3596_v24, %s10013_s22  ;;  %v1164_v5 = vadd.f32 %v18467_v63, %v10331_v36  ;;  %v18469_v18 = vld [vmem:[#allocation4_spill] sm:$0xff]  ;;  %v18473_v63 = vld [vmem:[#allocation222_spill] sm:$0xff]  ;;  %v18492_v33 = vld [vmem:[#allocation55_spill] sm:$0xff] }
 0x3ef   : > { %18466 = vst [vmem:[#allocation83_spill] sm:$0xff] %v13940_v11  ;;  %v5481_v40 = vmax.f32 %v5353_v1, %v5091_v23  ;;  %v13956_v43 = vadd.f32 %v18469_v18, %v10331_v36  ;;  %v18471_v1 = vld [vmem:[#allocation19_spill] sm:$0xff]  ;;  %v13966_v21 = vmax.f32 %v18436_v15, %v18473_v63  ;;  %v3051_v18 = vmax.f32 %v13332_v29, %v13745_v28  ;;  %v18480_v29 = vld [vmem:[#allocation33_spill] sm:$0xff] }
 0x3f0   : > { %v4618_v7 = vsel %vm4463_vm2, %v17584_v61, %v17585_v51  ;;  %v13950_v49 = vpop.permute.xlu1 %3402  ;;  %v13952_v24 = vpop.permute.xlu0 %3378  ;;  %v13962_v23 = vadd.f32 %v18471_v1, %v10331_v36  ;;  %v5003_v61 = vsel %vm4848_vm3, %v17588_v20, %v17589_v42  ;;  %v3050_v15 = vmax.f32 %v13328_v32, %v13747_v4  ;;  %v18477_v42 = vld [vmem:[#allocation242_spill] sm:$0xff] }
 0x3f1   : > { %18468 = vst [vmem:[#allocation162_spill] sm:$0xff] %v13950_v49  ;;  %18470 = vst [vmem:[#allocation115_spill] sm:$0xff] %v13956_v43  ;;  %v5309_v13 = vmax.f32 %v13910_v14, %v4618_v7  ;;  %v1741_v51 = vmax.f32 %v1164_v5, 0.0  ;;  %v1188_v20 = vadd.f32 %v18476_v38, %v10331_v36  ;;  %v13992_v28 = vadd.f32 %v18480_v29, %v10331_v36  ;;  %v5621_v49 = vld [vmem:[#allocation2 + $0x60] sm:$0x1] }
 0x3f2   : > { %5610 = vst.msk [vmem:[#allocation2 + $0x3c0] sm:$0xff] %vm5489_vm4, %v5481_v40  ;;  %18472 = vst [vmem:[#allocation77_spill] sm:$0xff] %v13962_v23  ;;  %3252 = vrot.lane.b32.xlu1 %v1717_v25, %s10014_s23  ;;  %3220 = vrot.lane.b32.xlu0 %v1685_v47, %s10014_s23  ;;  %v18475_v40 = vld [vmem:[#allocation43_spill] sm:$0xff]  ;;  %v3628_v25 = vmax.f32 %v13966_v21, %v18477_v42  ;;  %v18488_v42 = vld [vmem:[#allocation21_spill] sm:$0xff] }
 0x3f3   : > { %18474 = vst [vmem:[#allocation122_spill] sm:$0xff] %v13966_v21  ;;  %v1020_v7 = vadd.f32 %v18475_v40, %v10331_v36  ;;  %v5437_v1 = vmax.f32 %v5309_v13, %v5003_v61  ;;  %v18478_v40 = vld [vmem:[#allocation26_spill] sm:$0xff]  ;;  %18481 = vst [vmem:[#allocation131_spill] sm:$0xff] %v13992_v28  ;;  %v1749_v63 = vmax.f32 %v1188_v20, 0.0  ;;  %v1212_v5 = vadd.f32 %v18488_v42, %v10331_v36  ;;  %v18526_v23 = vld [vmem:[#allocation49_spill] sm:$0xff] }
 0x3f4   : > { %v4073_v47 = vpop.permute.xlu1 %4072  ;;  %v4071_v14 = vpop.permute.xlu0 %4070  ;;  %v13988_v9 = vadd.f32 %v18478_v40, %v10331_v36  ;;  %v18487_v40 = vld [vmem:[#allocation53_spill] sm:$0xff]  ;;  %v3006_v20 = vmax.f32 %v13353_v35, %v13310_v60  ;;  %v1618_v21 = vadd.f32 %v18492_v33, %v10319_v26  ;;  %v18496_v60 = vld [vmem:[#allocation167_spill] sm:$0xff]  ;;  %v3007_v33 = vmax.f32 %v13366_v8, %v13312_v17 }
 0x3f5   : > { %5566 = vst.msk [vmem:[#allocation2 + $0x260] sm:$0xff] %vm5489_vm4, %v5437_v1  ;;  %v13996_v32 = vsel %vm4206_vm1, %v3051_v18, %v4073_v47  ;;  %v13999_v4 = vsel %vm4206_vm1, %v3050_v15, %v4071_v14  ;;  %v18484_v18 = vld [vmem:[#allocation40_spill] sm:$0xff]  ;;  %v1693_v14 = vmax.f32 %v1020_v7, 0.0  ;;  %v18486_v15 = vld [vmem:[#allocation45_spill] sm:$0xff]  ;;  %v1044_v29 = vadd.f32 %v18487_v40, %v10331_v36  ;;  %v18501_v17 = vld [vmem:[#allocation187_spill] sm:$0xff] }
 0x3f6   : > { %18479 = vst [vmem:[#allocation223_spill] sm:$0xff] %v13988_v9  ;;  %18482 = vst [vmem:[#allocation74_spill] sm:$0xff] %v13996_v32  ;;  %v17598_v38 = vrot.slane %v13996_v32, 1  ;;  %v17597_v61 = vrot.slane %v13999_v4, 1  ;;  %3946 = vrot.lane.b32.xlu1 %v3628_v25, %s10013_s22  ;;  %3276 = vrot.lane.b32.xlu0 %v1741_v51, %s10014_s23  ;;  %v14010_v1 = vadd.f32 %v18484_v18, %v10331_v36  ;;  %v18494_v43 = vrot.slane %v13996_v32, 2  ;;  %v18511_v40 = vld [vmem:[#allocation116_spill] sm:$0xff] }
 0x3f7   : > { %18483 = vst [vmem:[#allocation106_spill] sm:$0xff] %v13999_v4  ;;  %v1594_v47 = vadd.f32 %v18486_v15, %v10319_v26  ;;  %v18490_v15 = vld [vmem:[#allocation47_spill] sm:$0xff]  ;;  %v18495_v7 = vrot.slane %v13999_v4, 2  ;;  %v14047_v35 = vadd.f32 %v18496_v60, %v10331_v36  ;;  %v18500_v60 = vld [vmem:[#allocation177_spill] sm:$0xff]  ;;  %v14066_v8 = vadd.f32 %v18501_v17, %v10331_v36  ;;  %v18522_v26 = vld [vmem:[#allocation220_spill] sm:$0xff] }
 0x3f8   : > { %18485 = vst [vmem:[#allocation79_spill] sm:$0xff] %v14010_v1  ;;  %v4714_v51 = vsel %vm4463_vm2, %v17597_v61, %v17598_v38  ;;  %v3983_v25 = vpop.permute.xlu1 %3982  ;;  %v14023_v18 = vpop.permute.xlu0 %2274  ;;  %v14028_v13 = vadd.f32 %v18490_v15, %v10331_v36  ;;  %v18493_v61 = vld [vmem:[#allocation67_spill] sm:$0xff]  ;;  %v14062_v46 = vadd.f32 %v18500_v60, %v10331_v36 }
 0x3f9   : > { %18489 = vst [vmem:[#allocation138_spill] sm:$0xff] %v14023_v18  ;;  %v5357_v42 = vmax.f32 %v13999_v4, %v4714_v51  ;;  %v1068_v38 = vadd.f32 %v18493_v61, %v10331_v36  ;;  %v5099_v15 = vsel %vm4848_vm3, %v18495_v7, %v18494_v43  ;;  %v14052_v61 = vsel %vm4206_vm1, %v3006_v20, %v3983_v25  ;;  %v5619_v17 = vld [vmem:[#allocation2 + $0x20] sm:$0x1] }
 0x3fa   : > { %18491 = vst [vmem:[#allocation226_spill] sm:$0xff] %v14028_v13  ;;  %3284 = vrot.lane.b32.xlu1 %v1749_v63, %s10014_s23  ;;  %3228 = vrot.lane.b32.xlu0 %v1693_v14, %s10014_s23  ;;  %18497 = vst [vmem:[#allocation75_spill] sm:$0xff] %v14052_v61  ;;  %v14055_v4 = vmax.f32 %v1594_v47, 0.0  ;;  %v1701_v43 = vmax.f32 %v1044_v29, 0.0  ;;  %v1757_v7 = vmax.f32 %v1212_v5, 0.0  ;;  %v18504_v5 = vld [vmem:[#allocation134_spill] sm:$0xff] }
 0x3fb   : > { %v5485_v51 = vmax.f32 %v5357_v42, %v5099_v15  ;;  %18502 = vst [vmem:[#allocation153_spill] sm:$0xff] %v14066_v8  ;;  %v14074_v29 = vadd.f32 %v18504_v5, %v10331_v36  ;;  %v17608_v25 = vrot.slane %v14052_v61, 1  ;;  %v14081_v15 = vmax.f32 %v1618_v21, 0.0  ;;  %v18509_v5 = vld [vmem:[#allocation93_spill] sm:$0xff]  ;;  %v5620_v9 = vld [vmem:[#allocation2 + $0x40] sm:$0x1] }
 0x3fc   : > { %18498 = vst [vmem:[#allocation145_spill] sm:$0xff] %v14055_v4  ;;  %v14057_v63 = vpop.permute.xlu1 %3354  ;;  %v3985_v14 = vpop.permute.xlu0 %3984  ;;  %v1765_v60 = vmax.f32 %v14047_v35, 0.0  ;;  %v14090_v32 = vadd.f32 %v18509_v5, %v10331_v36  ;;  %v14094_v42 = vadd.f32 %v18511_v40, %v10331_v36  ;;  %v18515_v5 = vld [vmem:[#allocation82_spill] sm:$0xff]  ;;  %v18520_v11 = vrot.slane %v14052_v61, 2  ;;  %v6092_v40 = vld [vmem:[#allocation2 + $0x324] sm:$0x1] }
 0x3fd   : > { %18499 = vst [vmem:[#allocation229_spill] sm:$0xff] %v14057_v63  ;;  %5614 = vst.msk [vmem:[#allocation2 + $0x3e0] sm:$0xff] %vm5489_vm4, %v5485_v51  ;;  %v14070_v47 = vsel %vm4206_vm1, %v3007_v33, %v3985_v14  ;;  %v18507_v51 = vld [vmem:[#allocation57_spill] sm:$0xff]  ;;  %v1709_v14 = vmax.f32 %v1068_v38, 0.0  ;;  %v5960_v8 = vrot.slane %v5643_v41, 7  ;;  %v18531_v41 = vld [vmem:[#allocation90_spill] sm:$0xff] }
 0x3fe   : > { %18503 = vst [vmem:[#allocation154_spill] sm:$0xff] %v14070_v47  ;;  %18505 = vst [vmem:[#allocation212_spill] sm:$0xff] %v14074_v29  ;;  %v17609_v20 = vrot.slane %v14070_v47, 1  ;;  %3292 = vrot.lane.b32.xlu1 %v1757_v7, %s10014_s23  ;;  %3236 = vrot.lane.b32.xlu0 %v1701_v43, %s10014_s23  ;;  %v14085_v33 = vadd.f32 %v18507_v51, %v10331_v36  ;;  %v5683_v7 = vld [vmem:[#allocation2 + $0x322] sm:$0x1]  ;;  %v18519_v45 = vrot.slane %v14070_v47, 2 }
 0x3ff   : > { %18506 = vst [vmem:[#allocation214_spill] sm:$0xff] %v14081_v15  ;;  %18510 = vst [vmem:[#allocation157_spill] sm:$0xff] %v14090_v32  ;;  %v6068_v51 = vld [vmem:[#allocation2 + $0x24] sm:$0x1]  ;;  %v18517_v15 = vld [vmem:[#allocation105_spill] sm:$0xff]  ;;  %v5779_v28 = vrot.slane %v5683_v7, 7 }
 0x400   : > { %18508 = vst [vmem:[#allocation123_spill] sm:$0xff] %v14085_v33  ;;  %18512 = vst [vmem:[#allocation237_spill] sm:$0xff] %v14094_v42  ;;  %v4626_v21 = vsel %vm4463_vm2, %v17608_v25, %v17609_v20  ;;  %v14102_v38 = vpop.permute.xlu1 %2282  ;;  %v14104_v35 = vpop.permute.xlu0 %3410  ;;  %v18516_v33 = vld [vmem:[#allocation20_spill] sm:$0xff]  ;;  %v18521_v43 = vld [vmem:[#allocation239_spill] sm:$0xff]  ;;  %v6139_v18 = vrot.slane %v6068_v51, 7  ;;  %v6181_v42 = vrot.slane %v6092_v40, 7 }
 0x401   : > { %18513 = vst [vmem:[#allocation80_spill] sm:$0xff] %v14102_v38  ;;  %18514 = vst [vmem:[#allocation215_spill] sm:$0xff] %v14104_v35  ;;  %v14108_v13 = vmax.f32 %v18516_v33, %v18515_v5  ;;  %v5313_v1 = vmax.f32 %v14052_v61, %v4626_v21  ;;  %v18518_v25 = vld [vmem:[#allocation32_spill] sm:$0xff]  ;;  %v5011_v5 = vsel %vm4848_vm3, %v18520_v11, %v18519_v45  ;;  %v5918_v21 = vrot.slane %v5619_v17, 7  ;;  %v6317_v38 = vld [vmem:[#allocation2 + $0x326] sm:$0x1] }
 0x402   : > { %v14115_v20 = vmax.f32 %v18518_v25, %v18517_v15  ;;  %3244 = vrot.lane.b32.xlu1 %v1709_v14, %s10014_s23  ;;  %2682 = vrot.lane.b32.xlu0 %v18521_v43, %s10014_s23  ;;  %v14128_v15 = vadd.f32 %v18522_v26, %v10331_v36  ;;  %v6069_v47 = vld [vmem:[#allocation2 + $0x44] sm:$0x1]  ;;  %v5682_v17 = vld [vmem:[#allocation2 + $0x302] sm:$0x1]  ;;  %v18525_v26 = vld [vmem:[#allocation126_spill] sm:$0xff]  ;;  %v6406_v48 = vrot.slane %v6317_v38, 7 }
 0x403   : > { %v5441_v4 = vmax.f32 %v5313_v1, %v5011_v5  ;;  %v14138_v1 = vmax.f32 %v18526_v23, %v18525_v26  ;;  %v18527_v7 = vld [vmem:[#allocation147_spill] sm:$0xff]  ;;  %v18534_v35 = vld [vmem:[#allocation113_spill] sm:$0xff]  ;;  %v6141_v34 = vrot.slane %v6069_v47, 6  ;;  %v5780_v38 = vsel %vm5731_vm5, %v5779_v28, %v5682_v17 }
 0x404   : > { %v14132_v11 = vpop.permute.xlu1 %3418  ;;  %v14134_v14 = vpop.permute.xlu0 %3362  ;;  %v18528_v5 = vld [vmem:[#allocation71_spill] sm:$0xff]  ;;  %v14151_v26 = vmax.f32 %v18534_v35, %v18533_v19  ;;  %v3010_v28 = vmax.f32 %v13411_v53, %v13390_v37 }
 0x405   : > { %18523 = vst [vmem:[#allocation16_spill] sm:$0xff] %v14132_v11  ;;  %18524 = vst [vmem:[#allocation234_spill] sm:$0xff] %v14134_v14  ;;  %v14142_v51 = vmax.f32 %v18528_v5, %v18527_v7  ;;  %v5684_v45 = vld [vmem:[#allocation2 + $0x342] sm:$0x1]  ;;  %v5642_v61 = vld [vmem:[#allocation2 + $0x300] sm:$0x1] }
 0x406   : > { %5570 = vst.msk [vmem:[#allocation2 + $0x280] sm:$0xff] %vm5489_vm4, %v5441_v4  ;;  %v6292_v11 = vld [vmem:[#allocation2 + $0x6] sm:$0x1]  ;;  %18535 = vst [vmem:[#allocation91_spill] sm:$0xff] %v14151_v26  ;;  %2690 = vrot.lane.b32.xlu1 %v18536_v22, %s10014_s23  ;;  %3300 = vrot.lane.b32.xlu0 %v1765_v60, %s10014_s23  ;;  %v5920_v4 = vrot.slane %v5620_v9, 6  ;;  %v5961_v9 = vsel %vm5731_vm5, %v5960_v8, %v5642_v61  ;;  %v18539_v61 = vmax.f32 %v14062_v46, 0.0 }
 0x407   : > { %18529 = vst [vmem:[#allocation144_spill] sm:$0xff] %v14142_v51  ;;  %v6294_v14 = vld [vmem:[#allocation2 + $0x46] sm:$0x1]  ;;  %v5644_v7 = vld [vmem:[#allocation2 + $0x340] sm:$0x1]  ;;  %v5781_v51 = vrot.slane %v5684_v45, 6  ;;  %v6365_v47 = vsel %vm5731_vm5, %v6364_v16, %v6292_v11 }
 0x408   : > { %v18530_v32 = vld [vmem:[#allocation163_spill] sm:$0xff]  ;;  %v14160_v26 = vpop.permute.xlu1 %3426  ;;  %v3991_v6 = vpop.permute.xlu0 %3990  ;;  %v6366_v31 = vrot.slane %v6294_v14, 6  ;;  %v18538_v45 = vld [vmem:[#allocation224_spill] sm:$0xff]  ;;  %v5922_v14 = vrot.slane %v5621_v49, 5 }
 0x409   : > { %v14147_v27 = vmax.f32 %v18531_v41, %v18530_v32  ;;  %v6091_v40 = vld [vmem:[#allocation2 + $0x304] sm:$0x1]  ;;  %v5919_v32 = vsel %vm5731_vm5, %v5918_v21, %v5618_v54  ;;  %v6316_v19 = vld [vmem:[#allocation2 + $0x306] sm:$0x1]  ;;  %v5622_v17 = vld [vmem:[#allocation2 + $0x80] sm:$0x1]  ;;  %v14172_v29 = vadd.f32 %v18538_v45, %v10331_v36  ;;  %v14186_v11 = vsel %vm4206_vm1, %v3010_v28, %v3991_v6 }
 0x40a   : > { %v6093_v63 = vld [vmem:[#allocation2 + $0x344] sm:$0x1]  ;;  %v5962_v54 = vrot.slane %v5644_v7, 6  ;;  %v14168_v21 = vsel %vm5731_vm5, %v6406_v48, %v6316_v19  ;;  %3308 = vrot.lane.b32.xlu1 %v18539_v61, %s10014_s23  ;;  %2746 = vrot.lane.b32.xlu0 %v18518_v25, %s10014_s23  ;;  %v5921_v37 = vsel %vm5734_vm6, %v5920_v4, %v5919_v32  ;;  %v6296_v48 = vld [vmem:[#allocation2 + $0x86] sm:$0x1]  ;;  %18540 = vst [vmem:[#allocation24_spill] sm:$0xff] %v14186_v11 }
 0x40b   : > { %18532 = vst [vmem:[#allocation168_spill] sm:$0xff] %v14147_v27  ;;  %v6140_v27 = vsel %vm5731_vm5, %v6139_v18, %v6067_v30  ;;  %v6070_v60 = vld [vmem:[#allocation2 + $0x64] sm:$0x1]  ;;  %v6182_v30 = vsel %vm5731_vm5, %v6181_v42, %v6091_v40  ;;  %v6295_v18 = vld [vmem:[#allocation2 + $0x66] sm:$0x1]  ;;  %18537 = vst [vmem:[#allocation219_spill] sm:$0xff] %v14168_v21  ;;  %v3011_v42 = vmax.f32 %v13423_v56, %v13392_v62 }
 0x40c   : > { %v14180_v53 = vld [vmem:[#allocation2 + $0x84] sm:$0x1]  ;;  %v6142_v16 = vsel %vm5734_vm6, %v6141_v34, %v6140_v27  ;;  %v6183_v8 = vrot.slane %v6093_v63, 6  ;;  %v6143_v46 = vrot.slane %v6070_v60, 5  ;;  %v3993_v7 = vpop.permute.xlu1 %3992  ;;  %v14188_v40 = vpop.permute.xlu0 %3370  ;;  %v14191_v25 = vsel %vm5734_vm6, %v5781_v51, %v5780_v38  ;;  %v5623_v63 = vld [vmem:[#allocation2 + $0xa0] sm:$0x1] }
 0x40d   : > { %v5924_v4 = vrot.slane %v5622_v17, 4  ;;  %v6367_v32 = vsel %vm5734_vm6, %v6366_v31, %v6365_v47  ;;  %v6368_v34 = vrot.slane %v6295_v18, 5  ;;  %v14195_v27 = vsel %vm4206_vm1, %v3011_v42, %v3993_v7  ;;  %v6072_v56 = vld [vmem:[#allocation2 + $0xa4] sm:$0x1]  ;;  %v18542_v19 = vld [vmem:[#allocation64_spill] sm:$0xff]  ;;  %v18544_v47 = vld [vmem:[#allocation198_spill] sm:$0xff] }
 0x40e   : > { %18541 = vst [vmem:[#allocation36_spill] sm:$0xff] %v14195_v27  ;;  %v14198_v62 = vsel %vm5734_vm6, %v5962_v54, %v5961_v9  ;;  %v6145_v6 = vrot.slane %v14180_v53, 4  ;;  %v6370_v49 = vrot.slane %v6296_v48, 4  ;;  %v14203_v60 = vmax.f32 %v18521_v43, %v18542_v19  ;;  %2698 = vrot.lane.b32.xlu1 %v18544_v47, %s10014_s23  ;;  %v18545_v9 = vld [vmem:[#allocation232_spill] sm:$0xff]  ;;  %v6297_v28 = vld [vmem:[#allocation2 + $0xa6] sm:$0x1] }
 0x40f   : > { %v17638_v51 = vrot.slane %v14186_v11, 1  ;;  %v17639_v31 = vrot.slane %v14195_v27, 1  ;;  %2674 = vrot.lane.b32.xlu0 %v18545_v9, %s10014_s23  ;;  %v18546_v17 = vld [vmem:[#allocation231_spill] sm:$0xff]  ;;  %v5923_v43 = vsel %vm5737_vm7, %v5922_v14, %v5921_v37  ;;  %v6144_v61 = vsel %vm5737_vm7, %v6143_v46, %v6142_v16 }
 0x410   : > { %18543 = vst [vmem:[#allocation176_spill] sm:$0xff] %v14203_v60  ;;  %v14214_v54 = vadd.f32 %v18546_v17, %v10331_v36  ;;  %v5624_v18 = vld [vmem:[#allocation2 + $0xc0] sm:$0x1]  ;;  %v6073_v45 = vld [vmem:[#allocation2 + $0xc4] sm:$0x1]  ;;  %v14219_v53 = vsel %vm5734_vm6, %v6183_v8, %v6182_v30  ;;  %v3636_v42 = vmax.f32 %v14203_v60, %v13665_v52  ;;  %v14229_v17 = vpop.permute.xlu1 %2554  ;;  %v14231_v37 = vpop.permute.xlu0 %3434  ;;  %v5926_v14 = vrot.slane %v5623_v63, 3 }
 0x411   : > { %v6298_v48 = vld [vmem:[#allocation2 + $0xc6] sm:$0x1]  ;;  %v4634_v19 = vsel %vm4463_vm2, %v17638_v51, %v17639_v31  ;;  %v5625_v16 = vld [vmem:[#allocation2 + $0xe0] sm:$0x1]  ;;  %v6074_v30 = vld [vmem:[#allocation2 + $0xe4] sm:$0x1]  ;;  %v6369_v52 = vsel %vm5737_vm7, %v6368_v34, %v6367_v32  ;;  %v5925_v63 = vsel %vm5740_vm8, %v5924_v4, %v5923_v43 }
 0x412   : > { %18547 = vst [vmem:[#allocation194_spill] sm:$0xff] %v14214_v54  ;;  %v5317_v8 = vmax.f32 %v14186_v11, %v4634_v19  ;;  %v6147_v46 = vrot.slane %v6072_v56, 3  ;;  %v6299_v38 = vld [vmem:[#allocation2 + $0xe6] sm:$0x1]  ;;  %v6372_v7 = vrot.slane %v6297_v28, 3  ;;  %v18548_v60 = vrot.slane %v14195_v27, 2  ;;  %3962 = vrot.lane.b32.xlu1 %v3636_v42, %s10013_s22 }
 0x413   : > { %v18549_v36 = vrot.slane %v14186_v11, 2  ;;  %2754 = vrot.lane.b32.xlu0 %v18526_v23, %s10014_s23  ;;  %v5928_v31 = vrot.slane %v5624_v18, 2  ;;  %v5627_v19 = vld [vmem:[#allocation2 + $0x120] sm:$0x1]  ;;  %v6149_v56 = vrot.slane %v6073_v45, 2  ;;  %v5930_v32 = vrot.slane %v5625_v16, 1 }
 0x414   : > { %v6076_v21 = vld [vmem:[#allocation2 + $0x124] sm:$0x1]  ;;  %v6151_v34 = vrot.slane %v6074_v30, 1  ;;  %v6374_v28 = vrot.slane %v6298_v48, 2  ;;  %v14244_v27 = vpop.permute.xlu1 %2618  ;;  %v14246_v11 = vpop.permute.xlu0 %2562  ;;  %v6371_v23 = vsel %vm5740_vm8, %v6370_v49, %v6369_v52  ;;  %v6376_v42 = vrot.slane %v6299_v38, 1  ;;  %v18550_v30 = vld [vmem:[#allocation193_spill] sm:$0xff] }
 0x415   : > { %v5019_v51 = vsel %vm4848_vm3, %v18549_v36, %v18548_v60  ;;  %v5927_v36 = vsel %vm5743_vm9, %v5926_v14, %v5925_v63  ;;  %v6146_v60 = vsel %vm5740_vm8, %v6145_v6, %v6144_v61  ;;  %v6301_v4 = vld [vmem:[#allocation2 + $0x126] sm:$0x1]  ;;  %v5628_v18 = vld [vmem:[#allocation2 + $0x140] sm:$0x1]  ;;  %v5932_v43 = vrot.slane %v5627_v19, 7  ;;  %v18551_v6 = vld [vmem:[#allocation210_spill] sm:$0xff] }
 0x416   : > { %v5445_v54 = vmax.f32 %v5317_v8, %v5019_v51  ;;  %v6148_v51 = vsel %vm5743_vm9, %v6147_v46, %v6146_v60  ;;  %v6077_v45 = vld [vmem:[#allocation2 + $0x144] sm:$0x1]  ;;  %v6153_v48 = vrot.slane %v6076_v21, 7  ;;  %v6373_v16 = vsel %vm5743_vm9, %v6372_v7, %v6371_v23  ;;  %2738 = vrot.lane.b32.xlu1 %v18516_v33, %s10014_s23  ;;  %v5629_v38 = vld [vmem:[#allocation2 + $0x160] sm:$0x1]  ;;  %v18552_v23 = vld [vmem:[#allocation174_spill] sm:$0xff] }
 0x417   : > { %v14256_v8 = vmax.f32 %v18536_v22, %v18550_v30  ;;  %2706 = vrot.lane.b32.xlu0 %v18551_v6, %s10014_s23  ;;  %v5929_v49 = vsel %vm5746_vm10, %v5928_v31, %v5927_v36  ;;  %v6078_v61 = vld [vmem:[#allocation2 + $0x164] sm:$0x1]  ;;  %v6302_v14 = vld [vmem:[#allocation2 + $0x146] sm:$0x1]  ;;  %v5626_v7 = vld [vmem:[#allocation2 + $0x100] sm:$0x1]  ;;  %v6375_v46 = vsel %vm5746_vm10, %v6374_v28, %v6373_v16 }
 0x418   : > { %5574 = vst.msk [vmem:[#allocation2 + $0x2a0] sm:$0xff] %vm5489_vm4, %v5445_v54  ;;  %v6150_v54 = vsel %vm5746_vm10, %v6149_v56, %v6148_v51  ;;  %v14265_v21 = vsel %vm5749_vm11, %v5930_v32, %v5929_v49  ;;  %v6378_v33 = vrot.slane %v6301_v4, 7  ;;  %v14273_v63 = vpop.permute.xlu1 %2570  ;;  %v3999_v31 = vpop.permute.xlu0 %3998  ;;  %v5934_v19 = vrot.slane %v5628_v18, 6  ;;  %v6075_v56 = vld [vmem:[#allocation2 + $0x104] sm:$0x1] }
 0x419   : > { %v14268_v22 = vsel %vm5749_vm11, %v6151_v34, %v6150_v54  ;;  %v3640_v52 = vmax.f32 %v14256_v8, %v13770_v0  ;;  %v6155_v36 = vrot.slane %v6077_v45, 6  ;;  %v14276_v60 = vsel %vm5749_vm11, %v6376_v42, %v6375_v46  ;;  %v6303_v32 = vld [vmem:[#allocation2 + $0x166] sm:$0x1]  ;;  %v5630_v51 = vld [vmem:[#allocation2 + $0x180] sm:$0x1]  ;;  %v18553_v0 = vld [vmem:[#allocation244_spill] sm:$0xff] }
 0x41a   : > { %v3014_v34 = vmax.f32 %v18552_v23, %v13455_v39  ;;  %v5936_v30 = vrot.slane %v5629_v38, 5  ;;  %v6157_v28 = vrot.slane %v6078_v61, 5  ;;  %v6380_v4 = vrot.slane %v6302_v14, 6  ;;  %v6300_v39 = vld [vmem:[#allocation2 + $0x106] sm:$0x1]  ;;  %v18554_v45 = vld [vmem:[#allocation108_spill] sm:$0xff] }
 0x41b   : > { %v14283_v49 = vmax.f32 %v18545_v9, %v18553_v0  ;;  %2762 = vrot.lane.b32.xlu0 %v18528_v5, %s10014_s23  ;;  %3970 = vrot.lane.b32.xlu1 %v3640_v52, %s10013_s22  ;;  %v5933_v42 = vsel %vm5731_vm5, %v5932_v43, %v5626_v7  ;;  %v6154_v18 = vsel %vm5731_vm5, %v6153_v48, %v6075_v56  ;;  %v18555_v38 = vld [vmem:[#allocation182_spill] sm:$0xff]  ;;  %v6079_v14 = vld [vmem:[#allocation2 + $0x184] sm:$0x1]  ;;  %v6382_v46 = vrot.slane %v6303_v32, 5  ;;  %v6304_v56 = vld [vmem:[#allocation2 + $0x186] sm:$0x1] }
 0x41c   : > { %v3015_v54 = vmax.f32 %v18555_v38, %v18554_v45  ;;  %v14293_v61 = vsel %vm4206_vm1, %v3014_v34, %v3999_v31  ;;  %v6379_v9 = vsel %vm5731_vm5, %v6378_v33, %v6300_v39  ;;  %v3668_v5 = vmax.f32 %v14115_v20, %v13768_v50  ;;  %v4001_v23 = vpop.permute.xlu1 %4000  ;;  %v14298_v52 = vpop.permute.xlu0 %2546  ;;  %v5631_v31 = vld [vmem:[#allocation2 + $0x1a0] sm:$0x1] }
 0x41d   : > { %18556 = vst [vmem:[#allocation103_spill] sm:$0xff] %v14293_v61  ;;  %v5935_v43 = vsel %vm5734_vm6, %v5934_v19, %v5933_v42  ;;  %v5938_v48 = vrot.slane %v5630_v51, 4  ;;  %v6156_v7 = vsel %vm5734_vm6, %v6155_v36, %v6154_v18  ;;  %v6381_v32 = vsel %vm5734_vm6, %v6380_v4, %v6379_v9  ;;  %v18558_v36 = vld [vmem:[#allocation243_spill] sm:$0xff]  ;;  %v18559_v18 = vld [vmem:[#allocation86_spill] sm:$0xff] }
 0x41e   : > { %v14303_v0 = vsel %vm4206_vm1, %v3015_v54, %v4001_v23  ;;  %v5937_v34 = vsel %vm5737_vm7, %v5936_v30, %v5935_v43  ;;  %v6158_v33 = vsel %vm5737_vm7, %v6157_v28, %v6156_v7  ;;  %v17646_v50 = vrot.slane %v14293_v61, 1  ;;  %v6080_v51 = vld [vmem:[#allocation2 + $0x1a4] sm:$0x1]  ;;  %v18560_v28 = vld [vmem:[#allocation25_spill] sm:$0xff]  ;;  %v5635_v16 = vld [vmem:[#allocation2 + $0x220] sm:$0x1] }
 0x41f   : > { %18557 = vst [vmem:[#allocation102_spill] sm:$0xff] %v14303_v0  ;;  %v17648_v39 = vrot.slane %v14303_v0, 1  ;;  %v17647_v19 = vrot.slane %v14303_v0, 2  ;;  %4026 = vrot.lane.b32.xlu0 %v3668_v5, %s10013_s22  ;;  %2714 = vrot.lane.b32.xlu1 %v18558_v36, %s10014_s23  ;;  %v6159_v42 = vrot.slane %v6079_v14, 4  ;;  %v14316_v30 = vmax.f32 %v18544_v47, %v18559_v18 }
 0x420   : > { %v2932_v4 = vmax.f32 %v18560_v28, %v14229_v17  ;;  %v6383_v45 = vsel %vm5737_vm7, %v6382_v46, %v6381_v32  ;;  %v6384_v38 = vrot.slane %v6304_v56, 4  ;;  %v3632_v54 = vmax.f32 %v14283_v49, %v13846_v55  ;;  %v3835_v5 = vpop.permute.xlu1 %3834  ;;  %v14329_v47 = vpop.permute.xlu0 %2626  ;;  %v6305_v17 = vld [vmem:[#allocation2 + $0x1a6] sm:$0x1]  ;;  %v5632_v55 = vld [vmem:[#allocation2 + $0x1c0] sm:$0x1] }
 0x421   : > { %v17645_v9 = vrot.slane %v14293_v61, 2  ;;  %v4642_v14 = vsel %vm4463_vm2, %v17646_v50, %v17648_v39  ;;  %v5939_v23 = vsel %vm5740_vm8, %v5938_v48, %v5937_v34  ;;  %v5940_v7 = vrot.slane %v5631_v31, 3  ;;  %v5685_v48 = vld [vmem:[#allocation2 + $0x362] sm:$0x1]  ;;  %v5633_v34 = vld [vmem:[#allocation2 + $0x1e0] sm:$0x1] }
 0x422   : > { %v5321_v46 = vmax.f32 %v14293_v61, %v4642_v14  ;;  %v14334_v43 = vsel %vm4206_vm1, %v2932_v4, %v3835_v5  ;;  %v6161_v56 = vrot.slane %v6080_v51, 3  ;;  %v6160_v31 = vsel %vm5740_vm8, %v6159_v42, %v6158_v33  ;;  %v18562_v51 = vld [vmem:[#allocation159_spill] sm:$0xff] }
 0x423   : > { %18561 = vst [vmem:[#allocation156_spill] sm:$0xff] %v14334_v43  ;;  %v5027_v32 = vsel %vm4848_vm3, %v17645_v9, %v17647_v19  ;;  %v17649_v18 = vrot.slane %v14334_v43, 1  ;;  %2770 = vrot.lane.b32.xlu0 %v18531_v41, %s10014_s23  ;;  %3954 = vrot.lane.b32.xlu1 %v3632_v54, %s10013_s22  ;;  %v14349_v4 = vmax.f32 %v18551_v6, %v18562_v51  ;;  %v5645_v5 = vld [vmem:[#allocation2 + $0x360] sm:$0x1]  ;;  %v6386_v50 = vrot.slane %v6305_v17, 3  ;;  %v18563_v54 = vld [vmem:[#allocation92_spill] sm:$0xff] }
 0x424   : > { %v5449_v14 = vmax.f32 %v5321_v46, %v5027_v32  ;;  %v6385_v9 = vsel %vm5740_vm8, %v6384_v38, %v6383_v45  ;;  %v3644_v19 = vmax.f32 %v14316_v30, %v13844_v3  ;;  %v3672_v41 = vmax.f32 %v14138_v1, %v13872_v59  ;;  %v14361_v42 = vpop.permute.xlu1 %2610  ;;  %v14363_v6 = vpop.permute.xlu0 %2578  ;;  %v5675_v46 = vld [vmem:[#allocation2 + $0x222] sm:$0x1]  ;;  %v18565_v38 = vld [vmem:[#allocation89_spill] sm:$0xff]  ;;  %v5646_v28 = vld [vmem:[#allocation2 + $0x380] sm:$0x1] }
 0x425   : > { %v18564_v39 = vrot.slane %v18563_v54, 1  ;;  %v5686_v32 = vld [vmem:[#allocation2 + $0x382] sm:$0x1]  ;;  %v5942_v45 = vrot.slane %v5632_v55, 2  ;;  %v14367_v17 = vmax.f32 %v18558_v36, %v18565_v38  ;;  %v5783_v59 = vrot.slane %v5685_v48, 5 }
 0x426   : > { %5578 = vst.msk [vmem:[#allocation2 + $0x2c0] sm:$0xff] %vm5489_vm4, %v5449_v14  ;;  %v5944_v51 = vrot.slane %v5633_v34, 1  ;;  %v5941_v36 = vsel %vm5743_vm9, %v5940_v7, %v5939_v23  ;;  %v5964_v55 = vrot.slane %v5645_v5, 5  ;;  %v14379_v14 = vld [vmem:[#allocation2 + $0x1c4] sm:$0x1]  ;;  %v14382_v48 = vsel %vm5743_vm9, %v6161_v56, %v6160_v31  ;;  %v6102_v56 = vld [vmem:[%s17211_s3 + $0x98] sm:$0xff] }
 0x427   : > { %v4476_v33 = vsel %vm4463_vm2, %v18564_v39, %v17649_v18  ;;  %18566 = vst [vmem:[#allocation185_spill] sm:$0xff] %v14367_v17  ;;  %v18567_v39 = vrot.slane %v14334_v43, 2  ;;  %v18568_v18 = vrot.slane %v18563_v54, 2  ;;  %3978 = vrot.lane.b32.xlu0 %v3644_v19, %s10013_s22  ;;  %4034 = vrot.lane.b32.xlu1 %v3672_v41, %s10013_s22  ;;  %v5785_v38 = vrot.slane %v5686_v32, 4  ;;  %v14384_v43 = vld [vmem:[#allocation2 + $0x1e4] sm:$0x1] }
 0x428   : > { %v5238_v3 = vmax.f32 %v18563_v54, %v4476_v33  ;;  %v5765_v33 = vrot.slane %v5675_v46, 7  ;;  %v14387_v54 = vsel %vm5743_vm9, %v6386_v50, %v6385_v9  ;;  %v3018_v19 = vmax.f32 %v13542_v2, %v13604_v10  ;;  %v14391_v41 = vpop.permute.xlu0 %2634  ;;  %v18569_v50 = vld [vmem:[#allocation13_spill] sm:$0xff] }
 0x429   : > { %v4861_v61 = vsel %vm4848_vm3, %v18568_v18, %v18567_v39  ;;  %v4007_v18 = vpop.permute.xlu1 %4006  ;;  %v5943_v23 = vsel %vm5746_vm10, %v5942_v45, %v5941_v36  ;;  %v5946_v7 = vrot.slane %v5635_v16, 7  ;;  %v5966_v31 = vrot.slane %v5646_v28, 4  ;;  %v18570_v9 = vld [vmem:[#allocation137_spill] sm:$0xff]  ;;  %v5674_v28 = vld [vmem:[#allocation2 + $0x202] sm:$0x1] }
 0x42a   : > { %v5366_v34 = vmax.f32 %v5238_v3, %v4861_v61  ;;  %v6101_v61 = vld [vmem:[%s17211_s3 + $0x90] sm:$0xff]  ;;  %v14402_v5 = vmax.f32 %v18570_v9, %v18569_v50  ;;  %v5784_v2 = vsel %vm5737_vm7, %v5783_v59, %v14191_v25  ;;  %v14408_v10 = vsel %vm5749_vm11, %v5944_v51, %v5943_v23  ;;  %v5676_v45 = vld [vmem:[#allocation2 + $0x242] sm:$0x1]  ;;  %v5634_v51 = vld [vmem:[#allocation2 + $0x200] sm:$0x1] }
 0x42b   : > { %v3019_v46 = vmax.f32 %v13562_v58, %v13636_v12  ;;  %v14414_v32 = vsel %vm4206_vm1, %v3018_v19, %v4007_v18  ;;  %2722 = vrot.lane.b32.xlu0 %v18570_v9, %s10014_s23  ;;  %2778 = vrot.lane.b32.xlu1 %v18534_v35, %s10014_s23  ;;  %v5965_v25 = vsel %vm5737_vm7, %v5964_v55, %v14198_v62  ;;  %v5687_v55 = vld [vmem:[#allocation2 + $0x3a2] sm:$0x1]  ;;  %v5636_v19 = vld [vmem:[#allocation2 + $0x240] sm:$0x1]  ;;  %v18574_v50 = vld [vmem:[#allocation189_spill] sm:$0xff] }
 0x42c   : > { %5495 = vst.msk [vmem:[#allocation2 + $0x28] sm:$0xff] %vm5489_vm4, %v5366_v34  ;;  %18571 = vst [vmem:[#allocation118_spill] sm:$0xff] %v14414_v32  ;;  %v2936_v59 = vmax.f32 %v13567_v57, %v14246_v11  ;;  %v5766_v58 = vsel %vm5731_vm5, %v5765_v33, %v5674_v28  ;;  %v5786_v12 = vsel %vm5740_vm8, %v5785_v38, %v5784_v2  ;;  %v4009_v62 = vpop.permute.xlu0 %4008  ;;  %v5647_v57 = vld [vmem:[#allocation2 + $0x3a0] sm:$0x1]  ;;  %v17655_v33 = vrot.slane %v14414_v32, 1 }
 0x42d   : > { %v14427_v39 = vpack.c.bf16 %v6102_v56, %v6101_v61  ;;  %v3648_v35 = vmax.f32 %v14349_v4, %v13922_v44  ;;  %v3664_v36 = vmax.f32 %v14108_v13, %v13952_v24  ;;  %v3843_v34 = vpop.permute.xlu1 %3842  ;;  %v5947_v18 = vsel %vm5731_vm5, %v5946_v7, %v5634_v51 }
 0x42e   : > { %v5967_v11 = vsel %vm5740_vm8, %v5966_v31, %v5965_v25  ;;  %v14437_v38 = vsel %vm4206_vm1, %v2936_v59, %v3843_v34  ;;  %v14440_v23 = vsel %vm4206_vm1, %v3019_v46, %v4009_v62  ;;  %v5767_v44 = vrot.slane %v5676_v45, 6  ;;  %v5688_v31 = vld [vmem:[#allocation2 + $0x3c2] sm:$0x1]  ;;  %v18575_v45 = vld [vmem:[#allocation162_spill] sm:$0xff]  ;;  %v18576_v25 = vld [vmem:[#allocation144_spill] sm:$0xff] }
 0x42f   : > { %18572 = vst [vmem:[#allocation10_spill] sm:$0xff] %v14437_v38  ;;  %18573 = vst [vmem:[#allocation192_spill] sm:$0xff] %v14440_v23  ;;  %v17654_v24 = vrot.slane %v14437_v38, 1  ;;  %v17656_v61 = vrot.slane %v14437_v38, 2  ;;  %v17657_v56 = vrot.slane %v14440_v23, 1  ;;  %v17659_v7 = vrot.slane %v14440_v23, 2  ;;  %3986 = vrot.lane.b32.xlu0 %v3648_v35, %s10013_s22  ;;  %4018 = vrot.lane.b32.xlu1 %v3664_v36, %s10013_s22 }
 0x430   : > { %v2964_v9 = vmax.f32 %v18574_v50, %v14244_v27  ;;  %v5787_v2 = vrot.slane %v5687_v55, 3  ;;  %v5948_v46 = vrot.slane %v5636_v19, 6  ;;  %v5968_v28 = vrot.slane %v5647_v57, 3  ;;  %v18577_v34 = vld [vmem:[#allocation111_spill] sm:$0xff]  ;;  %v3899_v55 = vpop.permute.xlu0 %3898 }
 0x431   : > { %v3676_v59 = vmax.f32 %v18576_v25, %v18575_v45  ;;  %v17658_v51 = vrot.slane %v14414_v32, 2  ;;  %v18578_v62 = vrot.slane %v18577_v34, 1  ;;  %v4650_v27 = vsel %vm4463_vm2, %v17655_v33, %v17657_v56  ;;  %v14463_v36 = vpop.permute.xlu1 %2586 }
 0x432   : > { %v5325_v57 = vmax.f32 %v14414_v32, %v4650_v27  ;;  %v14468_v50 = vsel %vm4206_vm1, %v2964_v9, %v3899_v55  ;;  %v5789_v45 = vrot.slane %v5688_v31, 2  ;;  %v18581_v31 = vld [vmem:[#allocation146_spill] sm:$0xff]  ;;  %v14485_v9 = vld [vmem:[#allocation2 + $0x3c0] sm:$0x1]  ;;  %v5768_v56 = vsel %vm5734_vm6, %v5767_v44, %v5766_v58  ;;  %v5677_v27 = vld [vmem:[#allocation2 + $0x262] sm:$0x1] }
 0x433   : > { %v4484_v35 = vsel %vm4463_vm2, %v18578_v62, %v17654_v24  ;;  %18579 = vst [vmem:[#allocation65_spill] sm:$0xff] %v14468_v50  ;;  %v18580_v62 = vrot.slane %v18577_v34, 2  ;;  %v5035_v33 = vsel %vm4848_vm3, %v17658_v51, %v17659_v7  ;;  %4042 = vrot.lane.b32.xlu0 %v3676_v59, %s10013_s22  ;;  %2730 = vrot.lane.b32.xlu1 %v18581_v31, %s10014_s23  ;;  %v18583_v51 = vld [vmem:[#allocation221_spill] sm:$0xff]  ;;  %v5678_v44 = vld [vmem:[#allocation2 + $0x282] sm:$0x1] }
 0x434   : > { %v5242_v19 = vmax.f32 %v18577_v34, %v4484_v35  ;;  %v17664_v35 = vrot.slane %v14468_v50, 1  ;;  %v18582_v34 = vld [vmem:[#allocation205_spill] sm:$0xff]  ;;  %v18584_v7 = vrot.slane %v18583_v51, 1  ;;  %v14495_v59 = vpop.permute.xlu0 %2642  ;;  %v5788_v32 = vsel %vm5743_vm9, %v5787_v2, %v5786_v12 }
 0x435   : > { %v4869_v24 = vsel %vm4848_vm3, %v18580_v62, %v17656_v61  ;;  %v2928_v55 = vmax.f32 %v18582_v34, %v14298_v52  ;;  %v5453_v61 = vmax.f32 %v5325_v57, %v5035_v33  ;;  %v3827_v16 = vpop.permute.xlu1 %3826  ;;  %v14499_v38 = vsel %vm5734_vm6, %v5948_v46, %v5947_v18  ;;  %v18586_v18 = vld [vmem:[#allocation229_spill] sm:$0xff]  ;;  %v18592_v57 = vld [vmem:[#allocation196_spill] sm:$0xff] }
 0x436   : > { %v5370_v62 = vmax.f32 %v5242_v19, %v4869_v24  ;;  %v4540_v3 = vsel %vm4463_vm2, %v18584_v7, %v17664_v35  ;;  %v14502_v52 = vsel %vm5743_vm9, %v5968_v28, %v5967_v11  ;;  %v5679_v24 = vld [vmem:[#allocation2 + $0x2a2] sm:$0x1]  ;;  %v14511_v7 = vsel %vm5746_vm10, %v5789_v45, %v5788_v32  ;;  %v18589_v28 = vld [vmem:[#allocation206_spill] sm:$0xff]  ;;  %v18590_v32 = vld [vmem:[#allocation212_spill] sm:$0xff] }
 0x437   : > { %5582 = vst.msk [vmem:[#allocation2 + $0x2e0] sm:$0xff] %vm5489_vm4, %v5453_v61  ;;  %v5270_v58 = vmax.f32 %v18583_v51, %v4540_v3  ;;  %v14508_v33 = vsel %vm4206_vm1, %v2928_v55, %v3827_v16  ;;  %v3652_v11 = vmax.f32 %v14367_v17, %v18586_v18  ;;  %v18587_v2 = vrot.slane %v14468_v50, 2  ;;  %2786 = vrot.lane.b32.xlu0 %v18589_v28, %s10014_s23  ;;  %v18593_v34 = vld [vmem:[#allocation201_spill] sm:$0xff]  ;;  %v18594_v18 = vld [vmem:[#allocation215_spill] sm:$0xff] }
 0x438   : > { %5499 = vst.msk [vmem:[#allocation2 + $0x48] sm:$0xff] %vm5489_vm4, %v5370_v62  ;;  %18585 = vst [vmem:[#allocation29_spill] sm:$0xff] %v14508_v33  ;;  %v18588_v46 = vrot.slane %v18583_v51, 2  ;;  %v17671_v3 = vrot.slane %v14508_v33, 1  ;;  %v18591_v19 = vmax.f32 %v18590_v32, 0.0  ;;  %v2940_v45 = vmax.f32 %v18592_v57, %v14273_v63  ;;  %v18596_v35 = vld [vmem:[#allocation69_spill] sm:$0xff]  ;;  %v3851_v32 = vpop.permute.xlu0 %3850 }
 0x439   : > { %v2968_v55 = vmax.f32 %v18593_v34, %v14329_v47  ;;  %v5769_v62 = vrot.slane %v5677_v27, 5  ;;  %v18597_v12 = vrot.slane %v18596_v35, 1  ;;  %v3907_v50 = vpop.permute.xlu1 %3906  ;;  %v5771_v23 = vrot.slane %v5678_v44, 4  ;;  %v5637_v63 = vld [vmem:[#allocation2 + $0x260] sm:$0x1] }
 0x43a   : > { %v4925_v61 = vsel %vm4848_vm3, %v18588_v46, %v18587_v2  ;;  %3324 = vrot.lane.b32.xlu1 %v18591_v19, %s10014_s23  ;;  %v18595_v2 = vld [vmem:[#allocation168_spill] sm:$0xff]  ;;  %v5680_v19 = vld [vmem:[#allocation2 + $0x2c2] sm:$0x1]  ;;  %v5773_v0 = vrot.slane %v5679_v24, 3  ;;  %v18598_v47 = vrot.slane %v14508_v33, 2  ;;  %v18599_v27 = vrot.slane %v18596_v35, 2 }
 0x43b   : > { %v5398_v51 = vmax.f32 %v5270_v58, %v4925_v61  ;;  %v3680_v46 = vmax.f32 %v18595_v2, %v18594_v18  ;;  %v4468_v16 = vsel %vm4463_vm2, %v18597_v12, %v17671_v3  ;;  %v14547_v57 = vsel %vm4206_vm1, %v2968_v55, %v3907_v50  ;;  %v5689_v34 = vld [vmem:[#allocation2 + $0x3e2] sm:$0x1]  ;;  %3994 = vrot.lane.b32.xlu0 %v3652_v11, %s10013_s22  ;;  %v18604_v3 = vld [vmem:[#allocation230_spill] sm:$0xff] }
 0x43c   : > { %v4853_v58 = vsel %vm4848_vm3, %v18599_v27, %v18598_v47  ;;  %v5234_v61 = vmax.f32 %v18596_v35, %v4468_v16  ;;  %18600 = vst [vmem:[#allocation117_spill] sm:$0xff] %v14547_v57  ;;  %v14550_v12 = vsel %vm4206_vm1, %v2940_v45, %v3851_v32  ;;  %v17672_v44 = vrot.slane %v14547_v57, 1  ;;  %v5638_v35 = vld [vmem:[#allocation2 + $0x280] sm:$0x1] }
 0x43d   : > { %5527 = vst.msk [vmem:[#allocation2 + $0x128] sm:$0xff] %vm5489_vm4, %v5398_v51  ;;  %18601 = vst [vmem:[#allocation143_spill] sm:$0xff] %v14550_v12  ;;  %v17673_v51 = vrot.slane %v14550_v12, 1  ;;  %v5770_v50 = vsel %vm5737_vm7, %v5769_v62, %v5768_v56  ;;  %v5775_v55 = vrot.slane %v5680_v19, 2  ;;  %v5950_v45 = vrot.slane %v5637_v63, 5  ;;  %v18602_v32 = vld [vmem:[#allocation175_spill] sm:$0xff]  ;;  %v14569_v24 = vpop.permute.xlu1 %2650 }
 0x43e   : > { %4050 = vrot.lane.b32.xlu1 %v3680_v46, %s10013_s22  ;;  %v5362_v16 = vmax.f32 %v5234_v61, %v4853_v58  ;;  %v18603_v47 = vrot.slane %v18602_v32, 1  ;;  %v18605_v18 = vrot.slane %v18604_v3, 1  ;;  %v14571_v46 = vpop.permute.xlu0 %2594  ;;  %v5681_v58 = vld [vmem:[#allocation2 + $0x2e2] sm:$0x1]  ;;  %v5772_v56 = vsel %vm5740_vm8, %v5771_v23, %v5770_v50  ;;  %v5641_v17 = vld [vmem:[#allocation2 + $0x2e0] sm:$0x1] }
 0x43f   : > { %v5791_v62 = vrot.slane %v5689_v34, 1  ;;  %v5774_v61 = vsel %vm5743_vm9, %v5773_v0, %v5772_v56  ;;  %v18607_v33 = vrot.slane %v14547_v57, 2  ;;  %v18608_v2 = vrot.slane %v18602_v32, 2  ;;  %v18612_v0 = vld [vmem:[#allocation157_spill] sm:$0xff]  ;;  %v18614_v56 = vld [vmem:[#allocation186_spill] sm:$0xff] }
 0x440   : > { %v4548_v27 = vsel %vm4463_vm2, %v18603_v47, %v17672_v44  ;;  %v4492_v11 = vsel %vm4463_vm2, %v18605_v18, %v17673_v51  ;;  %5491 = vst.msk [vmem:[#allocation2 + $0x8] sm:$0xff] %vm5489_vm4, %v5362_v16  ;;  %v5639_v47 = vld [vmem:[#allocation2 + $0x2a0] sm:$0x1]  ;;  %v5952_v44 = vrot.slane %v5638_v35, 4  ;;  %v18609_v34 = vrot.slane %v14550_v12, 2  ;;  %v18615_v57 = vld [vmem:[#allocation234_spill] sm:$0xff] }
 0x441   : > { %v5274_v19 = vmax.f32 %v18602_v32, %v4548_v27  ;;  %v5246_v63 = vmax.f32 %v18604_v3, %v4492_v11  ;;  %v18606_v18 = vld [vmem:[#allocation135_spill] sm:$0xff]  ;;  %v4933_v23 = vsel %vm4848_vm3, %v18608_v2, %v18607_v33  ;;  %v18610_v16 = vrot.slane %v18604_v3, 2  ;;  %v18611_v27 = vld [vmem:[#allocation140_spill] sm:$0xff] }
 0x442   : > { %v2960_v51 = vmax.f32 %v18606_v18, %v14361_v42  ;;  %2794 = vrot.lane.b32.xlu0 %v18611_v27, %s10014_s23  ;;  %v18613_v35 = vmax.f32 %v18612_v0, 0.0  ;;  %v5777_v42 = vrot.slane %v5681_v58, 1  ;;  %v5640_v11 = vld [vmem:[#allocation2 + $0x2c0] sm:$0x1]  ;;  %v2944_v32 = vmax.f32 %v18614_v56, %v14363_v6  ;;  %v3859_v12 = vpop.permute.xlu0 %3858  ;;  %v18623_v56 = vld [vmem:[#allocation8_spill] sm:$0xff] }
 0x443   : > { %v4877_v50 = vsel %vm4848_vm3, %v18610_v16, %v18609_v34  ;;  %v5402_v18 = vmax.f32 %v5274_v19, %v4933_v23  ;;  %v5776_v2 = vsel %vm5746_vm10, %v5775_v55, %v5774_v61  ;;  %v3656_v3 = vmax.f32 %v14402_v5, %v18615_v57  ;;  %v3891_v34 = vpop.permute.xlu1 %3890 }
 0x444   : > { %3332 = vrot.lane.b32.xlu1 %v18613_v35, %s10014_s23  ;;  %v5374_v33 = vmax.f32 %v5246_v63, %v4877_v50  ;;  %v5778_v16 = vsel %vm5749_vm11, %v5777_v42, %v5776_v2  ;;  %v5951_v0 = vsel %vm5737_vm7, %v5950_v45, %v14499_v38  ;;  %v5954_v58 = vrot.slane %v5639_v47, 3  ;;  %v5649_v63 = vld [vmem:[#allocation2 + $0x3e0] sm:$0x1] }
 0x445   : > { %5531 = vst.msk [vmem:[#allocation2 + $0x148] sm:$0xff] %vm5489_vm4, %v5402_v18  ;;  %v14606_v6 = vsel %vm4206_vm1, %v2960_v51, %v3891_v34  ;;  %9350 = vmatprep.mubr.msk.f32.mxu1 %vm5489_vm4, %v5778_v16  ;;  %v14610_v57 = vsel %vm4206_vm1, %v2944_v32, %v3859_v12  ;;  %v5792_v55 = vsel %vm5749_vm11, %v5791_v62, %v14511_v7  ;;  %v5956_v19 = vrot.slane %v5640_v11, 2  ;;  %v18618_v51 = vld [vmem:[#allocation77_spill] sm:$0xff]  ;;  %v18620_v12 = vld [vmem:[#allocation16_spill] sm:$0xff]  ;;  %v18621_v50 = vld [vmem:[#allocation91_spill] sm:$0xff] }
 0x446   : > { %5503 = vst.msk [vmem:[#allocation2 + $0x68] sm:$0xff] %vm5489_vm4, %v5374_v33  ;;  %18616 = vst [vmem:[#allocation200_spill] sm:$0xff] %v14606_v6  ;;  %v17685_v38 = vrot.slane %v14606_v6, 1  ;;  %v17681_v45 = vrot.slane %v14606_v6, 2  ;;  %v17688_v61 = vrot.slane %v14610_v57, 1  ;;  %v17687_v47 = vrot.slane %v14610_v57, 2  ;;  %9351 = vmatmul.mubr.msk.f32.gmra.mrb[68].mxu1 %vm5489_vm4, %v5792_v55 }
 0x447   : > { %18617 = vst [vmem:[#allocation27_spill] sm:$0xff] %v14610_v57  ;;  %v18619_v23 = vmax.f32 %v18618_v51, 0.0  ;;  %v3684_v35 = vmax.f32 %v18621_v50, %v18620_v12  ;;  %v18622_v7 = vld [vmem:[#allocation39_spill] sm:$0xff]  ;;  %9369 = vmatprep.mubr.msk.f32.mxu1 %vm5489_vm4, %v14265_v21  ;;  %v5953_v42 = vsel %vm5740_vm8, %v5952_v44, %v5951_v0  ;;  %v5958_v11 = vrot.slane %v5641_v17, 1  ;;  %v18625_v33 = vld [vmem:[#allocation238_spill] sm:$0xff]  ;;  %v14640_v34 = vpop.permute.xlu1 %2602 }
 0x448   : > { %v2972_v62 = vmax.f32 %v18622_v7, %v14391_v41  ;;  %4002 = vrot.lane.b32.xlu1 %v3656_v3, %s10013_s22  ;;  %v18624_v32 = vrot.slane %v18623_v56, 1  ;;  %v18626_v2 = vrot.slane %v18625_v33, 1  ;;  %v3915_v3 = vpop.permute.xlu0 %3914  ;;  %v5955_v21 = vsel %vm5743_vm9, %v5954_v58, %v5953_v42  ;;  %v14643_v44 = vld [vmem:[#allocation2 + $0x346] sm:$0x1]  ;;  %v6104_v58 = vld [vmem:[%s17211_s3 + $0xa8] sm:$0xff] }
 0x449   : > { %3388 = vrot.lane.b32.xlu0 %v18619_v23, %s10014_s23  ;;  %v5972_v16 = vrot.slane %v5649_v63, 1  ;;  %v5957_v51 = vsel %vm5746_vm10, %v5956_v19, %v5955_v21  ;;  %v6103_v23 = vld [vmem:[%s17211_s3 + $0xa0] sm:$0xff]  ;;  %v18628_v12 = vrot.slane %v18623_v56, 2  ;;  %v18629_v19 = vrot.slane %v18625_v33, 2  ;;  %v6969_v6 = vld [vmem:[#allocation2 + $0x4c] sm:$0x1] }
 0x44a   : > { %v4532_v18 = vsel %vm4463_vm2, %v18624_v32, %v17685_v38  ;;  %v4500_v41 = vsel %vm4463_vm2, %v18626_v2, %v17688_v61  ;;  %v14648_v55 = vsel %vm4206_vm1, %v2972_v62, %v3915_v3  ;;  %v14657_v63 = vld [vmem:[#allocation2 + $0x1c6] sm:$0x1]  ;;  %9370 = vmatmul.mubr.msk.f32.vlgmr.msra.gmra.mrb[66].mxu1 %vm5489_vm4, %v14408_v10  ;;  %v14679_v21 = vld [vmem:[#allocation2 + $0x364] sm:$0x1] }
 0x44b   : > { %v5266_v17 = vmax.f32 %v18623_v56, %v4532_v18  ;;  %v5250_v0 = vmax.f32 %v18625_v33, %v4500_v41  ;;  %18627 = vst [vmem:[#allocation213_spill] sm:$0xff] %v14648_v55  ;;  %v4917_v7 = vsel %vm4848_vm3, %v18628_v12, %v17681_v45  ;;  %v4885_v62 = vsel %vm4848_vm3, %v18629_v19, %v17687_v47  ;;  %v18630_v56 = vld [vmem:[#allocation51_spill] sm:$0xff]  ;;  %v18631_v41 = vld [vmem:[#allocation153_spill] sm:$0xff] }
 0x44c   : > { %v17683_v42 = vrot.slane %v14648_v55, 1  ;;  %v17682_v32 = vrot.slane %v14648_v55, 2  ;;  %9716 = vmatpush3.bf16.msra.mxu1 %v18630_v56  ;;  %v18632_v3 = vmax.f32 %v18631_v41, 0.0  ;;  %v5959_v33 = vsel %vm5749_vm11, %v5958_v11, %v5957_v51  ;;  %v18633_v19 = vld [vmem:[#allocation151_spill] sm:$0xff]  ;;  %v18656_v47 = vld [vmem:[#allocation41_spill] sm:$0xff]  ;;  %v18659_v41 = vld [vmem:[#allocation136_spill] sm:$0xff] }
 0x44d   : > { %4058 = vrot.lane.b32.xlu0 %v3684_v35, %s10013_s22  ;;  %v5394_v18 = vmax.f32 %v5266_v17, %v4917_v7  ;;  %v5378_v2 = vmax.f32 %v5250_v0, %v4885_v62  ;;  %v18634_v10 = vrot.slane %v18633_v19, 1  ;;  %9372 = vmatprep.mubr.msk.f32.mxu1 %vm5489_vm4, %v5959_v33  ;;  %v14688_v17 = vpop.permute.xlu1 %3196  ;;  %v14691_v0 = vpop.permute.xlu0 %2658  ;;  %v18635_v11 = vrot.slane %v14485_v9, 2  ;;  %v6105_v62 = vld [vmem:[%s17211_s3 + $0xb0] sm:$0xff]  ;;  %v6084_v56 = vld [vmem:[#allocation2 + $0x224] sm:$0x1] }
 0x44e   : > { %3316 = vrot.lane.b32.xlu1 %v18632_v3, %s10014_s23  ;;  %9718 = vmatprep.subr.bf16.mxu1 %v14427_v39  ;;  %v9721_v7 = vpack.c.bf16 %v6104_v58, %v6103_v23  ;;  %v18636_v3 = vld [vmem:[#allocation165_spill] sm:$0xff]  ;;  %v6106_v23 = vld [vmem:[%s17211_s3 + $0xb8] sm:$0xff]  ;;  %v18637_v58 = vrot.slane %v14379_v14, 2  ;;  %v18642_v14 = vrot.slane %v14384_v43, 1  ;;  %v6167_v43 = vrot.slane %v6084_v56, 7  ;;  %v18821_v57 = vld [vmem:[#allocation59_spill] sm:$0xff] }
 0x44f   : > { %v4556_v35 = vsel %vm4463_vm2, %v18634_v10, %v17683_v42  ;;  %v5971_v51 = vsel %vm5746_vm10, %v18635_v11, %v14502_v52  ;;  %v14703_v33 = vmax.f32 %v18581_v31, %v18636_v3  ;;  %5523 = vst.msk [vmem:[#allocation2 + $0x108] sm:$0xff] %vm5489_vm4, %v5394_v18  ;;  %5507 = vst.msk [vmem:[#allocation2 + $0x88] sm:$0xff] %vm5489_vm4, %v5378_v2  ;;  %v6085_v11 = vld [vmem:[#allocation2 + $0x244] sm:$0x1]  ;;  %v18638_v3 = vld [vmem:[#allocation138_spill] sm:$0xff]  ;;  %v18639_v2 = vrot.slane %v18633_v19, 2 }
 0x450   : > { %v5278_v9 = vmax.f32 %v18633_v19, %v4556_v35  ;;  %v5973_v52 = vsel %vm5749_vm11, %v5972_v16, %v5971_v51  ;;  %v6164_v10 = vsel %vm5746_vm10, %v18637_v58, %v14382_v48  ;;  %v6086_v31 = vld [vmem:[#allocation2 + $0x264] sm:$0x1]  ;;  %v14718_v18 = vmax.f32 %v18589_v28, %v18638_v3  ;;  %v18640_v35 = vld [vmem:[#allocation237_spill] sm:$0xff]  ;;  %v18644_v19 = vld [vmem:[#allocation54_spill] sm:$0xff]  ;;  %9720 = vmatpush3.bf16.msra.mxu1 %v14427_v39 }
 0x451   : > { %v4941_v16 = vsel %vm4848_vm3, %v18639_v2, %v17682_v32  ;;  %9373 = vmatmul.mubr.msk.f32.gmra.mrb[68].mxu1 %vm5489_vm4, %v5973_v52  ;;  %v18641_v51 = vmax.f32 %v18640_v35, 0.0  ;;  %v14732_v48 = vsel %vm5749_vm11, %v18642_v14, %v6164_v10  ;;  %v6087_v58 = vld [vmem:[#allocation2 + $0x284] sm:$0x1]  ;;  %v6185_v28 = vrot.slane %v14679_v21, 5  ;;  %v3923_v21 = vpop.permute.xlu1 %3922  ;;  %9722 = vmatprep.subr.bf16.mxu1 %v9721_v7  ;;  %v6325_v39 = vld [vmem:[%s17211_s3 + $0xc8] sm:$0xff] }
 0x452   : > { %v18643_v3 = vld [vmem:[#allocation235_spill] sm:$0xff]  ;;  %v2976_v2 = vmax.f32 %v18644_v19, %v14495_v59  ;;  %v5406_v32 = vmax.f32 %v5278_v9, %v4941_v16  ;;  %v3660_v10 = vmax.f32 %v14703_v33, %v14188_v40  ;;  %9391 = vmatprep.mubr.msk.f32.mxu1 %vm5489_vm4, %v14268_v22  ;;  %v6169_v9 = vrot.slane %v6085_v11, 6 }
 0x453   : > { %3340 = vrot.lane.b32.xlu0 %v18641_v51, %s10014_s23  ;;  %v2948_v45 = vmax.f32 %v18643_v3, %v14463_v36  ;;  %v18645_v52 = vld [vmem:[#allocation223_spill] sm:$0xff]  ;;  %v3867_v36 = vpop.permute.xlu0 %3866  ;;  %v9725_v51 = vpack.c.bf16 %v6106_v23, %v6105_v62  ;;  %v6171_v56 = vrot.slane %v6086_v31, 5  ;;  %v3688_v40 = vmax.f32 %v14718_v18, %v14160_v26 }
 0x454   : > { %v18646_v35 = vmax.f32 %v18645_v52, 0.0  ;;  %v6324_v59 = vld [vmem:[%s17211_s3 + $0xc0] sm:$0xff]  ;;  %5535 = vst.msk [vmem:[#allocation2 + $0x168] sm:$0xff] %vm5489_vm4, %v5406_v32  ;;  %v14759_v22 = vsel %vm4206_vm1, %v2976_v2, %v3923_v21  ;;  %v6173_v3 = vrot.slane %v6087_v58, 4  ;;  %9724 = vmatpush3.bf16.msra.mxu1 %v9721_v7  ;;  %v6186_v58 = vsel %vm5737_vm7, %v6185_v28, %v14219_v53  ;;  %v18649_v21 = vld [vmem:[#allocation150_spill] sm:$0xff] }
 0x455   : > { %v14753_v16 = vld [vmem:[#allocation2 + $0x384] sm:$0x1]  ;;  %18647 = vst [vmem:[#allocation38_spill] sm:$0xff] %v14759_v22  ;;  %v14762_v62 = vsel %vm4206_vm1, %v2948_v45, %v3867_v36  ;;  %v17684_v19 = vrot.slane %v14759_v22, 1  ;;  %v17689_v11 = vrot.slane %v14759_v22, 2  ;;  %v9729_v32 = vpack.c.bf16 %v6325_v39, %v6324_v59  ;;  %v14784_v39 = vpop.permute.xlu1 %3204  ;;  %9726 = vmatprep.subr.bf16.mxu1 %v9725_v51 }
 0x456   : > { %3396 = vrot.lane.b32.xlu1 %v18646_v35, %s10014_s23  ;;  %18648 = vst [vmem:[#allocation84_spill] sm:$0xff] %v14762_v62  ;;  %v6083_v23 = vld [vmem:[#allocation2 + $0x204] sm:$0x1]  ;;  %v17686_v31 = vrot.slane %v14762_v62, 1  ;;  %v17690_v52 = vrot.slane %v14762_v62, 2  ;;  %v6187_v35 = vrot.slane %v14753_v16, 4  ;;  %v2952_v61 = vmax.f32 %v18656_v47, %v14571_v46 }
 0x457   : > { %v6088_v14 = vld [vmem:[#allocation2 + $0x2a4] sm:$0x1]  ;;  %4010 = vrot.lane.b32.xlu0 %v3660_v10, %s10013_s22  ;;  %v6168_v2 = vsel %vm5731_vm5, %v6167_v43, %v6083_v23  ;;  %v18650_v36 = vrot.slane %v18649_v21, 1  ;;  %v14786_v43 = vpop.permute.xlu0 %2666  ;;  %v14829_v47 = vld [vmem:[#allocation2 + $0x1e6] sm:$0x1]  ;;  %v18818_v62 = vld [vmem:[#allocation76_spill] sm:$0xff] }
 0x458   : > { %v6089_v26 = vld [vmem:[#allocation2 + $0x2c4] sm:$0x1]  ;;  %v6170_v53 = vsel %vm5734_vm6, %v6169_v9, %v6168_v2  ;;  %v6175_v28 = vrot.slane %v6088_v14, 3  ;;  %v18653_v9 = vrot.slane %v18649_v21, 2  ;;  %9728 = vmatpush3.bf16.msra.mxu1 %v9725_v51  ;;  %v6188_v51 = vsel %vm5740_vm8, %v6187_v35, %v6186_v58 }
 0x459   : > { %v6090_v45 = vld [vmem:[#allocation2 + $0x2e4] sm:$0x1]  ;;  %v4564_v42 = vsel %vm4463_vm2, %v18650_v36, %v17684_v19  ;;  %v6172_v36 = vsel %vm5737_vm7, %v6171_v56, %v6170_v53  ;;  %v6177_v19 = vrot.slane %v6089_v26, 2  ;;  %v18655_v26 = vld [vmem:[#allocation145_spill] sm:$0xff]  ;;  %9730 = vmatprep.subr.bf16.mxu1 %v9729_v32 }
 0x45a   : > { %4066 = vrot.lane.b32.xlu1 %v3688_v40, %s10013_s22  ;;  %v18651_v7 = vld [vmem:[#allocation199_spill] sm:$0xff]  ;;  %v5282_v40 = vmax.f32 %v18649_v21, %v4564_v42  ;;  %v4949_v42 = vsel %vm4848_vm3, %v18653_v9, %v17689_v11  ;;  %v6174_v2 = vsel %vm5740_vm8, %v6173_v3, %v6172_v36  ;;  %v18657_v9 = vmax.f32 %v14128_v15, 0.0  ;;  %v3875_v11 = vpop.permute.xlu1 %3874  ;;  %v6329_v15 = vld [vmem:[%s17211_s3 + $0xe8] sm:$0xff] }
 0x45b   : > { %v18652_v10 = vrot.slane %v18651_v7, 1  ;;  %v6096_v16 = vld [vmem:[#allocation2 + $0x3a4] sm:$0x1]  ;;  %v18654_v56 = vrot.slane %v18651_v7, 2  ;;  %2268 = vrot.lane.b32.xlu0 %v18655_v26, %s10013_s22  ;;  %9392 = vmatmul.mubr.msk.f32.vlgmr.msra.gmra.mrb[66].mxu1 %vm5489_vm4, %v14732_v48 }
 0x45c   : > { %v6097_v38 = vld [vmem:[#allocation2 + $0x3c4] sm:$0x1]  ;;  %v5410_v12 = vmax.f32 %v5282_v40, %v4949_v42  ;;  %9732 = vmatpush3.bf16.msra.mxu1 %v9729_v32  ;;  %v6390_v42 = vrot.slane %v14829_v47, 1 }
 0x45d   : > { %v4508_v59 = vsel %vm4463_vm2, %v18652_v10, %v17686_v31  ;;  %v6326_v10 = vld [vmem:[%s17211_s3 + $0xd0] sm:$0xff]  ;;  %v6327_v31 = vld [vmem:[%s17211_s3 + $0xd8] sm:$0xff]  ;;  %v4893_v14 = vsel %vm4848_vm3, %v18654_v56, %v17690_v52  ;;  %v6098_v53 = vld [vmem:[#allocation2 + $0x3e4] sm:$0x1]  ;;  %v14816_v56 = vpop.permute.xlu0 %3260  ;;  %v6176_v52 = vsel %vm5743_vm9, %v6175_v28, %v6174_v2  ;;  %v6191_v3 = vrot.slane %v6097_v38, 2 }
 0x45e   : > { %v5254_v23 = vmax.f32 %v18651_v7, %v4508_v59  ;;  %v6179_v59 = vrot.slane %v6090_v45, 1  ;;  %3348 = vrot.lane.b32.xlu1 %v18657_v9, %s10014_s23  ;;  %v6189_v7 = vrot.slane %v6096_v16, 3  ;;  %v9733_v45 = vpack.c.bf16 %v6327_v31, %v6326_v10  ;;  %v18658_v36 = vld [vmem:[#allocation3_spill] sm:$0xff]  ;;  %5539 = vst.msk [vmem:[#allocation2 + $0x188] sm:$0xff] %vm5489_vm4, %v5410_v12  ;;  %v18661_v16 = vld [vmem:[#allocation80_spill] sm:$0xff]  ;;  %v18665_v2 = vld [vmem:[#allocation181_spill] sm:$0xff]  ;;  %v14865_v32 = vpop.permute.xlu1 %3188 }
 0x45f   : > { %v14821_v22 = vadd.f32 %v18659_v41, %v18658_v36  ;;  %v6328_v46 = vld [vmem:[%s17211_s3 + $0xe0] sm:$0xff]  ;;  %v14834_v38 = vsel %vm4206_vm1, %v2952_v61, %v3875_v11  ;;  %v6178_v41 = vsel %vm5746_vm10, %v6177_v19, %v6176_v52  ;;  %v6193_v31 = vrot.slane %v6098_v53, 1  ;;  %v18664_v52 = vld [vmem:[#allocation60_spill] sm:$0xff] }
 0x460   : > { %v5382_v21 = vmax.f32 %v5254_v23, %v4893_v14  ;;  %18660 = vst [vmem:[#allocation127_spill] sm:$0xff] %v14834_v38  ;;  %v6319_v28 = vld [vmem:[#allocation2 + $0x366] sm:$0x1]  ;;  %v14840_v40 = vmax.f32 %v18611_v27, %v18661_v16  ;;  %v17702_v23 = vrot.slane %v14834_v38, 1  ;;  %v17695_v10 = vrot.slane %v14834_v38, 2  ;;  %9734 = vmatprep.subr.bf16.mxu1 %v9733_v45 }
 0x461   : > { %v6180_v61 = vsel %vm5749_vm11, %v6179_v59, %v6178_v41  ;;  %v18662_v12 = vld [vmem:[#allocation83_spill] sm:$0xff]  ;;  %v2980_v58 = vmax.f32 %v18664_v52, %v14569_v24  ;;  %v6190_v27 = vsel %vm5743_vm9, %v6189_v7, %v6188_v51  ;;  %v9737_v35 = vpack.c.bf16 %v6329_v15, %v6328_v46  ;;  %v3931_v7 = vpop.permute.xlu0 %3930  ;;  %v6330_v41 = vld [vmem:[%s17211_s3 + $0xf0] sm:$0xff]  ;;  %v6331_v51 = vld [vmem:[%s17211_s3 + $0xf8] sm:$0xff]  ;;  %9736 = vmatpush3.bf16.msra.mxu1 %v9733_v45 }
 0x462   : > { %5511 = vst.msk [vmem:[#allocation2 + $0xa8] sm:$0xff] %vm5489_vm4, %v5382_v21  ;;  %v18663_v19 = vmax.f32 %v18662_v12, 0.0  ;;  %v6309_v11 = vld [vmem:[#allocation2 + $0x226] sm:$0x1]  ;;  %9394 = vmatprep.mubr.msk.f32.mxu1 %vm5489_vm4, %v6180_v61  ;;  %v3692_v48 = vmax.f32 %v14840_v40, %v14231_v37  ;;  %v18666_v59 = vrot.slane %v18665_v2, 1  ;;  %v6192_v9 = vsel %vm5746_vm10, %v6191_v3, %v6190_v27  ;;  %v18671_v52 = vld [vmem:[#allocation194_spill] sm:$0xff] }
 0x463   : > { %v6310_v14 = vld [vmem:[#allocation2 + $0x246] sm:$0x1]  ;;  %v6410_v46 = vrot.slane %v6319_v28, 5  ;;  %v6194_v15 = vsel %vm5749_vm11, %v6193_v31, %v6192_v9  ;;  %v14871_v47 = vsel %vm4206_vm1, %v2980_v58, %v3931_v7  ;;  %v6392_v16 = vrot.slane %v6309_v11, 7  ;;  %v18677_v9 = vld [vmem:[#allocation214_spill] sm:$0xff]  ;;  %9738 = vmatprep.subr.bf16.mxu1 %v9737_v35 }
 0x464   : > { %3380 = vrot.lane.b32.xlu0 %v18663_v19, %s10014_s23  ;;  %v4516_v53 = vsel %vm4463_vm2, %v18666_v59, %v17702_v23  ;;  %v18667_v24 = vld [vmem:[#allocation131_spill] sm:$0xff]  ;;  %18669 = vst [vmem:[#allocation207_spill] sm:$0xff] %v14871_v47  ;;  %v18670_v28 = vrot.slane %v18665_v2, 2  ;;  %9395 = vmatmul.mubr.msk.f32.gmra.mrb[68].mxu1 %vm5489_vm4, %v6194_v15  ;;  %v17693_v31 = vrot.slane %v14871_v47, 1  ;;  %v17694_v12 = vrot.slane %v14871_v47, 2  ;;  %v6779_v23 = vld [vmem:[%s17211_s3 + $0x168] sm:$0xff] }
 0x465   : > { %v18668_v21 = vmax.f32 %v18667_v24, 0.0  ;;  %v6320_v36 = vld [vmem:[#allocation2 + $0x386] sm:$0x1]  ;;  %v5258_v37 = vmax.f32 %v18665_v2, %v4516_v53  ;;  %v6394_v19 = vrot.slane %v6310_v14, 6  ;;  %v1829_v58 = vmax.f32 %v18671_v52, 0.0  ;;  %9413 = vmatprep.mubr.msk.f32.mxu1 %vm5489_vm4, %v14276_v60  ;;  %v18675_v14 = vld [vmem:[#allocation17_spill] sm:$0xff]  ;;  %v14906_v60 = vpop.permute.xlu1 %3268  ;;  %9740 = vmatpush3.bf16.msra.mxu1 %v9737_v35 }
 0x466   : > { %v6311_v3 = vld [vmem:[#allocation2 + $0x266] sm:$0x1]  ;;  %v4901_v61 = vsel %vm4848_vm3, %v18670_v28, %v17695_v10  ;;  %v18672_v11 = vrot.slane %v14657_v63, 2  ;;  %v18674_v24 = vrot.slane %v14643_v44, 6  ;;  %v14908_v63 = vpop.permute.xlu0 %3212  ;;  %v6412_v15 = vrot.slane %v6320_v36, 4  ;;  %v6550_v36 = vld [vmem:[%s17211_s3 + $0x108] sm:$0xff] }
 0x467   : > { %3404 = vrot.lane.b32.xlu1 %v18668_v21, %s10014_s23  ;;  %v5386_v27 = vmax.f32 %v5258_v37, %v4901_v61  ;;  %v6321_v59 = vld [vmem:[#allocation2 + $0x3a6] sm:$0x1]  ;;  %v6396_v44 = vrot.slane %v6311_v3, 5  ;;  %v14929_v3 = vmax.f32 %v14821_v22, 0.0 }
 0x468   : > { %4074 = vrot.lane.b32.xlu0 %v3692_v48, %s10013_s22  ;;  %v6389_v2 = vsel %vm5746_vm10, %v18672_v11, %v14387_v54  ;;  %v18673_v53 = vld [vmem:[#allocation219_spill] sm:$0xff]  ;;  %v18676_v48 = vrot.slane %v18675_v14, 1  ;;  %v9741_v54 = vpack.c.bf16 %v6331_v51, %v6330_v41  ;;  %v18678_v51 = vrot.slane %v18675_v14, 2 }
 0x469   : > { %v6409_v21 = vsel %vm5734_vm6, %v18674_v24, %v18673_v53  ;;  %v6308_v7 = vld [vmem:[#allocation2 + $0x206] sm:$0x1]  ;;  %5515 = vst.msk [vmem:[#allocation2 + $0xc8] sm:$0xff] %vm5489_vm4, %v5386_v27  ;;  %v14913_v61 = vsel %vm5749_vm11, %v6390_v42, %v6389_v2 }
 0x46a   : > { %v4572_v45 = vsel %vm4463_vm2, %v18676_v48, %v17693_v31  ;;  %v6312_v37 = vld [vmem:[#allocation2 + $0x286] sm:$0x1]  ;;  %v6393_v53 = vsel %vm5731_vm5, %v6392_v16, %v6308_v7  ;;  %v6411_v24 = vsel %vm5737_vm7, %v6410_v46, %v6409_v21  ;;  %v4957_v42 = vsel %vm4848_vm3, %v18678_v51, %v17694_v12  ;;  %v18680_v48 = vld [vmem:[#allocation14_spill] sm:$0xff]  ;;  %9742 = vmatprep.subr.bf16.mxu1 %v9741_v54 }
 0x46b   : > { %2276 = vrot.lane.b32.xlu1 %v18677_v9, %s10013_s22  ;;  %v5286_v28 = vmax.f32 %v18675_v14, %v4572_v45  ;;  %v6313_v11 = vld [vmem:[#allocation2 + $0x2a6] sm:$0x1]  ;;  %v18679_v46 = vmax.f32 %v14172_v29, 0.0  ;;  %v6395_v2 = vsel %vm5734_vm6, %v6394_v19, %v6393_v53  ;;  %v6414_v21 = vrot.slane %v6321_v59, 3  ;;  %v3939_v29 = vpop.permute.xlu1 %3938  ;;  %9744 = vmatpush3.bf16.msra.mxu1 %v9741_v54 }
 0x46c   : > { %v6549_v41 = vld [vmem:[%s17211_s3 + $0x100] sm:$0xff]  ;;  %v2956_v45 = vmax.f32 %v18680_v48, %v14640_v34  ;;  %v6398_v51 = vrot.slane %v6312_v37, 4  ;;  %v6397_v10 = vsel %vm5737_vm7, %v6396_v44, %v6395_v2  ;;  %v6400_v19 = vrot.slane %v6313_v11, 3  ;;  %v6551_v34 = vld [vmem:[%s17211_s3 + $0x110] sm:$0xff] }
 0x46d   : > { %3356 = vrot.lane.b32.xlu0 %v18679_v46, %s10014_s23  ;;  %v6314_v16 = vld [vmem:[#allocation2 + $0x2c6] sm:$0x1]  ;;  %v5414_v31 = vmax.f32 %v5286_v28, %v4957_v42  ;;  %v3883_v46 = vpop.permute.xlu0 %3882  ;;  %v6413_v59 = vsel %vm5740_vm8, %v6412_v15, %v6411_v24  ;;  %v9745_v53 = vpack.c.bf16 %v6550_v36, %v6549_v41  ;;  %v18687_v42 = vld [vmem:[#allocation110_spill] sm:$0xff] }
 0x46e   : > { %v6315_v27 = vld [vmem:[#allocation2 + $0x2e6] sm:$0x1]  ;;  %v6402_v37 = vrot.slane %v6314_v16, 2  ;;  %v6399_v16 = vsel %vm5740_vm8, %v6398_v51, %v6397_v10  ;;  %9414 = vmatmul.mubr.msk.f32.vlgmr.msra.gmra.mrb[66].mxu1 %vm5489_vm4, %v14913_v61 }
 0x46f   : > { %v18681_v7 = vld [vmem:[#allocation63_spill] sm:$0xff]  ;;  %5543 = vst.msk [vmem:[#allocation2 + $0x1a8] sm:$0xff] %vm5489_vm4, %v5414_v31  ;;  %v6404_v44 = vrot.slane %v6315_v27, 1  ;;  %v6415_v27 = vsel %vm5743_vm9, %v6414_v21, %v6413_v59  ;;  %v14980_v10 = vpop.permute.xlu1 %3252  ;;  %v6401_v21 = vsel %vm5743_vm9, %v6400_v19, %v6399_v16  ;;  %9746 = vmatprep.subr.bf16.mxu1 %v9745_v53 }
 0x470   : > { %v2984_v14 = vmax.f32 %v18681_v7, %v14691_v0  ;;  %v18682_v22 = vld [vmem:[#allocation79_spill] sm:$0xff]  ;;  %v6552_v0 = vld [vmem:[%s17211_s3 + $0x118] sm:$0xff]  ;;  %9748 = vmatpush3.bf16.msra.mxu1 %v9745_v53 }
 0x471   : > { %v18683_v12 = vmax.f32 %v18682_v22, 0.0  ;;  %v6322_v15 = vld [vmem:[#allocation2 + $0x3c6] sm:$0x1]  ;;  %2284 = vrot.lane.b32.xlu0 %v14929_v3, %s10013_s22  ;;  %v9749_v48 = vpack.c.bf16 %v6552_v0, %v6551_v34  ;;  %v14982_v54 = vpop.permute.xlu0 %3220  ;;  %v6403_v0 = vsel %vm5746_vm10, %v6402_v37, %v6401_v21 }
 0x472   : > { %v14952_v35 = vsel %vm4206_vm1, %v2984_v14, %v3939_v29  ;;  %v6323_v31 = vld [vmem:[#allocation2 + $0x3e6] sm:$0x1]  ;;  %v6416_v51 = vrot.slane %v6322_v15, 2  ;;  %v6405_v16 = vsel %vm5749_vm11, %v6404_v44, %v6403_v0 }
 0x473   : > { %3412 = vrot.lane.b32.xlu1 %v18683_v12, %s10014_s23  ;;  %18684 = vst [vmem:[#allocation129_spill] sm:$0xff] %v14952_v35  ;;  %v14955_v12 = vsel %vm4206_vm1, %v2956_v45, %v3883_v46  ;;  %v17699_v28 = vrot.slane %v14952_v35, 1  ;;  %v17696_v11 = vrot.slane %v14952_v35, 2  ;;  %v18686_v36 = vld [vmem:[#allocation7_spill] sm:$0xff]  ;;  %v18688_v45 = vld [vmem:[#allocation173_spill] sm:$0xff]  ;;  %9416 = vmatprep.mubr.msk.f32.mxu1 %vm5489_vm4, %v6405_v16  ;;  %v3947_v61 = vpop.permute.xlu1 %3946 }
 0x474   : > { %18685 = vst [vmem:[#allocation12_spill] sm:$0xff] %v14955_v12  ;;  %v17701_v24 = vrot.slane %v14955_v12, 1  ;;  %v17700_v41 = vrot.slane %v14955_v12, 2  ;;  %v1644_v2 = vadd.f32 %v18687_v42, %v18686_v36  ;;  %v18689_v7 = vrot.slane %v18688_v45, 1  ;;  %v18690_v22 = vld [vmem:[#allocation191_spill] sm:$0xff]  ;;  %9750 = vmatprep.subr.bf16.mxu1 %v9749_v48  ;;  %v18723_v35 = vld [vmem:[#allocation5_spill] sm:$0xff] }
 0x475   : > { %v18691_v29 = vrot.slane %v18690_v22, 1  ;;  %v6418_v36 = vrot.slane %v6323_v31, 1  ;;  %v6553_v52 = vld [vmem:[%s17211_s3 + $0x120] sm:$0xff]  ;;  %v18693_v19 = vrot.slane %v18688_v45, 2  ;;  %v18694_v37 = vrot.slane %v18690_v22, 2  ;;  %v15017_v0 = vpop.permute.xlu0 %3276  ;;  %9752 = vmatpush3.bf16.msra.mxu1 %v9749_v48 }
 0x476   : > { %v4580_v14 = vsel %vm4463_vm2, %v18689_v7, %v17699_v28  ;;  %v18692_v42 = vld [vmem:[#allocation115_spill] sm:$0xff]  ;;  %v6417_v44 = vsel %vm5746_vm10, %v6416_v51, %v6415_v27  ;;  %v6519_v27 = vld [vmem:[#allocation2 + $0x48] sm:$0x1] }
 0x477   : > { %v4524_v46 = vsel %vm4463_vm2, %v18691_v29, %v17701_v24  ;;  %3364 = vrot.lane.b32.xlu1 %v1829_v58, %s10014_s23  ;;  %v5290_v59 = vmax.f32 %v18688_v45, %v4580_v14  ;;  %v6554_v58 = vld [vmem:[%s17211_s3 + $0x128] sm:$0xff]  ;;  %v1837_v7 = vmax.f32 %v18692_v42, 0.0  ;;  %v4965_v15 = vsel %vm4848_vm3, %v18693_v19, %v17696_v11  ;;  %v18695_v14 = vld [vmem:[#allocation226_spill] sm:$0xff] }
 0x478   : > { %v5262_v34 = vmax.f32 %v18690_v22, %v4524_v46  ;;  %v4909_v31 = vsel %vm4848_vm3, %v18694_v37, %v17700_v41  ;;  %v18696_v29 = vmax.f32 %v18695_v14, 0.0  ;;  %v6518_v46 = vld [vmem:[#allocation2 + $0x28] sm:$0x1]  ;;  %v18697_v45 = vld [vmem:[#allocation122_spill] sm:$0xff]  ;;  %v18698_v22 = vld [vmem:[#allocation123_spill] sm:$0xff]  ;;  %v9753_v14 = vpack.c.bf16 %v6554_v58, %v6553_v52 }
 0x479   : > { %v2988_v21 = vmax.f32 %v18697_v45, %v14786_v43  ;;  %v5418_v42 = vmax.f32 %v5290_v59, %v4965_v15  ;;  %v1893_v37 = vmax.f32 %v18698_v22, 0.0  ;;  %v6520_v11 = vld [vmem:[#allocation2 + $0x68] sm:$0x1]  ;;  %v6555_v43 = vld [vmem:[%s17211_s3 + $0x130] sm:$0xff]  ;;  %v6419_v59 = vsel %vm5749_vm11, %v6418_v36, %v6417_v44  ;;  %v6556_v52 = vld [vmem:[%s17211_s3 + $0x138] sm:$0xff] }
 0x47a   : > { %3420 = vrot.lane.b32.xlu0 %v18696_v29, %s10014_s23  ;;  %v5390_v19 = vmax.f32 %v5262_v34, %v4909_v31  ;;  %v6517_v29 = vld [vmem:[#allocation2 + $0x8] sm:$0x1]  ;;  %v6589_v34 = vrot.slane %v6518_v46, 7  ;;  %v1901_v58 = vmax.f32 %v1644_v2, 0.0  ;;  %9417 = vmatmul.mubr.msk.f32.gmra.mrb[68].mxu1 %vm5489_vm4, %v6419_v59  ;;  %v6593_v45 = vrot.slane %v6520_v11, 5  ;;  %v18703_v59 = vld [vmem:[#allocation31_spill] sm:$0xff] }
 0x47b   : > { %3372 = vrot.lane.b32.xlu1 %v1837_v7, %s10014_s23  ;;  %5547 = vst.msk [vmem:[#allocation2 + $0x1c8] sm:$0xff] %vm5489_vm4, %v5418_v42  ;;  %v15025_v53 = vsel %vm4206_vm1, %v2988_v21, %v3947_v61  ;;  %v6521_v51 = vld [vmem:[#allocation2 + $0x88] sm:$0x1]  ;;  %v15042_v42 = vpop.permute.xlu1 %3284  ;;  %9754 = vmatprep.subr.bf16.mxu1 %v9753_v14  ;;  %v6591_v22 = vrot.slane %v6519_v27, 6  ;;  %v9757_v48 = vpack.c.bf16 %v6556_v52, %v6555_v43  ;;  %v6774_v43 = vld [vmem:[%s17211_s3 + $0x140] sm:$0xff] }
 0x47c   : > { %5519 = vst.msk [vmem:[#allocation2 + $0xe8] sm:$0xff] %vm5489_vm4, %v5390_v19  ;;  %18699 = vst [vmem:[#allocation132_spill] sm:$0xff] %v15025_v53  ;;  %v17698_v7 = vrot.slane %v15025_v53, 1  ;;  %v17697_v15 = vrot.slane %v15025_v53, 2  ;;  %v6522_v31 = vld [vmem:[#allocation2 + $0xa8] sm:$0x1]  ;;  %v6590_v36 = vsel %vm5731_vm5, %v6589_v34, %v6517_v29  ;;  %v15044_v19 = vpop.permute.xlu0 %3228  ;;  %9756 = vmatpush3.bf16.msra.mxu1 %v9753_v14 }
 0x47d   : > { %v6523_v16 = vld [vmem:[#allocation2 + $0xc8] sm:$0x1]  ;;  %v6597_v44 = vrot.slane %v6522_v31, 3  ;;  %v6592_v34 = vsel %vm5734_vm6, %v6591_v22, %v6590_v36  ;;  %v18704_v31 = vld [vmem:[#allocation46_spill] sm:$0xff]  ;;  %9758 = vmatprep.subr.bf16.mxu1 %v9757_v48 }
 0x47e   : > { %3428 = vrot.lane.b32.xlu0 %v1893_v37, %s10014_s23  ;;  %v18700_v46 = vld [vmem:[#allocation180_spill] sm:$0xff]  ;;  %v6595_v37 = vrot.slane %v6521_v51, 4  ;;  %v6594_v52 = vsel %vm5737_vm7, %v6593_v45, %v6592_v34 }
 0x47f   : > { %v18701_v21 = vrot.slane %v18700_v46, 1  ;;  %3436 = vrot.lane.b32.xlu1 %v1901_v58, %s10014_s23  ;;  %v18702_v11 = vrot.slane %v18700_v46, 2  ;;  %v6599_v58 = vrot.slane %v6523_v16, 2  ;;  %v6775_v27 = vld [vmem:[%s17211_s3 + $0x148] sm:$0xff] }
 0x480   : > { %v15066_v36 = vpop.permute.xlu0 %3236  ;;  %v6525_v22 = vld [vmem:[#allocation2 + $0x108] sm:$0x1]  ;;  %9760 = vmatpush3.bf16.msra.mxu1 %v9757_v48  ;;  %v18709_v48 = vld [vmem:[#allocation70_spill] sm:$0xff] }
 0x481   : > { %v4588_v2 = vsel %vm4463_vm2, %v18701_v21, %v17698_v7  ;;  %v4973_v29 = vsel %vm4848_vm3, %v18702_v11, %v17697_v15  ;;  %v6526_v21 = vld [vmem:[#allocation2 + $0x128] sm:$0x1]  ;;  %v9761_v15 = vpack.c.bf16 %v6775_v27, %v6774_v43  ;;  %v18705_v7 = vld [vmem:[#allocation94_spill] sm:$0xff]  ;;  %v15173_v12 = vmax.f32 %v18709_v48, %v18723_v35  ;;  %v18728_v35 = vld [vmem:[#allocation225_spill] sm:$0xff] }
 0x482   : > { %v5294_v61 = vmax.f32 %v18700_v46, %v4588_v2  ;;  %2556 = vrot.lane.b32.xlu0 %v18703_v59, %s10014_s23  ;;  %v15064_v46 = vpop.permute.xlu1 %3292  ;;  %v6596_v2 = vsel %vm5740_vm8, %v6595_v37, %v6594_v52  ;;  %v6528_v11 = vld [vmem:[#allocation2 + $0x168] sm:$0x1]  ;;  %v6603_v34 = vrot.slane %v6526_v21, 7 }
 0x483   : > { %2564 = vrot.lane.b32.xlu1 %v18704_v31, %s10014_s23  ;;  %v6524_v16 = vld [vmem:[#allocation2 + $0xe8] sm:$0x1]  ;;  %9762 = vmatprep.subr.bf16.mxu1 %v9761_v15  ;;  %18724 = vst [vmem:[#allocation242_spill] sm:$0xff] %v15173_v12 }
 0x484   : > { %v5422_v51 = vmax.f32 %v5294_v61, %v4973_v29  ;;  %v6598_v61 = vsel %vm5743_vm9, %v6597_v44, %v6596_v2  ;;  %v6601_v29 = vrot.slane %v6524_v16, 1  ;;  %v6527_v45 = vld [vmem:[#allocation2 + $0x148] sm:$0x1]  ;;  %v6604_v24 = vsel %vm5731_vm5, %v6603_v34, %v6525_v22  ;;  %v18706_v44 = vld [vmem:[#allocation15_spill] sm:$0xff]  ;;  %v2683_v21 = vpop.permute.xlu0 %2682 }
 0x485   : > { %v6529_v14 = vld [vmem:[#allocation2 + $0x188] sm:$0x1]  ;;  %v6600_v28 = vsel %vm5746_vm10, %v6599_v58, %v6598_v61  ;;  %v6605_v43 = vrot.slane %v6527_v45, 6 }
 0x486   : > { %5551 = vst.msk [vmem:[#allocation2 + $0x1e8] sm:$0xff] %vm5489_vm4, %v5422_v51  ;;  %2620 = vrot.lane.b32.xlu0 %v18705_v7, %s10014_s23  ;;  %v6530_v41 = vld [vmem:[#allocation2 + $0x1a8] sm:$0x1]  ;;  %v6602_v37 = vsel %vm5749_vm11, %v6601_v29, %v6600_v28  ;;  %v6607_v51 = vrot.slane %v6528_v11, 5  ;;  %v15078_v16 = vpop.permute.xlu1 %3244  ;;  %v6609_v27 = vrot.slane %v6529_v14, 4  ;;  %v6776_v29 = vld [vmem:[%s17211_s3 + $0x150] sm:$0xff] }
 0x487   : > { %v6531_v52 = vld [vmem:[#allocation2 + $0x1c8] sm:$0x1]  ;;  %2548 = vrot.lane.b32.xlu1 %v18706_v44, %s10014_s23  ;;  %9435 = vmatprep.mubr.msk.f32.mxu1 %vm5489_vm4, %v6602_v37  ;;  %v6611_v2 = vrot.slane %v6530_v41, 3  ;;  %v6606_v22 = vsel %vm5734_vm6, %v6605_v43, %v6604_v24  ;;  %v6777_v41 = vld [vmem:[%s17211_s3 + $0x158] sm:$0xff] }
 0x488   : > { %v18707_v58 = vld [vmem:[#allocation104_spill] sm:$0xff]  ;;  %v6613_v11 = vrot.slane %v6531_v52, 2  ;;  %v6608_v61 = vsel %vm5737_vm7, %v6607_v51, %v6606_v22  ;;  %v15101_v24 = vpop.permute.xlu0 %3300  ;;  %v6778_v22 = vld [vmem:[%s17211_s3 + $0x160] sm:$0xff] }
 0x489   : > { %v15083_v28 = vmax.f32 %v18703_v59, %v18707_v58  ;;  %v18710_v45 = vld [vmem:[#allocation52_spill] sm:$0xff]  ;;  %v6610_v37 = vsel %vm5740_vm8, %v6609_v27, %v6608_v61  ;;  %v9765_v58 = vpack.c.bf16 %v6777_v41, %v6776_v29  ;;  %v18711_v27 = vld [vmem:[#allocation95_spill] sm:$0xff] }
 0x48a   : > { %2572 = vrot.lane.b32.xlu0 %v18709_v48, %s10014_s23  ;;  %v15099_v14 = vpop.permute.xlu1 %2690  ;;  %v6612_v52 = vsel %vm5743_vm9, %v6611_v2, %v6610_v37  ;;  %v18714_v41 = vld [vmem:[#allocation160_spill] sm:$0xff]  ;;  %v6781_v37 = vld [vmem:[%s17211_s3 + $0x178] sm:$0xff]  ;;  %v15191_v48 = vmax.f32 %v18710_v45, %v18728_v35 }
 0x48b   : > { %18708 = vst [vmem:[#allocation4_spill] sm:$0xff] %v15083_v28  ;;  %v3573_v59 = vmax.f32 %v15083_v28, %v14688_v17  ;;  %2628 = vrot.lane.b32.xlu1 %v18710_v45, %s10014_s23  ;;  %v6614_v43 = vsel %vm5746_vm10, %v6613_v11, %v6612_v52  ;;  %v18712_v11 = vld [vmem:[#allocation121_spill] sm:$0xff]  ;;  %v18715_v52 = vld [vmem:[#allocation166_spill] sm:$0xff] }
 0x48c   : > { %v15119_v61 = vpop.permute.xlu0 %2746  ;;  %v15123_v29 = vmax.f32 %v18704_v31, %v18712_v11  ;;  %18729 = vst [vmem:[#allocation26_spill] sm:$0xff] %v15191_v48  ;;  %v3609_v45 = vmax.f32 %v15191_v48, %v14906_v60  ;;  %v18733_v60 = vld [vmem:[#allocation87_spill] sm:$0xff]  ;;  %v18838_v28 = vld [vmem:[#allocation37_spill] sm:$0xff] }
 0x48d   : > { %v6532_v34 = vld [vmem:[#allocation2 + $0x1e8] sm:$0x1] }
 0x48e   : > { %v6615_v51 = vrot.slane %v6532_v34, 1  ;;  %3836 = vrot.lane.b32.xlu0 %v3573_v59, %s10013_s22  ;;  %v15116_v2 = vpop.permute.xlu1 %3308  ;;  %18713 = vst [vmem:[#allocation19_spill] sm:$0xff] %v15123_v29  ;;  %v9769_v59 = vpack.c.bf16 %v6779_v23, %v6778_v22  ;;  %v6780_v34 = vld [vmem:[%s17211_s3 + $0x170] sm:$0xff]  ;;  %v3577_v31 = vmax.f32 %v15123_v29, %v14784_v39  ;;  %v6999_v39 = vld [vmem:[%s17211_s3 + $0x180] sm:$0xff] }
 0x48f   : > { %2580 = vrot.lane.b32.xlu1 %v18711_v27, %s10014_s23  ;;  %v9773_v22 = vpack.c.bf16 %v6781_v37, %v6780_v34  ;;  %v18720_v34 = vld [vmem:[#allocation78_spill] sm:$0xff] }
 0x490   : > { %v6616_v17 = vsel %vm5749_vm11, %v6615_v51, %v6614_v43  ;;  %v18717_v51 = vld [vmem:[#allocation195_spill] sm:$0xff]  ;;  %v15143_v23 = vpop.permute.xlu0 %2674 }
 0x491   : > { %9436 = vmatmul.mubr.msk.f32.vlgmr.msra.gmra.mrb[66].mxu1 %vm5489_vm4, %v6616_v17 }
 0x492   : > { %9764 = vmatpush3.bf16.msra.mxu1 %v9761_v15  ;;  %2612 = vrot.lane.b32.xlu0 %v18714_v41, %s10014_s23  ;;  %v15135_v15 = vmax.f32 %v18705_v7, %v18715_v52  ;;  %v15141_v43 = vpop.permute.xlu1 %2698  ;;  %v18718_v7 = vld [vmem:[#allocation176_spill] sm:$0xff] }
 0x493   : > { %9766 = vmatprep.subr.bf16.mxu1 %v9765_v58  ;;  %2636 = vrot.lane.b32.xlu1 %v18717_v51, %s10014_s23  ;;  %v2996_v11 = vmax.f32 %v18718_v7, %v2683_v21  ;;  %v7000_v52 = vld [vmem:[%s17211_s3 + $0x188] sm:$0xff]  ;;  %v15163_v21 = vmax.f32 %v18706_v44, %v18720_v34 }
 0x494   : > { %18716 = vst [vmem:[#allocation222_spill] sm:$0xff] %v15135_v15  ;;  %v3605_v17 = vmax.f32 %v15135_v15, %v14816_v56  ;;  %v15156_v53 = vpop.permute.xlu0 %2754  ;;  %v18722_v7 = vld [vmem:[#allocation112_spill] sm:$0xff] }
 0x495   : > { %18721 = vst [vmem:[#allocation9_spill] sm:$0xff] %v15163_v21  ;;  %v18725_v44 = vld [vmem:[#allocation128_spill] sm:$0xff] }
 0x496   : > { %9768 = vmatpush3.bf16.msra.mxu1 %v9765_v58  ;;  %3844 = vrot.lane.b32.xlu0 %v3577_v31, %s10013_s22  ;;  %v3963_v58 = vpop.permute.xlu1 %3962  ;;  %v18727_v34 = vld [vmem:[#allocation68_spill] sm:$0xff] }
 0x497   : > { %9770 = vmatprep.subr.bf16.mxu1 %v9769_v59  ;;  %3900 = vrot.lane.b32.xlu1 %v3605_v17, %s10013_s22  ;;  %v15159_v56 = vsel %vm4206_vm1, %v2996_v11, %v3963_v58  ;;  %v15169_v17 = vpack.c.bf16 %v7000_v52, %v6999_v39  ;;  %v18726_v11 = vrot.slane %v18725_v44, 1 }
 0x498   : > { %18719 = vst [vmem:[#allocation43_spill] sm:$0xff] %v15159_v56  ;;  %v17711_v37 = vrot.slane %v15159_v56, 1  ;;  %v15186_v39 = vpop.permute.xlu0 %2706  ;;  %v18730_v47 = vrot.slane %v15159_v56, 2 }
 0x49a   : > { %9772 = vmatpush3.bf16.msra.mxu1 %v9769_v59  ;;  %2588 = vrot.lane.b32.xlu0 %v18722_v7, %s10014_s23  ;;  %v3569_v59 = vmax.f32 %v15163_v21, %v14865_v32  ;;  %v4604_v58 = vsel %vm4463_vm2, %v18726_v11, %v17711_v37  ;;  %v15184_v31 = vpop.permute.xlu1 %2738  ;;  %v3581_v32 = vmax.f32 %v15173_v12, %v14908_v63  ;;  %v18731_v11 = vrot.slane %v18725_v44, 2  ;;  %v6967_v12 = vld [vmem:[#allocation2 + $0xc] sm:$0x1] }
 0x49b   : > { %9774 = vmatprep.subr.bf16.mxu1 %v9773_v22  ;;  %2644 = vrot.lane.b32.xlu1 %v18727_v34, %s10014_s23  ;;  %v5302_v52 = vmax.f32 %v18725_v44, %v4604_v58  ;;  %v15551_v21 = vld [vmem:[#allocation2 + $0x12c] sm:$0x1] }
 0x49c   : > { %v4989_v37 = vsel %vm4848_vm3, %v18731_v11, %v18730_v47  ;;  %v15207_v35 = vpop.permute.xlu0 %2762  ;;  %v18737_v11 = vld [vmem:[#allocation130_spill] sm:$0xff] }
 0x49d   : > { %v5430_v58 = vmax.f32 %v5302_v52, %v4989_v37  ;;  %v18735_v37 = vld [vmem:[#allocation240_spill] sm:$0xff] }
 0x49e   : > { %9776 = vmatpush3.bf16.msra.mxu1 %v9773_v22  ;;  %3828 = vrot.lane.b32.xlu0 %v3569_v59, %s10013_s22  ;;  %v3000_v22 = vmax.f32 %v14256_v8, %v15099_v14  ;;  %v3971_v63 = vpop.permute.xlu1 %3970  ;;  %v3028_v8 = vmax.f32 %v14115_v20, %v15119_v61  ;;  %v15220_v14 = vmax.f32 %v18711_v27, %v18733_v60  ;;  %v18736_v52 = vrot.slane %v18735_v37, 1 }
 0x49f   : > { %9778 = vmatprep.subr.bf16.mxu1 %v15169_v17  ;;  %3852 = vrot.lane.b32.xlu1 %v3581_v32, %s10013_s22  ;;  %5559 = vst.msk [vmem:[#allocation2 + $0x228] sm:$0xff] %vm5489_vm4, %v5430_v58  ;;  %v18741_v60 = vrot.slane %v18735_v37, 2 }
 0x4a0   : > { %v15211_v47 = vsel %vm4206_vm1, %v3000_v22, %v3971_v63  ;;  %18734 = vst [vmem:[#allocation40_spill] sm:$0xff] %v15220_v14  ;;  %v4027_v58 = vpop.permute.xlu0 %4026  ;;  %v3585_v61 = vmax.f32 %v15220_v14, %v14982_v54 }
 0x4a1   : > { %18732 = vst [vmem:[#allocation33_spill] sm:$0xff] %v15211_v47  ;;  %v17712_v59 = vrot.slane %v15211_v47, 1  ;;  %v17715_v44 = vrot.slane %v15211_v47, 2  ;;  %v15237_v27 = vsel %vm4206_vm1, %v3028_v8, %v4027_v58  ;;  %v2992_v8 = vmax.f32 %v14283_v49, %v15143_v23  ;;  %v18743_v58 = vld [vmem:[#allocation236_spill] sm:$0xff] }
 0x4a2   : > { %3908 = vrot.lane.b32.xlu0 %v3609_v45, %s10013_s22  ;;  %v15229_v22 = vpop.permute.xlu1 %2714  ;;  %v18738_v45 = vld [vmem:[#allocation119_spill] sm:$0xff]  ;;  %18740 = vst [vmem:[#allocation53_spill] sm:$0xff] %v15237_v27  ;;  %v15254_v54 = vmax.f32 %v18717_v51, %v18743_v58  ;;  %v18748_v23 = vrot.slane %v15237_v27, 2 }
 0x4a3   : > { %v4612_v32 = vsel %vm4463_vm2, %v18736_v52, %v17712_v59  ;;  %2596 = vrot.lane.b32.xlu1 %v18737_v11, %s10014_s23  ;;  %v15233_v63 = vmax.f32 %v18714_v41, %v18738_v45  ;;  %v4997_v52 = vsel %vm4848_vm3, %v18741_v60, %v17715_v44  ;;  %v17722_v59 = vrot.slane %v15237_v27, 1  ;;  %v18742_v41 = vld [vmem:[#allocation217_spill] sm:$0xff]  ;;  %v18745_v45 = vld [vmem:[#allocation22_spill] sm:$0xff]  ;;  %v18815_v27 = vld [vmem:[#allocation36_spill] sm:$0xff] }
 0x4a4   : > { %v5306_v20 = vmax.f32 %v18735_v37, %v4612_v32  ;;  %18744 = vst [vmem:[#allocation21_spill] sm:$0xff] %v15254_v54  ;;  %v18746_v60 = vrot.slane %v18745_v45, 1  ;;  %v15264_v47 = vpop.permute.xlu0 %2770  ;;  %v18816_v38 = vrot.slane %v18815_v27, 1  ;;  %v18828_v14 = vrot.slane %v18815_v27, 2 }
 0x4a5   : > { %18739 = vst [vmem:[#allocation45_spill] sm:$0xff] %v15233_v63  ;;  %v3601_v37 = vmax.f32 %v15233_v63, %v14980_v10  ;;  %v3613_v10 = vmax.f32 %v15254_v54, %v15017_v0  ;;  %v18750_v0 = vld [vmem:[#allocation178_spill] sm:$0xff]  ;;  %v18824_v63 = vld [vmem:[#allocation85_spill] sm:$0xff] }
 0x4a6   : > { %2652 = vrot.lane.b32.xlu0 %v18742_v41, %s10014_s23  ;;  %v5434_v32 = vmax.f32 %v5306_v20, %v4997_v52  ;;  %v4668_v44 = vsel %vm4463_vm2, %v18746_v60, %v17722_v59  ;;  %v3955_v56 = vpop.permute.xlu1 %3954  ;;  %v18749_v20 = vrot.slane %v18745_v45, 2  ;;  %v18823_v54 = vld [vmem:[#allocation42_spill] sm:$0xff] }
 0x4a7   : > { %3860 = vrot.lane.b32.xlu1 %v3585_v61, %s10013_s22  ;;  %v5334_v49 = vmax.f32 %v18745_v45, %v4668_v44  ;;  %v15269_v51 = vsel %vm4206_vm1, %v2992_v8, %v3955_v56  ;;  %v3004_v44 = vmax.f32 %v14316_v30, %v15141_v43  ;;  %v3032_v56 = vmax.f32 %v14138_v1, %v15156_v53  ;;  %v18752_v45 = vld [vmem:[#allocation30_spill] sm:$0xff] }
 0x4a8   : > { %5563 = vst.msk [vmem:[#allocation2 + $0x248] sm:$0xff] %vm5489_vm4, %v5434_v32  ;;  %18747 = vst [vmem:[#allocation47_spill] sm:$0xff] %v15269_v51  ;;  %v5053_v52 = vsel %vm4848_vm3, %v18749_v20, %v18748_v23  ;;  %v17719_v61 = vrot.slane %v15269_v51, 1  ;;  %v17718_v58 = vrot.slane %v15269_v51, 2  ;;  %v15287_v32 = vmax.f32 %v18722_v7, %v18750_v0  ;;  %v3979_v20 = vpop.permute.xlu0 %3978  ;;  %v18757_v0 = vld [vmem:[#allocation149_spill] sm:$0xff] }
 0x4a9   : > { %v5462_v8 = vmax.f32 %v5334_v49, %v5053_v52  ;;  %v18753_v60 = vrot.slane %v18752_v45, 1  ;;  %v18754_v1 = vrot.slane %v18752_v45, 2  ;;  %v15306_v7 = vsel %vm4206_vm1, %v3004_v44, %v3979_v20  ;;  %v18762_v20 = vld [vmem:[#allocation183_spill] sm:$0xff] }
 0x4aa   : > { %3892 = vrot.lane.b32.xlu0 %v3601_v37, %s10013_s22  ;;  %18751 = vst [vmem:[#allocation55_spill] sm:$0xff] %v15287_v32  ;;  %v4035_v37 = vpop.permute.xlu1 %4034  ;;  %18756 = vst [vmem:[#allocation167_spill] sm:$0xff] %v15306_v7  ;;  %v17721_v52 = vrot.slane %v15306_v7, 1  ;;  %v3589_v44 = vmax.f32 %v15287_v32, %v15044_v19  ;;  %v6744_v32 = vld [vmem:[#allocation2 + $0x4a] sm:$0x1] }
 0x4ab   : > { %v4596_v23 = vsel %vm4463_vm2, %v18753_v60, %v17719_v61  ;;  %3916 = vrot.lane.b32.xlu1 %v3613_v10, %s10013_s22  ;;  %5591 = vst.msk [vmem:[#allocation2 + $0x328] sm:$0xff] %vm5489_vm4, %v5462_v8  ;;  %v4981_v30 = vsel %vm4848_vm3, %v18754_v1, %v17718_v58  ;;  %v15303_v43 = vsel %vm4206_vm1, %v3032_v56, %v4035_v37  ;;  %v17732_v8 = vrot.slane %v15306_v7, 2  ;;  %v18758_v1 = vld [vmem:[#allocation202_spill] sm:$0xff]  ;;  %v18760_v56 = vld [vmem:[#allocation171_spill] sm:$0xff] }
 0x4ac   : > { %v5298_v53 = vmax.f32 %v18752_v45, %v4596_v23  ;;  %18755 = vst [vmem:[#allocation67_spill] sm:$0xff] %v15303_v43  ;;  %v17720_v49 = vrot.slane %v15303_v43, 1  ;;  %v17723_v10 = vrot.slane %v15303_v43, 2  ;;  %v15316_v45 = vmax.f32 %v18727_v34, %v18758_v1 }
 0x4ad   : > { %v18761_v23 = vrot.slane %v18760_v56, 1  ;;  %v18763_v58 = vrot.slane %v18762_v20, 1 }
 0x4ae   : > { %2604 = vrot.lane.b32.xlu0 %v18757_v0, %s10014_s23  ;;  %v5426_v60 = vmax.f32 %v5298_v53, %v4981_v30  ;;  %18759 = vst [vmem:[#allocation177_spill] sm:$0xff] %v15316_v45  ;;  %v18764_v30 = vld [vmem:[#allocation34_spill] sm:$0xff]  ;;  %v15332_v34 = vpop.permute.xlu1 %2778  ;;  %v15334_v53 = vpop.permute.xlu0 %2722 }
 0x4af   : > { %v4676_v37 = vsel %vm4463_vm2, %v18761_v23, %v17720_v49  ;;  %v4620_v61 = vsel %vm4463_vm2, %v18763_v58, %v17721_v52  ;;  %2660 = vrot.lane.b32.xlu1 %v18764_v30, %s10014_s23  ;;  %v18765_v23 = vld [vmem:[#allocation56_spill] sm:$0xff]  ;;  %v3617_v58 = vmax.f32 %v15316_v45, %v15042_v42  ;;  %v18767_v52 = vrot.slane %v18760_v56, 2 }
 0x4b0   : > { %5555 = vst.msk [vmem:[#allocation2 + $0x208] sm:$0xff] %vm5489_vm4, %v5426_v60  ;;  %v5338_v19 = vmax.f32 %v18760_v56, %v4676_v37  ;;  %v5310_v1 = vmax.f32 %v18762_v20, %v4620_v61  ;;  %v15341_v49 = vmax.f32 %v18737_v11, %v18765_v23  ;;  %v18768_v60 = vrot.slane %v18762_v20, 2  ;;  %v15529_v45 = vld [vmem:[#allocation2 + $0x12a] sm:$0x1] }
 0x4b1   : > { %v5061_v59 = vsel %vm4848_vm3, %v18767_v52, %v17723_v10  ;;  %v3024_v11 = vmax.f32 %v14108_v13, %v15184_v31  ;;  %v3008_v42 = vmax.f32 %v14349_v4, %v15186_v39  ;;  %v18769_v10 = vld [vmem:[#allocation50_spill] sm:$0xff] }
 0x4b2   : > { %18766 = vst [vmem:[#allocation187_spill] sm:$0xff] %v15341_v49  ;;  %v5005_v37 = vsel %vm4848_vm3, %v18768_v60, %v17732_v8  ;;  %3868 = vrot.lane.b32.xlu0 %v3589_v44, %s10013_s22  ;;  %v5466_v61 = vmax.f32 %v5338_v19, %v5061_v59  ;;  %v4019_v56 = vpop.permute.xlu1 %4018  ;;  %v3987_v52 = vpop.permute.xlu0 %3986  ;;  %v15363_v43 = vmax.f32 %v18742_v41, %v18769_v10  ;;  %v18774_v10 = vld [vmem:[#allocation100_spill] sm:$0xff]  ;;  %v18804_v8 = vld [vmem:[#allocation73_spill] sm:$0xff] }
 0x4b3   : > { %v5438_v23 = vmax.f32 %v5310_v1, %v5005_v37  ;;  %3924 = vrot.lane.b32.xlu1 %v3617_v58, %s10013_s22  ;;  %v3593_v20 = vmax.f32 %v15341_v49, %v15066_v36  ;;  %v15370_v13 = vsel %vm4206_vm1, %v3024_v11, %v4019_v56  ;;  %v15373_v4 = vsel %vm4206_vm1, %v3008_v42, %v3987_v52  ;;  %v18773_v36 = vld [vmem:[#allocation152_spill] sm:$0xff]  ;;  %v18776_v1 = vld [vmem:[#allocation161_spill] sm:$0xff]  ;;  %v18820_v49 = vld [vmem:[#allocation203_spill] sm:$0xff] }
 0x4b4   : > { %18770 = vst [vmem:[#allocation134_spill] sm:$0xff] %v15363_v43  ;;  %5595 = vst.msk [vmem:[#allocation2 + $0x348] sm:$0xff] %vm5489_vm4, %v5466_v61  ;;  %v17728_v31 = vrot.slane %v15370_v13, 1  ;;  %v17726_v39 = vrot.slane %v15370_v13, 2  ;;  %v17731_v59 = vrot.slane %v15373_v4, 1  ;;  %v17730_v41 = vrot.slane %v15373_v4, 2 }
 0x4b5   : > { %5567 = vst.msk [vmem:[#allocation2 + $0x268] sm:$0xff] %vm5489_vm4, %v5438_v23  ;;  %18771 = vst [vmem:[#allocation57_spill] sm:$0xff] %v15370_v13  ;;  %v15383_v44 = vmax.f32 %v18757_v0, %v18774_v10  ;;  %v3036_v19 = vmax.f32 %v18576_v25, %v15207_v35  ;;  %v15389_v58 = vmax.f32 %v18764_v30, %v18776_v1  ;;  %v18778_v37 = vld [vmem:[#allocation209_spill] sm:$0xff]  ;;  %v18780_v0 = vld [vmem:[#allocation154_spill] sm:$0xff] }
 0x4b6   : > { %18772 = vst [vmem:[#allocation93_spill] sm:$0xff] %v15373_v4  ;;  %2668 = vrot.lane.b32.xlu0 %v18773_v36, %s10014_s23  ;;  %v3621_v60 = vmax.f32 %v15363_v43, %v15064_v46  ;;  %v18779_v11 = vrot.slane %v18778_v37, 1  ;;  %v18781_v61 = vrot.slane %v18780_v0, 1  ;;  %v15404_v25 = vpop.permute.xlu1 %2730  ;;  %v4043_v35 = vpop.permute.xlu0 %4042  ;;  %v18783_v10 = vrot.slane %v18778_v37, 2  ;;  %v18808_v13 = vld [vmem:[#allocation233_spill] sm:$0xff]  ;;  %v18812_v4 = vld [vmem:[#allocation44_spill] sm:$0xff] }
 0x4b7   : > { %18775 = vst [vmem:[#allocation116_spill] sm:$0xff] %v15383_v44  ;;  %18777 = vst [vmem:[#allocation82_spill] sm:$0xff] %v15389_v58  ;;  %3876 = vrot.lane.b32.xlu1 %v3593_v20, %s10013_s22  ;;  %v3597_v46 = vmax.f32 %v15383_v44, %v15078_v16  ;;  %v15411_v52 = vsel %vm4206_vm1, %v3036_v19, %v4043_v35  ;;  %v18784_v20 = vrot.slane %v18780_v0, 2  ;;  %v18813_v7 = vrot.slane %v18812_v4, 1  ;;  %v7193_v43 = vld [vmem:[#allocation2 + $0x2e] sm:$0x1] }
 0x4b8   : > { %v4660_v42 = vsel %vm4463_vm2, %v18779_v11, %v17728_v31  ;;  %v4628_v23 = vsel %vm4463_vm2, %v18781_v61, %v17731_v59  ;;  %18782 = vst [vmem:[#allocation20_spill] sm:$0xff] %v15411_v52  ;;  %v5045_v1 = vsel %vm4848_vm3, %v18783_v10, %v17726_v39  ;;  %v17727_v16 = vrot.slane %v15411_v52, 1 }
 0x4b9   : > { %v5330_v30 = vmax.f32 %v18778_v37, %v4660_v42  ;;  %v5314_v56 = vmax.f32 %v18780_v0, %v4628_v23  ;;  %v5013_v11 = vsel %vm4848_vm3, %v18784_v20, %v17730_v41  ;;  %v17729_v42 = vrot.slane %v15411_v52, 2  ;;  %v18785_v23 = vld [vmem:[#allocation218_spill] sm:$0xff]  ;;  %v18787_v0 = vld [vmem:[#allocation188_spill] sm:$0xff]  ;;  %v18807_v52 = vld [vmem:[#allocation245_spill] sm:$0xff] }
 0x4ba   : > { %3932 = vrot.lane.b32.xlu0 %v3621_v60, %s10013_s22  ;;  %v15428_v35 = vmax.f32 %v18773_v36, %v18785_v23  ;;  %v3625_v37 = vmax.f32 %v15389_v58, %v15101_v24  ;;  %v18788_v10 = vrot.slane %v18787_v0, 1  ;;  %v15438_v39 = vpop.permute.xlu1 %3324  ;;  %v15440_v60 = vpop.permute.xlu0 %2786  ;;  %v18792_v23 = vld [vmem:[#allocation58_spill] sm:$0xff]  ;;  %v7264_v29 = vrot.slane %v7193_v43, 7 }
 0x4bb   : > { %v5458_v19 = vmax.f32 %v5330_v30, %v5045_v1  ;;  %v5442_v61 = vmax.f32 %v5314_v56, %v5013_v11  ;;  %3884 = vrot.lane.b32.xlu1 %v3597_v46, %s10013_s22  ;;  %v18789_v30 = vrot.slane %v18787_v0, 2  ;;  %v18790_v46 = vld [vmem:[#allocation185_spill] sm:$0xff]  ;;  %v18791_v11 = vld [vmem:[#allocation168_spill] sm:$0xff] }
 0x4bc   : > { %18786 = vst [vmem:[#allocation105_spill] sm:$0xff] %v15428_v35  ;;  %v4684_v20 = vsel %vm4463_vm2, %v18788_v10, %v17727_v16  ;;  %v3629_v24 = vmax.f32 %v15428_v35, %v15116_v2  ;;  %v3012_v1 = vmax.f32 %v18790_v46, %v15229_v22  ;;  %v18793_v10 = vld [vmem:[#allocation6_spill] sm:$0xff]  ;;  %v18794_v2 = vld [vmem:[#allocation81_spill] sm:$0xff]  ;;  %v18799_v46 = vld [vmem:[#allocation48_spill] sm:$0xff] }
 0x4bd   : > { %5587 = vst.msk [vmem:[#allocation2 + $0x308] sm:$0xff] %vm5489_vm4, %v5458_v19  ;;  %5571 = vst.msk [vmem:[#allocation2 + $0x288] sm:$0xff] %vm5489_vm4, %v5442_v61  ;;  %v5342_v36 = vmax.f32 %v18787_v0, %v4684_v20  ;;  %v5069_v56 = vsel %vm4848_vm3, %v18789_v30, %v17729_v42  ;;  %v3040_v19 = vmax.f32 %v18791_v11, %v15264_v47  ;;  %v18795_v16 = vld [vmem:[#allocation18_spill] sm:$0xff]  ;;  %v18797_v42 = vld [vmem:[#allocation35_spill] sm:$0xff] }
 0x4be   : > { %3940 = vrot.lane.b32.xlu0 %v3625_v37, %s10013_s22  ;;  %v15459_v20 = vmax.f32 %v18793_v10, %v18792_v23  ;;  %v15463_v31 = vmax.f32 %v18795_v16, %v18794_v2  ;;  %v4051_v0 = vpop.permute.xlu1 %4050  ;;  %v3995_v30 = vpop.permute.xlu0 %3994  ;;  %v18796_v37 = vld [vmem:[#allocation107_spill] sm:$0xff]  ;;  %v18798_v22 = vld [vmem:[#allocation125_spill] sm:$0xff]  ;;  %v6743_v11 = vld [vmem:[#allocation2 + $0x2a] sm:$0x1]  ;;  %v15497_v23 = vmax.f32 %v18808_v13, %v18807_v52 }
 0x4bf   : > { %v5470_v61 = vmax.f32 %v5342_v36, %v5069_v56  ;;  %3948 = vrot.lane.b32.xlu1 %v3629_v24, %s10013_s22  ;;  %v15468_v41 = vmax.f32 %v18797_v42, %v18796_v37  ;;  %v15472_v47 = vmax.f32 %v18799_v46, %v18798_v22  ;;  %v15476_v36 = vsel %vm4206_vm1, %v3040_v19, %v4051_v0  ;;  %v6968_v24 = vld [vmem:[#allocation2 + $0x2c] sm:$0x1]  ;;  %v18802_v22 = vld [vmem:[#allocation197_spill] sm:$0xff]  ;;  %v18805_v0 = vld [vmem:[#allocation23_spill] sm:$0xff] }
 0x4c0   : > { %18800 = vst [vmem:[#allocation32_spill] sm:$0xff] %v15476_v36  ;;  %v15479_v56 = vsel %vm4206_vm1, %v3012_v1, %v3995_v30  ;;  %v18806_v1 = vld [vmem:[#allocation97_spill] sm:$0xff]  ;;  %v18809_v2 = vld [vmem:[#allocation227_spill] sm:$0xff]  ;;  %v18811_v59 = vrot.slane %v15476_v36, 1  ;;  %v18817_v35 = vld [vmem:[#allocation190_spill] sm:$0xff]  ;;  %v7039_v58 = vrot.slane %v6968_v24, 7 }
 0x4c1   : > { %5599 = vst.msk [vmem:[#allocation2 + $0x368] sm:$0xff] %vm5489_vm4, %v5470_v61  ;;  %18801 = vst [vmem:[#allocation239_spill] sm:$0xff] %v15479_v56  ;;  %v18803_v61 = vld [vmem:[#allocation66_spill] sm:$0xff]  ;;  %v15493_v30 = vmax.f32 %v18806_v1, %v18805_v0  ;;  %v15501_v37 = vmax.f32 %v18802_v22, %v18809_v2  ;;  %v6742_v2 = vld [vmem:[#allocation2 + $0xa] sm:$0x1] }
 0x4c2   : > { %2684 = vrot.lane.b32.xlu0 %v18802_v22, %s10014_s23  ;;  %v15489_v19 = vmax.f32 %v18804_v8, %v18803_v61  ;;  %v4692_v51 = vsel %vm4463_vm2, %v18813_v7, %v18811_v59  ;;  %v18814_v61 = vrot.slane %v15479_v56, 1  ;;  %v15515_v52 = vpop.permute.xlu1 %3332  ;;  %v15517_v44 = vpop.permute.xlu0 %2794  ;;  %v6814_v22 = vrot.slane %v6743_v11, 7  ;;  %v18819_v59 = vld [vmem:[#allocation228_spill] sm:$0xff]  ;;  %v18822_v11 = vld [vmem:[#allocation241_spill] sm:$0xff] }
 0x4c3   : > { %18810 = vst [vmem:[#allocation220_spill] sm:$0xff] %v15501_v37  ;;  %2692 = vrot.lane.b32.xlu1 %v18817_v35, %s10014_s23  ;;  %v15521_v7 = vmax.f32 %v18817_v35, %v18818_v62  ;;  %v15525_v55 = vmax.f32 %v18820_v49, %v18819_v59  ;;  %v15533_v24 = vmax.f32 %v18822_v11, %v18821_v57  ;;  %v18825_v35 = vrot.slane %v15476_v36, 2  ;;  %v6745_v57 = vld [vmem:[#allocation2 + $0x6a] sm:$0x1] }
 0x4c4   : > { %v4636_v0 = vsel %vm4463_vm2, %v18816_v38, %v18814_v61  ;;  %v5346_v38 = vmax.f32 %v18812_v4, %v4692_v51  ;;  %v15537_v62 = vmax.f32 %v18824_v63, %v18823_v54  ;;  %v18826_v59 = vrot.slane %v18812_v4, 2  ;;  %v7194_v4 = vld [vmem:[#allocation2 + $0x4e] sm:$0x1] }
 0x4c5   : > { %v5318_v61 = vmax.f32 %v18815_v27, %v4636_v0  ;;  %v18827_v0 = vrot.slane %v15479_v56, 2  ;;  %v6815_v36 = vsel %vm5731_vm5, %v6814_v22, %v6742_v2  ;;  %v3016_v27 = vmax.f32 %v14402_v5, %v15334_v53  ;;  %v18830_v2 = vld [vmem:[#allocation141_spill] sm:$0xff]  ;;  %v6970_v53 = vld [vmem:[#allocation2 + $0x6c] sm:$0x1]  ;;  %v6753_v56 = vld [vmem:[#allocation2 + $0x16a] sm:$0x1] }
 0x4c6   : > { %v5077_v51 = vsel %vm4848_vm3, %v18826_v59, %v18825_v35  ;;  %2748 = vrot.lane.b32.xlu0 %v18797_v42, %s10014_s23  ;;  %v15554_v35 = vld [vmem:[#allocation2 + $0x12e] sm:$0x1]  ;;  %v6816_v42 = vrot.slane %v6744_v32, 6  ;;  %v15562_v59 = vld [vmem:[#allocation2 + $0x14a] sm:$0x1]  ;;  %v4003_v5 = vpop.permute.xlu1 %4002  ;;  %v6818_v43 = vrot.slane %v6745_v57, 5  ;;  %v3044_v57 = vmax.f32 %v18621_v50, %v15332_v34 }
 0x4c7   : > { %v5021_v48 = vsel %vm4848_vm3, %v18828_v14, %v18827_v0  ;;  %v5474_v54 = vmax.f32 %v5346_v38, %v5077_v51  ;;  %2676 = vrot.lane.b32.xlu1 %v18808_v13, %s10014_s23  ;;  %v15560_v14 = vpop.permute.xlu0 %3388  ;;  %v6828_v38 = vrot.slane %v15529_v45, 7  ;;  %v7040_v13 = vsel %vm5731_vm5, %v7039_v58, %v6967_v12  ;;  %v7192_v51 = vld [vmem:[#allocation2 + $0xe] sm:$0x1]  ;;  %v6746_v58 = vld [vmem:[#allocation2 + $0x8a] sm:$0x1]  ;;  %v18832_v34 = vld [vmem:[#allocation102_spill] sm:$0xff] }
 0x4c8   : > { %v5446_v15 = vmax.f32 %v5318_v61, %v5021_v48  ;;  %v7041_v48 = vrot.slane %v6969_v6, 6  ;;  %v18829_v61 = vld [vmem:[#allocation120_spill] sm:$0xff]  ;;  %v7053_v32 = vrot.slane %v15551_v21, 7  ;;  %v15574_v0 = vsel %vm4206_vm1, %v3016_v27, %v4003_v5 }
 0x4c9   : > { %v15567_v22 = vmax.f32 %v18830_v2, %v18829_v61  ;;  %5603 = vst.msk [vmem:[#allocation2 + $0x388] sm:$0xff] %vm5489_vm4, %v5474_v54  ;;  %18831 = vst [vmem:[#allocation126_spill] sm:$0xff] %v15574_v0  ;;  %v6817_v6 = vsel %vm5734_vm6, %v6816_v42, %v6815_v36  ;;  %v7195_v45 = vld [vmem:[#allocation2 + $0x6e] sm:$0x1]  ;;  %v7266_v54 = vrot.slane %v7194_v4, 6  ;;  %v17775_v12 = vrot.slane %v15574_v0, 1 }
 0x4ca   : > { %5575 = vst.msk [vmem:[#allocation2 + $0x2a8] sm:$0xff] %vm5489_vm4, %v5446_v15  ;;  %2700 = vrot.lane.b32.xlu0 %v18820_v49, %s10014_s23  ;;  %v6830_v27 = vrot.slane %v15562_v59, 6  ;;  %v3637_v61 = vmax.f32 %v15501_v37, %v15438_v39  ;;  %v6750_v36 = vld [vmem:[#allocation2 + $0x10a] sm:$0x1]  ;;  %v7042_v4 = vsel %vm5734_vm6, %v7041_v48, %v7040_v13  ;;  %v7043_v42 = vrot.slane %v6970_v53, 5  ;;  %v15596_v21 = vpop.permute.xlu1 %3316 }
 0x4cb   : > { %2756 = vrot.lane.b32.xlu1 %v18799_v46, %s10014_s23  ;;  %v4059_v49 = vpop.permute.xlu0 %4058  ;;  %v6977_v5 = vld [vmem:[#allocation2 + $0x14c] sm:$0x1]  ;;  %v7265_v50 = vsel %vm5731_vm5, %v7264_v29, %v7192_v51  ;;  %v18833_v15 = vrot.slane %v18832_v34, 1  ;;  %v6819_v46 = vsel %vm5737_vm7, %v6818_v43, %v6817_v6  ;;  %v7268_v48 = vrot.slane %v7195_v45, 5 }
 0x4cc   : > { %v15599_v39 = vsel %vm4206_vm1, %v3044_v57, %v4059_v49  ;;  %v6971_v37 = vld [vmem:[#allocation2 + $0x8c] sm:$0x1]  ;;  %v6820_v51 = vrot.slane %v6746_v58, 4  ;;  %v18836_v57 = vrot.slane %v18832_v34, 2  ;;  %v6829_v6 = vsel %vm5731_vm5, %v6828_v38, %v6750_v36  ;;  %v7196_v38 = vld [vmem:[#allocation2 + $0x8e] sm:$0x1] }
 0x4cd   : > { %v4644_v59 = vsel %vm4463_vm2, %v18833_v15, %v17775_v12  ;;  %18834 = vst [vmem:[#allocation49_spill] sm:$0xff] %v15599_v39  ;;  %v15606_v15 = vld [vmem:[#allocation2 + $0x14e] sm:$0x1]  ;;  %v18835_v12 = vrot.slane %v15574_v0, 2  ;;  %v6975_v45 = vld [vmem:[#allocation2 + $0x10c] sm:$0x1] }
 0x4ce   : > { %v5322_v53 = vmax.f32 %v18832_v34, %v4644_v59  ;;  %3964 = vrot.lane.b32.xlu0 %v3637_v61, %s10013_s22  ;;  %v7055_v49 = vrot.slane %v6977_v5, 6  ;;  %v7267_v59 = vsel %vm5734_vm6, %v7266_v54, %v7265_v50  ;;  %v18837_v13 = vrot.slane %v15599_v39, 1  ;;  %v15625_v5 = vpop.permute.xlu1 %3396 }
 0x4cf   : > { %v5029_v43 = vsel %vm4848_vm3, %v18836_v57, %v18835_v12  ;;  %v18839_v61 = vrot.slane %v18838_v28, 1  ;;  %2708 = vrot.lane.b32.xlu1 %v18822_v11, %s10014_s23  ;;  %v15622_v0 = vpop.permute.xlu0 %3340  ;;  %v6832_v34 = vrot.slane %v6753_v56, 5  ;;  %v7045_v12 = vrot.slane %v6971_v37, 4  ;;  %v6978_v57 = vld [vmem:[#allocation2 + $0x16c] sm:$0x1] }
 0x4d0   : > { %v5450_v29 = vmax.f32 %v5322_v53, %v5029_v43  ;;  %v7044_v54 = vsel %vm5737_vm7, %v7043_v42, %v7042_v4  ;;  %v7269_v50 = vsel %vm5737_vm7, %v7268_v48, %v7267_v59  ;;  %v7280_v53 = vrot.slane %v15606_v15, 6  ;;  %v7200_v48 = vld [vmem:[#allocation2 + $0x10e] sm:$0x1] }
 0x4d1   : > { %v4700_v58 = vsel %vm4463_vm2, %v18839_v61, %v18837_v13  ;;  %v18840_v11 = vrot.slane %v15599_v39, 2  ;;  %v18841_v13 = vrot.slane %v18838_v28, 2  ;;  %v15639_v37 = vsel %vm5740_vm8, %v6820_v51, %v6819_v46  ;;  %v15643_v15 = vld [vmem:[#allocation2 + $0x16e] sm:$0x1]  ;;  %v6747_v51 = vld [vmem:[#allocation2 + $0xaa] sm:$0x1] }
 0x4d2   : > { %v5350_v36 = vmax.f32 %v18838_v28, %v4700_v58  ;;  %5579 = vst.msk [vmem:[#allocation2 + $0x2c8] sm:$0xff] %vm5489_vm4, %v5450_v29  ;;  %2740 = vrot.lane.b32.xlu0 %v18795_v16, %s10014_s23  ;;  %v6831_v4 = vsel %vm5734_vm6, %v6830_v27, %v6829_v6  ;;  %v7054_v42 = vsel %vm5731_vm5, %v7053_v32, %v6975_v45  ;;  %v7057_v28 = vrot.slane %v6978_v57, 5  ;;  %v6754_v6 = vld [vmem:[#allocation2 + $0x18a] sm:$0x1]  ;;  %v6972_v57 = vld [vmem:[#allocation2 + $0xac] sm:$0x1] }
 0x4d3   : > { %v5085_v56 = vsel %vm4848_vm3, %v18841_v13, %v18840_v11  ;;  %v3020_v29 = vmax.f32 %v14703_v33, %v15404_v25  ;;  %v7270_v59 = vrot.slane %v7196_v38, 4  ;;  %v3048_v61 = vmax.f32 %v14718_v18, %v15440_v60  ;;  %2764 = vrot.lane.b32.xlu1 %v18804_v8, %s10014_s23  ;;  %v4011_v27 = vpop.permute.xlu0 %4010  ;;  %v4067_v33 = vpop.permute.xlu1 %4066  ;;  %v7197_v11 = vld [vmem:[#allocation2 + $0xae] sm:$0x1] }
 0x4d4   : > { %v5478_v43 = vmax.f32 %v5350_v36, %v5085_v56  ;;  %v3641_v16 = vmax.f32 %v15521_v7, %v15515_v52  ;;  %v6833_v32 = vsel %vm5737_vm7, %v6832_v34, %v6831_v4  ;;  %v7046_v46 = vsel %vm5740_vm8, %v7045_v12, %v7044_v54  ;;  %v6748_v36 = vld [vmem:[#allocation2 + $0xca] sm:$0x1] }
 0x4d5   : > { %v15657_v25 = vsel %vm4206_vm1, %v3020_v29, %v4011_v27  ;;  %v7056_v18 = vsel %vm5734_vm6, %v7055_v49, %v7054_v42  ;;  %v18843_v60 = vrot.slane %v15554_v35, 7  ;;  %v7282_v8 = vrot.slane %v15643_v15, 5  ;;  %v6979_v49 = vld [vmem:[#allocation2 + $0x18c] sm:$0x1] }
 0x4d6   : > { %5607 = vst.msk [vmem:[#allocation2 + $0x3a8] sm:$0xff] %vm5489_vm4, %v5478_v43  ;;  %18842 = vst [vmem:[#allocation147_spill] sm:$0xff] %v15657_v25  ;;  %v3669_v45 = vmax.f32 %v15468_v41, %v15560_v14  ;;  %v15667_v58 = vsel %vm4206_vm1, %v3048_v61, %v4067_v33  ;;  %v17784_v34 = vrot.slane %v15657_v25, 1  ;;  %v17783_v12 = vrot.slane %v15657_v25, 2  ;;  %3972 = vrot.lane.b32.xlu0 %v3641_v16, %s10013_s22  ;;  %v18845_v13 = vld [vmem:[#allocation192_spill] sm:$0xff] }
 0x4d7   : > { %v7279_v52 = vsel %vm5731_vm5, %v18843_v60, %v7200_v48  ;;  %18844 = vst [vmem:[#allocation71_spill] sm:$0xff] %v15667_v58  ;;  %v17780_v35 = vrot.slane %v15667_v58, 1  ;;  %v17779_v38 = vrot.slane %v15667_v58, 2  ;;  %v7058_v54 = vsel %vm5737_vm7, %v7057_v28, %v7056_v18  ;;  %v15682_v42 = vpop.permute.xlu0 %2268  ;;  %v6973_v29 = vld [vmem:[#allocation2 + $0xcc] sm:$0x1]  ;;  %v15693_v27 = vpop.permute.xlu1 %3348 }
 0x4d8   : > { %v7271_v14 = vsel %vm5740_vm8, %v7270_v59, %v7269_v50  ;;  %v18846_v56 = vrot.slane %v18845_v13, 1  ;;  %4028 = vrot.lane.b32.xlu1 %v3669_v45, %s10013_s22  ;;  %v6822_v48 = vrot.slane %v6747_v51, 3  ;;  %v6834_v15 = vrot.slane %v6754_v6, 4  ;;  %v15684_v43 = vld [vmem:[#allocation2 + $0x18e] sm:$0x1]  ;;  %v18847_v50 = vld [vmem:[#allocation142_spill] sm:$0xff] }
 0x4d9   : > { %v7281_v28 = vsel %vm5734_vm6, %v7280_v53, %v7279_v52  ;;  %v18848_v59 = vrot.slane %v18847_v50, 1  ;;  %v7047_v33 = vrot.slane %v6972_v57, 3  ;;  %v7059_v18 = vrot.slane %v6979_v49, 4  ;;  %v6534_v60 = vld [vmem:[#allocation2 + $0x228] sm:$0x1] }
 0x4da   : > { %v4652_v4 = vsel %vm4463_vm2, %v18846_v56, %v17784_v34  ;;  %v18849_v6 = vrot.slane %v18845_v13, 2  ;;  %2716 = vrot.lane.b32.xlu0 %v18824_v63, %s10014_s23  ;;  %v6824_v52 = vrot.slane %v6748_v36, 2  ;;  %v7272_v45 = vrot.slane %v7197_v11, 3  ;;  %v6533_v36 = vld [vmem:[#allocation2 + $0x208] sm:$0x1] }
 0x4db   : > { %v4708_v61 = vsel %vm4463_vm2, %v18848_v59, %v17780_v35  ;;  %v5326_v16 = vmax.f32 %v18845_v13, %v4652_v4  ;;  %v18850_v56 = vrot.slane %v18847_v50, 2  ;;  %v7049_v4 = vrot.slane %v6973_v29, 2  ;;  %v15708_v59 = vld [vmem:[#allocation2 + $0xce] sm:$0x1]  ;;  %v15715_v63 = vpop.permute.xlu0 %3380  ;;  %v6536_v11 = vld [vmem:[#allocation2 + $0x268] sm:$0x1] }
 0x4dc   : > { %v5354_v51 = vmax.f32 %v18847_v50, %v4708_v61  ;;  %v5037_v53 = vsel %vm4848_vm3, %v18849_v6, %v17783_v12  ;;  %v7284_v13 = vrot.slane %v15684_v43, 4  ;;  %v3633_v61 = vmax.f32 %v15497_v23, %v15596_v21  ;;  %2772 = vrot.lane.b32.xlu1 %v18806_v1, %s10014_s23  ;;  %v7001_v1 = vld [vmem:[%s17211_s3 + $0x190] sm:$0xff]  ;;  %v15753_v35 = vld [vmem:[#allocation2 + $0xea] sm:$0x1] }
 0x4dd   : > { %v5093_v57 = vsel %vm4848_vm3, %v18850_v56, %v17779_v38  ;;  %v5454_v49 = vmax.f32 %v5326_v16, %v5037_v53  ;;  %v6823_v50 = vsel %vm5743_vm9, %v6822_v48, %v15639_v37  ;;  %v6755_v16 = vld [vmem:[#allocation2 + $0x1aa] sm:$0x1]  ;;  %v15720_v29 = vsel %vm5737_vm7, %v7282_v8, %v7281_v28  ;;  %v6535_v53 = vld [vmem:[#allocation2 + $0x248] sm:$0x1]  ;;  %v15734_v8 = vpop.permute.xlu1 %3404 }
 0x4de   : > { %v5482_v6 = vmax.f32 %v5354_v51, %v5093_v57  ;;  %v6537_v56 = vld [vmem:[#allocation2 + $0x288] sm:$0x1]  ;;  %v6617_v21 = vrot.slane %v6534_v60, 7  ;;  %v6835_v51 = vsel %vm5740_vm8, %v6834_v15, %v6833_v32  ;;  %v7048_v57 = vsel %vm5743_vm9, %v7047_v33, %v7046_v46  ;;  %3956 = vrot.lane.b32.xlu0 %v3633_v61, %s10013_s22  ;;  %v7002_v46 = vld [vmem:[%s17211_s3 + $0x198] sm:$0xff]  ;;  %v15743_v15 = vld [vmem:[#allocation2 + $0x1ac] sm:$0x1] }
 0x4df   : > { %5583 = vst.msk [vmem:[#allocation2 + $0x2e8] sm:$0xff] %vm5489_vm4, %v5454_v49  ;;  %v15729_v38 = vsel %vm5740_vm8, %v7059_v18, %v7058_v54  ;;  %v3645_v37 = vmax.f32 %v15525_v55, %v15622_v0  ;;  %v6538_v48 = vld [vmem:[#allocation2 + $0x2a8] sm:$0x1]  ;;  %v15738_v32 = vsel %vm5746_vm10, %v6824_v52, %v6823_v50  ;;  %v7273_v54 = vsel %vm5743_vm9, %v7272_v45, %v7271_v14  ;;  %v4075_v61 = vpop.permute.xlu0 %4074  ;;  %v15758_v45 = vld [vmem:[#allocation2 + $0x1ae] sm:$0x1] }
 0x4e0   : > { %5611 = vst.msk [vmem:[#allocation2 + $0x3c8] sm:$0xff] %vm5489_vm4, %v5482_v6  ;;  %v7274_v0 = vrot.slane %v15708_v59, 2  ;;  %v3052_v28 = vmax.f32 %v14840_v40, %v15517_v44  ;;  %v6539_v33 = vld [vmem:[#allocation2 + $0x2c8] sm:$0x1]  ;;  %v6618_v18 = vsel %vm5731_vm5, %v6617_v21, %v6533_v36  ;;  %v6621_v60 = vrot.slane %v6536_v11, 5 }
 0x4e1   : > { %v6836_v49 = vrot.slane %v6755_v16, 3  ;;  %v3673_v52 = vmax.f32 %v15472_v47, %v15625_v5  ;;  %3980 = vrot.lane.b32.xlu1 %v3645_v37, %s10013_s22  ;;  %v6619_v6 = vrot.slane %v6535_v53, 6  ;;  %v6623_v50 = vrot.slane %v6537_v56, 4  ;;  %v15763_v59 = vld [vmem:[#allocation2 + $0x1ca] sm:$0x1]  ;;  %v15770_v16 = vpop.permute.xlu1 %2276 }
 0x4e2   : > { %v15756_v14 = vsel %vm5746_vm10, %v7049_v4, %v7048_v57  ;;  %v15761_v40 = vsel %vm4206_vm1, %v3052_v28, %v4075_v61  ;;  %v6625_v44 = vrot.slane %v6538_v48, 3  ;;  %v15765_v36 = vpack.c.bf16 %v7002_v46, %v7001_v1  ;;  %v15767_v5 = vld [vmem:[#allocation2 + $0xec] sm:$0x1]  ;;  %v15781_v46 = vld [vmem:[#allocation2 + $0xee] sm:$0x1]  ;;  %v18852_v28 = vld [vmem:[#allocation74_spill] sm:$0xff] }
 0x4e3   : > { %18851 = vst [vmem:[#allocation163_spill] sm:$0xff] %v15761_v40  ;;  %v7061_v11 = vrot.slane %v15743_v15, 3  ;;  %v17782_v53 = vrot.slane %v15761_v40, 1  ;;  %v17781_v4 = vrot.slane %v15761_v40, 2  ;;  %4036 = vrot.lane.b32.xlu0 %v3673_v52, %s10013_s22  ;;  %v6620_v56 = vsel %vm5734_vm6, %v6619_v6, %v6618_v18  ;;  %v15776_v57 = vld [vmem:[#allocation2 + $0x1cc] sm:$0x1] }
 0x4e4   : > { %v6627_v21 = vrot.slane %v6539_v33, 2  ;;  %v6622_v1 = vsel %vm5737_vm7, %v6621_v60, %v6620_v56  ;;  %v6826_v37 = vrot.slane %v15753_v35, 1  ;;  %v6837_v48 = vsel %vm5743_vm9, %v6836_v49, %v6835_v51  ;;  %v15791_v33 = vpop.permute.xlu0 %3356  ;;  %v15796_v49 = vld [vmem:[#allocation2 + $0x1ce] sm:$0x1]  ;;  %v6767_v25 = vld [vmem:[#allocation2 + $0x32a] sm:$0x1] }
 0x4e5   : > { %v7286_v15 = vrot.slane %v15758_v45, 3  ;;  %v18853_v61 = vrot.slane %v18852_v28, 1  ;;  %2724 = vrot.lane.b32.xlu1 %v18830_v2, %s10014_s23  ;;  %v6624_v35 = vsel %vm5740_vm8, %v6623_v50, %v6622_v1  ;;  %v6838_v51 = vrot.slane %v15763_v59, 2  ;;  %v15808_v1 = vpop.permute.xlu1 %3412 }
 0x4e6   : > { %v6540_v18 = vld [vmem:[#allocation2 + $0x2e8] sm:$0x1]  ;;  %v7051_v60 = vrot.slane %v15767_v5, 1  ;;  %v6626_v45 = vsel %vm5743_vm9, %v6625_v44, %v6624_v35  ;;  %v3649_v2 = vmax.f32 %v15533_v24, %v15693_v27  ;;  %v18854_v50 = vrot.slane %v18852_v28, 2  ;;  %v15821_v35 = vld [vmem:[#allocation2 + $0x1ea] sm:$0x1] }
 0x4e7   : > { %v4716_v52 = vsel %vm4463_vm2, %v18853_v61, %v17782_v53  ;;  %v6629_v56 = vrot.slane %v6540_v18, 1  ;;  %v7063_v61 = vrot.slane %v15776_v57, 2  ;;  %2780 = vrot.lane.b32.xlu0 %v18655_v26, %s10014_s23  ;;  %v6628_v5 = vsel %vm5746_vm10, %v6627_v21, %v6626_v45  ;;  %v6542_v44 = vld [vmem:[#allocation2 + $0x328] sm:$0x1]  ;;  %v7003_v57 = vld [vmem:[%s17211_s3 + $0x1a0] sm:$0xff]  ;;  %v7005_v21 = vld [vmem:[%s17211_s3 + $0x1b0] sm:$0xff] }
 0x4e8   : > { %v5358_v6 = vmax.f32 %v18852_v28, %v4716_v52  ;;  %v5101_v59 = vsel %vm4848_vm3, %v18854_v50, %v17781_v4  ;;  %v7004_v27 = vld [vmem:[%s17211_s3 + $0x1a8] sm:$0xff]  ;;  %v7276_v28 = vrot.slane %v15781_v46, 1  ;;  %v7006_v45 = vld [vmem:[%s17211_s3 + $0x1b8] sm:$0xff]  ;;  %v7275_v4 = vsel %vm5746_vm10, %v7274_v0, %v7273_v54  ;;  %v7224_v54 = vld [vmem:[%s17211_s3 + $0x1c0] sm:$0xff] }
 0x4e9   : > { %v6630_v18 = vsel %vm5749_vm11, %v6629_v56, %v6628_v5  ;;  %v15829_v50 = vld [vmem:[#allocation2 + $0x1ec] sm:$0x1]  ;;  %v7288_v53 = vrot.slane %v15796_v49, 2  ;;  %v3665_v46 = vmax.f32 %v15463_v31, %v15715_v63  ;;  %3988 = vrot.lane.b32.xlu1 %v3649_v2, %s10013_s22  ;;  %v6541_v56 = vld [vmem:[#allocation2 + $0x308] sm:$0x1]  ;;  %v7062_v12 = vsel %vm5743_vm9, %v7061_v11, %v15729_v38 }
 0x4ea   : > { %v5486_v52 = vmax.f32 %v5358_v6, %v5101_v59  ;;  %9438 = vmatprep.mubr.msk.f32.mxu1 %vm5489_vm4, %v6630_v18  ;;  %v15837_v6 = vpop.permute.xlu0 %2284  ;;  %v6544_v59 = vld [vmem:[#allocation2 + $0x368] sm:$0x1]  ;;  %v6759_v5 = vld [vmem:[#allocation2 + $0x22a] sm:$0x1]  ;;  %v15844_v0 = vld [vmem:[#allocation2 + $0x1ee] sm:$0x1]  ;;  %v7285_v63 = vsel %vm5740_vm8, %v7284_v13, %v15720_v29  ;;  %v15853_v34 = vsel %vm5749_vm11, %v6826_v37, %v15738_v32  ;;  %v15855_v38 = vpack.c.bf16 %v7004_v27, %v7003_v57  ;;  %v15863_v13 = vpop.permute.xlu1 %3364 }
 0x4eb   : > { %v6543_v49 = vld [vmem:[#allocation2 + $0x348] sm:$0x1]  ;;  %v6631_v18 = vrot.slane %v6542_v44, 7  ;;  %v7287_v40 = vsel %vm5743_vm9, %v7286_v15, %v7285_v63  ;;  %v3677_v43 = vmax.f32 %v15489_v19, %v15734_v8  ;;  %4020 = vrot.lane.b32.xlu0 %v3665_v46, %s10013_s22  ;;  %v6839_v44 = vsel %vm5746_vm10, %v6838_v51, %v6837_v48  ;;  %v6760_v37 = vld [vmem:[#allocation2 + $0x24a] sm:$0x1] }
 0x4ec   : > { %5615 = vst.msk [vmem:[#allocation2 + $0x3e8] sm:$0xff] %vm5489_vm4, %v5486_v52  ;;  %v6545_v2 = vld [vmem:[#allocation2 + $0x388] sm:$0x1]  ;;  %v6840_v32 = vrot.slane %v15821_v35, 1  ;;  %v7065_v57 = vrot.slane %v15829_v50, 1  ;;  %v6635_v58 = vrot.slane %v6544_v59, 5  ;;  %v15872_v8 = vsel %vm5749_vm11, %v7051_v60, %v15756_v14 }
 0x4ed   : > { %v7225_v11 = vld [vmem:[%s17211_s3 + $0x1c8] sm:$0xff]  ;;  %v6632_v52 = vsel %vm5731_vm5, %v6631_v18, %v6541_v56  ;;  %v6842_v63 = vrot.slane %v6759_v5, 7  ;;  %4044 = vrot.lane.b32.xlu1 %v3677_v43, %s10013_s22  ;;  %v6633_v48 = vrot.slane %v6543_v49, 6  ;;  %v6637_v51 = vrot.slane %v6545_v2, 4 }
 0x4ee   : > { %v6546_v29 = vld [vmem:[#allocation2 + $0x3a8] sm:$0x1]  ;;  %v6758_v15 = vld [vmem:[#allocation2 + $0x20a] sm:$0x1]  ;;  %v15875_v46 = vpop.permute.xlu0 %3420  ;;  %v15877_v39 = vpack.c.bf16 %v7006_v45, %v7005_v21  ;;  %v7064_v50 = vsel %vm5746_vm10, %v7063_v61, %v7062_v12  ;;  %v15880_v59 = vpack.c.bf16 %v7225_v11, %v7224_v54  ;;  %v15883_v5 = vsel %vm5749_vm11, %v7276_v28, %v7275_v4  ;;  %v15886_v60 = vpop.permute.xlu1 %3372 }
 0x4ef   : > { %v6547_v27 = vld [vmem:[#allocation2 + $0x3c8] sm:$0x1]  ;;  %v6761_v35 = vld [vmem:[#allocation2 + $0x26a] sm:$0x1]  ;;  %v6639_v56 = vrot.slane %v6546_v29, 3  ;;  %v7290_v14 = vrot.slane %v15844_v0, 1  ;;  %2732 = vrot.lane.b32.xlu0 %v18793_v10, %s10014_s23  ;;  %v6634_v49 = vsel %vm5734_vm6, %v6633_v48, %v6632_v52  ;;  %v6843_v45 = vsel %vm5731_vm5, %v6842_v63, %v6758_v15 }
 0x4f0   : > { %v6641_v2 = vrot.slane %v6547_v27, 2  ;;  %v6762_v21 = vld [vmem:[#allocation2 + $0x28a] sm:$0x1]  ;;  %v6844_v12 = vrot.slane %v6760_v37, 6  ;;  %v6636_v54 = vsel %vm5737_vm7, %v6635_v58, %v6634_v49  ;;  %v6846_v4 = vrot.slane %v6761_v35, 5 }
 0x4f1   : > { %v6768_v61 = vld [vmem:[#allocation2 + $0x34a] sm:$0x1]  ;;  %v6856_v11 = vrot.slane %v6767_v25, 7  ;;  %v7289_v0 = vsel %vm5746_vm10, %v7288_v53, %v7287_v40  ;;  %v3653_v43 = vmax.f32 %v15537_v62, %v15791_v33  ;;  %2788 = vrot.lane.b32.xlu1 %v18677_v9, %s10014_s23  ;;  %v6638_v37 = vsel %vm5740_vm8, %v6637_v51, %v6636_v54 }
 0x4f2   : > { %v6763_v18 = vld [vmem:[#allocation2 + $0x2aa] sm:$0x1]  ;;  %v15898_v10 = vpop.permute.xlu0 %3428  ;;  %v6841_v27 = vsel %vm5749_vm11, %v6840_v32, %v6839_v44  ;;  %v15903_v15 = vsel %vm5749_vm11, %v7065_v57, %v7064_v50  ;;  %v6640_v25 = vsel %vm5743_vm9, %v6639_v56, %v6638_v37  ;;  %v6845_v33 = vsel %vm5734_vm6, %v6844_v12, %v6843_v45  ;;  %v15909_v49 = vpop.permute.xlu1 %3436  ;;  %v7226_v50 = vld [vmem:[%s17211_s3 + $0x1d0] sm:$0xff]  ;;  %v7227_v56 = vld [vmem:[%s17211_s3 + $0x1d8] sm:$0xff] }
 0x4f3   : > { %v6766_v28 = vld [vmem:[#allocation2 + $0x30a] sm:$0x1]  ;;  %v6548_v29 = vld [vmem:[#allocation2 + $0x3e8] sm:$0x1]  ;;  %v6848_v63 = vrot.slane %v6762_v21, 4  ;;  %v3681_v35 = vmax.f32 %v15493_v30, %v15808_v1  ;;  %3996 = vrot.lane.b32.xlu0 %v3653_v43, %s10013_s22  ;;  %v6642_v44 = vsel %vm5746_vm10, %v6641_v2, %v6640_v25  ;;  %v6850_v32 = vrot.slane %v6763_v18, 3 }
 0x4f4   : > { %v6764_v58 = vld [vmem:[#allocation2 + $0x2ca] sm:$0x1]  ;;  %v6643_v40 = vrot.slane %v6548_v29, 1  ;;  %v6857_v51 = vsel %vm5731_vm5, %v6856_v11, %v6766_v28  ;;  %v6858_v12 = vrot.slane %v6768_v61, 6  ;;  %v6847_v18 = vsel %vm5737_vm7, %v6846_v4, %v6845_v33  ;;  %v6984_v29 = vld [vmem:[#allocation2 + $0x22c] sm:$0x1] }
 0x4f5   : > { %v6769_v52 = vld [vmem:[#allocation2 + $0x36a] sm:$0x1]  ;;  %v6852_v21 = vrot.slane %v6764_v58, 2  ;;  %4052 = vrot.lane.b32.xlu1 %v3681_v35, %s10013_s22  ;;  %v15927_v37 = vsel %vm5749_vm11, %v7290_v14, %v7289_v0  ;;  %v6849_v61 = vsel %vm5740_vm8, %v6848_v63, %v6847_v18  ;;  %v15933_v25 = vpack.c.bf16 %v7227_v56, %v7226_v50  ;;  %v15946_v33 = vld [vmem:[#allocation2 + $0x24c] sm:$0x1] }
 0x4f6   : > { %v6765_v53 = vld [vmem:[#allocation2 + $0x2ea] sm:$0x1]  ;;  %v6644_v1 = vsel %vm5749_vm11, %v6643_v40, %v6642_v44  ;;  %v6860_v54 = vrot.slane %v6769_v52, 5  ;;  %v15923_v2 = vpop.permute.xlu0 %2556  ;;  %v6859_v58 = vsel %vm5734_vm6, %v6858_v12, %v6857_v51  ;;  %v7209_v40 = vld [vmem:[#allocation2 + $0x22e] sm:$0x1]  ;;  %v15937_v4 = vmax.f32 %v18655_v26, %v15682_v42  ;;  %v15941_v14 = vpop.permute.xlu1 %2564  ;;  %v7231_v12 = vld [vmem:[%s17211_s3 + $0x1f8] sm:$0xff] }
 0x4f7   : > { %v6770_v48 = vld [vmem:[#allocation2 + $0x38a] sm:$0x1]  ;;  %9439 = vmatmul.mubr.msk.f32.gmra.mrb[68].mxu1 %vm5489_vm4, %v6644_v1  ;;  %v6854_v28 = vrot.slane %v6765_v53, 1  ;;  %v3657_v53 = vmax.f32 %v15567_v22, %v15863_v13  ;;  %2796 = vrot.lane.b32.xlu0 %v14929_v3, %s10014_s23  ;;  %v15948_v63 = vld [vmem:[#allocation2 + $0x24e] sm:$0x1]  ;;  %v7067_v35 = vrot.slane %v6984_v29, 7  ;;  %v15981_v18 = vmax.f32 %v18677_v9, %v15770_v16 }
 0x4f8   : > { %v6771_v57 = vld [vmem:[#allocation2 + $0x3aa] sm:$0x1]  ;;  %v6862_v43 = vrot.slane %v6770_v48, 4  ;;  %9457 = vmatprep.mubr.msk.f32.mxu1 %vm5489_vm4, %v15853_v34  ;;  %v6851_v34 = vsel %vm5743_vm9, %v6850_v32, %v6849_v61  ;;  %v6861_v26 = vsel %vm5737_vm7, %v6860_v54, %v6859_v58  ;;  %v7228_v13 = vld [vmem:[%s17211_s3 + $0x1e0] sm:$0xff]  ;;  %v3685_v44 = vmax.f32 %v15937_v4, %v15875_v46  ;;  %v6983_v50 = vld [vmem:[#allocation2 + $0x20c] sm:$0x1] }
 0x4f9   : > { %v6772_v45 = vld [vmem:[#allocation2 + $0x3ca] sm:$0x1]  ;;  %v6864_v52 = vrot.slane %v6771_v57, 3  ;;  %v6853_v48 = vsel %vm5746_vm10, %v6852_v21, %v6851_v34  ;;  %4004 = vrot.lane.b32.xlu1 %v3657_v53, %s10013_s22  ;;  %v15963_v56 = vld [vmem:[#allocation2 + $0x26c] sm:$0x1]  ;;  %v7069_v21 = vrot.slane %v15946_v33, 6  ;;  %v7068_v9 = vsel %vm5731_vm5, %v7067_v35, %v6983_v50 }
 0x4fa   : > { %v6773_v11 = vld [vmem:[#allocation2 + $0x3ea] sm:$0x1]  ;;  %v6866_v0 = vrot.slane %v6772_v45, 2  ;;  %v15959_v32 = vpop.permute.xlu0 %2620  ;;  %v6855_v57 = vsel %vm5749_vm11, %v6854_v28, %v6853_v48  ;;  %v6863_v51 = vsel %vm5740_vm8, %v6862_v43, %v6861_v26  ;;  %v6992_v1 = vld [vmem:[#allocation2 + $0x32c] sm:$0x1]  ;;  %v7230_v45 = vld [vmem:[%s17211_s3 + $0x1f0] sm:$0xff]  ;;  %v3661_v28 = vmax.f32 %v15459_v20, %v15886_v60 }
 0x4fb   : > { %v6868_v42 = vrot.slane %v6773_v11, 1  ;;  %9458 = vmatmul.mubr.msk.f32.vlgmr.msra.gmra.mrb[66].mxu1 %vm5489_vm4, %v6841_v27  ;;  %v6865_v46 = vsel %vm5743_vm9, %v6864_v52, %v6863_v51  ;;  %v7229_v27 = vld [vmem:[%s17211_s3 + $0x1e8] sm:$0xff]  ;;  %v7292_v54 = vrot.slane %v7209_v40, 7  ;;  %v15985_v11 = vpop.permute.xlu1 %2548  ;;  %4060 = vrot.lane.b32.xlu0 %v3685_v44, %s10013_s22  ;;  %v7071_v16 = vrot.slane %v15963_v56, 5 }
 0x4fc   : > { %9780 = vmatpush3.bf16.msra.mxu1 %v15169_v17  ;;  %9460 = vmatprep.mubr.msk.f32.mxu1 %vm5489_vm4, %v6855_v57  ;;  %v7294_v17 = vrot.slane %v15948_v63, 6  ;;  %v6867_v43 = vsel %vm5746_vm10, %v6866_v0, %v6865_v46  ;;  %v7208_v29 = vld [vmem:[#allocation2 + $0x20e] sm:$0x1]  ;;  %v6987_v40 = vld [vmem:[#allocation2 + $0x28c] sm:$0x1]  ;;  %v7081_v53 = vrot.slane %v6992_v1, 7  ;;  %v15997_v34 = vmax.f32 %v14929_v3, %v15837_v6 }
 0x4fd   : > { %9782 = vmatprep.subr.bf16.mxu1 %v15765_v36  ;;  %v7211_v61 = vld [vmem:[#allocation2 + $0x26e] sm:$0x1]  ;;  %v6869_v52 = vsel %vm5749_vm11, %v6868_v42, %v6867_v43  ;;  %v6993_v60 = vld [vmem:[#allocation2 + $0x34c] sm:$0x1]  ;;  %v3689_v0 = vmax.f32 %v15981_v18, %v15898_v10  ;;  %4012 = vrot.lane.b32.xlu1 %v3661_v28, %s10013_s22  ;;  %v16005_v26 = vpack.c.bf16 %v7229_v27, %v7228_v13  ;;  %v7449_v13 = vld [vmem:[%s17211_s3 + $0x200] sm:$0xff]  ;;  %v7073_v56 = vrot.slane %v6987_v40, 4 }
 0x4fe   : > { %v15990_v58 = vld [vmem:[#allocation2 + $0x32e] sm:$0x1]  ;;  %v16003_v33 = vpop.permute.xlu0 %2572  ;;  %v6991_v63 = vld [vmem:[#allocation2 + $0x30c] sm:$0x1]  ;;  %v16010_v3 = vpack.c.bf16 %v7231_v12, %v7230_v45  ;;  %v7293_v6 = vsel %vm5731_vm5, %v7292_v54, %v7208_v29  ;;  %v7296_v10 = vrot.slane %v7211_v61, 5  ;;  %v7070_v50 = vsel %vm5734_vm6, %v7069_v21, %v7068_v9  ;;  %v7451_v46 = vld [vmem:[%s17211_s3 + $0x210] sm:$0xff] }
 0x4ff   : > { %9461 = vmatmul.mubr.msk.f32.gmra.mrb[68].mxu1 %vm5489_vm4, %v6869_v52  ;;  %v6994_v48 = vld [vmem:[#allocation2 + $0x36c] sm:$0x1]  ;;  %v7212_v42 = vld [vmem:[#allocation2 + $0x28e] sm:$0x1]  ;;  %v7306_v44 = vrot.slane %v15990_v58, 7  ;;  %v16024_v57 = vpop.permute.xlu1 %2628  ;;  %4068 = vrot.lane.b32.xlu0 %v3689_v0, %s10013_s22  ;;  %v7083_v1 = vrot.slane %v6993_v60, 6  ;;  %v7082_v54 = vsel %vm5731_vm5, %v7081_v53, %v6991_v63  ;;  %v7072_v29 = vsel %vm5737_vm7, %v7071_v16, %v7070_v50 }
 0x500   : > { %9784 = vmatpush3.bf16.msra.mxu1 %v15765_v36  ;;  %9479 = vmatprep.mubr.msk.f32.mxu1 %vm5489_vm4, %v15872_v8  ;;  %v16013_v35 = vld [vmem:[#allocation2 + $0x34e] sm:$0x1]  ;;  %v3693_v8 = vmax.f32 %v15997_v34, %v15909_v49  ;;  %v6988_v51 = vld [vmem:[#allocation2 + $0x2ac] sm:$0x1]  ;;  %v7452_v27 = vld [vmem:[%s17211_s3 + $0x218] sm:$0xff]  ;;  %v7085_v28 = vrot.slane %v6994_v48, 5  ;;  %v7295_v61 = vsel %vm5734_vm6, %v7294_v17, %v7293_v6 }
 0x501   : > { %v7450_v36 = vld [vmem:[%s17211_s3 + $0x208] sm:$0xff]  ;;  %9786 = vmatprep.subr.bf16.mxu1 %v15855_v38  ;;  %v7298_v43 = vrot.slane %v7212_v42, 4  ;;  %v7308_v52 = vrot.slane %v16013_v35, 6  ;;  %v7075_v60 = vrot.slane %v6988_v51, 3  ;;  %v7297_v0 = vsel %vm5737_vm7, %v7296_v10, %v7295_v61 }
 0x502   : > { %v18855_v49 = vld [vmem:[#allocation4_spill] sm:$0xff]  ;;  %4076 = vrot.lane.b32.xlu1 %v3693_v8, %s10013_s22  ;;  %v3837_v21 = vpop.permute.xlu0 %3836  ;;  %v16042_v40 = vpack.c.bf16 %v7450_v36, %v7449_v13  ;;  %v16047_v63 = vpack.c.bf16 %v7452_v27, %v7451_v46  ;;  %v7084_v35 = vsel %vm5734_vm6, %v7083_v1, %v7082_v54  ;;  %v18858_v27 = vld [vmem:[#allocation109_spill] sm:$0xff] }
 0x503   : > { %v2933_v45 = vmax.f32 %v18855_v49, %v15923_v2  ;;  %v6989_v12 = vld [vmem:[#allocation2 + $0x2cc] sm:$0x1]  ;;  %v7216_v58 = vld [vmem:[#allocation2 + $0x30e] sm:$0x1]  ;;  %v16049_v48 = vpop.permute.xlu1 %2580  ;;  %v7086_v36 = vsel %vm5737_vm7, %v7085_v28, %v7084_v35  ;;  %v16056_v8 = vsel %vm5740_vm8, %v7298_v43, %v7297_v0  ;;  %v18859_v49 = vrot.slane %v18858_v27, 1 }
 0x504   : > { %9788 = vmatpush3.bf16.msra.mxu1 %v15855_v38  ;;  %v6990_v9 = vld [vmem:[#allocation2 + $0x2ec] sm:$0x1]  ;;  %v7077_v42 = vrot.slane %v6989_v12, 2  ;;  %v7074_v38 = vsel %vm5740_vm8, %v7073_v56, %v7072_v29  ;;  %v7307_v10 = vsel %vm5731_vm5, %v7306_v44, %v7216_v58  ;;  %v16070_v29 = vld [vmem:[#allocation2 + $0x36e] sm:$0x1]  ;;  %v18861_v0 = vrot.slane %v18858_v27, 2 }
 0x505   : > { %v4214_v2 = vsel %vm4206_vm1, %v2933_v45, %v3837_v21  ;;  %v6995_v53 = vld [vmem:[#allocation2 + $0x38c] sm:$0x1]  ;;  %9790 = vmatprep.subr.bf16.mxu1 %v15877_v39  ;;  %v7079_v1 = vrot.slane %v6990_v9, 1  ;;  %v7076_v44 = vsel %vm5743_vm9, %v7075_v60, %v7074_v38  ;;  %v18862_v60 = vld [vmem:[#allocation19_spill] sm:$0xff] }
 0x506   : > { %v4477_v16 = vrot.slane %v4214_v2, 1  ;;  %v4862_v17 = vrot.slane %v4214_v2, 2  ;;  %v6996_v6 = vld [vmem:[#allocation2 + $0x3ac] sm:$0x1]  ;;  %v16065_v12 = vpop.permute.xlu0 %2612  ;;  %v7087_v54 = vrot.slane %v6995_v53, 4 }
 0x507   : > { %v6997_v13 = vld [vmem:[#allocation2 + $0x3cc] sm:$0x1]  ;;  %v7089_v43 = vrot.slane %v6996_v6, 3  ;;  %v7213_v53 = vld [vmem:[#allocation2 + $0x2ae] sm:$0x1]  ;;  %v2937_v6 = vmax.f32 %v18862_v60, %v15941_v14  ;;  %v7310_v14 = vrot.slane %v16070_v29, 5 }
 0x508   : > { %v18856_v51 = vld [vmem:[#allocation156_spill] sm:$0xff]  ;;  %v4480_v45 = vsel %vm4463_vm2, %v4477_v16, %v18859_v49  ;;  %9792 = vmatpush3.bf16.msra.mxu1 %v15877_v39  ;;  %v4865_v9 = vsel %vm4848_vm3, %v4862_v17, %v18861_v0  ;;  %v7091_v39 = vrot.slane %v6997_v13, 2  ;;  %v7088_v27 = vsel %vm5740_vm8, %v7087_v54, %v7086_v36  ;;  %v18864_v0 = vld [vmem:[#allocation10_spill] sm:$0xff] }
 0x509   : > { %v18857_v50 = vrot.slane %v18856_v51, 1  ;;  %v6998_v56 = vld [vmem:[#allocation2 + $0x3ec] sm:$0x1]  ;;  %v5240_v21 = vmax.f32 %v4214_v2, %v4480_v45  ;;  %v18860_v61 = vrot.slane %v18856_v51, 2  ;;  %9794 = vmatprep.subr.bf16.mxu1 %v15880_v59  ;;  %v7078_v2 = vsel %vm5746_vm10, %v7077_v42, %v7076_v44  ;;  %v16090_v49 = vld [vmem:[#allocation2 + $0x2ce] sm:$0x1] }
 0x50a   : > { %v16092_v42 = vld [vmem:[#allocation2 + $0x3ae] sm:$0x1]  ;;  %v7309_v13 = vsel %vm5734_vm6, %v7308_v52, %v7307_v10  ;;  %v18863_v45 = vld [vmem:[#allocation222_spill] sm:$0xff]  ;;  %v7090_v36 = vsel %vm5743_vm9, %v7089_v43, %v7088_v27 }
 0x50b   : > { %v4478_v46 = vsel %vm4463_vm2, %v18857_v50, %v4477_v16  ;;  %v4863_v58 = vsel %vm4848_vm3, %v18860_v61, %v4862_v17  ;;  %v16078_v16 = vpop.permute.xlu1 %2636  ;;  %v5368_v38 = vmax.f32 %v5240_v21, %v4865_v9  ;;  %v16084_v50 = vld [vmem:[#allocation2 + $0x38e] sm:$0x1]  ;;  %9480 = vmatmul.mubr.msk.f32.vlgmr.msra.gmra.mrb[66].mxu1 %vm5489_vm4, %v15903_v15  ;;  %v7080_v17 = vsel %vm5749_vm11, %v7079_v1, %v7078_v2 }
 0x50c   : > { %v5239_v28 = vmax.f32 %v18856_v51, %v4478_v46  ;;  %v7093_v51 = vrot.slane %v6998_v56, 1  ;;  %v3845_v46 = vpop.permute.xlu0 %3844  ;;  %v2965_v56 = vmax.f32 %v18863_v45, %v15959_v32  ;;  %9482 = vmatprep.mubr.msk.f32.mxu1 %vm5489_vm4, %v7080_v17  ;;  %9796 = vmatpush3.bf16.msra.mxu1 %v15880_v59  ;;  %v7300_v1 = vrot.slane %v7213_v53, 3  ;;  %v7215_v32 = vld [vmem:[#allocation2 + $0x2ee] sm:$0x1] }
 0x50d   : > { %5497 = vst.msk [vmem:[#allocation2 + $0x38] sm:$0xff] %vm5489_vm4, %v5368_v38  ;;  %v4218_v15 = vsel %vm4206_vm1, %v2937_v6, %v3845_v46  ;;  %9798 = vmatprep.subr.bf16.mxu1 %v15933_v25  ;;  %v7312_v21 = vrot.slane %v16084_v50, 4  ;;  %v7302_v59 = vrot.slane %v16090_v49, 2  ;;  %v7314_v61 = vrot.slane %v16092_v42, 3  ;;  %v18869_v46 = vld [vmem:[#allocation65_spill] sm:$0xff]  ;;  %v18871_v42 = vld [vmem:[#allocation172_spill] sm:$0xff] }
 0x50e   : > { %v5367_v35 = vmax.f32 %v5239_v28, %v4863_v58  ;;  %v4485_v52 = vrot.slane %v4218_v15, 1  ;;  %v4870_v10 = vrot.slane %v4218_v15, 2  ;;  %v7092_v28 = vsel %vm5746_vm10, %v7091_v39, %v7090_v36  ;;  %v18866_v39 = vld [vmem:[#allocation133_spill] sm:$0xff] }
 0x50f   : > { %v3901_v54 = vpop.permute.xlu1 %3900  ;;  %v7094_v29 = vsel %vm5749_vm11, %v7093_v51, %v7092_v28  ;;  %v18865_v9 = vrot.slane %v18864_v0, 1  ;;  %v18867_v53 = vrot.slane %v18866_v39, 1  ;;  %v7304_v17 = vrot.slane %v7215_v32, 1 }
 0x510   : > { %5496 = vst.msk [vmem:[#allocation2 + $0x30] sm:$0xff] %vm5489_vm4, %v5367_v35  ;;  %v4246_v44 = vsel %vm4206_vm1, %v2965_v56, %v3901_v54  ;;  %9483 = vmatmul.mubr.msk.f32.gmra.mrb[68].mxu1 %vm5489_vm4, %v7094_v29  ;;  %v16118_v6 = vpop.permute.xlu0 %2588  ;;  %v18868_v35 = vld [vmem:[#allocation9_spill] sm:$0xff]  ;;  %v18870_v27 = vrot.slane %v18869_v46, 1  ;;  %v18872_v45 = vrot.slane %v18871_v42, 1  ;;  %v18873_v36 = vrot.slane %v18864_v0, 2 }
 0x511   : > { %v4541_v43 = vrot.slane %v4246_v44, 1  ;;  %v4926_v58 = vrot.slane %v4246_v44, 2  ;;  %v4486_v2 = vsel %vm4463_vm2, %v18865_v9, %v4485_v52  ;;  %v4488_v60 = vsel %vm4463_vm2, %v4485_v52, %v18867_v53  ;;  %9800 = vmatpush3.bf16.msra.mxu1 %v15933_v25  ;;  %9501 = vmatprep.mubr.msk.f32.mxu1 %vm5489_vm4, %v15883_v5  ;;  %v7222_v5 = vld [vmem:[#allocation2 + $0x3ce] sm:$0x1] }
 0x512   : > { %v2929_v38 = vmax.f32 %v18868_v35, %v15985_v11  ;;  %v5243_v51 = vmax.f32 %v18864_v0, %v4486_v2  ;;  %v5244_v50 = vmax.f32 %v4218_v15, %v4488_v60  ;;  %v4871_v54 = vsel %vm4848_vm3, %v18873_v36, %v4870_v10  ;;  %9802 = vmatprep.subr.bf16.mxu1 %v16005_v26  ;;  %v18880_v36 = vld [vmem:[#allocation88_spill] sm:$0xff] }
 0x513   : > { %v4542_v49 = vsel %vm4463_vm2, %v18870_v27, %v4541_v43  ;;  %v4544_v56 = vsel %vm4463_vm2, %v4541_v43, %v18872_v45  ;;  %v18874_v11 = vrot.slane %v18866_v39, 2  ;;  %v16136_v15 = vpop.permute.xlu1 %2644  ;;  %v18875_v43 = vrot.slane %v18869_v46, 2  ;;  %v18878_v45 = vld [vmem:[#allocation29_spill] sm:$0xff] }
 0x514   : > { %v5271_v25 = vmax.f32 %v18869_v46, %v4542_v49  ;;  %v5272_v28 = vmax.f32 %v4246_v44, %v4544_v56  ;;  %v5371_v32 = vmax.f32 %v5243_v51, %v4871_v54  ;;  %v18876_v9 = vrot.slane %v18871_v42, 2  ;;  %v3829_v2 = vpop.permute.xlu0 %3828  ;;  %v18877_v44 = vld [vmem:[#allocation242_spill] sm:$0xff] }
 0x515   : > { %v4873_v52 = vsel %vm4848_vm3, %v4870_v10, %v18874_v11  ;;  %v4927_v0 = vsel %vm4848_vm3, %v18875_v43, %v4926_v58  ;;  %v7301_v39 = vsel %vm5743_vm9, %v7300_v1, %v16056_v8  ;;  %v7311_v53 = vsel %vm5737_vm7, %v7310_v14, %v7309_v13  ;;  %9804 = vmatpush3.bf16.msra.mxu1 %v16005_v26  ;;  %v7223_v13 = vld [vmem:[#allocation2 + $0x3ee] sm:$0x1] }
 0x516   : > { %v5372_v29 = vmax.f32 %v5244_v50, %v4873_v52  ;;  %v4929_v10 = vsel %vm4848_vm3, %v4926_v58, %v18876_v9  ;;  %v2941_v60 = vmax.f32 %v18877_v44, %v16003_v33  ;;  %v5399_v35 = vmax.f32 %v5271_v25, %v4927_v0  ;;  %5500 = vst.msk [vmem:[#allocation2 + $0x50] sm:$0xff] %vm5489_vm4, %v5371_v32  ;;  %v18882_v52 = vld [vmem:[#allocation26_spill] sm:$0xff]  ;;  %v18883_v32 = vld [vmem:[#allocation143_spill] sm:$0xff]  ;;  %v18885_v0 = vld [vmem:[#allocation72_spill] sm:$0xff] }
 0x517   : > { %v5400_v51 = vmax.f32 %v5272_v28, %v4929_v10  ;;  %v4210_v58 = vsel %vm4206_vm1, %v2929_v38, %v3829_v2  ;;  %v3853_v50 = vpop.permute.xlu1 %3852  ;;  %9806 = vmatprep.subr.bf16.mxu1 %v16010_v3  ;;  %v7303_v8 = vsel %vm5746_vm10, %v7302_v59, %v7301_v39  ;;  %v7313_v33 = vsel %vm5740_vm8, %v7312_v21, %v7311_v53 }
 0x518   : > { %5501 = vst.msk [vmem:[#allocation2 + $0x58] sm:$0xff] %vm5489_vm4, %v5372_v29  ;;  %v4469_v46 = vrot.slane %v4210_v58, 1  ;;  %v4854_v27 = vrot.slane %v4210_v58, 2  ;;  %5528 = vst.msk [vmem:[#allocation2 + $0x130] sm:$0xff] %vm5489_vm4, %v5399_v35  ;;  %v4222_v14 = vsel %vm4206_vm1, %v2941_v60, %v3853_v50  ;;  %v7305_v26 = vsel %vm5749_vm11, %v7304_v17, %v7303_v8  ;;  %v3909_v11 = vpop.permute.xlu0 %3908  ;;  %v7455_v50 = vld [vmem:[%s17211_s3 + $0x230] sm:$0xff] }
 0x519   : > { %5529 = vst.msk [vmem:[#allocation2 + $0x138] sm:$0xff] %vm5489_vm4, %v5400_v51  ;;  %v7315_v1 = vsel %vm5743_vm9, %v7314_v61, %v7313_v33  ;;  %v7316_v38 = vrot.slane %v7222_v5, 2  ;;  %v4493_v49 = vrot.slane %v4222_v14, 1  ;;  %v4878_v42 = vrot.slane %v4222_v14, 2  ;;  %9808 = vmatpush3.bf16.msra.mxu1 %v16010_v3  ;;  %v7453_v3 = vld [vmem:[%s17211_s3 + $0x220] sm:$0xff] }
 0x51a   : > { %v18879_v56 = vrot.slane %v18878_v45, 1  ;;  %v18881_v54 = vrot.slane %v18880_v36, 1  ;;  %v2969_v25 = vmax.f32 %v18882_v52, %v16024_v57  ;;  %v7318_v61 = vrot.slane %v7223_v13, 1  ;;  %9810 = vmatprep.subr.bf16.mxu1 %v16042_v40 }
 0x51b   : > { %v18884_v29 = vrot.slane %v18883_v32, 1  ;;  %v18886_v9 = vrot.slane %v18885_v0, 1  ;;  %v18887_v2 = vrot.slane %v18878_v45, 2  ;;  %v18888_v57 = vrot.slane %v18880_v36, 2  ;;  %v16187_v53 = vpop.permute.xlu1 %2596 }
 0x51c   : > { %v4470_v59 = vsel %vm4463_vm2, %v18879_v56, %v4469_v46  ;;  %v4472_v21 = vsel %vm4463_vm2, %v4469_v46, %v18881_v54  ;;  %v7456_v46 = vld [vmem:[%s17211_s3 + $0x238] sm:$0xff]  ;;  %v18890_v13 = vrot.slane %v18885_v0, 2  ;;  %9502 = vmatmul.mubr.msk.f32.vlgmr.msra.gmra.mrb[66].mxu1 %vm5489_vm4, %v15927_v37  ;;  %v7674_v56 = vld [vmem:[%s17211_s3 + $0x240] sm:$0xff] }
 0x51d   : > { %v5235_v28 = vmax.f32 %v18878_v45, %v4470_v59  ;;  %v5236_v17 = vmax.f32 %v4210_v58, %v4472_v21  ;;  %v4494_v43 = vsel %vm4463_vm2, %v18884_v29, %v4493_v49  ;;  %v4496_v10 = vsel %vm4463_vm2, %v4493_v49, %v18886_v9  ;;  %v7454_v58 = vld [vmem:[%s17211_s3 + $0x228] sm:$0xff]  ;;  %v16212_v49 = vpop.permute.xlu0 %2652  ;;  %9504 = vmatprep.mubr.msk.f32.mxu1 %vm5489_vm4, %v7305_v26  ;;  %v18893_v26 = vld [vmem:[#allocation117_spill] sm:$0xff] }
 0x51e   : > { %v4855_v39 = vsel %vm4848_vm3, %v18887_v2, %v4854_v27  ;;  %v4857_v5 = vsel %vm4848_vm3, %v4854_v27, %v18888_v57  ;;  %v5247_v44 = vmax.f32 %v18883_v32, %v4494_v43  ;;  %v5248_v60 = vmax.f32 %v4222_v14, %v4496_v10  ;;  %v7675_v59 = vld [vmem:[%s17211_s3 + $0x248] sm:$0xff]  ;;  %9812 = vmatpush3.bf16.msra.mxu1 %v16042_v40 }
 0x51f   : > { %v5363_v35 = vmax.f32 %v5235_v28, %v4855_v39  ;;  %v5364_v51 = vmax.f32 %v5236_v17, %v4857_v5  ;;  %v18889_v27 = vrot.slane %v18883_v32, 2  ;;  %v4881_v33 = vsel %vm4848_vm3, %v4878_v42, %v18890_v13  ;;  %v3861_v21 = vpop.permute.xlu1 %3860  ;;  %9814 = vmatprep.subr.bf16.mxu1 %v16047_v63  ;;  %v18892_v28 = vld [vmem:[#allocation45_spill] sm:$0xff] }
 0x520   : > { %v4250_v14 = vsel %vm4206_vm1, %v2969_v25, %v3909_v11  ;;  %v7317_v45 = vsel %vm5746_vm10, %v7316_v38, %v7315_v1  ;;  %v5376_v54 = vmax.f32 %v5248_v60, %v4881_v33  ;;  %v18891_v1 = vld [vmem:[#allocation40_spill] sm:$0xff]  ;;  %v9817_v52 = vpack.c.bf16 %v7454_v58, %v7453_v3 }
 0x521   : > { %v4879_v8 = vsel %vm4848_vm3, %v18889_v27, %v4878_v42  ;;  %5492 = vst.msk [vmem:[#allocation2 + $0x10] sm:$0xff] %vm5489_vm4, %v5363_v35  ;;  %5493 = vst.msk [vmem:[#allocation2 + $0x18] sm:$0xff] %vm5489_vm4, %v5364_v51  ;;  %v4549_v42 = vrot.slane %v4250_v14, 1  ;;  %v4934_v37 = vrot.slane %v4250_v14, 2  ;;  %v2945_v38 = vmax.f32 %v18891_v1, %v16049_v48  ;;  %v18895_v48 = vld [vmem:[#allocation124_spill] sm:$0xff]  ;;  %v3893_v39 = vpop.permute.xlu0 %3892  ;;  %v18899_v35 = vld [vmem:[#allocation21_spill] sm:$0xff] }
 0x522   : > { %v5375_v36 = vmax.f32 %v5247_v44, %v4879_v8  ;;  %v7319_v11 = vsel %vm5749_vm11, %v7318_v61, %v7317_v45  ;;  %v16229_v25 = vpack.c.bf16 %v7456_v46, %v7455_v50  ;;  %v2961_v17 = vmax.f32 %v18892_v28, %v16065_v12  ;;  %5505 = vst.msk [vmem:[#allocation2 + $0x78] sm:$0xff] %vm5489_vm4, %v5376_v54  ;;  %v18900_v8 = vld [vmem:[#allocation27_spill] sm:$0xff] }
 0x523   : > { %v18894_v40 = vrot.slane %v18893_v26, 1  ;;  %v18896_v29 = vrot.slane %v18895_v48, 1  ;;  %v16241_v43 = vpack.c.bf16 %v7675_v59, %v7674_v56  ;;  %v18897_v0 = vrot.slane %v18893_v26, 2  ;;  %9505 = vmatmul.mubr.msk.f32.gmra.mrb[68].mxu1 %vm5489_vm4, %v7319_v11  ;;  %v3917_v46 = vpop.permute.xlu1 %3916 }
 0x524   : > { %5504 = vst.msk [vmem:[#allocation2 + $0x70] sm:$0xff] %vm5489_vm4, %v5375_v36  ;;  %v4226_v2 = vsel %vm4206_vm1, %v2945_v38, %v3861_v21  ;;  %v18898_v57 = vrot.slane %v18895_v48, 2  ;;  %v4242_v60 = vsel %vm4206_vm1, %v2961_v17, %v3893_v39  ;;  %9816 = vmatpush3.bf16.msra.mxu1 %v16047_v63  ;;  %v2973_v51 = vmax.f32 %v18899_v35, %v16078_v16 }
 0x525   : > { %v4550_v32 = vsel %vm4463_vm2, %v18894_v40, %v4549_v42  ;;  %v4552_v61 = vsel %vm4463_vm2, %v4549_v42, %v18896_v29  ;;  %v4935_v9 = vsel %vm4848_vm3, %v18897_v0, %v4934_v37  ;;  %v4501_v3 = vrot.slane %v4226_v2, 1  ;;  %9818 = vmatprep.subr.bf16.mxu1 %v9817_v52  ;;  %v16272_v21 = vpop.permute.xlu0 %2604  ;;  %v18908_v40 = vld [vmem:[#allocation155_spill] sm:$0xff]  ;;  %v18910_v29 = vld [vmem:[#allocation177_spill] sm:$0xff] }
 0x526   : > { %v5275_v12 = vmax.f32 %v18893_v26, %v4550_v32  ;;  %v5276_v10 = vmax.f32 %v4250_v14, %v4552_v61  ;;  %v4937_v5 = vsel %vm4848_vm3, %v4934_v37, %v18898_v57  ;;  %v4886_v44 = vrot.slane %v4226_v2, 2  ;;  %v18902_v14 = vld [vmem:[#allocation139_spill] sm:$0xff]  ;;  %v18905_v37 = vld [vmem:[#allocation200_spill] sm:$0xff]  ;;  %v18912_v57 = vld [vmem:[#allocation213_spill] sm:$0xff] }
 0x527   : > { %v4533_v27 = vrot.slane %v4242_v60, 1  ;;  %v18901_v13 = vrot.slane %v18900_v8, 1  ;;  %v18903_v45 = vrot.slane %v18902_v14, 1  ;;  %v18904_v59 = vrot.slane %v18900_v8, 2 }
 0x528   : > { %v5403_v58 = vmax.f32 %v5275_v12, %v4935_v9  ;;  %v5404_v50 = vmax.f32 %v5276_v10, %v4937_v5  ;;  %v4918_v36 = vrot.slane %v4242_v60, 2  ;;  %v4254_v42 = vsel %vm4206_vm1, %v2973_v51, %v3917_v46  ;;  %9820 = vmatpush3.bf16.msra.mxu1 %v9817_v52  ;;  %v16283_v10 = vpop.permute.xlu1 %2660 }
 0x529   : > { %v4502_v33 = vsel %vm4463_vm2, %v18901_v13, %v4501_v3  ;;  %v4504_v56 = vsel %vm4463_vm2, %v4501_v3, %v18903_v45  ;;  %v4887_v63 = vsel %vm4848_vm3, %v18904_v59, %v4886_v44  ;;  %v18906_v1 = vrot.slane %v18905_v37, 1  ;;  %9822 = vmatprep.subr.bf16.mxu1 %v16229_v25 }
 0x52a   : > { %5532 = vst.msk [vmem:[#allocation2 + $0x150] sm:$0xff] %vm5489_vm4, %v5403_v58  ;;  %5533 = vst.msk [vmem:[#allocation2 + $0x158] sm:$0xff] %vm5489_vm4, %v5404_v50  ;;  %v5251_v16 = vmax.f32 %v18900_v8, %v4502_v33  ;;  %v5252_v54 = vmax.f32 %v4226_v2, %v4504_v56  ;;  %v18907_v11 = vrot.slane %v18902_v14, 2  ;;  %v4557_v17 = vrot.slane %v4254_v42, 1  ;;  %v18911_v2 = vld [vmem:[#allocation55_spill] sm:$0xff] }
 0x52b   : > { %v4534_v38 = vsel %vm4463_vm2, %v18906_v1, %v4533_v27  ;;  %v4942_v26 = vrot.slane %v4254_v42, 2  ;;  %v18909_v32 = vrot.slane %v18908_v40, 1  ;;  %v2977_v61 = vmax.f32 %v18910_v29, %v16136_v15  ;;  %v7418_v8 = vld [vmem:[#allocation2 + $0x30] sm:$0x1]  ;;  %v18923_v29 = vld [vmem:[#allocation62_spill] sm:$0xff] }
 0x52c   : > { %v4889_v28 = vsel %vm4848_vm3, %v4886_v44, %v18907_v11  ;;  %v5379_v0 = vmax.f32 %v5251_v16, %v4887_v63  ;;  %v5267_v12 = vmax.f32 %v18905_v37, %v4534_v38  ;;  %v2949_v39 = vmax.f32 %v18911_v2, %v16118_v6  ;;  %v18914_v44 = vld [vmem:[#allocation158_spill] sm:$0xff]  ;;  %9824 = vmatpush3.bf16.msra.mxu1 %v16229_v25  ;;  %v16312_v1 = vld [vmem:[#allocation2 + $0x50] sm:$0x1]  ;;  %v18920_v38 = vld [vmem:[#allocation187_spill] sm:$0xff] }
 0x52d   : > { %v4536_v48 = vsel %vm4463_vm2, %v4533_v27, %v18909_v32  ;;  %v5380_v9 = vmax.f32 %v5252_v54, %v4889_v28  ;;  %v18913_v5 = vrot.slane %v18912_v57, 1  ;;  %v18915_v52 = vrot.slane %v18914_v44, 1  ;;  %v3869_v27 = vpop.permute.xlu0 %3868  ;;  %9826 = vmatprep.subr.bf16.mxu1 %v16241_v43 }
 0x52e   : > { %v18916_v15 = vrot.slane %v18905_v37, 2  ;;  %5508 = vst.msk [vmem:[#allocation2 + $0x90] sm:$0xff] %vm5489_vm4, %v5379_v0  ;;  %v5268_v6 = vmax.f32 %v4242_v60, %v4536_v48  ;;  %v18917_v13 = vrot.slane %v18912_v57, 2  ;;  %v18918_v14 = vrot.slane %v18914_v44, 2 }
 0x52f   : > { %v4558_v3 = vsel %vm4463_vm2, %v18913_v5, %v4557_v17  ;;  %v4560_v35 = vsel %vm4463_vm2, %v4557_v17, %v18915_v52  ;;  %5509 = vst.msk [vmem:[#allocation2 + $0x98] sm:$0xff] %vm5489_vm4, %v5380_v9  ;;  %v18919_v56 = vrot.slane %v18908_v40, 2  ;;  %v4230_v63 = vsel %vm4206_vm1, %v2949_v39, %v3869_v27  ;;  %v18921_v40 = vld [vmem:[#allocation84_spill] sm:$0xff]  ;;  %v18926_v5 = vld [vmem:[#allocation38_spill] sm:$0xff] }
 0x530   : > { %v4919_v51 = vsel %vm4848_vm3, %v18916_v15, %v4918_v36  ;;  %v5279_v58 = vmax.f32 %v18912_v57, %v4558_v3  ;;  %v5280_v50 = vmax.f32 %v4254_v42, %v4560_v35  ;;  %v4943_v33 = vsel %vm4848_vm3, %v18917_v13, %v4942_v26  ;;  %v3925_v42 = vpop.permute.xlu1 %3924  ;;  %v18928_v52 = vld [vmem:[#allocation164_spill] sm:$0xff] }
 0x531   : > { %v5395_v46 = vmax.f32 %v5267_v12, %v4919_v51  ;;  %v4945_v45 = vsel %vm4848_vm3, %v4942_v26, %v18918_v14  ;;  %v4921_v59 = vsel %vm4848_vm3, %v4918_v36, %v18919_v56  ;;  %v4509_v37 = vrot.slane %v4230_v63, 1  ;;  %v16327_v9 = vpop.permute.xlu0 %2668  ;;  %v18932_v14 = vld [vmem:[#allocation82_spill] sm:$0xff] }
 0x532   : > { %v5407_v60 = vmax.f32 %v5279_v58, %v4943_v33  ;;  %v5408_v16 = vmax.f32 %v5280_v50, %v4945_v45  ;;  %v5396_v54 = vmax.f32 %v5268_v6, %v4921_v59  ;;  %v2953_v11 = vmax.f32 %v18920_v38, %v16187_v53  ;;  %v7417_v33 = vld [vmem:[#allocation2 + $0x10] sm:$0x1] }
 0x533   : > { %5524 = vst.msk [vmem:[#allocation2 + $0x110] sm:$0xff] %vm5489_vm4, %v5395_v46  ;;  %v4258_v36 = vsel %vm4206_vm1, %v2977_v61, %v3925_v42  ;;  %v4894_v28 = vrot.slane %v4230_v63, 2  ;;  %v7489_v17 = vrot.slane %v7418_v8, 7  ;;  %v18922_v32 = vrot.slane %v18921_v40, 1  ;;  %v18925_v61 = vld [vmem:[#allocation134_spill] sm:$0xff] }
 0x534   : > { %5536 = vst.msk [vmem:[#allocation2 + $0x170] sm:$0xff] %vm5489_vm4, %v5407_v60  ;;  %5537 = vst.msk [vmem:[#allocation2 + $0x178] sm:$0xff] %vm5489_vm4, %v5408_v16  ;;  %v4565_v25 = vrot.slane %v4258_v36, 1  ;;  %v4950_v26 = vrot.slane %v4258_v36, 2  ;;  %v18924_v0 = vrot.slane %v18923_v29, 1  ;;  %v2981_v12 = vmax.f32 %v18925_v61, %v16212_v49  ;;  %v3877_v6 = vpop.permute.xlu1 %3876 }
 0x535   : > { %5525 = vst.msk [vmem:[#allocation2 + $0x118] sm:$0xff] %vm5489_vm4, %v5396_v54  ;;  %v4510_v48 = vsel %vm4463_vm2, %v18922_v32, %v4509_v37  ;;  %v7491_v57 = vrot.slane %v16312_v1, 6  ;;  %v18927_v3 = vrot.slane %v18926_v5, 1  ;;  %v18929_v35 = vrot.slane %v18928_v52, 1  ;;  %v3933_v54 = vpop.permute.xlu0 %3932 }
 0x536   : > { %v4512_v53 = vsel %vm4463_vm2, %v4509_v37, %v18924_v0  ;;  %v5255_v2 = vmax.f32 %v18921_v40, %v4510_v48  ;;  %v18930_v51 = vrot.slane %v18921_v40, 2  ;;  %v18931_v50 = vrot.slane %v18923_v29, 2  ;;  %v18937_v48 = vld [vmem:[#allocation127_spill] sm:$0xff] }
 0x537   : > { %v5256_v39 = vmax.f32 %v4230_v63, %v4512_v53  ;;  %v4566_v44 = vsel %vm4463_vm2, %v18927_v3, %v4565_v25  ;;  %v4568_v15 = vsel %vm4463_vm2, %v4565_v25, %v18929_v35  ;;  %v2985_v45 = vmax.f32 %v18932_v14, %v16283_v10  ;;  %v18935_v10 = vld [vmem:[#allocation116_spill] sm:$0xff]  ;;  %v18936_v25 = vld [vmem:[#allocation105_spill] sm:$0xff] }
 0x538   : > { %v4895_v58 = vsel %vm4848_vm3, %v18930_v51, %v4894_v28  ;;  %v4897_v49 = vsel %vm4848_vm3, %v4894_v28, %v18931_v50  ;;  %v5283_v46 = vmax.f32 %v18926_v5, %v4566_v44  ;;  %v5284_v27 = vmax.f32 %v4258_v36, %v4568_v15  ;;  %v3885_v32 = vpop.permute.xlu1 %3884  ;;  %v18939_v53 = vld [vmem:[#allocation216_spill] sm:$0xff] }
 0x539   : > { %v5383_v8 = vmax.f32 %v5255_v2, %v4895_v58  ;;  %v5384_v13 = vmax.f32 %v5256_v39, %v4897_v49  ;;  %v18933_v56 = vrot.slane %v18926_v5, 2  ;;  %v18934_v63 = vrot.slane %v18928_v52, 2  ;;  %v3941_v52 = vpop.permute.xlu0 %3940 }
 0x53a   : > { %v4234_v16 = vsel %vm4206_vm1, %v2953_v11, %v3877_v6  ;;  %v2957_v28 = vmax.f32 %v18935_v10, %v16272_v21  ;;  %v2989_v40 = vmax.f32 %v18936_v25, %v16327_v9  ;;  %v7490_v11 = vsel %vm5731_vm5, %v7489_v17, %v7417_v33  ;;  %v18943_v6 = vld [vmem:[#allocation207_spill] sm:$0xff] }
 0x53b   : > { %v4951_v59 = vsel %vm4848_vm3, %v18933_v56, %v4950_v26  ;;  %v4953_v60 = vsel %vm4848_vm3, %v4950_v26, %v18934_v63  ;;  %5512 = vst.msk [vmem:[#allocation2 + $0xb0] sm:$0xff] %vm5489_vm4, %v5383_v8  ;;  %5513 = vst.msk [vmem:[#allocation2 + $0xb8] sm:$0xff] %vm5489_vm4, %v5384_v13  ;;  %v4517_v38 = vrot.slane %v4234_v16, 1  ;;  %v4902_v36 = vrot.slane %v4234_v16, 2  ;;  %v18945_v8 = vld [vmem:[#allocation96_spill] sm:$0xff] }
 0x53c   : > { %v5411_v42 = vmax.f32 %v5283_v46, %v4951_v59  ;;  %v5412_v37 = vmax.f32 %v5284_v27, %v4953_v60  ;;  %v4262_v26 = vsel %vm4206_vm1, %v2981_v12, %v3933_v54  ;;  %v18938_v29 = vrot.slane %v18937_v48, 1  ;;  %v3949_v14 = vpop.permute.xlu1 %3948  ;;  %v18947_v56 = vld [vmem:[#allocation12_spill] sm:$0xff] }
 0x53d   : > { %v18940_v61 = vrot.slane %v18939_v53, 1  ;;  %v18941_v2 = vrot.slane %v18937_v48, 2  ;;  %v18942_v12 = vrot.slane %v18939_v53, 2  ;;  %v4238_v3 = vsel %vm4206_vm1, %v2957_v28, %v3885_v32  ;;  %v18949_v60 = vld [vmem:[#allocation148_spill] sm:$0xff] }
 0x53e   : > { %5540 = vst.msk [vmem:[#allocation2 + $0x190] sm:$0xff] %vm5489_vm4, %v5411_v42  ;;  %5541 = vst.msk [vmem:[#allocation2 + $0x198] sm:$0xff] %vm5489_vm4, %v5412_v37  ;;  %v4518_v0 = vsel %vm4463_vm2, %v18938_v29, %v4517_v38  ;;  %v4573_v44 = vrot.slane %v4262_v26, 1  ;;  %v4525_v35 = vrot.slane %v4238_v3, 1  ;;  %v4910_v15 = vrot.slane %v4238_v3, 2  ;;  %v16407_v29 = vpop.permute.xlu0 %2684 }
 0x53f   : > { %v4520_v21 = vsel %vm4463_vm2, %v4517_v38, %v18940_v61  ;;  %v4903_v9 = vsel %vm4848_vm3, %v18941_v2, %v4902_v36  ;;  %v4905_v17 = vsel %vm4848_vm3, %v4902_v36, %v18942_v12  ;;  %v5259_v39 = vmax.f32 %v18937_v48, %v4518_v0  ;;  %v7420_v2 = vld [vmem:[#allocation2 + $0x70] sm:$0x1] }
 0x540   : > { %v5260_v5 = vmax.f32 %v4234_v16, %v4520_v21  ;;  %v4958_v51 = vrot.slane %v4262_v26, 2  ;;  %v4266_v58 = vsel %vm4206_vm1, %v2985_v45, %v3941_v52  ;;  %v18944_v46 = vrot.slane %v18943_v6, 1  ;;  %v18955_v52 = vld [vmem:[#allocation129_spill] sm:$0xff] }
 0x541   : > { %v5387_v50 = vmax.f32 %v5259_v39, %v4903_v9  ;;  %v18946_v13 = vrot.slane %v18945_v8, 1  ;;  %v18948_v59 = vrot.slane %v18947_v56, 1  ;;  %v18950_v16 = vrot.slane %v18949_v60, 1 }
 0x542   : > { %v5388_v49 = vmax.f32 %v5260_v5, %v4905_v17  ;;  %v4574_v27 = vsel %vm4463_vm2, %v18944_v46, %v4573_v44  ;;  %v18951_v45 = vrot.slane %v18947_v56, 2  ;;  %v18952_v37 = vrot.slane %v18949_v60, 2  ;;  %v16411_v5 = vpop.permute.xlu1 %2692 }
 0x543   : > { %v4576_v33 = vsel %vm4463_vm2, %v4573_v44, %v18946_v13  ;;  %v4526_v63 = vsel %vm4463_vm2, %v18948_v59, %v4525_v35  ;;  %v4528_v54 = vsel %vm4463_vm2, %v4525_v35, %v18950_v16  ;;  %5516 = vst.msk [vmem:[#allocation2 + $0xd0] sm:$0xff] %vm5489_vm4, %v5387_v50  ;;  %v18953_v28 = vrot.slane %v18943_v6, 2 }
 0x544   : > { %v4911_v42 = vsel %vm4848_vm3, %v18951_v45, %v4910_v15  ;;  %v4913_v38 = vsel %vm4848_vm3, %v4910_v15, %v18952_v37  ;;  %5517 = vst.msk [vmem:[#allocation2 + $0xd8] sm:$0xff] %vm5489_vm4, %v5388_v49  ;;  %v5263_v36 = vmax.f32 %v18947_v56, %v4526_v63  ;;  %v5264_v10 = vmax.f32 %v4238_v3, %v4528_v54  ;;  %v7421_v49 = vld [vmem:[#allocation2 + $0x90] sm:$0x1] }
 0x545   : > { %v4959_v25 = vsel %vm4848_vm3, %v18953_v28, %v4958_v51  ;;  %v18954_v32 = vrot.slane %v18945_v8, 2  ;;  %v5287_v0 = vmax.f32 %v18943_v6, %v4574_v27  ;;  %v5288_v53 = vmax.f32 %v4262_v26, %v4576_v33  ;;  %v18961_v27 = vld [vmem:[#allocation11_spill] sm:$0xff]  ;;  %v16427_v33 = vpop.permute.xlu0 %2748  ;;  %v7422_v54 = vld [vmem:[#allocation2 + $0xb0] sm:$0x1] }
 0x546   : > { %v4270_v61 = vsel %vm4206_vm1, %v2989_v40, %v3949_v14  ;;  %v4581_v21 = vrot.slane %v4266_v58, 1  ;;  %v5391_v9 = vmax.f32 %v5263_v36, %v4911_v42  ;;  %v5392_v12 = vmax.f32 %v5264_v10, %v4913_v38  ;;  %v18959_v40 = vld [vmem:[#allocation132_spill] sm:$0xff]  ;;  %v7426_v45 = vld [vmem:[#allocation2 + $0x130] sm:$0x1]  ;;  %v16442_v38 = vpop.permute.xlu1 %2676 }
 0x547   : > { %v4961_v48 = vsel %vm4848_vm3, %v4958_v51, %v18954_v32  ;;  %v4589_v17 = vrot.slane %v4270_v61, 1  ;;  %v4974_v39 = vrot.slane %v4270_v61, 2  ;;  %v5415_v3 = vmax.f32 %v5287_v0, %v4959_v25  ;;  %v18957_v51 = vld [vmem:[#allocation211_spill] sm:$0xff] }
 0x548   : > { %v5416_v44 = vmax.f32 %v5288_v53, %v4961_v48  ;;  %v18956_v35 = vrot.slane %v18955_v52, 1  ;;  %v18958_v50 = vrot.slane %v18957_v51, 1  ;;  %5520 = vst.msk [vmem:[#allocation2 + $0xf0] sm:$0xff] %vm5489_vm4, %v5391_v9  ;;  %5521 = vst.msk [vmem:[#allocation2 + $0xf8] sm:$0xff] %vm5489_vm4, %v5392_v12  ;;  %v18960_v6 = vrot.slane %v18959_v40, 1 }
 0x549   : > { %v18962_v8 = vrot.slane %v18961_v27, 1  ;;  %v7492_v14 = vsel %vm5734_vm6, %v7491_v57, %v7490_v11  ;;  %v7493_v56 = vrot.slane %v7420_v2, 5  ;;  %5544 = vst.msk [vmem:[#allocation2 + $0x1b0] sm:$0xff] %vm5489_vm4, %v5415_v3  ;;  %v4966_v60 = vrot.slane %v4266_v58, 2  ;;  %v16450_v9 = vpop.permute.xlu0 %2700  ;;  %v7427_v12 = vld [vmem:[#allocation2 + $0x150] sm:$0x1] }
 0x54a   : > { %v4582_v15 = vsel %vm4463_vm2, %v18956_v35, %v4581_v21  ;;  %v4584_v26 = vsel %vm4463_vm2, %v4581_v21, %v18958_v50  ;;  %v4590_v46 = vsel %vm4463_vm2, %v18960_v6, %v4589_v17  ;;  %5545 = vst.msk [vmem:[#allocation2 + $0x1b8] sm:$0xff] %vm5489_vm4, %v5416_v44  ;;  %v18963_v42 = vrot.slane %v18959_v40, 2  ;;  %v7423_v53 = vld [vmem:[#allocation2 + $0xd0] sm:$0x1]  ;;  %v16456_v3 = vpop.permute.xlu1 %2756 }
 0x54b   : > { %v4592_v13 = vsel %vm4463_vm2, %v4589_v17, %v18962_v8  ;;  %v5295_v59 = vmax.f32 %v18959_v40, %v4590_v46  ;;  %v5291_v16 = vmax.f32 %v18955_v52, %v4582_v15  ;;  %v18964_v1 = vrot.slane %v18961_v27, 2  ;;  %v18967_v15 = vld [vmem:[#allocation220_spill] sm:$0xff] }
 0x54c   : > { %v5296_v63 = vmax.f32 %v4270_v61, %v4592_v13  ;;  %v4975_v37 = vsel %vm4848_vm3, %v18963_v42, %v4974_v39  ;;  %v5292_v11 = vmax.f32 %v4266_v58, %v4584_v26  ;;  %v7495_v36 = vrot.slane %v7421_v49, 4  ;;  %v7425_v61 = vld [vmem:[#allocation2 + $0x110] sm:$0x1]  ;;  %v18968_v42 = vld [vmem:[#allocation43_spill] sm:$0xff] }
 0x54d   : > { %v4977_v57 = vsel %vm4848_vm3, %v4974_v39, %v18964_v1  ;;  %v5423_v10 = vmax.f32 %v5295_v59, %v4975_v37  ;;  %v18965_v25 = vrot.slane %v18955_v52, 2  ;;  %v18966_v48 = vrot.slane %v18957_v51, 2  ;;  %v7428_v52 = vld [vmem:[#allocation2 + $0x170] sm:$0x1]  ;;  %v3965_v27 = vpop.permute.xlu0 %3964 }
 0x54e   : > { %v5424_v28 = vmax.f32 %v5296_v63, %v4977_v57  ;;  %v7497_v58 = vrot.slane %v7422_v54, 3  ;;  %v7503_v17 = vrot.slane %v7426_v45, 7  ;;  %v7499_v39 = vrot.slane %v7423_v53, 2  ;;  %v7429_v49 = vld [vmem:[#allocation2 + $0x190] sm:$0x1]  ;;  %v16467_v63 = vpop.permute.xlu1 %2708  ;;  %v18970_v57 = vld [vmem:[#allocation208_spill] sm:$0xff] }
 0x54f   : > { %v4967_v32 = vsel %vm4848_vm3, %v18965_v25, %v4966_v60  ;;  %v4969_v0 = vsel %vm4848_vm3, %v4966_v60, %v18966_v48  ;;  %5552 = vst.msk [vmem:[#allocation2 + $0x1f0] sm:$0xff] %vm5489_vm4, %v5423_v10  ;;  %v7494_v44 = vsel %vm5737_vm7, %v7493_v56, %v7492_v14  ;;  %v2997_v51 = vmax.f32 %v18967_v15, %v16407_v29  ;;  %v7424_v50 = vld [vmem:[#allocation2 + $0xf0] sm:$0x1] }
 0x550   : > { %v5419_v21 = vmax.f32 %v5291_v16, %v4967_v32  ;;  %v5420_v2 = vmax.f32 %v5292_v11, %v4969_v0  ;;  %5553 = vst.msk [vmem:[#allocation2 + $0x1f8] sm:$0xff] %vm5489_vm4, %v5424_v28  ;;  %v7504_v35 = vsel %vm5731_vm5, %v7503_v17, %v7425_v61  ;;  %v7496_v26 = vsel %vm5740_vm8, %v7495_v36, %v7494_v44  ;;  %v7430_v8 = vld [vmem:[#allocation2 + $0x1b0] sm:$0x1]  ;;  %v7643_v32 = vld [vmem:[#allocation2 + $0x32] sm:$0x1] }
 0x551   : > { %v7505_v40 = vrot.slane %v7427_v12, 6  ;;  %v7498_v6 = vsel %vm5743_vm9, %v7497_v58, %v7496_v26  ;;  %v7501_v46 = vrot.slane %v7424_v50, 1  ;;  %v4278_v14 = vsel %vm4206_vm1, %v2997_v51, %v3965_v27  ;;  %v16477_v10 = vpop.permute.xlu0 %2740  ;;  %v7676_v25 = vld [vmem:[%s17211_s3 + $0x250] sm:$0xff]  ;;  %v7678_v51 = vld [vmem:[%s17211_s3 + $0x260] sm:$0xff] }
 0x552   : > { %5548 = vst.msk [vmem:[#allocation2 + $0x1d0] sm:$0xff] %vm5489_vm4, %v5419_v21  ;;  %5549 = vst.msk [vmem:[#allocation2 + $0x1d8] sm:$0xff] %vm5489_vm4, %v5420_v2  ;;  %v7500_v13 = vsel %vm5746_vm10, %v7499_v39, %v7498_v6  ;;  %v7507_v59 = vrot.slane %v7428_v52, 5  ;;  %v4605_v60 = vrot.slane %v4278_v14, 1  ;;  %v4990_v16 = vrot.slane %v4278_v14, 2  ;;  %v7677_v2 = vld [vmem:[%s17211_s3 + $0x258] sm:$0xff]  ;;  %v16495_v52 = vpop.permute.xlu1 %2764 }
 0x553   : > { %v7506_v56 = vsel %vm5734_vm6, %v7505_v40, %v7504_v35  ;;  %v7502_v29 = vsel %vm5749_vm11, %v7501_v46, %v7500_v13  ;;  %v7509_v54 = vrot.slane %v7429_v49, 4  ;;  %v7511_v45 = vrot.slane %v7430_v8, 3  ;;  %v16487_v58 = vld [vmem:[#allocation2 + $0x34] sm:$0x1]  ;;  %v16501_v50 = vld [vmem:[#allocation2 + $0x36] sm:$0x1] }
 0x554   : > { %9523 = vmatprep.mubr.msk.f32.mxu1 %vm5489_vm4, %v7502_v29  ;;  %v18969_v37 = vrot.slane %v18968_v42, 1  ;;  %v18971_v11 = vrot.slane %v18970_v57, 1  ;;  %v7508_v61 = vsel %vm5737_vm7, %v7507_v59, %v7506_v56  ;;  %v18972_v12 = vrot.slane %v18968_v42, 2  ;;  %v7679_v46 = vld [vmem:[%s17211_s3 + $0x268] sm:$0xff]  ;;  %v7680_v27 = vld [vmem:[%s17211_s3 + $0x270] sm:$0xff]  ;;  %v7681_v8 = vld [vmem:[%s17211_s3 + $0x278] sm:$0xff] }
 0x555   : > { %v18973_v39 = vrot.slane %v18970_v57, 2  ;;  %v7510_v35 = vsel %vm5740_vm8, %v7509_v54, %v7508_v61  ;;  %v3001_v26 = vmax.f32 %v15521_v7, %v16411_v5  ;;  %v9829_v7 = vpack.c.bf16 %v7677_v2, %v7676_v25  ;;  %v7644_v5 = vld [vmem:[#allocation2 + $0x52] sm:$0x1]  ;;  %v16517_v29 = vld [vmem:[#allocation2 + $0x38] sm:$0x1] }
 0x556   : > { %v4606_v1 = vsel %vm4463_vm2, %v18969_v37, %v4605_v60  ;;  %v4608_v36 = vsel %vm4463_vm2, %v4605_v60, %v18971_v11  ;;  %v7432_v28 = vld [vmem:[#allocation2 + $0x1f0] sm:$0x1]  ;;  %v4991_v17 = vsel %vm4848_vm3, %v18972_v12, %v4990_v16  ;;  %v7512_v6 = vsel %vm5743_vm9, %v7511_v45, %v7510_v35  ;;  %v7651_v35 = vld [vmem:[#allocation2 + $0x132] sm:$0x1] }
 0x557   : > { %v5303_v48 = vmax.f32 %v18968_v42, %v4606_v1  ;;  %v5304_v0 = vmax.f32 %v4278_v14, %v4608_v36  ;;  %v7515_v21 = vrot.slane %v7432_v28, 1  ;;  %v4993_v44 = vsel %vm4848_vm3, %v4990_v16, %v18973_v39  ;;  %v3973_v14 = vpop.permute.xlu0 %3972  ;;  %v4029_v42 = vpop.permute.xlu1 %4028  ;;  %v7642_v36 = vld [vmem:[#allocation2 + $0x12] sm:$0x1] }
 0x558   : > { %v7714_v56 = vrot.slane %v7643_v32, 7  ;;  %v7939_v59 = vrot.slane %v16487_v58, 7  ;;  %v3029_v60 = vmax.f32 %v15468_v41, %v16427_v33  ;;  %v4282_v54 = vsel %vm4206_vm1, %v3001_v26, %v3973_v14  ;;  %v7645_v41 = vld [vmem:[#allocation2 + $0x72] sm:$0x1] }
 0x559   : > { %v7431_v53 = vld [vmem:[#allocation2 + $0x1d0] sm:$0x1]  ;;  %v5431_v49 = vmax.f32 %v5303_v48, %v4991_v17  ;;  %v5432_v40 = vmax.f32 %v5304_v0, %v4993_v44  ;;  %v8164_v45 = vrot.slane %v16501_v50, 7  ;;  %v4613_v37 = vrot.slane %v4282_v54, 1 }
 0x55a   : > { %v7513_v15 = vrot.slane %v7431_v53, 2  ;;  %v4998_v1 = vrot.slane %v4282_v54, 2  ;;  %v9833_v57 = vpack.c.bf16 %v7679_v46, %v7678_v51  ;;  %v16527_v11 = vpack.c.bf16 %v7681_v8, %v7680_v27  ;;  %v18974_v53 = vld [vmem:[#allocation33_spill] sm:$0xff] }
 0x55b   : > { %5560 = vst.msk [vmem:[#allocation2 + $0x230] sm:$0xff] %vm5489_vm4, %v5431_v49  ;;  %5561 = vst.msk [vmem:[#allocation2 + $0x238] sm:$0xff] %vm5489_vm4, %v5432_v40  ;;  %v2993_v33 = vmax.f32 %v15497_v23, %v16442_v38  ;;  %v4310_v28 = vsel %vm4206_vm1, %v3029_v60, %v4029_v42  ;;  %v7716_v25 = vrot.slane %v7644_v5, 6  ;;  %v8389_v32 = vrot.slane %v16517_v29, 7  ;;  %v18976_v2 = vld [vmem:[#allocation101_spill] sm:$0xff]  ;;  %v16540_v39 = vpop.permute.xlu0 %2716  ;;  %v18980_v49 = vld [vmem:[#allocation114_spill] sm:$0xff]  ;;  %v16556_v14 = vpop.permute.xlu1 %2772 }
 0x55c   : > { %v7514_v13 = vsel %vm5746_vm10, %v7513_v15, %v7512_v6  ;;  %v4669_v48 = vrot.slane %v4310_v28, 1  ;;  %v5054_v0 = vrot.slane %v4310_v28, 2  ;;  %v18975_v61 = vrot.slane %v18974_v53, 1  ;;  %v18978_v15 = vld [vmem:[#allocation53_spill] sm:$0xff]  ;;  %v7899_v5 = vld [vmem:[%s17211_s3 + $0x280] sm:$0xff]  ;;  %v7900_v42 = vld [vmem:[%s17211_s3 + $0x288] sm:$0xff] }
 0x55d   : > { %v7516_v16 = vsel %vm5749_vm11, %v7515_v21, %v7514_v13  ;;  %v18977_v12 = vrot.slane %v18976_v2, 1  ;;  %v7718_v44 = vrot.slane %v7645_v41, 5  ;;  %v18979_v51 = vrot.slane %v18978_v15, 1 }
 0x55e   : > { %9524 = vmatmul.mubr.msk.f32.vlgmr.msra.gmra.mrb[66].mxu1 %vm5489_vm4, %v7516_v16  ;;  %v4614_v21 = vsel %vm4463_vm2, %v18975_v61, %v4613_v37  ;;  %v18981_v40 = vrot.slane %v18980_v49, 1  ;;  %v18982_v46 = vrot.slane %v18974_v53, 2  ;;  %v18983_v8 = vrot.slane %v18976_v2, 2 }
 0x55f   : > { %9828 = vmatpush3.bf16.msra.mxu1 %v16241_v43  ;;  %v4616_v17 = vsel %vm4463_vm2, %v4613_v37, %v18977_v12  ;;  %v5307_v23 = vmax.f32 %v18974_v53, %v4614_v21  ;;  %v7715_v43 = vsel %vm5731_vm5, %v7714_v56, %v7642_v36  ;;  %v4670_v26 = vsel %vm4463_vm2, %v18979_v51, %v4669_v48  ;;  %v7901_v37 = vld [vmem:[%s17211_s3 + $0x290] sm:$0xff] }
 0x560   : > { %9830 = vmatprep.subr.bf16.mxu1 %v9829_v7  ;;  %v5308_v38 = vmax.f32 %v4282_v54, %v4616_v17  ;;  %v4672_v6 = vsel %vm4463_vm2, %v4669_v48, %v18981_v40  ;;  %v4999_v27 = vsel %vm4848_vm3, %v18982_v46, %v4998_v1  ;;  %v5001_v13 = vsel %vm4848_vm3, %v4998_v1, %v18983_v8  ;;  %v7902_v1 = vld [vmem:[%s17211_s3 + $0x298] sm:$0xff]  ;;  %v3957_v48 = vpop.permute.xlu0 %3956  ;;  %v7646_v53 = vld [vmem:[#allocation2 + $0x92] sm:$0x1]  ;;  %v18988_v8 = vld [vmem:[#allocation204_spill] sm:$0xff] }
 0x561   : > { %v5335_v56 = vmax.f32 %v18978_v15, %v4670_v26  ;;  %v5336_v60 = vmax.f32 %v4310_v28, %v4672_v6  ;;  %v5435_v16 = vmax.f32 %v5307_v23, %v4999_v27  ;;  %v18984_v36 = vrot.slane %v18978_v15, 2  ;;  %v16583_v51 = vld [vmem:[#allocation2 + $0xb2] sm:$0x1]  ;;  %v18986_v6 = vld [vmem:[#allocation47_spill] sm:$0xff] }
 0x562   : > { %v5436_v54 = vmax.f32 %v5308_v38, %v5001_v13  ;;  %v18985_v28 = vrot.slane %v18980_v49, 2  ;;  %v7717_v61 = vsel %vm5734_vm6, %v7716_v25, %v7715_v43  ;;  %v7728_v21 = vrot.slane %v7651_v35, 7  ;;  %v3981_v38 = vpop.permute.xlu1 %3980  ;;  %v7650_v25 = vld [vmem:[#allocation2 + $0x112] sm:$0x1] }
 0x563   : > { %9832 = vmatpush3.bf16.msra.mxu1 %v9829_v7  ;;  %v5055_v41 = vsel %vm4848_vm3, %v18984_v36, %v5054_v0  ;;  %v3005_v2 = vmax.f32 %v15525_v55, %v16450_v9  ;;  %5564 = vst.msk [vmem:[#allocation2 + $0x250] sm:$0xff] %vm5489_vm4, %v5435_v16  ;;  %v4274_v23 = vsel %vm4206_vm1, %v2993_v33, %v3957_v48  ;;  %v7720_v35 = vrot.slane %v7646_v53, 4  ;;  %v18990_v16 = vld [vmem:[#allocation167_spill] sm:$0xff] }
 0x564   : > { %v5057_v7 = vsel %vm4848_vm3, %v5054_v0, %v18985_v28  ;;  %9834 = vmatprep.subr.bf16.mxu1 %v9833_v57  ;;  %v5463_v12 = vmax.f32 %v5335_v56, %v5055_v41  ;;  %5565 = vst.msk [vmem:[#allocation2 + $0x258] sm:$0xff] %vm5489_vm4, %v5436_v54  ;;  %v4597_v15 = vrot.slane %v4274_v23, 1  ;;  %v4982_v0 = vrot.slane %v4274_v23, 2 }
 0x565   : > { %v5464_v17 = vmax.f32 %v5336_v60, %v5057_v7  ;;  %v16585_v26 = vpack.c.bf16 %v7900_v42, %v7899_v5  ;;  %v16587_v43 = vpack.c.bf16 %v7902_v1, %v7901_v37  ;;  %v3033_v55 = vmax.f32 %v15472_v47, %v16456_v3  ;;  %v4037_v3 = vpop.permute.xlu0 %4036  ;;  %v18992_v37 = vld [vmem:[#allocation75_spill] sm:$0xff] }
 0x566   : > { %5592 = vst.msk [vmem:[#allocation2 + $0x330] sm:$0xff] %vm5489_vm4, %v5463_v12  ;;  %v4286_v9 = vsel %vm4206_vm1, %v3005_v2, %v3981_v38  ;;  %v7719_v33 = vsel %vm5737_vm7, %v7718_v44, %v7717_v61  ;;  %v18987_v46 = vrot.slane %v18986_v6, 1  ;;  %v18989_v13 = vrot.slane %v18988_v8, 1  ;;  %v7652_v44 = vld [vmem:[#allocation2 + $0x152] sm:$0x1]  ;;  %v16617_v53 = vpop.permute.xlu1 %2724 }
 0x567   : > { %5593 = vst.msk [vmem:[#allocation2 + $0x338] sm:$0xff] %vm5489_vm4, %v5464_v17  ;;  %9836 = vmatpush3.bf16.msra.mxu1 %v9833_v57  ;;  %v4621_v49 = vrot.slane %v4286_v9, 1  ;;  %v5006_v40 = vrot.slane %v4286_v9, 2  ;;  %v7722_v57 = vrot.slane %v16583_v51, 3  ;;  %v7729_v60 = vsel %vm5731_vm5, %v7728_v21, %v7650_v25  ;;  %v16621_v17 = vld [vmem:[#allocation2 + $0xd2] sm:$0x1] }
 0x568   : > { %v4598_v27 = vsel %vm4463_vm2, %v18987_v46, %v4597_v15  ;;  %v4600_v47 = vsel %vm4463_vm2, %v4597_v15, %v18989_v13  ;;  %9838 = vmatprep.subr.bf16.mxu1 %v16527_v11  ;;  %v18991_v54 = vrot.slane %v18990_v16, 1  ;;  %v18993_v1 = vrot.slane %v18992_v37, 1 }
 0x569   : > { %v5299_v5 = vmax.f32 %v18986_v6, %v4598_v27  ;;  %v5300_v56 = vmax.f32 %v4274_v23, %v4600_v47  ;;  %v18994_v41 = vrot.slane %v18986_v6, 2  ;;  %v18995_v7 = vrot.slane %v18988_v8, 2 }
 0x56a   : > { %v4622_v42 = vsel %vm4463_vm2, %v18991_v54, %v4621_v49  ;;  %v4624_v36 = vsel %vm4463_vm2, %v4621_v49, %v18993_v1  ;;  %v18996_v23 = vrot.slane %v18990_v16, 2  ;;  %v18997_v15 = vrot.slane %v18992_v37, 2  ;;  %v16630_v49 = vpop.permute.xlu0 %2780 }
 0x56b   : > { %v4983_v28 = vsel %vm4848_vm3, %v18994_v41, %v4982_v0  ;;  %v4985_v48 = vsel %vm4848_vm3, %v4982_v0, %v18995_v7  ;;  %v5311_v61 = vmax.f32 %v18990_v16, %v4622_v42  ;;  %v5312_v21 = vmax.f32 %v4286_v9, %v4624_v36  ;;  %9840 = vmatpush3.bf16.msra.mxu1 %v16527_v11 }
 0x56c   : > { %v5427_v2 = vmax.f32 %v5299_v5, %v4983_v28  ;;  %v5428_v12 = vmax.f32 %v5300_v56, %v4985_v48  ;;  %v5007_v38 = vsel %vm4848_vm3, %v18996_v23, %v5006_v40  ;;  %v5009_v25 = vsel %vm4848_vm3, %v5006_v40, %v18997_v15  ;;  %9842 = vmatprep.subr.bf16.mxu1 %v16585_v26  ;;  %v18998_v5 = vld [vmem:[#allocation67_spill] sm:$0xff] }
 0x56d   : > { %v4314_v0 = vsel %vm4206_vm1, %v3033_v55, %v4037_v3  ;;  %v7730_v9 = vrot.slane %v7652_v44, 6  ;;  %v5439_v6 = vmax.f32 %v5311_v61, %v5007_v38  ;;  %v5440_v46 = vmax.f32 %v5312_v21, %v5009_v25  ;;  %v3989_v55 = vpop.permute.xlu1 %3988  ;;  %v19006_v38 = vld [vmem:[#allocation24_spill] sm:$0xff] }
 0x56e   : > { %5556 = vst.msk [vmem:[#allocation2 + $0x210] sm:$0xff] %vm5489_vm4, %v5427_v2  ;;  %5557 = vst.msk [vmem:[#allocation2 + $0x218] sm:$0xff] %vm5489_vm4, %v5428_v12  ;;  %v4677_v11 = vrot.slane %v4314_v0, 1  ;;  %v5062_v27 = vrot.slane %v4314_v0, 2  ;;  %v3009_v8 = vmax.f32 %v15533_v24, %v16467_v63  ;;  %v3025_v40 = vmax.f32 %v15463_v31, %v16477_v10  ;;  %v19000_v63 = vld [vmem:[#allocation184_spill] sm:$0xff]  ;;  %v4021_v42 = vpop.permute.xlu0 %4020  ;;  %v19004_v2 = vld [vmem:[#allocation93_spill] sm:$0xff] }
 0x56f   : > { %v16640_v13 = vsel %vm5740_vm8, %v7720_v35, %v7719_v33  ;;  %v7724_v47 = vrot.slane %v16621_v17, 2  ;;  %v3037_v3 = vmax.f32 %v15489_v19, %v16495_v52  ;;  %5568 = vst.msk [vmem:[#allocation2 + $0x270] sm:$0xff] %vm5489_vm4, %v5439_v6  ;;  %5569 = vst.msk [vmem:[#allocation2 + $0x278] sm:$0xff] %vm5489_vm4, %v5440_v46  ;;  %v18999_v56 = vrot.slane %v18998_v5, 1  ;;  %v16653_v10 = vld [vmem:[#allocation2 + $0x172] sm:$0x1] }
 0x570   : > { %v19001_v44 = vrot.slane %v19000_v63, 1  ;;  %v16656_v33 = vsel %vm5734_vm6, %v7730_v9, %v7729_v60  ;;  %v19002_v35 = vrot.slane %v18998_v5, 2  ;;  %v4290_v54 = vsel %vm4206_vm1, %v3009_v8, %v3989_v55  ;;  %v19009_v8 = vld [vmem:[#allocation57_spill] sm:$0xff] }
 0x571   : > { %v4678_v24 = vsel %vm4463_vm2, %v18999_v56, %v4677_v11  ;;  %v19003_v37 = vrot.slane %v19000_v63, 2  ;;  %v4629_v36 = vrot.slane %v4290_v54, 1  ;;  %v5014_v41 = vrot.slane %v4290_v54, 2  ;;  %v4045_v48 = vpop.permute.xlu1 %4044 }
 0x572   : > { %v4680_v31 = vsel %vm4463_vm2, %v4677_v11, %v19001_v44  ;;  %v5063_v19 = vsel %vm4848_vm3, %v19002_v35, %v5062_v27  ;;  %v5339_v52 = vmax.f32 %v18998_v5, %v4678_v24  ;;  %v4306_v28 = vsel %vm4206_vm1, %v3025_v40, %v4021_v42  ;;  %v16684_v5 = vpop.permute.xlu0 %2732 }
 0x573   : > { %v5340_v16 = vmax.f32 %v4314_v0, %v4680_v31  ;;  %v5065_v1 = vsel %vm4848_vm3, %v5062_v27, %v19003_v37  ;;  %v4661_v61 = vrot.slane %v4306_v28, 1  ;;  %v7732_v21 = vrot.slane %v16653_v10, 5  ;;  %v19012_v31 = vld [vmem:[#allocation98_spill] sm:$0xff] }
 0x574   : > { %v5467_v60 = vmax.f32 %v5339_v52, %v5063_v19  ;;  %v19005_v12 = vrot.slane %v19004_v2, 1  ;;  %v19007_v15 = vrot.slane %v19006_v38, 1  ;;  %v19008_v0 = vrot.slane %v19004_v2, 2 }
 0x575   : > { %v5468_v7 = vmax.f32 %v5340_v16, %v5065_v1  ;;  %v5046_v6 = vrot.slane %v4306_v28, 2  ;;  %v4318_v27 = vsel %vm4206_vm1, %v3037_v3, %v4045_v48  ;;  %v19010_v40 = vrot.slane %v19009_v8, 1  ;;  %v16695_v42 = vpop.permute.xlu1 %2788  ;;  %v19014_v1 = vld [vmem:[#allocation20_spill] sm:$0xff] }
 0x576   : > { %v4630_v23 = vsel %vm4463_vm2, %v19005_v12, %v4629_v36  ;;  %v4632_v25 = vsel %vm4463_vm2, %v4629_v36, %v19007_v15  ;;  %v5015_v9 = vsel %vm4848_vm3, %v19008_v0, %v5014_v41  ;;  %5596 = vst.msk [vmem:[#allocation2 + $0x350] sm:$0xff] %vm5489_vm4, %v5467_v60  ;;  %v19011_v56 = vrot.slane %v19006_v38, 2  ;;  %v19016_v60 = vld [vmem:[#allocation170_spill] sm:$0xff]  ;;  %v3997_v12 = vpop.permute.xlu0 %3996 }
 0x577   : > { %5597 = vst.msk [vmem:[#allocation2 + $0x358] sm:$0xff] %vm5489_vm4, %v5468_v7  ;;  %v5315_v46 = vmax.f32 %v19004_v2, %v4630_v23  ;;  %v5316_v11 = vmax.f32 %v4290_v54, %v4632_v25  ;;  %v4662_v55 = vsel %vm4463_vm2, %v19010_v40, %v4661_v61  ;;  %v4685_v63 = vrot.slane %v4318_v27, 1  ;;  %v7434_v23 = vld [vmem:[#allocation2 + $0x230] sm:$0x1] }
 0x578   : > { %v5017_v24 = vsel %vm4848_vm3, %v5014_v41, %v19011_v56  ;;  %v5070_v44 = vrot.slane %v4318_v27, 2  ;;  %v19013_v35 = vrot.slane %v19012_v31, 1  ;;  %v3041_v52 = vmax.f32 %v15493_v30, %v16556_v14  ;;  %v16722_v56 = vld [vmem:[#allocation2 + $0x250] sm:$0x1] }
 0x579   : > { %v5443_v3 = vmax.f32 %v5315_v46, %v5015_v9  ;;  %v5444_v16 = vmax.f32 %v5316_v11, %v5017_v24  ;;  %v5331_v54 = vmax.f32 %v19009_v8, %v4662_v55  ;;  %v3013_v37 = vmax.f32 %v15537_v62, %v16540_v39  ;;  %v4053_v40 = vpop.permute.xlu1 %4052 }
 0x57a   : > { %v4664_v19 = vsel %vm4463_vm2, %v4661_v61, %v19013_v35  ;;  %v19015_v36 = vrot.slane %v19014_v1, 1  ;;  %v19017_v7 = vrot.slane %v19016_v60, 1  ;;  %v19018_v61 = vrot.slane %v19009_v8, 2 }
 0x57b   : > { %5572 = vst.msk [vmem:[#allocation2 + $0x290] sm:$0xff] %vm5489_vm4, %v5443_v3  ;;  %5573 = vst.msk [vmem:[#allocation2 + $0x298] sm:$0xff] %vm5489_vm4, %v5444_v16  ;;  %v5332_v62 = vmax.f32 %v4306_v28, %v4664_v19  ;;  %v19019_v38 = vrot.slane %v19014_v1, 2  ;;  %v19020_v25 = vrot.slane %v19016_v60, 2  ;;  %v19021_v9 = vrot.slane %v19012_v31, 2  ;;  %v19022_v19 = vld [vmem:[#allocation239_spill] sm:$0xff] }
 0x57c   : > { %v4686_v41 = vsel %vm4463_vm2, %v19015_v36, %v4685_v63  ;;  %v4688_v48 = vsel %vm4463_vm2, %v4685_v63, %v19017_v7  ;;  %v5047_v30 = vsel %vm4848_vm3, %v19018_v61, %v5046_v6  ;;  %v4294_v11 = vsel %vm4206_vm1, %v3013_v37, %v3997_v12  ;;  %v19026_v60 = vld [vmem:[#allocation32_spill] sm:$0xff] }
 0x57d   : > { %v5343_v14 = vmax.f32 %v19014_v1, %v4686_v41  ;;  %v5344_v2 = vmax.f32 %v4318_v27, %v4688_v48  ;;  %v5459_v39 = vmax.f32 %v5331_v54, %v5047_v30  ;;  %v5071_v15 = vsel %vm4848_vm3, %v19019_v38, %v5070_v44  ;;  %v19024_v54 = vld [vmem:[#allocation103_spill] sm:$0xff]  ;;  %v19028_v61 = vld [vmem:[#allocation28_spill] sm:$0xff] }
 0x57e   : > { %v5073_v0 = vsel %vm4848_vm3, %v5070_v44, %v19020_v25  ;;  %v5049_v46 = vsel %vm4848_vm3, %v5046_v6, %v19021_v9  ;;  %v4637_v55 = vrot.slane %v4294_v11, 1  ;;  %v3017_v24 = vmax.f32 %v15567_v22, %v16617_v53  ;;  %v16736_v53 = vpop.permute.xlu0 %2796  ;;  %v7433_v25 = vld [vmem:[#allocation2 + $0x210] sm:$0x1] }
 0x57f   : > { %v5471_v8 = vmax.f32 %v5343_v14, %v5071_v15  ;;  %v5472_v27 = vmax.f32 %v5344_v2, %v5073_v0  ;;  %v5460_v28 = vmax.f32 %v5332_v62, %v5049_v46  ;;  %5588 = vst.msk [vmem:[#allocation2 + $0x310] sm:$0xff] %vm5489_vm4, %v5459_v39  ;;  %v4322_v63 = vsel %vm4206_vm1, %v3041_v52, %v4053_v40 }
 0x580   : > { %v5022_v44 = vrot.slane %v4294_v11, 2  ;;  %v7517_v31 = vrot.slane %v7434_v23, 7  ;;  %v4693_v6 = vrot.slane %v4322_v63, 1  ;;  %v5078_v35 = vrot.slane %v4322_v63, 2 }
 0x581   : > { %5600 = vst.msk [vmem:[#allocation2 + $0x370] sm:$0xff] %vm5489_vm4, %v5471_v8  ;;  %5601 = vst.msk [vmem:[#allocation2 + $0x378] sm:$0xff] %vm5489_vm4, %v5472_v27  ;;  %v19023_v3 = vrot.slane %v19022_v19, 1  ;;  %v19025_v37 = vrot.slane %v19024_v54, 1  ;;  %v3045_v52 = vmax.f32 %v15937_v4, %v16630_v49  ;;  %v7519_v41 = vrot.slane %v16722_v56, 6  ;;  %v4005_v49 = vpop.permute.xlu1 %4004 }
 0x582   : > { %5589 = vst.msk [vmem:[#allocation2 + $0x318] sm:$0xff] %vm5489_vm4, %v5460_v28  ;;  %v19027_v7 = vrot.slane %v19026_v60, 1  ;;  %v19029_v30 = vrot.slane %v19028_v61, 1  ;;  %v19030_v2 = vrot.slane %v19022_v19, 2  ;;  %v19031_v39 = vrot.slane %v19024_v54, 2  ;;  %v4061_v28 = vpop.permute.xlu0 %4060  ;;  %v19036_v54 = vld [vmem:[#allocation118_spill] sm:$0xff] }
 0x583   : > { %v4638_v16 = vsel %vm4463_vm2, %v19023_v3, %v4637_v55  ;;  %v4640_v22 = vsel %vm4463_vm2, %v4637_v55, %v19025_v37  ;;  %v3049_v0 = vmax.f32 %v15981_v18, %v16695_v42  ;;  %v19032_v9 = vrot.slane %v19026_v60, 2 }
 0x584   : > { %v5319_v1 = vmax.f32 %v19022_v19, %v4638_v16  ;;  %v5320_v36 = vmax.f32 %v4294_v11, %v4640_v22  ;;  %v4694_v48 = vsel %vm4463_vm2, %v19027_v7, %v4693_v6  ;;  %v4696_v14 = vsel %vm4463_vm2, %v4693_v6, %v19029_v30  ;;  %v19034_v19 = vld [vmem:[#allocation126_spill] sm:$0xff] }
 0x585   : > { %v5023_v62 = vsel %vm4848_vm3, %v19030_v2, %v5022_v44  ;;  %v5025_v4 = vsel %vm4848_vm3, %v5022_v44, %v19031_v39  ;;  %v5347_v12 = vmax.f32 %v19026_v60, %v4694_v48  ;;  %v5348_v23 = vmax.f32 %v4322_v63, %v4696_v14  ;;  %v4013_v6 = vpop.permute.xlu1 %4012 }
 0x586   : > { %v5447_v38 = vmax.f32 %v5319_v1, %v5023_v62  ;;  %v5448_v15 = vmax.f32 %v5320_v36, %v5025_v4  ;;  %v5079_v46 = vsel %vm4848_vm3, %v19032_v9, %v5078_v35  ;;  %v19033_v11 = vrot.slane %v19028_v61, 2  ;;  %v4069_v60 = vpop.permute.xlu0 %4068  ;;  %v19040_v62 = vld [vmem:[#allocation49_spill] sm:$0xff] }
 0x587   : > { %v4298_v27 = vsel %vm4206_vm1, %v3017_v24, %v4005_v49  ;;  %v5475_v40 = vmax.f32 %v5347_v12, %v5079_v46  ;;  %v3021_v18 = vmax.f32 %v15459_v20, %v16684_v5  ;;  %v3053_v42 = vmax.f32 %v15997_v34, %v16736_v53  ;;  %v19042_v49 = vld [vmem:[#allocation99_spill] sm:$0xff]  ;;  %v19046_v46 = vld [vmem:[#allocation61_spill] sm:$0xff] }
 0x588   : > { %v5081_v8 = vsel %vm4848_vm3, %v5078_v35, %v19033_v11  ;;  %5576 = vst.msk [vmem:[#allocation2 + $0x2b0] sm:$0xff] %vm5489_vm4, %v5447_v38  ;;  %5577 = vst.msk [vmem:[#allocation2 + $0x2b8] sm:$0xff] %vm5489_vm4, %v5448_v15  ;;  %v4645_v63 = vrot.slane %v4298_v27, 1  ;;  %v5030_v44 = vrot.slane %v4298_v27, 2  ;;  %v4326_v35 = vsel %vm4206_vm1, %v3045_v52, %v4061_v28  ;;  %v19044_v15 = vld [vmem:[#allocation147_spill] sm:$0xff] }
 0x589   : > { %v5476_v55 = vmax.f32 %v5348_v23, %v5081_v8  ;;  %v7518_v24 = vsel %vm5731_vm5, %v7517_v31, %v7433_v25  ;;  %5604 = vst.msk [vmem:[#allocation2 + $0x390] sm:$0xff] %vm5489_vm4, %v5475_v40  ;;  %v19035_v3 = vrot.slane %v19034_v19, 1  ;;  %v19037_v37 = vrot.slane %v19036_v54, 1  ;;  %v4077_v38 = vpop.permute.xlu1 %4076 }
 0x58a   : > { %v19038_v5 = vrot.slane %v19034_v19, 2  ;;  %v19039_v22 = vrot.slane %v19036_v54, 2  ;;  %v4302_v1 = vsel %vm4206_vm1, %v3021_v18, %v4013_v6  ;;  %v4701_v36 = vrot.slane %v4326_v35, 1 }
 0x58b   : > { %5605 = vst.msk [vmem:[#allocation2 + $0x398] sm:$0xff] %vm5489_vm4, %v5476_v55  ;;  %v4646_v16 = vsel %vm4463_vm2, %v19035_v3, %v4645_v63  ;;  %v4648_v20 = vsel %vm4463_vm2, %v4645_v63, %v19037_v37  ;;  %v4653_v7 = vrot.slane %v4302_v1, 1  ;;  %v5038_v48 = vrot.slane %v4302_v1, 2 }
 0x58c   : > { %v5031_v34 = vsel %vm4848_vm3, %v19038_v5, %v5030_v44  ;;  %v5033_v31 = vsel %vm4848_vm3, %v5030_v44, %v19039_v22  ;;  %v5323_v53 = vmax.f32 %v19034_v19, %v4646_v16  ;;  %v5324_v52 = vmax.f32 %v4298_v27, %v4648_v20  ;;  %v7436_v20 = vld [vmem:[#allocation2 + $0x270] sm:$0x1] }
 0x58d   : > { %v5086_v61 = vrot.slane %v4326_v35, 2  ;;  %v4330_v30 = vsel %vm4206_vm1, %v3049_v0, %v4069_v60  ;;  %v19041_v39 = vrot.slane %v19040_v62, 1  ;;  %v19043_v12 = vrot.slane %v19042_v49, 1 }
 0x58e   : > { %v5451_v14 = vmax.f32 %v5323_v53, %v5031_v34  ;;  %v5452_v2 = vmax.f32 %v5324_v52, %v5033_v31  ;;  %v19045_v25 = vrot.slane %v19044_v15, 1  ;;  %v19047_v11 = vrot.slane %v19046_v46, 1 }
 0x58f   : > { %v4702_v4 = vsel %vm4463_vm2, %v19041_v39, %v4701_v36  ;;  %v4704_v23 = vsel %vm4463_vm2, %v4701_v36, %v19043_v12  ;;  %v19048_v0 = vrot.slane %v19044_v15, 2  ;;  %v19049_v28 = vrot.slane %v19046_v46, 2 }
 0x590   : > { %v4654_v9 = vsel %vm4463_vm2, %v19045_v25, %v4653_v7  ;;  %v4656_v8 = vsel %vm4463_vm2, %v4653_v7, %v19047_v11  ;;  %5580 = vst.msk [vmem:[#allocation2 + $0x2d0] sm:$0xff] %vm5489_vm4, %v5451_v14  ;;  %5581 = vst.msk [vmem:[#allocation2 + $0x2d8] sm:$0xff] %vm5489_vm4, %v5452_v2  ;;  %v19050_v44 = vrot.slane %v19040_v62, 2  ;;  %v19051_v6 = vrot.slane %v19042_v49, 2  ;;  %v19054_v7 = vld [vmem:[#allocation106_spill] sm:$0xff] }
 0x591   : > { %v5039_v27 = vsel %vm4848_vm3, %v19048_v0, %v5038_v48  ;;  %v5041_v40 = vsel %vm4848_vm3, %v5038_v48, %v19049_v28  ;;  %v5327_v55 = vmax.f32 %v19044_v15, %v4654_v9  ;;  %v5328_v63 = vmax.f32 %v4302_v1, %v4656_v8  ;;  %v19052_v1 = vld [vmem:[#allocation71_spill] sm:$0xff]  ;;  %v7437_v14 = vld [vmem:[#allocation2 + $0x290] sm:$0x1]  ;;  %v7654_v25 = vld [vmem:[#allocation2 + $0x192] sm:$0x1] }
 0x592   : > { %v5087_v18 = vsel %vm4848_vm3, %v19050_v44, %v5086_v61  ;;  %v5089_v19 = vsel %vm4848_vm3, %v5086_v61, %v19051_v6  ;;  %v5351_v3 = vmax.f32 %v19040_v62, %v4702_v4  ;;  %v5352_v16 = vmax.f32 %v4326_v35, %v4704_v23  ;;  %v7438_v15 = vld [vmem:[#allocation2 + $0x2b0] sm:$0x1]  ;;  %v16841_v8 = vld [vmem:[#allocation2 + $0xf2] sm:$0x1]  ;;  %v16843_v0 = vld [vmem:[#allocation2 + $0x54] sm:$0x1] }
 0x593   : > { %v4334_v54 = vsel %vm4206_vm1, %v3053_v42, %v4077_v38  ;;  %v4709_v37 = vrot.slane %v4330_v30, 1  ;;  %v5455_v5 = vmax.f32 %v5327_v55, %v5039_v27  ;;  %v5456_v34 = vmax.f32 %v5328_v63, %v5041_v40  ;;  %v19056_v42 = vld [vmem:[#allocation163_spill] sm:$0xff]  ;;  %v7442_v11 = vld [vmem:[#allocation2 + $0x330] sm:$0x1]  ;;  %v7655_v6 = vld [vmem:[#allocation2 + $0x1b2] sm:$0x1] }
 0x594   : > { %v4717_v22 = vrot.slane %v4334_v54, 1  ;;  %v5102_v31 = vrot.slane %v4334_v54, 2  ;;  %v5479_v53 = vmax.f32 %v5351_v3, %v5087_v18  ;;  %v5480_v52 = vmax.f32 %v5352_v16, %v5089_v19  ;;  %v7656_v19 = vld [vmem:[#allocation2 + $0x1d2] sm:$0x1] }
 0x595   : > { %v19053_v36 = vrot.slane %v19052_v1, 1  ;;  %v19055_v48 = vrot.slane %v19054_v7, 1  ;;  %5584 = vst.msk [vmem:[#allocation2 + $0x2f0] sm:$0xff] %vm5489_vm4, %v5455_v5  ;;  %5585 = vst.msk [vmem:[#allocation2 + $0x2f8] sm:$0xff] %vm5489_vm4, %v5456_v34  ;;  %v19057_v35 = vrot.slane %v19056_v42, 1  ;;  %v7520_v39 = vsel %vm5734_vm6, %v7519_v41, %v7518_v24 }
 0x596   : > { %v4847_v62 = vsel %vm4463_vm2, %v4717_v22, 0.0  ;;  %v7521_v4 = vrot.slane %v7436_v20, 5  ;;  %5608 = vst.msk [vmem:[#allocation2 + $0x3b0] sm:$0xff] %vm5489_vm4, %v5479_v53  ;;  %5609 = vst.msk [vmem:[#allocation2 + $0x3b8] sm:$0xff] %vm5489_vm4, %v5480_v52  ;;  %v5094_v23 = vrot.slane %v4330_v30, 2  ;;  %v19058_v9 = vrot.slane %v19056_v42, 2 }
 0x597   : > { %v4710_v60 = vsel %vm4463_vm2, %v19053_v36, %v4709_v37  ;;  %v4712_v61 = vsel %vm4463_vm2, %v4709_v37, %v19055_v48  ;;  %v4718_v2 = vsel %vm4463_vm2, %v19057_v35, %v4717_v22  ;;  %v5360_v12 = vmax.f32 %v4334_v54, %v4847_v62  ;;  %v7439_v18 = vld [vmem:[#allocation2 + $0x2d0] sm:$0x1]  ;;  %v16851_v37 = vld [vmem:[#allocation2 + $0x1f2] sm:$0x1]  ;;  %v7867_v5 = vld [vmem:[#allocation2 + $0x14] sm:$0x1] }
 0x598   : > { %v5359_v49 = vmax.f32 %v19056_v42, %v4718_v2  ;;  %v5355_v38 = vmax.f32 %v19052_v1, %v4710_v60  ;;  %v5103_v46 = vsel %vm4848_vm3, %v19058_v9, %v5102_v31  ;;  %v5232_v56 = vsel %vm4848_vm3, %v5102_v31, 0.0  ;;  %v7441_v54 = vld [vmem:[#allocation2 + $0x310] sm:$0x1] }
 0x599   : > { %v5356_v41 = vmax.f32 %v4330_v30, %v4712_v61  ;;  %v7523_v24 = vrot.slane %v7437_v14, 4  ;;  %v5488_v28 = vmax.f32 %v5360_v12, %v5232_v56  ;;  %v19059_v40 = vrot.slane %v19052_v1, 2  ;;  %v7443_v22 = vld [vmem:[#allocation2 + $0x350] sm:$0x1]  ;;  %v16860_v1 = vld [vmem:[#allocation2 + $0x74] sm:$0x1] }
 0x59a   : > { %v5487_v27 = vmax.f32 %v5359_v49, %v5103_v46  ;;  %v19060_v63 = vrot.slane %v19054_v7, 2  ;;  %v7525_v16 = vrot.slane %v7438_v15, 3  ;;  %v7734_v20 = vrot.slane %v7654_v25, 4  ;;  %v7444_v60 = vld [vmem:[#allocation2 + $0x370] sm:$0x1] }
 0x59b   : > { %v5095_v55 = vsel %vm4848_vm3, %v19059_v40, %v5094_v23  ;;  %5617 = vst.msk [vmem:[#allocation2 + $0x3f8] sm:$0xff] %vm5489_vm4, %v5488_v28  ;;  %v7527_v34 = vrot.slane %v7439_v18, 2  ;;  %v7531_v31 = vrot.slane %v7442_v11, 7  ;;  %v7723_v53 = vsel %vm5743_vm9, %v7722_v57, %v16640_v13  ;;  %v7659_v61 = vld [vmem:[#allocation2 + $0x232] sm:$0x1] }
 0x59c   : > { %v5097_v44 = vsel %vm4848_vm3, %v5094_v23, %v19060_v63  ;;  %v5483_v30 = vmax.f32 %v5355_v38, %v5095_v55  ;;  %5616 = vst.msk [vmem:[#allocation2 + $0x3f0] sm:$0xff] %vm5489_vm4, %v5487_v27  ;;  %v7726_v52 = vrot.slane %v16841_v8, 1  ;;  %v7522_v36 = vsel %vm5737_vm7, %v7521_v4, %v7520_v39  ;;  %v7440_v57 = vld [vmem:[#allocation2 + $0x2f0] sm:$0x1]  ;;  %v7667_v49 = vld [vmem:[#allocation2 + $0x332] sm:$0x1] }
 0x59d   : > { %v5484_v3 = vmax.f32 %v5356_v41, %v5097_v44  ;;  %v7733_v7 = vsel %vm5737_vm7, %v7732_v21, %v16656_v33  ;;  %v7736_v48 = vrot.slane %v7655_v6, 3  ;;  %v7738_v51 = vrot.slane %v7656_v19, 2  ;;  %v7445_v14 = vld [vmem:[#allocation2 + $0x390] sm:$0x1]  ;;  %v7660_v21 = vld [vmem:[#allocation2 + $0x252] sm:$0x1] }
 0x59e   : > { %5612 = vst.msk [vmem:[#allocation2 + $0x3d0] sm:$0xff] %vm5489_vm4, %v5483_v30  ;;  %v7524_v13 = vsel %vm5740_vm8, %v7523_v24, %v7522_v36  ;;  %v7532_v42 = vsel %vm5731_vm5, %v7531_v31, %v7441_v54  ;;  %v7740_v35 = vrot.slane %v16851_v37, 1  ;;  %v7941_v2 = vrot.slane %v16843_v0, 6  ;;  %v7446_v4 = vld [vmem:[#allocation2 + $0x3b0] sm:$0x1] }
 0x59f   : > { %5613 = vst.msk [vmem:[#allocation2 + $0x3d8] sm:$0xff] %vm5489_vm4, %v5484_v3  ;;  %v7526_v62 = vsel %vm5743_vm9, %v7525_v16, %v7524_v13  ;;  %v7529_v39 = vrot.slane %v7440_v57, 1  ;;  %v7533_v10 = vrot.slane %v7443_v22, 6  ;;  %v7735_v33 = vsel %vm5740_vm8, %v7734_v20, %v7733_v7  ;;  %v7658_v38 = vld [vmem:[#allocation2 + $0x212] sm:$0x1] }
 0x5a0   : > { %v7528_v12 = vsel %vm5746_vm10, %v7527_v34, %v7526_v62  ;;  %v7535_v23 = vrot.slane %v7444_v60, 5  ;;  %v7661_v15 = vld [vmem:[#allocation2 + $0x272] sm:$0x1]  ;;  %v7742_v25 = vrot.slane %v7659_v61, 7  ;;  %v7940_v9 = vsel %vm5731_vm5, %v7939_v59, %v7867_v5  ;;  %v7871_v30 = vld [vmem:[#allocation2 + $0x94] sm:$0x1] }
 0x5a1   : > { %v7530_v46 = vsel %vm5749_vm11, %v7529_v39, %v7528_v12  ;;  %v7534_v56 = vsel %vm5734_vm6, %v7533_v10, %v7532_v42  ;;  %v7537_v41 = vrot.slane %v7445_v14, 4  ;;  %v7666_v24 = vld [vmem:[#allocation2 + $0x312] sm:$0x1]  ;;  %v7943_v8 = vrot.slane %v16860_v1, 5  ;;  %v7872_v42 = vld [vmem:[#allocation2 + $0xb4] sm:$0x1] }
 0x5a2   : > { %v7668_v11 = vld [vmem:[#allocation2 + $0x352] sm:$0x1]  ;;  %9526 = vmatprep.mubr.msk.f32.mxu1 %vm5489_vm4, %v7530_v46  ;;  %v7539_v0 = vrot.slane %v7446_v4, 3  ;;  %v7725_v27 = vsel %vm5746_vm10, %v7724_v47, %v7723_v53  ;;  %v7737_v58 = vsel %vm5743_vm9, %v7736_v48, %v7735_v33  ;;  %v7756_v40 = vrot.slane %v7667_v49, 7  ;;  %v7873_v10 = vld [vmem:[#allocation2 + $0xd4] sm:$0x1] }
 0x5a3   : > { %v7662_v28 = vld [vmem:[#allocation2 + $0x292] sm:$0x1]  ;;  %v7448_v55 = vld [vmem:[#allocation2 + $0x3f0] sm:$0x1]  ;;  %v7727_v63 = vsel %vm5749_vm11, %v7726_v52, %v7725_v27  ;;  %v7739_v44 = vsel %vm5746_vm10, %v7738_v51, %v7737_v58  ;;  %v7743_v6 = vsel %vm5731_vm5, %v7742_v25, %v7658_v38  ;;  %v7942_v3 = vsel %vm5734_vm6, %v7941_v2, %v7940_v9  ;;  %v7876_v2 = vld [vmem:[#allocation2 + $0x134] sm:$0x1] }
 0x5a4   : > { %v7669_v59 = vld [vmem:[#allocation2 + $0x372] sm:$0x1]  ;;  %v7536_v47 = vsel %vm5737_vm7, %v7535_v23, %v7534_v56  ;;  %v7543_v16 = vrot.slane %v7448_v55, 1  ;;  %v7744_v20 = vrot.slane %v7660_v21, 6  ;;  %v7757_v5 = vsel %vm5731_vm5, %v7756_v40, %v7666_v24  ;;  %v7874_v9 = vld [vmem:[#allocation2 + $0xf4] sm:$0x1] }
 0x5a5   : > { %v7663_v18 = vld [vmem:[#allocation2 + $0x2b2] sm:$0x1]  ;;  %v7447_v17 = vld [vmem:[#allocation2 + $0x3d0] sm:$0x1]  ;;  %v7538_v34 = vsel %vm5740_vm8, %v7537_v41, %v7536_v47  ;;  %v7746_v31 = vrot.slane %v7661_v15, 5  ;;  %v7758_v52 = vrot.slane %v7668_v11, 6  ;;  %v7741_v21 = vsel %vm5749_vm11, %v7740_v35, %v7739_v44 }
 0x5a6   : > { %v7670_v19 = vld [vmem:[#allocation2 + $0x392] sm:$0x1]  ;;  %v7541_v22 = vrot.slane %v7447_v17, 2  ;;  %v7540_v1 = vsel %vm5743_vm9, %v7539_v0, %v7538_v34  ;;  %v7745_v60 = vsel %vm5734_vm6, %v7744_v20, %v7743_v6  ;;  %v7748_v7 = vrot.slane %v7662_v28, 4  ;;  %v7875_v41 = vld [vmem:[#allocation2 + $0x114] sm:$0x1] }
 0x5a7   : > { %v7664_v54 = vld [vmem:[#allocation2 + $0x2d2] sm:$0x1]  ;;  %v7760_v51 = vrot.slane %v7669_v59, 5  ;;  %v7750_v57 = vrot.slane %v7663_v18, 3  ;;  %v7759_v13 = vsel %vm5734_vm6, %v7758_v52, %v7757_v5  ;;  %v7762_v14 = vrot.slane %v7670_v19, 4  ;;  %v7904_v40 = vld [vmem:[%s17211_s3 + $0x2a8] sm:$0xff] }
 0x5a8   : > { %v7671_v53 = vld [vmem:[#allocation2 + $0x3b2] sm:$0x1]  ;;  %v7542_v61 = vsel %vm5746_vm10, %v7541_v22, %v7540_v1  ;;  %v7752_v39 = vrot.slane %v7664_v54, 2  ;;  %v7945_v33 = vrot.slane %v7871_v30, 4  ;;  %v7747_v49 = vsel %vm5737_vm7, %v7746_v31, %v7745_v60  ;;  %v7877_v11 = vld [vmem:[#allocation2 + $0x154] sm:$0x1] }
 0x5a9   : > { %v7665_v36 = vld [vmem:[#allocation2 + $0x2f2] sm:$0x1]  ;;  %v7544_v62 = vsel %vm5749_vm11, %v7543_v16, %v7542_v61  ;;  %v7764_v4 = vrot.slane %v7671_v53, 3  ;;  %v7749_v15 = vsel %vm5740_vm8, %v7748_v7, %v7747_v49  ;;  %v7761_v25 = vsel %vm5737_vm7, %v7760_v51, %v7759_v13  ;;  %v7878_v55 = vld [vmem:[#allocation2 + $0x174] sm:$0x1]  ;;  %v8124_v61 = vld [vmem:[%s17211_s3 + $0x2c0] sm:$0xff] }
 0x5aa   : > { %v7672_v48 = vld [vmem:[#allocation2 + $0x3d2] sm:$0x1]  ;;  %9527 = vmatmul.mubr.msk.f32.gmra.mrb[68].mxu1 %vm5489_vm4, %v7544_v62  ;;  %v7754_v12 = vrot.slane %v7665_v36, 1  ;;  %v7944_v46 = vsel %vm5737_vm7, %v7943_v8, %v7942_v3  ;;  %v7947_v56 = vrot.slane %v7872_v42, 3  ;;  %v7751_v37 = vsel %vm5743_vm9, %v7750_v57, %v7749_v15  ;;  %v7903_v8 = vld [vmem:[%s17211_s3 + $0x2a0] sm:$0xff] }
 0x5ab   : > { %v7673_v23 = vld [vmem:[#allocation2 + $0x3f2] sm:$0x1]  ;;  %v7766_v38 = vrot.slane %v7672_v48, 2  ;;  %9545 = vmatprep.mubr.msk.f32.mxu1 %vm5489_vm4, %v7727_v63  ;;  %v7763_v35 = vsel %vm5740_vm8, %v7762_v14, %v7761_v25  ;;  %v7949_v24 = vrot.slane %v7873_v10, 2  ;;  %v7953_v0 = vrot.slane %v7876_v2, 7 }
 0x5ac   : > { %v7753_v27 = vsel %vm5746_vm10, %v7752_v39, %v7751_v37  ;;  %v7765_v58 = vsel %vm5743_vm9, %v7764_v4, %v7763_v35  ;;  %v7768_v28 = vrot.slane %v7673_v23, 1  ;;  %v7946_v59 = vsel %vm5740_vm8, %v7945_v33, %v7944_v46  ;;  %v7879_v6 = vld [vmem:[#allocation2 + $0x194] sm:$0x1]  ;;  %v8092_v4 = vld [vmem:[#allocation2 + $0x16] sm:$0x1] }
 0x5ad   : > { %v7755_v63 = vsel %vm5749_vm11, %v7754_v12, %v7753_v27  ;;  %v7767_v44 = vsel %vm5746_vm10, %v7766_v38, %v7765_v58  ;;  %v7951_v18 = vrot.slane %v7874_v9, 1  ;;  %v7954_v19 = vsel %vm5731_vm5, %v7953_v0, %v7875_v41  ;;  %v7884_v30 = vld [vmem:[#allocation2 + $0x234] sm:$0x1]  ;;  %v8094_v23 = vld [vmem:[#allocation2 + $0x56] sm:$0x1] }
 0x5ae   : > { %9546 = vmatmul.mubr.msk.f32.vlgmr.msra.gmra.mrb[66].mxu1 %vm5489_vm4, %v7741_v21  ;;  %v7948_v3 = vsel %vm5743_vm9, %v7947_v56, %v7946_v59  ;;  %v7905_v17 = vld [vmem:[%s17211_s3 + $0x2b0] sm:$0xff]  ;;  %v7955_v54 = vrot.slane %v7877_v11, 6  ;;  %v9849_v5 = vpack.c.bf16 %v7904_v40, %v7903_v8  ;;  %v7957_v34 = vrot.slane %v7878_v55, 5  ;;  %v8125_v21 = vld [vmem:[%s17211_s3 + $0x2c8] sm:$0xff] }
 0x5af   : > { %9844 = vmatpush3.bf16.msra.mxu1 %v16585_v26  ;;  %9548 = vmatprep.mubr.msk.f32.mxu1 %vm5489_vm4, %v7755_v63  ;;  %v7880_v47 = vld [vmem:[#allocation2 + $0x1b4] sm:$0x1]  ;;  %v7950_v20 = vsel %vm5746_vm10, %v7949_v24, %v7948_v3  ;;  %v7906_v26 = vld [vmem:[%s17211_s3 + $0x2b8] sm:$0xff]  ;;  %v7769_v53 = vsel %vm5749_vm11, %v7768_v28, %v7767_v44  ;;  %v7959_v36 = vrot.slane %v7879_v6, 4  ;;  %v7967_v7 = vrot.slane %v7884_v30, 7 }
 0x5b0   : > { %v7881_v16 = vld [vmem:[#allocation2 + $0x1d4] sm:$0x1]  ;;  %9846 = vmatprep.subr.bf16.mxu1 %v16587_v43  ;;  %v7956_v1 = vsel %vm5734_vm6, %v7955_v54, %v7954_v19  ;;  %v7952_v48 = vsel %vm5749_vm11, %v7951_v18, %v7950_v20  ;;  %v7961_v51 = vrot.slane %v7880_v47, 3  ;;  %v9853_v10 = vpack.c.bf16 %v7906_v26, %v7905_v17  ;;  %v8095_v40 = vld [vmem:[#allocation2 + $0x76] sm:$0x1]  ;;  %v8127_v47 = vld [vmem:[%s17211_s3 + $0x2d8] sm:$0xff] }
 0x5b1   : > { %v7883_v22 = vld [vmem:[#allocation2 + $0x214] sm:$0x1]  ;;  %v7963_v14 = vrot.slane %v7881_v16, 2  ;;  %v7958_v33 = vsel %vm5737_vm7, %v7957_v34, %v7956_v1  ;;  %v9857_v58 = vpack.c.bf16 %v8125_v21, %v8124_v61  ;;  %v8096_v6 = vld [vmem:[#allocation2 + $0x96] sm:$0x1]  ;;  %v8165_v19 = vsel %vm5731_vm5, %v8164_v45, %v8092_v4  ;;  %v8128_v61 = vld [vmem:[%s17211_s3 + $0x2e0] sm:$0xff] }
 0x5b2   : > { %v7892_v31 = vld [vmem:[#allocation2 + $0x334] sm:$0x1]  ;;  %9549 = vmatmul.mubr.msk.f32.gmra.mrb[68].mxu1 %vm5489_vm4, %v7769_v53  ;;  %v7968_v2 = vsel %vm5731_vm5, %v7967_v7, %v7883_v22  ;;  %v7960_v38 = vsel %vm5740_vm8, %v7959_v36, %v7958_v33  ;;  %v8097_v16 = vld [vmem:[#allocation2 + $0xb6] sm:$0x1]  ;;  %v8166_v54 = vrot.slane %v8094_v23, 6  ;;  %v8168_v50 = vrot.slane %v8095_v40, 5 }
 0x5b3   : > { %v7882_v52 = vld [vmem:[#allocation2 + $0x1f4] sm:$0x1]  ;;  %9848 = vmatpush3.bf16.msra.mxu1 %v16587_v43  ;;  %9567 = vmatprep.mubr.msk.f32.mxu1 %vm5489_vm4, %v7952_v48  ;;  %v7981_v39 = vrot.slane %v7892_v31, 7  ;;  %v7962_v41 = vsel %vm5743_vm9, %v7961_v51, %v7960_v38  ;;  %v8098_v22 = vld [vmem:[#allocation2 + $0xd6] sm:$0x1]  ;;  %v8170_v1 = vrot.slane %v8096_v6, 4 }
 0x5b4   : > { %v7885_v60 = vld [vmem:[#allocation2 + $0x254] sm:$0x1]  ;;  %9850 = vmatprep.subr.bf16.mxu1 %v9849_v5  ;;  %v7965_v15 = vrot.slane %v7882_v52, 1  ;;  %v7964_v27 = vsel %vm5746_vm10, %v7963_v14, %v7962_v41  ;;  %v8099_v53 = vld [vmem:[#allocation2 + $0xf6] sm:$0x1]  ;;  %v8167_v52 = vsel %vm5734_vm6, %v8166_v54, %v8165_v19  ;;  %v8172_v51 = vrot.slane %v8097_v16, 3 }
 0x5b5   : > { %v7886_v57 = vld [vmem:[#allocation2 + $0x274] sm:$0x1]  ;;  %v7969_v12 = vrot.slane %v7885_v60, 6  ;;  %v8101_v36 = vld [vmem:[#allocation2 + $0x136] sm:$0x1]  ;;  %v8169_v33 = vsel %vm5737_vm7, %v8168_v50, %v8167_v52  ;;  %v8176_v21 = vrot.slane %v8099_v53, 1 }
 0x5b6   : > { %v7891_v13 = vld [vmem:[#allocation2 + $0x314] sm:$0x1]  ;;  %v7971_v9 = vrot.slane %v7886_v57, 5  ;;  %v7966_v20 = vsel %vm5749_vm11, %v7965_v15, %v7964_v27  ;;  %v8129_v57 = vld [vmem:[%s17211_s3 + $0x2e8] sm:$0xff]  ;;  %v8109_v4 = vld [vmem:[#allocation2 + $0x236] sm:$0x1]  ;;  %v8171_v38 = vsel %vm5740_vm8, %v8170_v1, %v8169_v33 }
 0x5b7   : > { %v7887_v42 = vld [vmem:[#allocation2 + $0x294] sm:$0x1]  ;;  %v7982_v56 = vsel %vm5731_vm5, %v7981_v39, %v7891_v13  ;;  %v7970_v35 = vsel %vm5734_vm6, %v7969_v12, %v7968_v2  ;;  %9852 = vmatpush3.bf16.msra.mxu1 %v9849_v5  ;;  %v8102_v13 = vld [vmem:[#allocation2 + $0x156] sm:$0x1]  ;;  %v8178_v23 = vrot.slane %v8101_v36, 7  ;;  %v9865_v41 = vpack.c.bf16 %v8129_v57, %v8128_v61  ;;  %v8350_v40 = vld [vmem:[%s17211_s3 + $0x308] sm:$0xff] }
 0x5b8   : > { %v7893_v62 = vld [vmem:[#allocation2 + $0x354] sm:$0x1]  ;;  %v7973_v24 = vrot.slane %v7887_v42, 4  ;;  %9854 = vmatprep.subr.bf16.mxu1 %v9853_v10  ;;  %v7972_v30 = vsel %vm5737_vm7, %v7971_v9, %v7970_v35  ;;  %v8100_v39 = vld [vmem:[#allocation2 + $0x116] sm:$0x1]  ;;  %v8192_v27 = vrot.slane %v8109_v4, 7 }
 0x5b9   : > { %v7888_v49 = vld [vmem:[#allocation2 + $0x2b4] sm:$0x1]  ;;  %v7983_v0 = vrot.slane %v7893_v62, 6  ;;  %v8174_v62 = vrot.slane %v8098_v22, 2  ;;  %v8103_v12 = vld [vmem:[#allocation2 + $0x176] sm:$0x1] }
 0x5ba   : > { %v7894_v43 = vld [vmem:[#allocation2 + $0x374] sm:$0x1]  ;;  %v7975_v28 = vrot.slane %v7888_v49, 3  ;;  %v7974_v5 = vsel %vm5740_vm8, %v7973_v24, %v7972_v30  ;;  %v16987_v15 = vld [vmem:[#allocation2 + $0x1b6] sm:$0x1]  ;;  %v8179_v24 = vsel %vm5731_vm5, %v8178_v23, %v8100_v39 }
 0x5bb   : > { %v7889_v25 = vld [vmem:[#allocation2 + $0x2d4] sm:$0x1]  ;;  %v7985_v8 = vrot.slane %v7894_v43, 5  ;;  %v7984_v63 = vsel %vm5734_vm6, %v7983_v0, %v7982_v56  ;;  %9856 = vmatpush3.bf16.msra.mxu1 %v9853_v10  ;;  %v8104_v43 = vld [vmem:[#allocation2 + $0x196] sm:$0x1]  ;;  %v8173_v56 = vsel %vm5743_vm9, %v8172_v51, %v8171_v38 }
 0x5bc   : > { %v7895_v46 = vld [vmem:[#allocation2 + $0x394] sm:$0x1]  ;;  %v7977_v55 = vrot.slane %v7889_v25, 2  ;;  %v7976_v45 = vsel %vm5743_vm9, %v7975_v28, %v7974_v5  ;;  %9858 = vmatprep.subr.bf16.mxu1 %v9857_v58  ;;  %v16989_v25 = vld [vmem:[#allocation2 + $0x1d6] sm:$0x1]  ;;  %v8175_v28 = vsel %vm5746_vm10, %v8174_v62, %v8173_v56  ;;  %v8184_v16 = vrot.slane %v8104_v43, 4 }
 0x5bd   : > { %v7890_v37 = vld [vmem:[#allocation2 + $0x2f4] sm:$0x1]  ;;  %v7987_v44 = vrot.slane %v7895_v46, 4  ;;  %v7986_v31 = vsel %vm5737_vm7, %v7985_v8, %v7984_v63  ;;  %v8108_v9 = vld [vmem:[#allocation2 + $0x216] sm:$0x1]  ;;  %v8349_v8 = vld [vmem:[%s17211_s3 + $0x300] sm:$0xff] }
 0x5be   : > { %v7896_v11 = vld [vmem:[#allocation2 + $0x3b4] sm:$0x1]  ;;  %v7979_v3 = vrot.slane %v7890_v37, 1  ;;  %v7978_v60 = vsel %vm5746_vm10, %v7977_v55, %v7976_v45  ;;  %9568 = vmatmul.mubr.msk.f32.vlgmr.msra.gmra.mrb[66].mxu1 %vm5489_vm4, %v7966_v20  ;;  %v8117_v46 = vld [vmem:[#allocation2 + $0x336] sm:$0x1]  ;;  %v8131_v37 = vld [vmem:[%s17211_s3 + $0x2f8] sm:$0xff]  ;;  %v8193_v19 = vsel %vm5731_vm5, %v8192_v27, %v8108_v9  ;;  %v9873_v51 = vpack.c.bf16 %v8350_v40, %v8349_v8 }
 0x5bf   : > { %v7897_v59 = vld [vmem:[#allocation2 + $0x3d4] sm:$0x1]  ;;  %v7989_v17 = vrot.slane %v7896_v11, 3  ;;  %v7988_v7 = vsel %vm5740_vm8, %v7987_v44, %v7986_v31  ;;  %9860 = vmatpush3.bf16.msra.mxu1 %v9857_v58  ;;  %v16995_v35 = vld [vmem:[#allocation2 + $0x1f6] sm:$0x1]  ;;  %v8177_v44 = vsel %vm5749_vm11, %v8176_v21, %v8175_v28  ;;  %v8188_v22 = vrot.slane %v16989_v25, 2 }
 0x5c0   : > { %v8126_v18 = vld [vmem:[%s17211_s3 + $0x2d0] sm:$0xff]  ;;  %v7991_v34 = vrot.slane %v7897_v59, 2  ;;  %v7980_v14 = vsel %vm5749_vm11, %v7979_v3, %v7978_v60  ;;  %v8180_v59 = vrot.slane %v8102_v13, 6  ;;  %v8206_v3 = vrot.slane %v8117_v46, 7  ;;  %v8319_v53 = vld [vmem:[#allocation2 + $0x58] sm:$0x1] }
 0x5c1   : > { %v7898_v26 = vld [vmem:[#allocation2 + $0x3f4] sm:$0x1]  ;;  %v9861_v48 = vpack.c.bf16 %v8127_v47, %v8126_v18  ;;  %v7990_v42 = vsel %vm5743_vm9, %v7989_v17, %v7988_v7  ;;  %9570 = vmatprep.mubr.msk.f32.mxu1 %vm5489_vm4, %v7980_v14  ;;  %v8110_v11 = vld [vmem:[#allocation2 + $0x256] sm:$0x1]  ;;  %v8182_v18 = vrot.slane %v8103_v12, 5  ;;  %v8190_v52 = vrot.slane %v16995_v35, 1 }
 0x5c2   : > { %v7993_v2 = vrot.slane %v7898_v26, 1  ;;  %v7992_v10 = vsel %vm5746_vm10, %v7991_v34, %v7990_v42  ;;  %v8130_v49 = vld [vmem:[%s17211_s3 + $0x2f0] sm:$0xff]  ;;  %v8181_v47 = vsel %vm5734_vm6, %v8180_v59, %v8179_v24  ;;  %v8194_v20 = vrot.slane %v8110_v11, 6  ;;  %v8317_v26 = vld [vmem:[#allocation2 + $0x18] sm:$0x1] }
 0x5c3   : > { %9862 = vmatprep.subr.bf16.mxu1 %v9861_v48  ;;  %v8111_v0 = vld [vmem:[#allocation2 + $0x276] sm:$0x1]  ;;  %v9869_v17 = vpack.c.bf16 %v8131_v37, %v8130_v49  ;;  %v8186_v34 = vrot.slane %v16987_v15, 3  ;;  %v8320_v4 = vld [vmem:[#allocation2 + $0x78] sm:$0x1]  ;;  %v8390_v38 = vsel %vm5731_vm5, %v8389_v32, %v8317_v26 }
 0x5c4   : > { %v7994_v58 = vsel %vm5749_vm11, %v7993_v2, %v7992_v10  ;;  %v8116_v55 = vld [vmem:[#allocation2 + $0x316] sm:$0x1]  ;;  %9864 = vmatpush3.bf16.msra.mxu1 %v9861_v48  ;;  %v8196_v45 = vrot.slane %v8111_v0, 5  ;;  %v8195_v1 = vsel %vm5734_vm6, %v8194_v20, %v8193_v19  ;;  %v8183_v48 = vsel %vm5737_vm7, %v8182_v18, %v8181_v47  ;;  %v8326_v10 = vld [vmem:[#allocation2 + $0x138] sm:$0x1] }
 0x5c5   : > { %v8118_v63 = vld [vmem:[#allocation2 + $0x356] sm:$0x1]  ;;  %9571 = vmatmul.mubr.msk.f32.gmra.mrb[68].mxu1 %vm5489_vm4, %v7994_v58  ;;  %9866 = vmatprep.subr.bf16.mxu1 %v9865_v41  ;;  %v8207_v31 = vsel %vm5731_vm5, %v8206_v3, %v8116_v55  ;;  %v8185_v42 = vsel %vm5740_vm8, %v8184_v16, %v8183_v48  ;;  %v8321_v23 = vld [vmem:[#allocation2 + $0x98] sm:$0x1]  ;;  %v8393_v29 = vrot.slane %v8320_v4, 5  ;;  %v8403_v18 = vrot.slane %v8326_v10, 7 }
 0x5c6   : > { %v8112_v6 = vld [vmem:[#allocation2 + $0x296] sm:$0x1]  ;;  %9589 = vmatprep.mubr.msk.f32.mxu1 %vm5489_vm4, %v8177_v44  ;;  %v8208_v7 = vrot.slane %v8118_v63, 6  ;;  %v8187_v33 = vsel %vm5743_vm9, %v8186_v34, %v8185_v42  ;;  %v8197_v21 = vsel %vm5737_vm7, %v8196_v45, %v8195_v1  ;;  %v8352_v46 = vld [vmem:[%s17211_s3 + $0x318] sm:$0xff]  ;;  %v8395_v28 = vrot.slane %v8321_v23, 4  ;;  %v8353_v63 = vld [vmem:[%s17211_s3 + $0x320] sm:$0xff] }
 0x5c7   : > { %v8119_v30 = vld [vmem:[#allocation2 + $0x376] sm:$0x1]  ;;  %v8198_v36 = vrot.slane %v8112_v6, 4  ;;  %v8322_v56 = vld [vmem:[#allocation2 + $0xb8] sm:$0x1]  ;;  %v8189_v37 = vsel %vm5746_vm10, %v8188_v22, %v8187_v33 }
 0x5c8   : > { %v8113_v54 = vld [vmem:[#allocation2 + $0x2b6] sm:$0x1]  ;;  %v8210_v14 = vrot.slane %v8119_v30, 5  ;;  %9868 = vmatpush3.bf16.msra.mxu1 %v9865_v41  ;;  %v8209_v62 = vsel %vm5734_vm6, %v8208_v7, %v8207_v31  ;;  %v8391_v41 = vrot.slane %v8319_v53, 6  ;;  %v8323_v11 = vld [vmem:[#allocation2 + $0xd8] sm:$0x1]  ;;  %v8191_v6 = vsel %vm5749_vm11, %v8190_v52, %v8189_v37 }
 0x5c9   : > { %v8120_v5 = vld [vmem:[#allocation2 + $0x396] sm:$0x1]  ;;  %v8200_v57 = vrot.slane %v8113_v54, 3  ;;  %9870 = vmatprep.subr.bf16.mxu1 %v9869_v17  ;;  %v8199_v15 = vsel %vm5740_vm8, %v8198_v36, %v8197_v21  ;;  %v8324_v27 = vld [vmem:[#allocation2 + $0xf8] sm:$0x1]  ;;  %v8397_v55 = vrot.slane %v8322_v56, 3 }
 0x5ca   : > { %v8114_v50 = vld [vmem:[#allocation2 + $0x2d6] sm:$0x1]  ;;  %v8212_v39 = vrot.slane %v8120_v5, 4  ;;  %v8211_v24 = vsel %vm5737_vm7, %v8210_v14, %v8209_v62  ;;  %v8392_v58 = vsel %vm5734_vm6, %v8391_v41, %v8390_v38  ;;  %v8325_v59 = vld [vmem:[#allocation2 + $0x118] sm:$0x1]  ;;  %v8399_v3 = vrot.slane %v8323_v11, 2 }
 0x5cb   : > { %v8121_v60 = vld [vmem:[#allocation2 + $0x3b6] sm:$0x1]  ;;  %v8202_v2 = vrot.slane %v8114_v50, 2  ;;  %v8201_v35 = vsel %vm5743_vm9, %v8200_v57, %v8199_v15  ;;  %v8327_v44 = vld [vmem:[#allocation2 + $0x158] sm:$0x1]  ;;  %v8394_v20 = vsel %vm5737_vm7, %v8393_v29, %v8392_v58  ;;  %v8401_v5 = vrot.slane %v8324_v27, 1 }
 0x5cc   : > { %v8115_v61 = vld [vmem:[#allocation2 + $0x2f6] sm:$0x1]  ;;  %v8214_v12 = vrot.slane %v8121_v60, 3  ;;  %9872 = vmatpush3.bf16.msra.mxu1 %v9869_v17  ;;  %v8213_v32 = vsel %vm5740_vm8, %v8212_v39, %v8211_v24  ;;  %v8354_v17 = vld [vmem:[%s17211_s3 + $0x328] sm:$0xff]  ;;  %v8328_v47 = vld [vmem:[#allocation2 + $0x178] sm:$0x1]  ;;  %v8404_v34 = vsel %vm5731_vm5, %v8403_v18, %v8325_v59  ;;  %v8396_v50 = vsel %vm5740_vm8, %v8395_v28, %v8394_v20 }
 0x5cd   : > { %v8122_v13 = vld [vmem:[#allocation2 + $0x3d6] sm:$0x1]  ;;  %v8204_v25 = vrot.slane %v8115_v61, 1  ;;  %9874 = vmatprep.subr.bf16.mxu1 %v9873_v51  ;;  %v8203_v19 = vsel %vm5746_vm10, %v8202_v2, %v8201_v35  ;;  %v8329_v16 = vld [vmem:[#allocation2 + $0x198] sm:$0x1]  ;;  %v8405_v52 = vrot.slane %v8327_v44, 6  ;;  %v8398_v36 = vsel %vm5743_vm9, %v8397_v55, %v8396_v50 }
 0x5ce   : > { %v8123_v49 = vld [vmem:[#allocation2 + $0x3f6] sm:$0x1]  ;;  %v8216_v9 = vrot.slane %v8122_v13, 2  ;;  %v8215_v8 = vsel %vm5743_vm9, %v8214_v12, %v8213_v32  ;;  %v8330_v26 = vld [vmem:[#allocation2 + $0x1b8] sm:$0x1]  ;;  %v9881_v60 = vpack.c.bf16 %v8354_v17, %v8353_v63  ;;  %v8407_v48 = vrot.slane %v8328_v47, 5 }
 0x5cf   : > { %v8351_v43 = vld [vmem:[%s17211_s3 + $0x310] sm:$0xff]  ;;  %v8218_v0 = vrot.slane %v8123_v49, 1  ;;  %9590 = vmatmul.mubr.msk.f32.vlgmr.msra.gmra.mrb[66].mxu1 %vm5489_vm4, %v8191_v6  ;;  %v8205_v54 = vsel %vm5749_vm11, %v8204_v25, %v8203_v19  ;;  %v8334_v22 = vld [vmem:[#allocation2 + $0x238] sm:$0x1]  ;;  %v8400_v57 = vsel %vm5746_vm10, %v8399_v3, %v8398_v36  ;;  %v8406_v13 = vsel %vm5734_vm6, %v8405_v52, %v8404_v34  ;;  %v8543_v39 = vld [vmem:[#allocation2 + $0x3a] sm:$0x1] }
 0x5d0   : > { %v9877_v40 = vpack.c.bf16 %v8352_v46, %v8351_v43  ;;  %v8217_v30 = vsel %vm5746_vm10, %v8216_v9, %v8215_v8  ;;  %9592 = vmatprep.mubr.msk.f32.mxu1 %vm5489_vm4, %v8205_v54  ;;  %9876 = vmatpush3.bf16.msra.mxu1 %v9873_v51  ;;  %v8355_v45 = vld [vmem:[%s17211_s3 + $0x330] sm:$0xff]  ;;  %v8331_v31 = vld [vmem:[#allocation2 + $0x1d8] sm:$0x1]  ;;  %v8409_v14 = vrot.slane %v8329_v16, 4  ;;  %v8417_v62 = vrot.slane %v8334_v22, 7  ;;  %v8574_v12 = vld [vmem:[%s17211_s3 + $0x340] sm:$0xff] }
 0x5d1   : > { %v17055_v53 = vld [vmem:[#allocation2 + $0x1f8] sm:$0x1]  ;;  %v8219_v1 = vsel %vm5749_vm11, %v8218_v0, %v8217_v30  ;;  %v8402_v4 = vsel %vm5749_vm11, %v8401_v5, %v8400_v57  ;;  %v8411_v10 = vrot.slane %v8330_v26, 3  ;;  %v8413_v49 = vrot.slane %v8331_v31, 2  ;;  %v8575_v43 = vld [vmem:[%s17211_s3 + $0x348] sm:$0xff]  ;;  %v8576_v50 = vld [vmem:[%s17211_s3 + $0x350] sm:$0xff] }
 0x5d2   : > { %9878 = vmatprep.subr.bf16.mxu1 %v9877_v40  ;;  %v8356_v7 = vld [vmem:[%s17211_s3 + $0x338] sm:$0xff]  ;;  %v8408_v46 = vsel %vm5737_vm7, %v8407_v48, %v8406_v13  ;;  %v8415_v56 = vrot.slane %v17055_v53, 1  ;;  %v8614_v63 = vrot.slane %v8543_v39, 7  ;;  %v9889_v18 = vpack.c.bf16 %v8575_v43, %v8574_v12  ;;  %v8579_v12 = vld [vmem:[%s17211_s3 + $0x368] sm:$0xff] }
 0x5d3   : > { %v8333_v51 = vld [vmem:[#allocation2 + $0x218] sm:$0x1]  ;;  %9593 = vmatmul.mubr.msk.f32.gmra.mrb[68].mxu1 %vm5489_vm4, %v8219_v1  ;;  %v8542_v25 = vld [vmem:[#allocation2 + $0x1a] sm:$0x1]  ;;  %v9885_v9 = vpack.c.bf16 %v8356_v7, %v8355_v45  ;;  %v8410_v11 = vsel %vm5740_vm8, %v8409_v14, %v8408_v46 }
 0x5d4   : > { %v8342_v61 = vld [vmem:[#allocation2 + $0x338] sm:$0x1]  ;;  %9880 = vmatpush3.bf16.msra.mxu1 %v9877_v40  ;;  %9611 = vmatprep.mubr.msk.f32.mxu1 %vm5489_vm4, %v8402_v4  ;;  %v8418_v23 = vsel %vm5731_vm5, %v8417_v62, %v8333_v51  ;;  %v8544_v24 = vld [vmem:[#allocation2 + $0x5a] sm:$0x1]  ;;  %v8412_v28 = vsel %vm5743_vm9, %v8411_v10, %v8410_v11  ;;  %v8615_v5 = vsel %vm5731_vm5, %v8614_v63, %v8542_v25 }
 0x5d5   : > { %v8335_v42 = vld [vmem:[#allocation2 + $0x258] sm:$0x1]  ;;  %v8431_v15 = vrot.slane %v8342_v61, 7  ;;  %9882 = vmatprep.subr.bf16.mxu1 %v9881_v60  ;;  %v8414_v44 = vsel %vm5746_vm10, %v8413_v49, %v8412_v28  ;;  %v8545_v3 = vld [vmem:[#allocation2 + $0x7a] sm:$0x1]  ;;  %v8616_v31 = vrot.slane %v8544_v24, 6 }
 0x5d6   : > { %v8336_v2 = vld [vmem:[#allocation2 + $0x278] sm:$0x1]  ;;  %v8419_v37 = vrot.slane %v8335_v42, 6  ;;  %v8546_v54 = vld [vmem:[#allocation2 + $0x9a] sm:$0x1]  ;;  %v8416_v53 = vsel %vm5749_vm11, %v8415_v56, %v8414_v44  ;;  %v8618_v7 = vrot.slane %v8545_v3, 5 }
 0x5d7   : > { %v8337_v33 = vld [vmem:[#allocation2 + $0x298] sm:$0x1]  ;;  %v8421_v32 = vrot.slane %v8336_v2, 5  ;;  %v8547_v20 = vld [vmem:[#allocation2 + $0xba] sm:$0x1]  ;;  %v8617_v57 = vsel %vm5734_vm6, %v8616_v31, %v8615_v5  ;;  %v8620_v13 = vrot.slane %v8546_v54, 4 }
 0x5d8   : > { %v8341_v21 = vld [vmem:[#allocation2 + $0x318] sm:$0x1]  ;;  %v8423_v0 = vrot.slane %v8337_v33, 4  ;;  %v8420_v8 = vsel %vm5734_vm6, %v8419_v37, %v8418_v23  ;;  %9884 = vmatpush3.bf16.msra.mxu1 %v9881_v60  ;;  %v8548_v60 = vld [vmem:[#allocation2 + $0xda] sm:$0x1]  ;;  %v8622_v39 = vrot.slane %v8547_v20, 3 }
 0x5d9   : > { %v8343_v38 = vld [vmem:[#allocation2 + $0x358] sm:$0x1]  ;;  %v8432_v58 = vsel %vm5731_vm5, %v8431_v15, %v8341_v21  ;;  %9886 = vmatprep.subr.bf16.mxu1 %v9885_v9  ;;  %v8422_v26 = vsel %vm5737_vm7, %v8421_v32, %v8420_v8  ;;  %v8549_v61 = vld [vmem:[#allocation2 + $0xfa] sm:$0x1]  ;;  %v8624_v21 = vrot.slane %v8548_v60, 2  ;;  %v8578_v49 = vld [vmem:[%s17211_s3 + $0x360] sm:$0xff] }
 0x5da   : > { %v8338_v41 = vld [vmem:[#allocation2 + $0x2b8] sm:$0x1]  ;;  %v8433_v55 = vrot.slane %v8343_v38, 6  ;;  %v8424_v52 = vsel %vm5740_vm8, %v8423_v0, %v8422_v26  ;;  %v8551_v14 = vld [vmem:[#allocation2 + $0x13a] sm:$0x1]  ;;  %v8619_v38 = vsel %vm5737_vm7, %v8618_v7, %v8617_v57  ;;  %v8626_v15 = vrot.slane %v8549_v61, 1 }
 0x5db   : > { %v8344_v35 = vld [vmem:[#allocation2 + $0x378] sm:$0x1]  ;;  %v8425_v6 = vrot.slane %v8338_v41, 3  ;;  %v8550_v43 = vld [vmem:[#allocation2 + $0x11a] sm:$0x1]  ;;  %v8621_v46 = vsel %vm5740_vm8, %v8620_v13, %v8619_v38  ;;  %v8580_v56 = vld [vmem:[%s17211_s3 + $0x370] sm:$0xff]  ;;  %v9897_v11 = vpack.c.bf16 %v8579_v12, %v8578_v49 }
 0x5dc   : > { %v8339_v29 = vld [vmem:[#allocation2 + $0x2d8] sm:$0x1]  ;;  %v8435_v30 = vrot.slane %v8344_v35, 5  ;;  %v8434_v47 = vsel %vm5734_vm6, %v8433_v55, %v8432_v58  ;;  %9888 = vmatpush3.bf16.msra.mxu1 %v9885_v9  ;;  %v8552_v25 = vld [vmem:[#allocation2 + $0x15a] sm:$0x1]  ;;  %v8628_v9 = vrot.slane %v8551_v14, 7  ;;  %v8623_v24 = vsel %vm5743_vm9, %v8622_v39, %v8621_v46 }
 0x5dd   : > { %v8345_v27 = vld [vmem:[#allocation2 + $0x398] sm:$0x1]  ;;  %v8427_v17 = vrot.slane %v8339_v29, 2  ;;  %v8426_v48 = vsel %vm5743_vm9, %v8425_v6, %v8424_v52  ;;  %9890 = vmatprep.subr.bf16.mxu1 %v9889_v18  ;;  %v8553_v41 = vld [vmem:[#allocation2 + $0x17a] sm:$0x1]  ;;  %v8625_v28 = vsel %vm5746_vm10, %v8624_v21, %v8623_v24  ;;  %v8778_v54 = vld [vmem:[%s17213_s5] sm:$0xff] }
 0x5de   : > { %v8340_v59 = vld [vmem:[#allocation2 + $0x2f8] sm:$0x1]  ;;  %v8437_v16 = vrot.slane %v8345_v27, 4  ;;  %v8436_v51 = vsel %vm5737_vm7, %v8435_v30, %v8434_v47  ;;  %v8554_v37 = vld [vmem:[#allocation2 + $0x19a] sm:$0x1]  ;;  %v8629_v32 = vsel %vm5731_vm5, %v8628_v9, %v8550_v43  ;;  %v8627_v44 = vsel %vm5749_vm11, %v8626_v15, %v8625_v28  ;;  %v8780_v43 = vld [vmem:[%s17213_s5 + $0x10] sm:$0xff] }
 0x5df   : > { %v8346_v40 = vld [vmem:[#allocation2 + $0x3b8] sm:$0x1]  ;;  %v8429_v34 = vrot.slane %v8340_v59, 1  ;;  %v8428_v42 = vsel %vm5746_vm10, %v8427_v17, %v8426_v48  ;;  %9612 = vmatmul.mubr.msk.f32.vlgmr.msra.gmra.mrb[66].mxu1 %vm5489_vm4, %v8416_v53  ;;  %v8559_v35 = vld [vmem:[#allocation2 + $0x23a] sm:$0x1]  ;;  %v8634_v26 = vrot.slane %v8554_v37, 4 }
 0x5e0   : > { %v8347_v19 = vld [vmem:[#allocation2 + $0x3d8] sm:$0x1]  ;;  %v8439_v22 = vrot.slane %v8346_v40, 3  ;;  %v8438_v2 = vsel %vm5740_vm8, %v8437_v16, %v8436_v51  ;;  %9892 = vmatpush3.bf16.msra.mxu1 %v9889_v18  ;;  %v8555_v29 = vld [vmem:[#allocation2 + $0x1ba] sm:$0x1]  ;;  %v8630_v40 = vrot.slane %v8552_v25, 6 }
 0x5e1   : > { %v8577_v45 = vld [vmem:[%s17211_s3 + $0x358] sm:$0xff]  ;;  %v8441_v36 = vrot.slane %v8347_v19, 2  ;;  %v8430_v4 = vsel %vm5749_vm11, %v8429_v34, %v8428_v42  ;;  %v8632_v18 = vrot.slane %v8553_v41, 5  ;;  %v8642_v6 = vrot.slane %v8559_v35, 7 }
 0x5e2   : > { %v8348_v1 = vld [vmem:[#allocation2 + $0x3f8] sm:$0x1]  ;;  %v9893_v62 = vpack.c.bf16 %v8577_v45, %v8576_v50  ;;  %v8440_v10 = vsel %vm5743_vm9, %v8439_v22, %v8438_v2  ;;  %9614 = vmatprep.mubr.msk.f32.mxu1 %vm5489_vm4, %v8430_v4  ;;  %v8560_v0 = vld [vmem:[#allocation2 + $0x25a] sm:$0x1]  ;;  %v8631_v3 = vsel %vm5734_vm6, %v8630_v40, %v8629_v32  ;;  %v8779_v45 = vld [vmem:[%s17213_s5 + $0x8] sm:$0xff]  ;;  %v8636_v31 = vrot.slane %v8555_v29, 3 }
 0x5e3   : > { %v8443_v33 = vrot.slane %v8348_v1, 1  ;;  %v8442_v23 = vsel %vm5746_vm10, %v8441_v36, %v8440_v10  ;;  %v8567_v27 = vld [vmem:[#allocation2 + $0x33a] sm:$0x1]  ;;  %v8644_v1 = vrot.slane %v8560_v0, 6  ;;  %v8633_v60 = vsel %vm5737_vm7, %v8632_v18, %v8631_v3  ;;  %v8786_v18 = vld [vmem:[%s17213_s5 + $0x40] sm:$0xff] }
 0x5e4   : > { %9894 = vmatprep.subr.bf16.mxu1 %v9893_v62  ;;  %v8581_v59 = vld [vmem:[%s17211_s3 + $0x378] sm:$0xff]  ;;  %v8656_v16 = vrot.slane %v8567_v27, 7  ;;  %v9905_v10 = vpack.c.bf16 %v8779_v45, %v8778_v54  ;;  %v8782_v27 = vld [vmem:[%s17213_s5 + $0x20] sm:$0xff] }
 0x5e5   : > { %v8444_v58 = vsel %vm5749_vm11, %v8443_v33, %v8442_v23  ;;  %v8556_v8 = vld [vmem:[#allocation2 + $0x1da] sm:$0x1]  ;;  %9896 = vmatpush3.bf16.msra.mxu1 %v9893_v62  ;;  %v9901_v20 = vpack.c.bf16 %v8581_v59, %v8580_v56  ;;  %v8635_v62 = vsel %vm5740_vm8, %v8634_v26, %v8633_v60  ;;  %v9140_v60 = vld [vmem:[%s17214_s6] ss:$0 sm:$0xff] }
 0x5e6   : > { %v8558_v55 = vld [vmem:[#allocation2 + $0x21a] sm:$0x1]  ;;  %9615 = vmatmul.mubr.msk.f32.gmra.mrb[68].mxu1 %vm5489_vm4, %v8444_v58  ;;  %9898 = vmatprep.subr.bf16.mxu1 %v9897_v11  ;;  %v8638_v7 = vrot.slane %v8556_v8, 2  ;;  %v8637_v33 = vsel %vm5743_vm9, %v8636_v31, %v8635_v62  ;;  %v8783_v58 = vld [vmem:[%s17213_s5 + $0x28] sm:$0xff] }
 0x5e7   : > { %v8561_v63 = vld [vmem:[#allocation2 + $0x27a] sm:$0x1]  ;;  %9633 = vmatprep.mubr.msk.f32.mxu1 %vm5489_vm4, %v8627_v44  ;;  %v8643_v22 = vsel %vm5731_vm5, %v8642_v6, %v8558_v55  ;;  %v9913_v8 = vpack.c.bf16 %v8783_v58, %v8782_v27  ;;  %v8784_v55 = vld [vmem:[%s17213_s5 + $0x30] sm:$0xff]  ;;  %v8787_v6 = vld [vmem:[%s17213_s5 + $0x48] sm:$0xff] }
 0x5e8   : > { %v8566_v19 = vld [vmem:[#allocation2 + $0x31a] sm:$0x1]  ;;  %v8646_v48 = vrot.slane %v8561_v63, 5  ;;  %v8645_v57 = vsel %vm5734_vm6, %v8644_v1, %v8643_v22  ;;  %v8639_v38 = vsel %vm5746_vm10, %v8638_v7, %v8637_v33 }
 0x5e9   : > { %v8568_v30 = vld [vmem:[#allocation2 + $0x35a] sm:$0x1]  ;;  %v8657_v36 = vsel %vm5731_vm5, %v8656_v16, %v8566_v19  ;;  %9900 = vmatpush3.bf16.msra.mxu1 %v9897_v11  ;;  %v9921_v19 = vpack.c.bf16 %v8787_v6, %v8786_v18  ;;  %v8791_v16 = vld [vmem:[%s17213_s5 + $0x68] sm:$0xff] }
 0x5ea   : > { %v8562_v17 = vld [vmem:[#allocation2 + $0x29a] sm:$0x1]  ;;  %v8658_v61 = vrot.slane %v8568_v30, 6  ;;  %9902 = vmatprep.subr.bf16.mxu1 %v9901_v20  ;;  %v8647_v15 = vsel %vm5737_vm7, %v8646_v48, %v8645_v57  ;;  %v8788_v30 = vld [vmem:[%s17213_s5 + $0x50] sm:$0xff] }
 0x5eb   : > { %v8569_v47 = vld [vmem:[#allocation2 + $0x37a] sm:$0x1]  ;;  %v8648_v13 = vrot.slane %v8562_v17, 4 }
 0x5ec   : > { %v8557_v5 = vld [vmem:[#allocation2 + $0x1fa] sm:$0x1]  ;;  %v8660_v2 = vrot.slane %v8569_v47, 5  ;;  %v8659_v39 = vsel %vm5734_vm6, %v8658_v61, %v8657_v36  ;;  %v8790_v47 = vld [vmem:[%s17213_s5 + $0x60] sm:$0xff] }
 0x5ed   : > { %v8563_v34 = vld [vmem:[#allocation2 + $0x2ba] sm:$0x1]  ;;  %v8640_v21 = vrot.slane %v8557_v5, 1  ;;  %9904 = vmatpush3.bf16.msra.mxu1 %v9901_v20  ;;  %v8649_v56 = vsel %vm5740_vm8, %v8648_v13, %v8647_v15  ;;  %v9929_v54 = vpack.c.bf16 %v8791_v16, %v8790_v47  ;;  %v8792_v20 = vld [vmem:[%s17213_s5 + $0x70] sm:$0xff] }
 0x5ee   : > { %v8570_v50 = vld [vmem:[#allocation2 + $0x39a] sm:$0x1]  ;;  %v8650_v14 = vrot.slane %v8563_v34, 3  ;;  %v8661_v41 = vsel %vm5737_vm7, %v8660_v2, %v8659_v39  ;;  %9906 = vmatprep.subr.bf16.mxu1 %v9905_v10  ;;  %v9139_v34 = vld [vmem:[%s17212_s4] ss:$0 sm:$0xff] }
 0x5ef   : > { %v8564_v53 = vld [vmem:[#allocation2 + $0x2da] sm:$0x1]  ;;  %v8662_v4 = vrot.slane %v8570_v50, 4  ;;  %v8641_v11 = vsel %vm5749_vm11, %v8640_v21, %v8639_v38 }
 0x5f0   : > { %v8565_v52 = vld [vmem:[#allocation2 + $0x2fa] sm:$0x1]  ;;  %v8652_v49 = vrot.slane %v8564_v53, 2  ;;  %v8651_v37 = vsel %vm5743_vm9, %v8650_v14, %v8649_v56  ;;  %9634 = vmatmul.mubr.msk.f32.vlgmr.msra.gmra.mrb[66].mxu1 %vm5489_vm4, %v8641_v11 }
 0x5f1   : > { %v8571_v51 = vld [vmem:[#allocation2 + $0x3ba] sm:$0x1]  ;;  %v8654_v25 = vrot.slane %v8565_v52, 1  ;;  %v8663_v35 = vsel %vm5740_vm8, %v8662_v4, %v8661_v41  ;;  %9908 = vmatpush3.bf16.msra.mxu1 %v9905_v10 }
 0x5f2   : > { %v8572_v42 = vld [vmem:[#allocation2 + $0x3da] sm:$0x1]  ;;  %v8664_v12 = vrot.slane %v8571_v51, 3  ;;  %v8653_v29 = vsel %vm5746_vm10, %v8652_v49, %v8651_v37 }
 0x5f3   : > { %v8781_v23 = vld [vmem:[%s17213_s5 + $0x18] sm:$0xff]  ;;  %v8666_v46 = vrot.slane %v8572_v42, 2  ;;  %v8655_v28 = vsel %vm5749_vm11, %v8654_v25, %v8653_v29 }
 0x5f4   : > { %v8573_v9 = vld [vmem:[#allocation2 + $0x3fa] sm:$0x1]  ;;  %v9909_v24 = vpack.c.bf16 %v8781_v23, %v8780_v43  ;;  %v8665_v32 = vsel %vm5743_vm9, %v8664_v12, %v8663_v35  ;;  %9636 = vmatprep.mubr.msk.f32.mxu1 %vm5489_vm4, %v8655_v28 }
 0x5f5   : > { %v8668_v0 = vrot.slane %v8573_v9, 1  ;;  %v8667_v59 = vsel %vm5746_vm10, %v8666_v46, %v8665_v32  ;;  %v8785_v63 = vld [vmem:[%s17213_s5 + $0x38] sm:$0xff] }
 0x5f6   : > { %9910 = vmatprep.subr.bf16.mxu1 %v9909_v24  ;;  %v9917_v44 = vpack.c.bf16 %v8785_v63, %v8784_v55  ;;  %v8789_v3 = vld [vmem:[%s17213_s5 + $0x58] sm:$0xff] }
 0x5f7   : > { %v8669_v40 = vsel %vm5749_vm11, %v8668_v0, %v8667_v59  ;;  %9912 = vmatpush3.bf16.msra.mxu1 %v9909_v24  ;;  %v9925_v17 = vpack.c.bf16 %v8789_v3, %v8788_v30  ;;  %v8793_v5 = vld [vmem:[%s17213_s5 + $0x78] sm:$0xff] }
 0x5f8   : > { %9637 = vmatmul.mubr.msk.f32.gmra.mrb[68].mxu1 %vm5489_vm4, %v8669_v40  ;;  %9914 = vmatprep.subr.bf16.mxu1 %v9913_v8  ;;  %v9933_v26 = vpack.c.bf16 %v8793_v5, %v8792_v20 }
 0x5fb   : > { %9916 = vmatpush3.bf16.msra.mxu1 %v9913_v8 }
 0x5fc   : > { %9918 = vmatprep.subr.bf16.mxu1 %v9917_v44 }
 0x5ff   : > { %9920 = vmatpush3.bf16.msra.mxu1 %v9917_v44 }
 0x600   : > { %9922 = vmatprep.subr.bf16.mxu1 %v9921_v19 }
 0x603   : > { %9924 = vmatpush3.bf16.msra.mxu1 %v9921_v19 }
 0x604   : > { %9926 = vmatprep.subr.bf16.mxu1 %v9925_v17 }
 0x607   : > { %9928 = vmatpush3.bf16.msra.mxu1 %v9925_v17 }
 0x608   : > { %9930 = vmatprep.subr.bf16.mxu1 %v9929_v54 }
 0x60b   : > { %9932 = vmatpush3.bf16.msra.mxu1 %v9929_v54 }
 0x60c   : > { %9934 = vmatprep.subr.bf16.mxu1 %v9933_v26 }
 0x60f   : > { %9936 = vmatpush3.bf16.msra.mxu1 %v9933_v26 }
 0x6c3   : > { %v9635_v22 = vpop.f32.mrb[66].mxu1 }
 0x6c4   : > { %v8744_v50 = vpop.f32.mrb[67].mxu1  ;;  %v8775_v31 = vadd.f32 %v9635_v22, %v9139_v34 }
 0x6c5   : > { %v8774_v45 = vadd.f32 %v9139_v34, %v8744_v50 }
 0x6c7   : > { %9671 = vmatprep.mubr.f32.mxu1 %v8774_v45 }
 0x6c8   : > { %9672 = vmatmul.mubr.f32.vlgmr.msra.gmra.mrb[70].mxu1 %v8775_v31 }
 0x6cb   : > { %v9638_v53 = vpop.f32.mrb[68].mxu1 }
 0x6cc   : > { %v8754_v52 = vpop.f32.mrb[69].mxu1  ;;  %v8777_v36 = vadd.f32 %v9638_v53, %v9139_v34 }
 0x6cd   : > { %v8776_v1 = vadd.f32 %v9139_v34, %v8754_v52 }
 0x6cf   : > { %9674 = vmatprep.mubr.f32.mxu1 %v8776_v1 }
 0x6d0   : > { %9675 = vmatmul.mubr.f32.gmra.mrb[72].mxu1 %v8777_v36 }
 0x79b   : > { %v9673_v7 = vpop.f32.mrb[70].mxu1 }
 0x79c   : > { %v8867_v48 = vpop.f32.mrb[71].mxu1  ;;  %v8873_v61 = vadd.f32 %v9673_v7, %v9140_v60 }
 0x79d   : > { %v8868_v51 = vadd.f32 %v9140_v60, %v8867_v48 }
 0x79e   : > { %8887 = vst [vmem:[%s280_s29 + $0x8] sm:$0xff] %v8873_v61 }
 0x79f   : > { %8886 = vst [vmem:[%s280_s29] sm:$0xff] %v8868_v51 }
 0x7a3   : > { %v9676_v57 = vpop.f32.mrb[72].mxu1 }
 0x7a4   : > { %v8877_v13 = vpop.f32.mrb[73].mxu1  ;;  %v8883_v42 = vadd.f32 %v9676_v57, %v9140_v60 }
 0x7a5   : > { %v8878_v14 = vadd.f32 %v9140_v60, %v8877_v13 }
 0x7a6   : > { %8889 = vst [vmem:[%s280_s29 + $0x18] sm:$0xff] %v8883_v42 }
 0x7a7   : > { %8888 = vst [vmem:[%s280_s29 + $0x10] sm:$0xff] %v8878_v14 }
 0x7a8 PF: > { %s17_s24 = sadd.s32 1, %s10010_s24  }
 0x7a9   : > { %p14_p5 = scmp.ge.s32.totalorder %s17_s24, 4  }
 0x7ab   :  { %16 = sbr.rel (!%p14_p5) target bundleno = 1 (0x1), region = 78 }

</bundles_post_ra>
